<compile_context>
chip_gen: v7x
topology: tpu7x:2x2x1
jax: 0.10.0
libtpu: 0.0.40
codegen_flags: <defaults>
</compile_context>

<pallas_src>
import functools
import math

import jax
import jax.numpy as jnp
from jax.experimental import pallas as pl
from jax.experimental.pallas import tpu as pltpu


def _round_up(v, m):
    return (v + m - 1) // m * m


# ------------------------------ Pallas kernels -------------------------------

def conv_bn_stats_kernel(p_ref, w_ref, b_ref, y_ref, sum_ref, sq_ref, *,
                         tm, m_real, tiles_per_core):
    """Fused patch-embed conv (as matmul) + BN batch-statistic accumulation."""
    @pl.when(pl.program_id(1) == 0)
    def _():
        sum_ref[...] = jnp.zeros_like(sum_ref)
        sq_ref[...] = jnp.zeros_like(sq_ref)

    y = jnp.dot(p_ref[...], w_ref[...],
                preferred_element_type=jnp.float32) + b_ref[...]
    y_ref[...] = y

    # Mask rows that only exist because of row padding so they do not pollute stats.
    row0 = (pl.program_id(0) * tiles_per_core + pl.program_id(1)) * tm
    rid = row0 + jax.lax.broadcasted_iota(jnp.int32, (tm, 1), 0)
    yv = jnp.where(rid < m_real, y, 0.0)
    cols = yv.shape[-1]
    sum_ref[...] += jnp.sum(yv.reshape(tm // 8, 8, cols), axis=0)
    sq_ref[...] += jnp.sum((yv * yv).reshape(tm // 8, 8, cols), axis=0)


def channel_stats_kernel(x_ref, sum_ref, sq_ref, *, tm, m_real, tiles_per_core):
    """Per-channel sum / sum-of-squares over rows (BatchNorm batch statistics)."""
    @pl.when(pl.program_id(1) == 0)
    def _():
        sum_ref[...] = jnp.zeros_like(sum_ref)
        sq_ref[...] = jnp.zeros_like(sq_ref)

    row0 = (pl.program_id(0) * tiles_per_core + pl.program_id(1)) * tm
    rid = row0 + jax.lax.broadcasted_iota(jnp.int32, (tm, 1), 0)
    xv = jnp.where(rid < m_real, x_ref[...], 0.0)
    cols = xv.shape[-1]
    sum_ref[...] += jnp.sum(xv.reshape(tm // 8, 8, cols), axis=0)
    sq_ref[...] += jnp.sum((xv * xv).reshape(tm // 8, 8, cols), axis=0)


def scale_shift_kernel(x_ref, scale_ref, shift_ref, o_ref):
    """BatchNorm apply folded to one FMA: y = x*scale + shift."""
    o_ref[...] = x_ref[...] * scale_ref[...] + shift_ref[...]


def matmul_bias_kernel(x_ref, w_ref, b_ref, o_ref, *, gelu):
    """1x1 conv as a matmul (+ optional fused GELU)."""
    y = jnp.dot(x_ref[...], w_ref[...],
                preferred_element_type=jnp.float32) + b_ref[...]
    if gelu:
        # TODO(synk): PyTorch nn.GELU defaults to exact erf-GELU; tanh approximation used here.
        y = jax.nn.gelu(y, approximate=True)
    o_ref[...] = y


def dwconv_taps_kernel(taps_ref, w_ref, b_ref, o_ref, *, ntaps, gelu):
    """Depthwise conv as a per-channel weighted sum of pre-gathered spatial taps."""
    acc = jnp.zeros(o_ref.shape, jnp.float32)
    for t in range(ntaps):
        acc = acc + taps_ref[t] * w_ref[t]
    y = acc + b_ref[...]
    if gelu:
        y = jax.nn.gelu(y, approximate=True)
    o_ref[...] = y


def mul_kernel(a_ref, b_ref, o_ref):
    o_ref[...] = a_ref[...] * b_ref[...]


def residual_scale_kernel(x_ref, v_ref, s_ref, o_ref):
    """o = x + s * v  (layer-scale residual; s broadcast over rows)."""
    o_ref[...] = x_ref[...] + s_ref[...] * v_ref[...]


def layernorm_kernel(x_ref, g_ref, b_ref, o_ref, *, n_real, eps):
    x = x_ref[...]
    mean = jnp.sum(x, axis=-1, keepdims=True) / n_real
    var = jnp.maximum(jnp.sum(x * x, axis=-1, keepdims=True) / n_real - mean * mean, 0.0)
    inv = jax.lax.rsqrt(var + eps)
    o_ref[...] = (x - mean) * inv * g_ref[...] + b_ref[...]


# ------------------------------ Wrapper helpers -------------------------------

def _pad_row(v, cols):
    v = jnp.asarray(v, jnp.float32).reshape(1, -1)
    return jnp.pad(v, ((0, 0), (0, cols - v.shape[1])))


def _run_rowwise(kernel, out_cols, tiled, bcast, *, tm, mpad, vmem_limit):
    """Row-tiled pallas_call: `tiled` are (mpad, *) matrices tiled along rows,
    `bcast` inputs are kept whole (resident in VMEM)."""
    ntiles = mpad // tm
    in_specs = ([pl.BlockSpec((tm, a.shape[-1]), lambda i: (i, 0)) for a in tiled] +
                [pl.BlockSpec(a.shape, lambda i, nd=a.ndim: (0,) * nd) for a in bcast])
    return pl.pallas_call(
        kernel,
        out_shape=jax.ShapeDtypeStruct((mpad, out_cols), jnp.float32),
        grid_spec=pltpu.PrefetchScalarGridSpec(
            num_scalar_prefetch=0,
            grid=(ntiles,),
            in_specs=in_specs,
            out_specs=pl.BlockSpec((tm, out_cols), lambda i: (i, 0))),
        compiler_params=pltpu.CompilerParams(
            dimension_semantics=("parallel",),
            vmem_limit_bytes=vmem_limit),
    )(*tiled, *bcast)


# --------------------------------- Forward ------------------------------------

def block_forward(x, params, *, patch_size=7, stride=4, mlp_ratio=4.0,
                  eps=1e-5, target_tm=512):
    N, C, H, W = x.shape
    pe_w = params["pe_w"]
    E = pe_w.shape[0]
    kh = kw = patch_size
    spad0 = patch_size // 2
    Ho = (H + 2 * spad0 - kh) // stride + 1
    Wo = (W + 2 * spad0 - kw) // stride + 1
    M = N * Ho * Wo
    K = C * kh * kw
    hidden = int(E * mlp_ratio)

    # Lane-dense / MXU-aligned padded dims.
    Epad = _round_up(E, 128)
    Hpad = _round_up(hidden, 128)
    Kpad = _round_up(K, 128)
    NCORES = 2                                   # per-core stat partials (v7x megacore)
    TM = min(target_tm, _round_up(M, 8))         # large row tiles (feedback: 256-1024)
    Mpad = _round_up(M, TM * NCORES)
    ntiles = Mpad // TM
    tpc = ntiles // NCORES

    # VMEM budget for the biggest pass, clamped so it also fits v7x's 64 MiB VMEM.
    cmax = max(Epad, Hpad)
    need = max(
        2 * TM * Kpad * 2 + Kpad * Epad * 2 + 2 * TM * Epad * 4 + 32 * Epad * 4,
        2 * 49 * TM * cmax * 4 + 2 * TM * cmax * 4 + 64 * cmax * 4,
        3 * 2 * TM * cmax * 4 + cmax * cmax * 4,
    )
    vmem_limit = int(min(64 * 2 ** 20, max(32 * 2 ** 20, 2 * need)))

    # ---- OverlapPatchEmbed: im2col (glue) + fused conv+BN-stats Pallas kernel ----
    xp = jnp.pad(x, ((0, 0), (0, 0), (spad0, spad0), (spad0, spad0)))
    ii = (jnp.arange(Ho) * stride)[:, None] + jnp.arange(kh)[None, :]
    jj = (jnp.arange(Wo) * stride)[:, None] + jnp.arange(kw)[None, :]
    patches = xp[:, :, ii[:, :, None, None], jj[None, None, :, :]]   # (N,C,Ho,kh,Wo,kw)
    patches = jnp.transpose(patches, (0, 2, 4, 1, 3, 5)).reshape(M, K)
    patches = jnp.pad(patches, ((0, Mpad - M), (0, Kpad - K))).astype(jnp.bfloat16)
    # TODO(synk): build patch tiles in-kernel from an NHWC HBM ref (pl.ANY + make_async_copy)
    # to remove the kh*kw im2col HBM blow-up entirely; bf16 operands halve it for now.

    w2d = jnp.pad(pe_w.reshape(E, K).T, ((0, Kpad - K), (0, Epad - E))).astype(jnp.bfloat16)
    b2d = _pad_row(params["pe_b"], Epad)

    kern_a = functools.partial(conv_bn_stats_kernel, tm=TM, m_real=M, tiles_per_core=tpc)
    y2d, psum, psq = pl.pallas_call(
        kern_a,
        out_shape=(jax.ShapeDtypeStruct((Mpad, Epad), jnp.float32),
                   jax.ShapeDtypeStruct((NCORES * 8, Epad), jnp.float32),
                   jax.ShapeDtypeStruct((NCORES * 8, Epad), jnp.float32)),
        grid_spec=pltpu.PrefetchScalarGridSpec(
            num_scalar_prefetch=0,
            grid=(NCORES, tpc),
            in_specs=[pl.BlockSpec((TM, Kpad), lambda c, j: (c * tpc + j, 0)),
                      pl.BlockSpec((Kpad, Epad), lambda c, j: (0, 0)),
                      pl.BlockSpec((1, Epad), lambda c, j: (0, 0))],
            out_specs=(pl.BlockSpec((TM, Epad), lambda c, j: (c * tpc + j, 0)),
                       pl.BlockSpec((8, Epad), lambda c, j: (c, 0)),
                       pl.BlockSpec((8, Epad), lambda c, j: (c, 0)))),
        compiler_params=pltpu.CompilerParams(
            dimension_semantics=("parallel", "arbitrary"),
            vmem_limit_bytes=vmem_limit),
    )(patches, w2d, b2d)

    def bn_apply(x2d, csum, csq, gamma_row, beta_row):
        mean = csum / M
        # TODO(synk): E[y^2]-E[y]^2 can cancel for large activations; clamped f32 is OK here.
        var = jnp.maximum(csq / M - mean * mean, 0.0)
        inv = jax.lax.rsqrt(var + eps)
        scale = gamma_row * inv
        shift = beta_row - mean * scale
        return _run_rowwise(scale_shift_kernel, x2d.shape[-1], [x2d], [scale, shift],
                            tm=TM, mpad=Mpad, vmem_limit=vmem_limit)

    # TODO(synk): PyTorch BatchNorm2d (train) also updates running stats; not modeled (forward-only).
    x0 = bn_apply(y2d,
                  jnp.sum(psum, axis=0, keepdims=True),
                  jnp.sum(psq, axis=0, keepdims=True),
                  _pad_row(params["pe_gamma"], Epad),
                  _pad_row(params["pe_beta"], Epad))

    # ------------------------------ block helpers ------------------------------
    def channel_stats(x2d):
        cols = x2d.shape[-1]
        kern = functools.partial(channel_stats_kernel, tm=TM, m_real=M, tiles_per_core=tpc)
        s, q = pl.pallas_call(
            kern,
            out_shape=(jax.ShapeDtypeStruct((NCORES * 8, cols), jnp.float32),
                       jax.ShapeDtypeStruct((NCORES * 8, cols), jnp.float32)),
            grid_spec=pltpu.PrefetchScalarGridSpec(
                num_scalar_prefetch=0,
                grid=(NCORES, tpc),
                in_specs=[pl.BlockSpec((TM, cols), lambda c, j: (c * tpc + j, 0))],
                out_specs=(pl.BlockSpec((8, cols), lambda c, j: (c, 0)),
                           pl.BlockSpec((8, cols), lambda c, j: (c, 0)))),
            compiler_params=pltpu.CompilerParams(
                dimension_semantics=("parallel", "arbitrary"),
                vmem_limit_bytes=vmem_limit),
        )(x2d)
        return jnp.sum(s, axis=0, keepdims=True), jnp.sum(q, axis=0, keepdims=True)

    def batchnorm(x2d, gamma_row, beta_row):
        s, q = channel_stats(x2d)
        return bn_apply(x2d, s, q, gamma_row, beta_row)

    def conv1x1(x2d, w_p, b_row, gelu=False):
        kern = functools.partial(matmul_bias_kernel, gelu=gelu)
        return _run_rowwise(kern, w_p.shape[-1], [x2d], [w_p, b_row],
                            tm=TM, mpad=Mpad, vmem_limit=vmem_limit)

    def dwconv(x2d, w_taps, b_row, ksize, dil, spad, gelu=False):
        cols = x2d.shape[-1]
        x4 = x2d[:M].reshape(N, Ho, Wo, cols)
        xp4 = jnp.pad(x4, ((0, 0), (spad, spad), (spad, spad), (0, 0)))
        taps = [xp4[:, ky * dil:ky * dil + Ho, kx * dil:kx * dil + Wo, :]
                for ky in range(ksize) for kx in range(ksize)]
        T = ksize * ksize
        taps = jnp.stack(taps, axis=0).reshape(T, M, cols)
        taps = jnp.pad(taps, ((0, 0), (0, Mpad - M), (0, 0)))
        # TODO(synk): gather taps in-kernel (pl.ANY HBM ref + DMA) instead of this k^2 read blow-up.
        kern = functools.partial(dwconv_taps_kernel, ntaps=T, gelu=gelu)
        return pl.pallas_call(
            kern,
            out_shape=jax.ShapeDtypeStruct((Mpad, cols), jnp.float32),
            grid_spec=pltpu.PrefetchScalarGridSpec(
                num_scalar_prefetch=0,
                grid=(ntiles,),
                in_specs=[pl.BlockSpec((T, TM, cols), lambda i: (0, i, 0)),
                          pl.BlockSpec((T, 1, cols), lambda i: (0, 0, 0)),
                          pl.BlockSpec((1, cols), lambda i: (0, 0))],
                out_specs=pl.BlockSpec((TM, cols), lambda i: (i, 0))),
            compiler_params=pltpu.CompilerParams(
                dimension_semantics=("parallel",),
                vmem_limit_bytes=vmem_limit),
        )(taps, w_taps, b_row)

    def pad_1x1(w_conv, cin_pad, cout_pad):
        co, ci = w_conv.shape[0], w_conv.shape[1]
        w2 = w_conv.reshape(co, ci).T
        return jnp.pad(w2, ((0, cin_pad - ci), (0, cout_pad - co))).astype(jnp.float32)

    def pad_dw(w_conv, cpad):
        c, _, kh_, kw_ = w_conv.shape
        wt = jnp.pad(w_conv.reshape(c, kh_ * kw_).T, ((0, 0), (0, cpad - c)))
        return wt.reshape(kh_ * kw_, 1, cpad).astype(jnp.float32)

    ones_row = jnp.ones((1, Epad), jnp.float32)

    def elem(kern, out_cols, tiled, bcast):
        return _run_rowwise(kern, out_cols, tiled, bcast,
                            tm=TM, mpad=Mpad, vmem_limit=vmem_limit)

    # ------------------------------ ConvBlock stack -----------------------------
    # Dropout / DropPath are identity at p=0.0.
    xc = x0
    for bp in params["blocks"]:
        # x = x + ls1 * KernalAttention(BN(x))
        xn1 = batchnorm(xc, _pad_row(bp["n1_g"], Epad), _pad_row(bp["n1_b"], Epad))
        u = conv1x1(xn1, pad_1x1(bp["p1_w"], Epad, Epad), _pad_row(bp["p1_b"], Epad), gelu=True)
        a = dwconv(u, pad_dw(bp["lka0_w"], Epad), _pad_row(bp["lka0_b"], Epad), 5, 1, 2)
        a = dwconv(a, pad_dw(bp["lkas_w"], Epad), _pad_row(bp["lkas_b"], Epad), 7, 3, 9)
        a = conv1x1(a, pad_1x1(bp["lka1_w"], Epad, Epad), _pad_row(bp["lka1_b"], Epad))
        a = elem(mul_kernel, Epad, [u, a], [])                          # LKA gating: u * attn
        a = conv1x1(a, pad_1x1(bp["p2_w"], Epad, Epad), _pad_row(bp["p2_b"], Epad))
        a = elem(residual_scale_kernel, Epad, [xn1, a], [ones_row])     # + shortcut inside attention
        xc = elem(residual_scale_kernel, Epad, [xc, a], [_pad_row(bp["ls1"], Epad)])

        # x = x + ls2 * Mlp(BN(x))
        xn2 = batchnorm(xc, _pad_row(bp["n2_g"], Epad), _pad_row(bp["n2_b"], Epad))
        h = conv1x1(xn2, pad_1x1(bp["fc1_w"], Epad, Hpad), _pad_row(bp["fc1_b"], Hpad))
        h = dwconv(h, pad_dw(bp["dw_w"], Hpad), _pad_row(bp["dw_b"], Hpad), 3, 1, 1, gelu=True)
        m = conv1x1(h, pad_1x1(bp["fc2_w"], Hpad, Epad), _pad_row(bp["fc2_b"], Epad))
        xc = elem(residual_scale_kernel, Epad, [xc, m], [_pad_row(bp["ls2"], Epad)])

    # ------------------------- final LayerNorm + layout -------------------------
    kern_ln = functools.partial(layernorm_kernel, n_real=E, eps=eps)
    xln = elem(kern_ln, Epad, [xc], [_pad_row(params["ln_g"], Epad),
                                     _pad_row(params["ln_b"], Epad)])
    y = xln[:M, :E].reshape(N, Ho, Wo, E)
    return jnp.transpose(y, (0, 3, 1, 2))        # NCHW, as Block.forward returns


# -------------------------------- Parameters -----------------------------------

def init_block_params(key, inp, oup, patch_size, mlp_ratio, depth):
    hidden = int(oup * mlp_ratio)
    keys = jax.random.split(key, 8 * depth + 1)

    def conv_w(k, shape, fan_out):
        return jax.random.normal(k, shape, jnp.float32) * math.sqrt(2.0 / fan_out)

    params = {
        "pe_w": conv_w(keys[0], (oup, inp, patch_size, patch_size),
                       patch_size * patch_size * oup),
        "pe_b": jnp.zeros((oup,), jnp.float32),
        "pe_gamma": jnp.ones((oup,), jnp.float32),
        "pe_beta": jnp.zeros((oup,), jnp.float32),
        "ln_g": jnp.ones((oup,), jnp.float32),
        "ln_b": jnp.zeros((oup,), jnp.float32),
        "blocks": [],
    }
    ki = 1
    for _ in range(depth):
        bp = {
            "n1_g": jnp.ones((oup,), jnp.float32),
            "n1_b": jnp.zeros((oup,), jnp.float32),
            "p1_w": conv_w(keys[ki + 0], (oup, oup, 1, 1), oup),
            "p1_b": jnp.zeros((oup,), jnp.float32),
            "lka0_w": conv_w(keys[ki + 1], (oup, 1, 5, 5), 25),
            "lka0_b": jnp.zeros((oup,), jnp.float32),
            "lkas_w": conv_w(keys[ki + 2], (oup, 1, 7, 7), 49),
            "lkas_b": jnp.zeros((oup,), jnp.float32),
            "lka1_w": conv_w(keys[ki + 3], (oup, oup, 1, 1), oup),
            "lka1_b": jnp.zeros((oup,), jnp.float32),
            "p2_w": conv_w(keys[ki + 4], (oup, oup, 1, 1), oup),
            "p2_b": jnp.zeros((oup,), jnp.float32),
            "ls1": 0.01 * jnp.ones((oup,), jnp.float32),
            "n2_g": jnp.ones((oup,), jnp.float32),
            "n2_b": jnp.zeros((oup,), jnp.float32),
            "fc1_w": conv_w(keys[ki + 5], (hidden, oup, 1, 1), hidden),
            "fc1_b": jnp.zeros((hidden,), jnp.float32),
            "dw_w": conv_w(keys[ki + 6], (hidden, 1, 3, 3), 9),
            "dw_b": jnp.zeros((hidden,), jnp.float32),
            "fc2_w": conv_w(keys[ki + 7], (oup, hidden, 1, 1), oup),
            "fc2_b": jnp.zeros((oup,), jnp.float32),
            "ls2": 0.01 * jnp.ones((oup,), jnp.float32),
        }
        params["blocks"].append(bp)
        ki += 8
    return params


# ----------------------------------- Main ---------------------------------------

if __name__ == "__main__":
    N, C, H, W = 2, 3, 16, 16
    oup = 32
    patch_size, stride = 7, 4
    mlp_ratio = 4.0
    depth = 1

    key = jax.random.PRNGKey(0)
    kx, kp = jax.random.split(key)
    x = jax.random.normal(kx, (N, C, H, W), jnp.float32)
    params = init_block_params(kp, C, oup, patch_size, mlp_ratio, depth)

    fwd = jax.jit(functools.partial(block_forward, patch_size=patch_size,
                                    stride=stride, mlp_ratio=mlp_ratio))
    y = jax.block_until_ready(fwd(x, params))

    Ho = (H + 2 * (patch_size // 2) - patch_size) // stride + 1
    Wo = (W + 2 * (patch_size // 2) - patch_size) // stride + 1
    assert y.shape == (N, oup, Ho, Wo), y.shape
    assert bool(jnp.all(jnp.isfinite(y))), "non-finite values in output"
    print("KERNEL_OK")
</pallas_src>

<mosaic_0001>
module attributes {stable_mosaic.version = 11 : i64} {
  func.func @scale_shift_kernel(%arg0: i32, %arg1: memref<32x128xf32, #tpu.memory_space<vmem>>, %arg2: memref<1x128xf32, #tpu.memory_space<vmem>>, %arg3: memref<1x128xf32, #tpu.memory_space<vmem>>, %arg4: memref<32x128xf32, #tpu.memory_space<vmem>>) attributes {dimension_semantics = [#tpu.dimension_semantics<parallel>], iteration_bounds = array<i64: 2>, scalar_prefetch = 0 : i64, scratch_operands = 0 : i64, tpu.core_type = #tpu.core_type<tc>, window_params = [{transform_indices = @transform_0, window_bounds = array<i64: 32, 128>}, {pipeline_mode = #tpu.pipeline_mode<synchronous>, transform_indices = @transform_1, window_bounds = array<i64: 1, 128>}, {pipeline_mode = #tpu.pipeline_mode<synchronous>, transform_indices = @transform_2, window_bounds = array<i64: 1, 128>}, {transform_indices = @transform_3, window_bounds = array<i64: 32, 128>}]} {
    %c0 = arith.constant 0 : index
    %c0_0 = arith.constant 0 : index
    %0 = vector.load %arg1[%c0, %c0_0] : memref<32x128xf32, #tpu.memory_space<vmem>>, vector<32x128xf32>
    %c0_1 = arith.constant 0 : index
    %c0_2 = arith.constant 0 : index
    %1 = vector.load %arg2[%c0_1, %c0_2] : memref<1x128xf32, #tpu.memory_space<vmem>>, vector<1x128xf32>
    %2 = vector.broadcast %1 : vector<1x128xf32> to vector<32x128xf32>
    %3 = arith.mulf %0, %2 : vector<32x128xf32>
    %c0_3 = arith.constant 0 : index
    %c0_4 = arith.constant 0 : index
    %4 = vector.load %arg3[%c0_3, %c0_4] : memref<1x128xf32, #tpu.memory_space<vmem>>, vector<1x128xf32>
    %5 = vector.broadcast %4 : vector<1x128xf32> to vector<32x128xf32>
    %6 = arith.addf %3, %5 : vector<32x128xf32>
    %c0_5 = arith.constant 0 : index
    %c0_6 = arith.constant 0 : index
    %7 = vector.load %arg4[%c0_5, %c0_6] : memref<32x128xf32, #tpu.memory_space<vmem>>, vector<32x128xf32>
    tpu.vector_store %arg4[%c0_5, %c0_6], %6 {strides = array<i32>} : memref<32x128xf32, #tpu.memory_space<vmem>>, vector<32x128xf32>,
    return
  }
  func.func @transform_0(%arg0: i32) -> (i32, i32) {
    %c0_i32 = arith.constant 0 : i32
    %c0_i32_0 = arith.constant 0 : i32
    return %arg0, %c0_i32 : i32, i32
  }
  func.func @transform_1(%arg0: i32) -> (i32, i32) {
    %c0_i32 = arith.constant 0 : i32
    %c0_i32_0 = arith.constant 0 : i32
    %c0_i32_1 = arith.constant 0 : i32
    return %c0_i32, %c0_i32_0 : i32, i32
  }
  func.func @transform_2(%arg0: i32) -> (i32, i32) {
    %c0_i32 = arith.constant 0 : i32
    %c0_i32_0 = arith.constant 0 : i32
    %c0_i32_1 = arith.constant 0 : i32
    return %c0_i32, %c0_i32_0 : i32, i32
  }
  func.func @transform_3(%arg0: i32) -> (i32, i32) {
    %c0_i32 = arith.constant 0 : i32
    %c0_i32_0 = arith.constant 0 : i32
    return %arg0, %c0_i32 : i32, i32
  }
}

module attributes {stable_mosaic.version = 11 : i64} {
  func.func @channel_stats_kernel(%arg0: i32, %arg1: i32, %arg2: memref<32x128xf32, #tpu.memory_space<vmem>>, %arg3: memref<8x128xf32, #tpu.memory_space<vmem>>, %arg4: memref<8x128xf32, #tpu.memory_space<vmem>>) attributes {dimension_semantics = [#tpu.dimension_semantics<parallel>, #tpu.dimension_semantics<arbitrary>], iteration_bounds = array<i64: 2, 1>, scalar_prefetch = 0 : i64, scratch_operands = 0 : i64, tpu.core_type = #tpu.core_type<tc>, window_params = [{transform_indices = @transform_0, window_bounds = array<i64: 32, 128>}, {transform_indices = @transform_1, window_bounds = array<i64: 8, 128>}, {transform_indices = @transform_2, window_bounds = array<i64: 8, 128>}]} {
    %c0_i32 = arith.constant 0 : i32
    %0 = arith.cmpi eq, %arg1, %c0_i32 : i32
    %1 = arith.extui %0 : i1 to i32
    %c0_i32_0 = arith.constant 0 : i32
    %2 = arith.cmpi ne, %1, %c0_i32_0 : i32
    scf.if %2 {
      %cst_13 = arith.constant 0.000000e+00 : f32
      %27 = vector.broadcast %cst_13 : f32 to vector<8x128xf32>
      %c0_14 = arith.constant 0 : index
      %c0_15 = arith.constant 0 : index
      %28 = vector.load %arg3[%c0_14, %c0_15] : memref<8x128xf32, #tpu.memory_space<vmem>>, vector<8x128xf32>
      tpu.vector_store %arg3[%c0_14, %c0_15], %27 {strides = array<i32>} : memref<8x128xf32, #tpu.memory_space<vmem>>, vector<8x128xf32>,
      %cst_16 = arith.constant 0.000000e+00 : f32
      %29 = vector.broadcast %cst_16 : f32 to vector<8x128xf32>
      %c0_17 = arith.constant 0 : index
      %c0_18 = arith.constant 0 : index
      %30 = vector.load %arg4[%c0_17, %c0_18] : memref<8x128xf32, #tpu.memory_space<vmem>>, vector<8x128xf32>
      tpu.vector_store %arg4[%c0_17, %c0_18], %29 {strides = array<i32>} : memref<8x128xf32, #tpu.memory_space<vmem>>, vector<8x128xf32>,
    } else {
    }
    %c1_i32 = arith.constant 1 : i32
    %3 = arith.muli %arg0, %c1_i32 : i32
    %4 = arith.addi %3, %arg1 : i32
    %c32_i32 = arith.constant 32 : i32
    %5 = arith.muli %4, %c32_i32 : i32
    %6 = tpu.iota {dimensions = array<i32: 0>} : vector<32x1xi32>
    %7 = vector.broadcast %5 : i32 to vector<32x1xi32>
    %8 = arith.addi %7, %6 : vector<32x1xi32>
    %c32_i32_1 = arith.constant 32 : i32
    %9 = vector.broadcast %c32_i32_1 : i32 to vector<32x1xi32>
    %10 = arith.cmpi slt, %8, %9 : vector<32x1xi32>
    %c0 = arith.constant 0 : index
    %c0_2 = arith.constant 0 : index
    %11 = vector.load %arg2[%c0, %c0_2] : memref<32x128xf32, #tpu.memory_space<vmem>>, vector<32x128xf32>
    %cst = arith.constant 0.000000e+00 : f32
    %12 = vector.shape_cast %10 : vector<32x1xi1> to vector<32x1xi1>
    %13 = vector.broadcast %12 : vector<32x1xi1> to vector<32x128xi1>
    %14 = vector.broadcast %cst : f32 to vector<32x128xf32>
    %15 = arith.select %13, %11, %14 : vector<32x128xi1>, vector<32x128xf32>
    %c0_3 = arith.constant 0 : index
    %c0_4 = arith.constant 0 : index
    %16 = vector.load %arg3[%c0_3, %c0_4] : memref<8x128xf32, #tpu.memory_space<vmem>>, vector<8x128xf32>
    %17 = vector.shape_cast %15 : vector<32x128xf32> to vector<4x8x128xf32>
    %cst_5 = arith.constant dense<0.000000e+00> : vector<8x128xf32>
    %18 = vector.multi_reduction <add>, %17, %cst_5 [0] : vector<4x8x128xf32> to vector<8x128xf32>
    %19 = arith.addf %16, %18 : vector<8x128xf32>
    %c0_6 = arith.constant 0 : index
    %c0_7 = arith.constant 0 : index
    %20 = vector.load %arg3[%c0_6, %c0_7] : memref<8x128xf32, #tpu.memory_space<vmem>>, vector<8x128xf32>
    tpu.vector_store %arg3[%c0_6, %c0_7], %19 {strides = array<i32>} : memref<8x128xf32, #tpu.memory_space<vmem>>, vector<8x128xf32>,
    %c0_8 = arith.constant 0 : index
    %c0_9 = arith.constant 0 : index
    %21 = vector.load %arg4[%c0_8, %c0_9] : memref<8x128xf32, #tpu.memory_space<vmem>>, vector<8x128xf32>
    %22 = arith.mulf %15, %15 : vector<32x128xf32>
    %23 = vector.shape_cast %22 : vector<32x128xf32> to vector<4x8x128xf32>
    %cst_10 = arith.constant dense<0.000000e+00> : vector<8x128xf32>
    %24 = vector.multi_reduction <add>, %23, %cst_10 [0] : vector<4x8x128xf32> to vector<8x128xf32>
    %25 = arith.addf %21, %24 : vector<8x128xf32>
    %c0_11 = arith.constant 0 : index
    %c0_12 = arith.constant 0 : index
    %26 = vector.load %arg4[%c0_11, %c0_12] : memref<8x128xf32, #tpu.memory_space<vmem>>, vector<8x128xf32>
    tpu.vector_store %arg4[%c0_11, %c0_12], %25 {strides = array<i32>} : memref<8x128xf32, #tpu.memory_space<vmem>>, vector<8x128xf32>,
    return
  }
  func.func @transform_0(%arg0: i32, %arg1: i32) -> (i32, i32) {
    %c1_i32 = arith.constant 1 : i32
    %0 = arith.muli %arg0, %c1_i32 : i32
    %1 = arith.addi %0, %arg1 : i32
    %c0_i32 = arith.constant 0 : i32
    %c0_i32_0 = arith.constant 0 : i32
    return %1, %c0_i32 : i32, i32
  }
  func.func @transform_1(%arg0: i32, %arg1: i32) -> (i32, i32) {
    %c0_i32 = arith.constant 0 : i32
    %c0_i32_0 = arith.constant 0 : i32
    return %arg0, %c0_i32 : i32, i32
  }
  func.func @transform_2(%arg0: i32, %arg1: i32) -> (i32, i32) {
    %c0_i32 = arith.constant 0 : i32
    %c0_i32_0 = arith.constant 0 : i32
    return %arg0, %c0_i32 : i32, i32
  }
}

module attributes {stable_mosaic.version = 11 : i64} {
  func.func @conv_bn_stats_kernel(%arg0: i32, %arg1: i32, %arg2: memref<32x256xbf16, #tpu.memory_space<vmem>>, %arg3: memref<256x128xbf16, #tpu.memory_space<vmem>>, %arg4: memref<1x128xf32, #tpu.memory_space<vmem>>, %arg5: memref<32x128xf32, #tpu.memory_space<vmem>>, %arg6: memref<8x128xf32, #tpu.memory_space<vmem>>, %arg7: memref<8x128xf32, #tpu.memory_space<vmem>>) attributes {dimension_semantics = [#tpu.dimension_semantics<parallel>, #tpu.dimension_semantics<arbitrary>], iteration_bounds = array<i64: 2, 1>, scalar_prefetch = 0 : i64, scratch_operands = 0 : i64, tpu.core_type = #tpu.core_type<tc>, window_params = [{transform_indices = @transform_0, window_bounds = array<i64: 32, 256>}, {pipeline_mode = #tpu.pipeline_mode<synchronous>, transform_indices = @transform_1, window_bounds = array<i64: 256, 128>}, {pipeline_mode = #tpu.pipeline_mode<synchronous>, transform_indices = @transform_2, window_bounds = array<i64: 1, 128>}, {transform_indices = @transform_3, window_bounds = array<i64: 32, 128>}, {transform_indices = @transform_4, window_bounds = array<i64: 8, 128>}, {transform_indices = @transform_5, window_bounds = array<i64: 8, 128>}]} {
    %c0_i32 = arith.constant 0 : i32
    %0 = arith.cmpi eq, %arg1, %c0_i32 : i32
    %1 = arith.extui %0 : i1 to i32
    %c0_i32_0 = arith.constant 0 : i32
    %2 = arith.cmpi ne, %1, %c0_i32_0 : i32
    scf.if %2 {
      %cst_20 = arith.constant 0.000000e+00 : f32
      %33 = vector.broadcast %cst_20 : f32 to vector<8x128xf32>
      %c0_21 = arith.constant 0 : index
      %c0_22 = arith.constant 0 : index
      %34 = vector.load %arg6[%c0_21, %c0_22] : memref<8x128xf32, #tpu.memory_space<vmem>>, vector<8x128xf32>
      tpu.vector_store %arg6[%c0_21, %c0_22], %33 {strides = array<i32>} : memref<8x128xf32, #tpu.memory_space<vmem>>, vector<8x128xf32>,
      %cst_23 = arith.constant 0.000000e+00 : f32
      %35 = vector.broadcast %cst_23 : f32 to vector<8x128xf32>
      %c0_24 = arith.constant 0 : index
      %c0_25 = arith.constant 0 : index
      %36 = vector.load %arg7[%c0_24, %c0_25] : memref<8x128xf32, #tpu.memory_space<vmem>>, vector<8x128xf32>
      tpu.vector_store %arg7[%c0_24, %c0_25], %35 {strides = array<i32>} : memref<8x128xf32, #tpu.memory_space<vmem>>, vector<8x128xf32>,
    } else {
    }
    %c0 = arith.constant 0 : index
    %c0_1 = arith.constant 0 : index
    %3 = vector.load %arg2[%c0, %c0_1] : memref<32x256xbf16, #tpu.memory_space<vmem>>, vector<32x256xbf16>
    %c0_2 = arith.constant 0 : index
    %c0_3 = arith.constant 0 : index
    %4 = vector.load %arg3[%c0_2, %c0_3] : memref<256x128xbf16, #tpu.memory_space<vmem>>, vector<256x128xbf16>
    %cst = arith.constant dense<0.000000e+00> : vector<32x128xf32>
    %5 = tpu.matmul %3, %4, %cst {dimension_numbers = #tpu.dot_dimension_numbers<[1], [0], [0], [1], [0, 0, 1, 1], [], []>} : vector<32x256xbf16>, vector<256x128xbf16>, vector<32x128xf32> -> vector<32x128xf32>
    %c0_4 = arith.constant 0 : index
    %c0_5 = arith.constant 0 : index
    %6 = vector.load %arg4[%c0_4, %c0_5] : memref<1x128xf32, #tpu.memory_space<vmem>>, vector<1x128xf32>
    %7 = vector.broadcast %6 : vector<1x128xf32> to vector<32x128xf32>
    %8 = arith.addf %5, %7 : vector<32x128xf32>
    %c0_6 = arith.constant 0 : index
    %c0_7 = arith.constant 0 : index
    %9 = vector.load %arg5[%c0_6, %c0_7] : memref<32x128xf32, #tpu.memory_space<vmem>>, vector<32x128xf32>
    tpu.vector_store %arg5[%c0_6, %c0_7], %8 {strides = array<i32>} : memref<32x128xf32, #tpu.memory_space<vmem>>, vector<32x128xf32>,
    %c1_i32 = arith.constant 1 : i32
    %10 = arith.muli %arg0, %c1_i32 : i32
    %11 = arith.addi %10, %arg1 : i32
    %c32_i32 = arith.constant 32 : i32
    %12 = arith.muli %11, %c32_i32 : i32
    %13 = tpu.iota {dimensions = array<i32: 0>} : vector<32x1xi32>
    %14 = vector.broadcast %12 : i32 to vector<32x1xi32>
    %15 = arith.addi %14, %13 : vector<32x1xi32>
    %c32_i32_8 = arith.constant 32 : i32
    %16 = vector.broadcast %c32_i32_8 : i32 to vector<32x1xi32>
    %17 = arith.cmpi slt, %15, %16 : vector<32x1xi32>
    %cst_9 = arith.constant 0.000000e+00 : f32
    %18 = vector.shape_cast %17 : vector<32x1xi1> to vector<32x1xi1>
    %19 = vector.broadcast %18 : vector<32x1xi1> to vector<32x128xi1>
    %20 = vector.broadcast %cst_9 : f32 to vector<32x128xf32>
    %21 = arith.select %19, %8, %20 : vector<32x128xi1>, vector<32x128xf32>
    %c0_10 = arith.constant 0 : index
    %c0_11 = arith.constant 0 : index
    %22 = vector.load %arg6[%c0_10, %c0_11] : memref<8x128xf32, #tpu.memory_space<vmem>>, vector<8x128xf32>
    %23 = vector.shape_cast %21 : vector<32x128xf32> to vector<4x8x128xf32>
    %cst_12 = arith.constant dense<0.000000e+00> : vector<8x128xf32>
    %24 = vector.multi_reduction <add>, %23, %cst_12 [0] : vector<4x8x128xf32> to vector<8x128xf32>
    %25 = arith.addf %22, %24 : vector<8x128xf32>
    %c0_13 = arith.constant 0 : index
    %c0_14 = arith.constant 0 : index
    %26 = vector.load %arg6[%c0_13, %c0_14] : memref<8x128xf32, #tpu.memory_space<vmem>>, vector<8x128xf32>
    tpu.vector_store %arg6[%c0_13, %c0_14], %25 {strides = array<i32>} : memref<8x128xf32, #tpu.memory_space<vmem>>, vector<8x128xf32>,
    %c0_15 = arith.constant 0 : index
    %c0_16 = arith.constant 0 : index
    %27 = vector.load %arg7[%c0_15, %c0_16] : memref<8x128xf32, #tpu.memory_space<vmem>>, vector<8x128xf32>
    %28 = arith.mulf %21, %21 : vector<32x128xf32>
    %29 = vector.shape_cast %28 : vector<32x128xf32> to vector<4x8x128xf32>
    %cst_17 = arith.constant dense<0.000000e+00> : vector<8x128xf32>
    %30 = vector.multi_reduction <add>, %29, %cst_17 [0] : vector<4x8x128xf32> to vector<8x128xf32>
    %31 = arith.addf %27, %30 : vector<8x128xf32>
    %c0_18 = arith.constant 0 : index
    %c0_19 = arith.constant 0 : index
    %32 = vector.load %arg7[%c0_18, %c0_19] : memref<8x128xf32, #tpu.memory_space<vmem>>, vector<8x128xf32>
    tpu.vector_store %arg7[%c0_18, %c0_19], %31 {strides = array<i32>} : memref<8x128xf32, #tpu.memory_space<vmem>>, vector<8x128xf32>,
    return
  }
  func.func @transform_0(%arg0: i32, %arg1: i32) -> (i32, i32) {
    %c1_i32 = arith.constant 1 : i32
    %0 = arith.muli %arg0, %c1_i32 : i32
    %1 = arith.addi %0, %arg1 : i32
    %c0_i32 = arith.constant 0 : i32
    %c0_i32_0 = arith.constant 0 : i32
    return %1, %c0_i32 : i32, i32
  }
  func.func @transform_1(%arg0: i32, %arg1: i32) -> (i32, i32) {
    %c0_i32 = arith.constant 0 : i32
    %c0_i32_0 = arith.constant 0 : i32
    %c0_i32_1 = arith.constant 0 : i32
    return %c0_i32, %c0_i32_0 : i32, i32
  }
  func.func @transform_2(%arg0: i32, %arg1: i32) -> (i32, i32) {
    %c0_i32 = arith.constant 0 : i32
    %c0_i32_0 = arith.constant 0 : i32
    %c0_i32_1 = arith.constant 0 : i32
    return %c0_i32, %c0_i32_0 : i32, i32
  }
  func.func @transform_3(%arg0: i32, %arg1: i32) -> (i32, i32) {
    %c1_i32 = arith.constant 1 : i32
    %0 = arith.muli %arg0, %c1_i32 : i32
    %1 = arith.addi %0, %arg1 : i32
    %c0_i32 = arith.constant 0 : i32
    %c0_i32_0 = arith.constant 0 : i32
    return %1, %c0_i32 : i32, i32
  }
  func.func @transform_4(%arg0: i32, %arg1: i32) -> (i32, i32) {
    %c0_i32 = arith.constant 0 : i32
    %c0_i32_0 = arith.constant 0 : i32
    return %arg0, %c0_i32 : i32, i32
  }
  func.func @transform_5(%arg0: i32, %arg1: i32) -> (i32, i32) {
    %c0_i32 = arith.constant 0 : i32
    %c0_i32_0 = arith.constant 0 : i32
    return %arg0, %c0_i32 : i32, i32
  }
}

module attributes {stable_mosaic.version = 11 : i64} {
  func.func @matmul_bias_kernel(%arg0: i32, %arg1: memref<32x128xf32, #tpu.memory_space<vmem>>, %arg2: memref<128x128xf32, #tpu.memory_space<vmem>>, %arg3: memref<1x128xf32, #tpu.memory_space<vmem>>, %arg4: memref<32x128xf32, #tpu.memory_space<vmem>>) attributes {dimension_semantics = [#tpu.dimension_semantics<parallel>], iteration_bounds = array<i64: 2>, scalar_prefetch = 0 : i64, scratch_operands = 0 : i64, tpu.core_type = #tpu.core_type<tc>, window_params = [{transform_indices = @transform_0, window_bounds = array<i64: 32, 128>}, {pipeline_mode = #tpu.pipeline_mode<synchronous>, transform_indices = @transform_1, window_bounds = array<i64: 128, 128>}, {pipeline_mode = #tpu.pipeline_mode<synchronous>, transform_indices = @transform_2, window_bounds = array<i64: 1, 128>}, {transform_indices = @transform_3, window_bounds = array<i64: 32, 128>}]} {
    %c0 = arith.constant 0 : index
    %c0_0 = arith.constant 0 : index
    %0 = vector.load %arg1[%c0, %c0_0] : memref<32x128xf32, #tpu.memory_space<vmem>>, vector<32x128xf32>
    %c0_1 = arith.constant 0 : index
    %c0_2 = arith.constant 0 : index
    %1 = vector.load %arg2[%c0_1, %c0_2] : memref<128x128xf32, #tpu.memory_space<vmem>>, vector<128x128xf32>
    %cst = arith.constant dense<0.000000e+00> : vector<32x128xf32>
    %2 = tpu.matmul %0, %1, %cst {dimension_numbers = #tpu.dot_dimension_numbers<[1], [0], [0], [1], [0, 0, 1, 1], [], []>} : vector<32x128xf32>, vector<128x128xf32>, vector<32x128xf32> -> vector<32x128xf32>
    %c0_3 = arith.constant 0 : index
    %c0_4 = arith.constant 0 : index
    %3 = vector.load %arg3[%c0_3, %c0_4] : memref<1x128xf32, #tpu.memory_space<vmem>>, vector<1x128xf32>
    %4 = vector.broadcast %3 : vector<1x128xf32> to vector<32x128xf32>
    %5 = arith.addf %2, %4 : vector<32x128xf32>
    %6 = arith.mulf %5, %5 : vector<32x128xf32>
    %7 = arith.mulf %5, %6 : vector<32x128xf32>
    %cst_5 = arith.constant 4.471500e-02 : f32
    %8 = vector.broadcast %cst_5 : f32 to vector<32x128xf32>
    %9 = arith.mulf %8, %7 : vector<32x128xf32>
    %10 = arith.addf %5, %9 : vector<32x128xf32>
    %cst_6 = arith.constant 0.797884583 : f32
    %11 = vector.broadcast %cst_6 : f32 to vector<32x128xf32>
    %12 = arith.mulf %11, %10 : vector<32x128xf32>
    %13 = math.tanh %12 : vector<32x128xf32>
    %cst_7 = arith.constant 1.000000e+00 : f32
    %14 = vector.broadcast %cst_7 : f32 to vector<32x128xf32>
    %15 = arith.addf %14, %13 : vector<32x128xf32>
    %cst_8 = arith.constant 5.000000e-01 : f32
    %16 = vector.broadcast %cst_8 : f32 to vector<32x128xf32>
    %17 = arith.mulf %16, %15 : vector<32x128xf32>
    %18 = arith.mulf %5, %17 : vector<32x128xf32>
    %c0_9 = arith.constant 0 : index
    %c0_10 = arith.constant 0 : index
    %19 = vector.load %arg4[%c0_9, %c0_10] : memref<32x128xf32, #tpu.memory_space<vmem>>, vector<32x128xf32>
    tpu.vector_store %arg4[%c0_9, %c0_10], %18 {strides = array<i32>} : memref<32x128xf32, #tpu.memory_space<vmem>>, vector<32x128xf32>,
    return
  }
  func.func @transform_0(%arg0: i32) -> (i32, i32) {
    %c0_i32 = arith.constant 0 : i32
    %c0_i32_0 = arith.constant 0 : i32
    return %arg0, %c0_i32 : i32, i32
  }
  func.func @transform_1(%arg0: i32) -> (i32, i32) {
    %c0_i32 = arith.constant 0 : i32
    %c0_i32_0 = arith.constant 0 : i32
    %c0_i32_1 = arith.constant 0 : i32
    return %c0_i32, %c0_i32_0 : i32, i32
  }
  func.func @transform_2(%arg0: i32) -> (i32, i32) {
    %c0_i32 = arith.constant 0 : i32
    %c0_i32_0 = arith.constant 0 : i32
    %c0_i32_1 = arith.constant 0 : i32
    return %c0_i32, %c0_i32_0 : i32, i32
  }
  func.func @transform_3(%arg0: i32) -> (i32, i32) {
    %c0_i32 = arith.constant 0 : i32
    %c0_i32_0 = arith.constant 0 : i32
    return %arg0, %c0_i32 : i32, i32
  }
}

module attributes {stable_mosaic.version = 11 : i64} {
  func.func @dwconv_taps_kernel(%arg0: i32, %arg1: memref<25x32x128xf32, #tpu.memory_space<vmem>>, %arg2: memref<25x1x128xf32, #tpu.memory_space<vmem>>, %arg3: memref<1x128xf32, #tpu.memory_space<vmem>>, %arg4: memref<32x128xf32, #tpu.memory_space<vmem>>) attributes {dimension_semantics = [#tpu.dimension_semantics<parallel>], iteration_bounds = array<i64: 2>, scalar_prefetch = 0 : i64, scratch_operands = 0 : i64, tpu.core_type = #tpu.core_type<tc>, window_params = [{transform_indices = @transform_0, window_bounds = array<i64: 25, 32, 128>}, {pipeline_mode = #tpu.pipeline_mode<synchronous>, transform_indices = @transform_1, window_bounds = array<i64: 25, 1, 128>}, {pipeline_mode = #tpu.pipeline_mode<synchronous>, transform_indices = @transform_2, window_bounds = array<i64: 1, 128>}, {transform_indices = @transform_3, window_bounds = array<i64: 32, 128>}]} {
    %cst = arith.constant 0.000000e+00 : f32
    %0 = vector.broadcast %cst : f32 to vector<32x128xf32>
    %c0 = arith.constant 0 : index
    %c0_0 = arith.constant 0 : index
    %c0_1 = arith.constant 0 : index
    %1 = vector.load %arg1[%c0, %c0_0, %c0_1] : memref<25x32x128xf32, #tpu.memory_space<vmem>>, vector<1x32x128xf32>
    %2 = vector.shape_cast %1 : vector<1x32x128xf32> to vector<32x128xf32>
    %c0_2 = arith.constant 0 : index
    %c0_3 = arith.constant 0 : index
    %c0_4 = arith.constant 0 : index
    %3 = vector.load %arg2[%c0_2, %c0_3, %c0_4] : memref<25x1x128xf32, #tpu.memory_space<vmem>>, vector<1x1x128xf32>
    %4 = vector.shape_cast %3 : vector<1x1x128xf32> to vector<1x128xf32>
    %5 = vector.broadcast %4 : vector<1x128xf32> to vector<32x128xf32>
    %6 = arith.mulf %2, %5 : vector<32x128xf32>
    %7 = arith.addf %0, %6 : vector<32x128xf32>
    %c1 = arith.constant 1 : index
    %c0_5 = arith.constant 0 : index
    %c0_6 = arith.constant 0 : index
    %8 = vector.load %arg1[%c1, %c0_5, %c0_6] : memref<25x32x128xf32, #tpu.memory_space<vmem>>, vector<1x32x128xf32>
    %9 = vector.shape_cast %8 : vector<1x32x128xf32> to vector<32x128xf32>
    %c1_7 = arith.constant 1 : index
    %c0_8 = arith.constant 0 : index
    %c0_9 = arith.constant 0 : index
    %10 = vector.load %arg2[%c1_7, %c0_8, %c0_9] : memref<25x1x128xf32, #tpu.memory_space<vmem>>, vector<1x1x128xf32>
    %11 = vector.shape_cast %10 : vector<1x1x128xf32> to vector<1x128xf32>
    %12 = vector.broadcast %11 : vector<1x128xf32> to vector<32x128xf32>
    %13 = arith.mulf %9, %12 : vector<32x128xf32>
    %14 = arith.addf %7, %13 : vector<32x128xf32>
    %c2 = arith.constant 2 : index
    %c0_10 = arith.constant 0 : index
    %c0_11 = arith.constant 0 : index
    %15 = vector.load %arg1[%c2, %c0_10, %c0_11] : memref<25x32x128xf32, #tpu.memory_space<vmem>>, vector<1x32x128xf32>
    %16 = vector.shape_cast %15 : vector<1x32x128xf32> to vector<32x128xf32>
    %c2_12 = arith.constant 2 : index
    %c0_13 = arith.constant 0 : index
    %c0_14 = arith.constant 0 : index
    %17 = vector.load %arg2[%c2_12, %c0_13, %c0_14] : memref<25x1x128xf32, #tpu.memory_space<vmem>>, vector<1x1x128xf32>
    %18 = vector.shape_cast %17 : vector<1x1x128xf32> to vector<1x128xf32>
    %19 = vector.broadcast %18 : vector<1x128xf32> to vector<32x128xf32>
    %20 = arith.mulf %16, %19 : vector<32x128xf32>
    %21 = arith.addf %14, %20 : vector<32x128xf32>
    %c3 = arith.constant 3 : index
    %c0_15 = arith.constant 0 : index
    %c0_16 = arith.constant 0 : index
    %22 = vector.load %arg1[%c3, %c0_15, %c0_16] : memref<25x32x128xf32, #tpu.memory_space<vmem>>, vector<1x32x128xf32>
    %23 = vector.shape_cast %22 : vector<1x32x128xf32> to vector<32x128xf32>
    %c3_17 = arith.constant 3 : index
    %c0_18 = arith.constant 0 : index
    %c0_19 = arith.constant 0 : index
    %24 = vector.load %arg2[%c3_17, %c0_18, %c0_19] : memref<25x1x128xf32, #tpu.memory_space<vmem>>, vector<1x1x128xf32>
    %25 = vector.shape_cast %24 : vector<1x1x128xf32> to vector<1x128xf32>
    %26 = vector.broadcast %25 : vector<1x128xf32> to vector<32x128xf32>
    %27 = arith.mulf %23, %26 : vector<32x128xf32>
    %28 = arith.addf %21, %27 : vector<32x128xf32>
    %c4 = arith.constant 4 : index
    %c0_20 = arith.constant 0 : index
    %c0_21 = arith.constant 0 : index
    %29 = vector.load %arg1[%c4, %c0_20, %c0_21] : memref<25x32x128xf32, #tpu.memory_space<vmem>>, vector<1x32x128xf32>
    %30 = vector.shape_cast %29 : vector<1x32x128xf32> to vector<32x128xf32>
    %c4_22 = arith.constant 4 : index
    %c0_23 = arith.constant 0 : index
    %c0_24 = arith.constant 0 : index
    %31 = vector.load %arg2[%c4_22, %c0_23, %c0_24] : memref<25x1x128xf32, #tpu.memory_space<vmem>>, vector<1x1x128xf32>
    %32 = vector.shape_cast %31 : vector<1x1x128xf32> to vector<1x128xf32>
    %33 = vector.broadcast %32 : vector<1x128xf32> to vector<32x128xf32>
    %34 = arith.mulf %30, %33 : vector<32x128xf32>
    %35 = arith.addf %28, %34 : vector<32x128xf32>
    %c5 = arith.constant 5 : index
    %c0_25 = arith.constant 0 : index
    %c0_26 = arith.constant 0 : index
    %36 = vector.load %arg1[%c5, %c0_25, %c0_26] : memref<25x32x128xf32, #tpu.memory_space<vmem>>, vector<1x32x128xf32>
    %37 = vector.shape_cast %36 : vector<1x32x128xf32> to vector<32x128xf32>
    %c5_27 = arith.constant 5 : index
    %c0_28 = arith.constant 0 : index
    %c0_29 = arith.constant 0 : index
    %38 = vector.load %arg2[%c5_27, %c0_28, %c0_29] : memref<25x1x128xf32, #tpu.memory_space<vmem>>, vector<1x1x128xf32>
    %39 = vector.shape_cast %38 : vector<1x1x128xf32> to vector<1x128xf32>
    %40 = vector.broadcast %39 : vector<1x128xf32> to vector<32x128xf32>
    %41 = arith.mulf %37, %40 : vector<32x128xf32>
    %42 = arith.addf %35, %41 : vector<32x128xf32>
    %c6 = arith.constant 6 : index
    %c0_30 = arith.constant 0 : index
    %c0_31 = arith.constant 0 : index
    %43 = vector.load %arg1[%c6, %c0_30, %c0_31] : memref<25x32x128xf32, #tpu.memory_space<vmem>>, vector<1x32x128xf32>
    %44 = vector.shape_cast %43 : vector<1x32x128xf32> to vector<32x128xf32>
    %c6_32 = arith.constant 6 : index
    %c0_33 = arith.constant 0 : index
    %c0_34 = arith.constant 0 : index
    %45 = vector.load %arg2[%c6_32, %c0_33, %c0_34] : memref<25x1x128xf32, #tpu.memory_space<vmem>>, vector<1x1x128xf32>
    %46 = vector.shape_cast %45 : vector<1x1x128xf32> to vector<1x128xf32>
    %47 = vector.broadcast %46 : vector<1x128xf32> to vector<32x128xf32>
    %48 = arith.mulf %44, %47 : vector<32x128xf32>
    %49 = arith.addf %42, %48 : vector<32x128xf32>
    %c7 = arith.constant 7 : index
    %c0_35 = arith.constant 0 : index
    %c0_36 = arith.constant 0 : index
    %50 = vector.load %arg1[%c7, %c0_35, %c0_36] : memref<25x32x128xf32, #tpu.memory_space<vmem>>, vector<1x32x128xf32>
    %51 = vector.shape_cast %50 : vector<1x32x128xf32> to vector<32x128xf32>
    %c7_37 = arith.constant 7 : index
    %c0_38 = arith.constant 0 : index
    %c0_39 = arith.constant 0 : index
    %52 = vector.load %arg2[%c7_37, %c0_38, %c0_39] : memref<25x1x128xf32, #tpu.memory_space<vmem>>, vector<1x1x128xf32>
    %53 = vector.shape_cast %52 : vector<1x1x128xf32> to vector<1x128xf32>
    %54 = vector.broadcast %53 : vector<1x128xf32> to vector<32x128xf32>
    %55 = arith.mulf %51, %54 : vector<32x128xf32>
    %56 = arith.addf %49, %55 : vector<32x128xf32>
    %c8 = arith.constant 8 : index
    %c0_40 = arith.constant 0 : index
    %c0_41 = arith.constant 0 : index
    %57 = vector.load %arg1[%c8, %c0_40, %c0_41] : memref<25x32x128xf32, #tpu.memory_space<vmem>>, vector<1x32x128xf32>
    %58 = vector.shape_cast %57 : vector<1x32x128xf32> to vector<32x128xf32>
    %c8_42 = arith.constant 8 : index
    %c0_43 = arith.constant 0 : index
    %c0_44 = arith.constant 0 : index
    %59 = vector.load %arg2[%c8_42, %c0_43, %c0_44] : memref<25x1x128xf32, #tpu.memory_space<vmem>>, vector<1x1x128xf32>
    %60 = vector.shape_cast %59 : vector<1x1x128xf32> to vector<1x128xf32>
    %61 = vector.broadcast %60 : vector<1x128xf32> to vector<32x128xf32>
    %62 = arith.mulf %58, %61 : vector<32x128xf32>
    %63 = arith.addf %56, %62 : vector<32x128xf32>
    %c9 = arith.constant 9 : index
    %c0_45 = arith.constant 0 : index
    %c0_46 = arith.constant 0 : index
    %64 = vector.load %arg1[%c9, %c0_45, %c0_46] : memref<25x32x128xf32, #tpu.memory_space<vmem>>, vector<1x32x128xf32>
    %65 = vector.shape_cast %64 : vector<1x32x128xf32> to vector<32x128xf32>
    %c9_47 = arith.constant 9 : index
    %c0_48 = arith.constant 0 : index
    %c0_49 = arith.constant 0 : index
    %66 = vector.load %arg2[%c9_47, %c0_48, %c0_49] : memref<25x1x128xf32, #tpu.memory_space<vmem>>, vector<1x1x128xf32>
    %67 = vector.shape_cast %66 : vector<1x1x128xf32> to vector<1x128xf32>
    %68 = vector.broadcast %67 : vector<1x128xf32> to vector<32x128xf32>
    %69 = arith.mulf %65, %68 : vector<32x128xf32>
    %70 = arith.addf %63, %69 : vector<32x128xf32>
    %c10 = arith.constant 10 : index
    %c0_50 = arith.constant 0 : index
    %c0_51 = arith.constant 0 : index
    %71 = vector.load %arg1[%c10, %c0_50, %c0_51] : memref<25x32x128xf32, #tpu.memory_space<vmem>>, vector<1x32x128xf32>
    %72 = vector.shape_cast %71 : vector<1x32x128xf32> to vector<32x128xf32>
    %c10_52 = arith.constant 10 : index
    %c0_53 = arith.constant 0 : index
    %c0_54 = arith.constant 0 : index
    %73 = vector.load %arg2[%c10_52, %c0_53, %c0_54] : memref<25x1x128xf32, #tpu.memory_space<vmem>>, vector<1x1x128xf32>
    %74 = vector.shape_cast %73 : vector<1x1x128xf32> to vector<1x128xf32>
    %75 = vector.broadcast %74 : vector<1x128xf32> to vector<32x128xf32>
    %76 = arith.mulf %72, %75 : vector<32x128xf32>
    %77 = arith.addf %70, %76 : vector<32x128xf32>
    %c11 = arith.constant 11 : index
    %c0_55 = arith.constant 0 : index
    %c0_56 = arith.constant 0 : index
    %78 = vector.load %arg1[%c11, %c0_55, %c0_56] : memref<25x32x128xf32, #tpu.memory_space<vmem>>, vector<1x32x128xf32>
    %79 = vector.shape_cast %78 : vector<1x32x128xf32> to vector<32x128xf32>
    %c11_57 = arith.constant 11 : index
    %c0_58 = arith.constant 0 : index
    %c0_59 = arith.constant 0 : index
    %80 = vector.load %arg2[%c11_57, %c0_58, %c0_59] : memref<25x1x128xf32, #tpu.memory_space<vmem>>, vector<1x1x128xf32>
    %81 = vector.shape_cast %80 : vector<1x1x128xf32> to vector<1x128xf32>
    %82 = vector.broadcast %81 : vector<1x128xf32> to vector<32x128xf32>
    %83 = arith.mulf %79, %82 : vector<32x128xf32>
    %84 = arith.addf %77, %83 : vector<32x128xf32>
    %c12 = arith.constant 12 : index
    %c0_60 = arith.constant 0 : index
    %c0_61 = arith.constant 0 : index
    %85 = vector.load %arg1[%c12, %c0_60, %c0_61] : memref<25x32x128xf32, #tpu.memory_space<vmem>>, vector<1x32x128xf32>
    %86 = vector.shape_cast %85 : vector<1x32x128xf32> to vector<32x128xf32>
    %c12_62 = arith.constant 12 : index
    %c0_63 = arith.constant 0 : index
    %c0_64 = arith.constant 0 : index
    %87 = vector.load %arg2[%c12_62, %c0_63, %c0_64] : memref<25x1x128xf32, #tpu.memory_space<vmem>>, vector<1x1x128xf32>
    %88 = vector.shape_cast %87 : vector<1x1x128xf32> to vector<1x128xf32>
    %89 = vector.broadcast %88 : vector<1x128xf32> to vector<32x128xf32>
    %90 = arith.mulf %86, %89 : vector<32x128xf32>
    %91 = arith.addf %84, %90 : vector<32x128xf32>
    %c13 = arith.constant 13 : index
    %c0_65 = arith.constant 0 : index
    %c0_66 = arith.constant 0 : index
    %92 = vector.load %arg1[%c13, %c0_65, %c0_66] : memref<25x32x128xf32, #tpu.memory_space<vmem>>, vector<1x32x128xf32>
    %93 = vector.shape_cast %92 : vector<1x32x128xf32> to vector<32x128xf32>
    %c13_67 = arith.constant 13 : index
    %c0_68 = arith.constant 0 : index
    %c0_69 = arith.constant 0 : index
    %94 = vector.load %arg2[%c13_67, %c0_68, %c0_69] : memref<25x1x128xf32, #tpu.memory_space<vmem>>, vector<1x1x128xf32>
    %95 = vector.shape_cast %94 : vector<1x1x128xf32> to vector<1x128xf32>
    %96 = vector.broadcast %95 : vector<1x128xf32> to vector<32x128xf32>
    %97 = arith.mulf %93, %96 : vector<32x128xf32>
    %98 = arith.addf %91, %97 : vector<32x128xf32>
    %c14 = arith.constant 14 : index
    %c0_70 = arith.constant 0 : index
    %c0_71 = arith.constant 0 : index
    %99 = vector.load %arg1[%c14, %c0_70, %c0_71] : memref<25x32x128xf32, #tpu.memory_space<vmem>>, vector<1x32x128xf32>
    %100 = vector.shape_cast %99 : vector<1x32x128xf32> to vector<32x128xf32>
    %c14_72 = arith.constant 14 : index
    %c0_73 = arith.constant 0 : index
    %c0_74 = arith.constant 0 : index
    %101 = vector.load %arg2[%c14_72, %c0_73, %c0_74] : memref<25x1x128xf32, #tpu.memory_space<vmem>>, vector<1x1x128xf32>
    %102 = vector.shape_cast %101 : vector<1x1x128xf32> to vector<1x128xf32>
    %103 = vector.broadcast %102 : vector<1x128xf32> to vector<32x128xf32>
    %104 = arith.mulf %100, %103 : vector<32x128xf32>
    %105 = arith.addf %98, %104 : vector<32x128xf32>
    %c15 = arith.constant 15 : index
    %c0_75 = arith.constant 0 : index
    %c0_76 = arith.constant 0 : index
    %106 = vector.load %arg1[%c15, %c0_75, %c0_76] : memref<25x32x128xf32, #tpu.memory_space<vmem>>, vector<1x32x128xf32>
    %107 = vector.shape_cast %106 : vector<1x32x128xf32> to vector<32x128xf32>
    %c15_77 = arith.constant 15 : index
    %c0_78 = arith.constant 0 : index
    %c0_79 = arith.constant 0 : index
    %108 = vector.load %arg2[%c15_77, %c0_78, %c0_79] : memref<25x1x128xf32, #tpu.memory_space<vmem>>, vector<1x1x128xf32>
    %109 = vector.shape_cast %108 : vector<1x1x128xf32> to vector<1x128xf32>
    %110 = vector.broadcast %109 : vector<1x128xf32> to vector<32x128xf32>
    %111 = arith.mulf %107, %110 : vector<32x128xf32>
    %112 = arith.addf %105, %111 : vector<32x128xf32>
    %c16 = arith.constant 16 : index
    %c0_80 = arith.constant 0 : index
    %c0_81 = arith.constant 0 : index
    %113 = vector.load %arg1[%c16, %c0_80, %c0_81] : memref<25x32x128xf32, #tpu.memory_space<vmem>>, vector<1x32x128xf32>
    %114 = vector.shape_cast %113 : vector<1x32x128xf32> to vector<32x128xf32>
    %c16_82 = arith.constant 16 : index
    %c0_83 = arith.constant 0 : index
    %c0_84 = arith.constant 0 : index
    %115 = vector.load %arg2[%c16_82, %c0_83, %c0_84] : memref<25x1x128xf32, #tpu.memory_space<vmem>>, vector<1x1x128xf32>
    %116 = vector.shape_cast %115 : vector<1x1x128xf32> to vector<1x128xf32>
    %117 = vector.broadcast %116 : vector<1x128xf32> to vector<32x128xf32>
    %118 = arith.mulf %114, %117 : vector<32x128xf32>
    %119 = arith.addf %112, %118 : vector<32x128xf32>
    %c17 = arith.constant 17 : index
    %c0_85 = arith.constant 0 : index
    %c0_86 = arith.constant 0 : index
    %120 = vector.load %arg1[%c17, %c0_85, %c0_86] : memref<25x32x128xf32, #tpu.memory_space<vmem>>, vector<1x32x128xf32>
    %121 = vector.shape_cast %120 : vector<1x32x128xf32> to vector<32x128xf32>
    %c17_87 = arith.constant 17 : index
    %c0_88 = arith.constant 0 : index
    %c0_89 = arith.constant 0 : index
    %122 = vector.load %arg2[%c17_87, %c0_88, %c0_89] : memref<25x1x128xf32, #tpu.memory_space<vmem>>, vector<1x1x128xf32>
    %123 = vector.shape_cast %122 : vector<1x1x128xf32> to vector<1x128xf32>
    %124 = vector.broadcast %123 : vector<1x128xf32> to vector<32x128xf32>
    %125 = arith.mulf %121, %124 : vector<32x128xf32>
    %126 = arith.addf %119, %125 : vector<32x128xf32>
    %c18 = arith.constant 18 : index
    %c0_90 = arith.constant 0 : index
    %c0_91 = arith.constant 0 : index
    %127 = vector.load %arg1[%c18, %c0_90, %c0_91] : memref<25x32x128xf32, #tpu.memory_space<vmem>>, vector<1x32x128xf32>
    %128 = vector.shape_cast %127 : vector<1x32x128xf32> to vector<32x128xf32>
    %c18_92 = arith.constant 18 : index
    %c0_93 = arith.constant 0 : index
    %c0_94 = arith.constant 0 : index
    %129 = vector.load %arg2[%c18_92, %c0_93, %c0_94] : memref<25x1x128xf32, #tpu.memory_space<vmem>>, vector<1x1x128xf32>
    %130 = vector.shape_cast %129 : vector<1x1x128xf32> to vector<1x128xf32>
    %131 = vector.broadcast %130 : vector<1x128xf32> to vector<32x128xf32>
    %132 = arith.mulf %128, %131 : vector<32x128xf32>
    %133 = arith.addf %126, %132 : vector<32x128xf32>
    %c19 = arith.constant 19 : index
    %c0_95 = arith.constant 0 : index
    %c0_96 = arith.constant 0 : index
    %134 = vector.load %arg1[%c19, %c0_95, %c0_96] : memref<25x32x128xf32, #tpu.memory_space<vmem>>, vector<1x32x128xf32>
    %135 = vector.shape_cast %134 : vector<1x32x128xf32> to vector<32x128xf32>
    %c19_97 = arith.constant 19 : index
    %c0_98 = arith.constant 0 : index
    %c0_99 = arith.constant 0 : index
    %136 = vector.load %arg2[%c19_97, %c0_98, %c0_99] : memref<25x1x128xf32, #tpu.memory_space<vmem>>, vector<1x1x128xf32>
    %137 = vector.shape_cast %136 : vector<1x1x128xf32> to vector<1x128xf32>
    %138 = vector.broadcast %137 : vector<1x128xf32> to vector<32x128xf32>
    %139 = arith.mulf %135, %138 : vector<32x128xf32>
    %140 = arith.addf %133, %139 : vector<32x128xf32>
    %c20 = arith.constant 20 : index
    %c0_100 = arith.constant 0 : index
    %c0_101 = arith.constant 0 : index
    %141 = vector.load %arg1[%c20, %c0_100, %c0_101] : memref<25x32x128xf32, #tpu.memory_space<vmem>>, vector<1x32x128xf32>
    %142 = vector.shape_cast %141 : vector<1x32x128xf32> to vector<32x128xf32>
    %c20_102 = arith.constant 20 : index
    %c0_103 = arith.constant 0 : index
    %c0_104 = arith.constant 0 : index
    %143 = vector.load %arg2[%c20_102, %c0_103, %c0_104] : memref<25x1x128xf32, #tpu.memory_space<vmem>>, vector<1x1x128xf32>
    %144 = vector.shape_cast %143 : vector<1x1x128xf32> to vector<1x128xf32>
    %145 = vector.broadcast %144 : vector<1x128xf32> to vector<32x128xf32>
    %146 = arith.mulf %142, %145 : vector<32x128xf32>
    %147 = arith.addf %140, %146 : vector<32x128xf32>
    %c21 = arith.constant 21 : index
    %c0_105 = arith.constant 0 : index
    %c0_106 = arith.constant 0 : index
    %148 = vector.load %arg1[%c21, %c0_105, %c0_106] : memref<25x32x128xf32, #tpu.memory_space<vmem>>, vector<1x32x128xf32>
    %149 = vector.shape_cast %148 : vector<1x32x128xf32> to vector<32x128xf32>
    %c21_107 = arith.constant 21 : index
    %c0_108 = arith.constant 0 : index
    %c0_109 = arith.constant 0 : index
    %150 = vector.load %arg2[%c21_107, %c0_108, %c0_109] : memref<25x1x128xf32, #tpu.memory_space<vmem>>, vector<1x1x128xf32>
    %151 = vector.shape_cast %150 : vector<1x1x128xf32> to vector<1x128xf32>
    %152 = vector.broadcast %151 : vector<1x128xf32> to vector<32x128xf32>
    %153 = arith.mulf %149, %152 : vector<32x128xf32>
    %154 = arith.addf %147, %153 : vector<32x128xf32>
    %c22 = arith.constant 22 : index
    %c0_110 = arith.constant 0 : index
    %c0_111 = arith.constant 0 : index
    %155 = vector.load %arg1[%c22, %c0_110, %c0_111] : memref<25x32x128xf32, #tpu.memory_space<vmem>>, vector<1x32x128xf32>
    %156 = vector.shape_cast %155 : vector<1x32x128xf32> to vector<32x128xf32>
    %c22_112 = arith.constant 22 : index
    %c0_113 = arith.constant 0 : index
    %c0_114 = arith.constant 0 : index
    %157 = vector.load %arg2[%c22_112, %c0_113, %c0_114] : memref<25x1x128xf32, #tpu.memory_space<vmem>>, vector<1x1x128xf32>
    %158 = vector.shape_cast %157 : vector<1x1x128xf32> to vector<1x128xf32>
    %159 = vector.broadcast %158 : vector<1x128xf32> to vector<32x128xf32>
    %160 = arith.mulf %156, %159 : vector<32x128xf32>
    %161 = arith.addf %154, %160 : vector<32x128xf32>
    %c23 = arith.constant 23 : index
    %c0_115 = arith.constant 0 : index
    %c0_116 = arith.constant 0 : index
    %162 = vector.load %arg1[%c23, %c0_115, %c0_116] : memref<25x32x128xf32, #tpu.memory_space<vmem>>, vector<1x32x128xf32>
    %163 = vector.shape_cast %162 : vector<1x32x128xf32> to vector<32x128xf32>
    %c23_117 = arith.constant 23 : index
    %c0_118 = arith.constant 0 : index
    %c0_119 = arith.constant 0 : index
    %164 = vector.load %arg2[%c23_117, %c0_118, %c0_119] : memref<25x1x128xf32, #tpu.memory_space<vmem>>, vector<1x1x128xf32>
    %165 = vector.shape_cast %164 : vector<1x1x128xf32> to vector<1x128xf32>
    %166 = vector.broadcast %165 : vector<1x128xf32> to vector<32x128xf32>
    %167 = arith.mulf %163, %166 : vector<32x128xf32>
    %168 = arith.addf %161, %167 : vector<32x128xf32>
    %c24 = arith.constant 24 : index
    %c0_120 = arith.constant 0 : index
    %c0_121 = arith.constant 0 : index
    %169 = vector.load %arg1[%c24, %c0_120, %c0_121] : memref<25x32x128xf32, #tpu.memory_space<vmem>>, vector<1x32x128xf32>
    %170 = vector.shape_cast %169 : vector<1x32x128xf32> to vector<32x128xf32>
    %c24_122 = arith.constant 24 : index
    %c0_123 = arith.constant 0 : index
    %c0_124 = arith.constant 0 : index
    %171 = vector.load %arg2[%c24_122, %c0_123, %c0_124] : memref<25x1x128xf32, #tpu.memory_space<vmem>>, vector<1x1x128xf32>
    %172 = vector.shape_cast %171 : vector<1x1x128xf32> to vector<1x128xf32>
    %173 = vector.broadcast %172 : vector<1x128xf32> to vector<32x128xf32>
    %174 = arith.mulf %170, %173 : vector<32x128xf32>
    %175 = arith.addf %168, %174 : vector<32x128xf32>
    %c0_125 = arith.constant 0 : index
    %c0_126 = arith.constant 0 : index
    %176 = vector.load %arg3[%c0_125, %c0_126] : memref<1x128xf32, #tpu.memory_space<vmem>>, vector<1x128xf32>
    %177 = vector.broadcast %176 : vector<1x128xf32> to vector<32x128xf32>
    %178 = arith.addf %175, %177 : vector<32x128xf32>
    %c0_127 = arith.constant 0 : index
    %c0_128 = arith.constant 0 : index
    %179 = vector.load %arg4[%c0_127, %c0_128] : memref<32x128xf32, #tpu.memory_space<vmem>>, vector<32x128xf32>
    tpu.vector_store %arg4[%c0_127, %c0_128], %178 {strides = array<i32>} : memref<32x128xf32, #tpu.memory_space<vmem>>, vector<32x128xf32>,
    return
  }
  func.func @transform_0(%arg0: i32) -> (i32, i32, i32) {
    %c0_i32 = arith.constant 0 : i32
    %c0_i32_0 = arith.constant 0 : i32
    %c0_i32_1 = arith.constant 0 : i32
    return %c0_i32, %arg0, %c0_i32_0 : i32, i32, i32
  }
  func.func @transform_1(%arg0: i32) -> (i32, i32, i32) {
    %c0_i32 = arith.constant 0 : i32
    %c0_i32_0 = arith.constant 0 : i32
    %c0_i32_1 = arith.constant 0 : i32
    %c0_i32_2 = arith.constant 0 : i32
    return %c0_i32, %c0_i32_0, %c0_i32_1 : i32, i32, i32
  }
  func.func @transform_2(%arg0: i32) -> (i32, i32) {
    %c0_i32 = arith.constant 0 : i32
    %c0_i32_0 = arith.constant 0 : i32
    %c0_i32_1 = arith.constant 0 : i32
    return %c0_i32, %c0_i32_0 : i32, i32
  }
  func.func @transform_3(%arg0: i32) -> (i32, i32) {
    %c0_i32 = arith.constant 0 : i32
    %c0_i32_0 = arith.constant 0 : i32
    return %arg0, %c0_i32 : i32, i32
  }
}

module attributes {stable_mosaic.version = 11 : i64} {
  func.func @dwconv_taps_kernel(%arg0: i32, %arg1: memref<49x32x128xf32, #tpu.memory_space<vmem>>, %arg2: memref<49x1x128xf32, #tpu.memory_space<vmem>>, %arg3: memref<1x128xf32, #tpu.memory_space<vmem>>, %arg4: memref<32x128xf32, #tpu.memory_space<vmem>>) attributes {dimension_semantics = [#tpu.dimension_semantics<parallel>], iteration_bounds = array<i64: 2>, scalar_prefetch = 0 : i64, scratch_operands = 0 : i64, tpu.core_type = #tpu.core_type<tc>, window_params = [{transform_indices = @transform_0, window_bounds = array<i64: 49, 32, 128>}, {pipeline_mode = #tpu.pipeline_mode<synchronous>, transform_indices = @transform_1, window_bounds = array<i64: 49, 1, 128>}, {pipeline_mode = #tpu.pipeline_mode<synchronous>, transform_indices = @transform_2, window_bounds = array<i64: 1, 128>}, {transform_indices = @transform_3, window_bounds = array<i64: 32, 128>}]} {
    %cst = arith.constant 0.000000e+00 : f32
    %0 = vector.broadcast %cst : f32 to vector<32x128xf32>
    %c0 = arith.constant 0 : index
    %c0_0 = arith.constant 0 : index
    %c0_1 = arith.constant 0 : index
    %1 = vector.load %arg1[%c0, %c0_0, %c0_1] : memref<49x32x128xf32, #tpu.memory_space<vmem>>, vector<1x32x128xf32>
    %2 = vector.shape_cast %1 : vector<1x32x128xf32> to vector<32x128xf32>
    %c0_2 = arith.constant 0 : index
    %c0_3 = arith.constant 0 : index
    %c0_4 = arith.constant 0 : index
    %3 = vector.load %arg2[%c0_2, %c0_3, %c0_4] : memref<49x1x128xf32, #tpu.memory_space<vmem>>, vector<1x1x128xf32>
    %4 = vector.shape_cast %3 : vector<1x1x128xf32> to vector<1x128xf32>
    %5 = vector.broadcast %4 : vector<1x128xf32> to vector<32x128xf32>
    %6 = arith.mulf %2, %5 : vector<32x128xf32>
    %7 = arith.addf %0, %6 : vector<32x128xf32>
    %c1 = arith.constant 1 : index
    %c0_5 = arith.constant 0 : index
    %c0_6 = arith.constant 0 : index
    %8 = vector.load %arg1[%c1, %c0_5, %c0_6] : memref<49x32x128xf32, #tpu.memory_space<vmem>>, vector<1x32x128xf32>
    %9 = vector.shape_cast %8 : vector<1x32x128xf32> to vector<32x128xf32>
    %c1_7 = arith.constant 1 : index
    %c0_8 = arith.constant 0 : index
    %c0_9 = arith.constant 0 : index
    %10 = vector.load %arg2[%c1_7, %c0_8, %c0_9] : memref<49x1x128xf32, #tpu.memory_space<vmem>>, vector<1x1x128xf32>
    %11 = vector.shape_cast %10 : vector<1x1x128xf32> to vector<1x128xf32>
    %12 = vector.broadcast %11 : vector<1x128xf32> to vector<32x128xf32>
    %13 = arith.mulf %9, %12 : vector<32x128xf32>
    %14 = arith.addf %7, %13 : vector<32x128xf32>
    %c2 = arith.constant 2 : index
    %c0_10 = arith.constant 0 : index
    %c0_11 = arith.constant 0 : index
    %15 = vector.load %arg1[%c2, %c0_10, %c0_11] : memref<49x32x128xf32, #tpu.memory_space<vmem>>, vector<1x32x128xf32>
    %16 = vector.shape_cast %15 : vector<1x32x128xf32> to vector<32x128xf32>
    %c2_12 = arith.constant 2 : index
    %c0_13 = arith.constant 0 : index
    %c0_14 = arith.constant 0 : index
    %17 = vector.load %arg2[%c2_12, %c0_13, %c0_14] : memref<49x1x128xf32, #tpu.memory_space<vmem>>, vector<1x1x128xf32>
    %18 = vector.shape_cast %17 : vector<1x1x128xf32> to vector<1x128xf32>
    %19 = vector.broadcast %18 : vector<1x128xf32> to vector<32x128xf32>
    %20 = arith.mulf %16, %19 : vector<32x128xf32>
    %21 = arith.addf %14, %20 : vector<32x128xf32>
    %c3 = arith.constant 3 : index
    %c0_15 = arith.constant 0 : index
    %c0_16 = arith.constant 0 : index
    %22 = vector.load %arg1[%c3, %c0_15, %c0_16] : memref<49x32x128xf32, #tpu.memory_space<vmem>>, vector<1x32x128xf32>
    %23 = vector.shape_cast %22 : vector<1x32x128xf32> to vector<32x128xf32>
    %c3_17 = arith.constant 3 : index
    %c0_18 = arith.constant 0 : index
    %c0_19 = arith.constant 0 : index
    %24 = vector.load %arg2[%c3_17, %c0_18, %c0_19] : memref<49x1x128xf32, #tpu.memory_space<vmem>>, vector<1x1x128xf32>
    %25 = vector.shape_cast %24 : vector<1x1x128xf32> to vector<1x128xf32>
    %26 = vector.broadcast %25 : vector<1x128xf32> to vector<32x128xf32>
    %27 = arith.mulf %23, %26 : vector<32x128xf32>
    %28 = arith.addf %21, %27 : vector<32x128xf32>
    %c4 = arith.constant 4 : index
    %c0_20 = arith.constant 0 : index
    %c0_21 = arith.constant 0 : index
    %29 = vector.load %arg1[%c4, %c0_20, %c0_21] : memref<49x32x128xf32, #tpu.memory_space<vmem>>, vector<1x32x128xf32>
    %30 = vector.shape_cast %29 : vector<1x32x128xf32> to vector<32x128xf32>
    %c4_22 = arith.constant 4 : index
    %c0_23 = arith.constant 0 : index
    %c0_24 = arith.constant 0 : index
    %31 = vector.load %arg2[%c4_22, %c0_23, %c0_24] : memref<49x1x128xf32, #tpu.memory_space<vmem>>, vector<1x1x128xf32>
    %32 = vector.shape_cast %31 : vector<1x1x128xf32> to vector<1x128xf32>
    %33 = vector.broadcast %32 : vector<1x128xf32> to vector<32x128xf32>
    %34 = arith.mulf %30, %33 : vector<32x128xf32>
    %35 = arith.addf %28, %34 : vector<32x128xf32>
    %c5 = arith.constant 5 : index
    %c0_25 = arith.constant 0 : index
    %c0_26 = arith.constant 0 : index
    %36 = vector.load %arg1[%c5, %c0_25, %c0_26] : memref<49x32x128xf32, #tpu.memory_space<vmem>>, vector<1x32x128xf32>
    %37 = vector.shape_cast %36 : vector<1x32x128xf32> to vector<32x128xf32>
    %c5_27 = arith.constant 5 : index
    %c0_28 = arith.constant 0 : index
    %c0_29 = arith.constant 0 : index
    %38 = vector.load %arg2[%c5_27, %c0_28, %c0_29] : memref<49x1x128xf32, #tpu.memory_space<vmem>>, vector<1x1x128xf32>
    %39 = vector.shape_cast %38 : vector<1x1x128xf32> to vector<1x128xf32>
    %40 = vector.broadcast %39 : vector<1x128xf32> to vector<32x128xf32>
    %41 = arith.mulf %37, %40 : vector<32x128xf32>
    %42 = arith.addf %35, %41 : vector<32x128xf32>
    %c6 = arith.constant 6 : index
    %c0_30 = arith.constant 0 : index
    %c0_31 = arith.constant 0 : index
    %43 = vector.load %arg1[%c6, %c0_30, %c0_31] : memref<49x32x128xf32, #tpu.memory_space<vmem>>, vector<1x32x128xf32>
    %44 = vector.shape_cast %43 : vector<1x32x128xf32> to vector<32x128xf32>
    %c6_32 = arith.constant 6 : index
    %c0_33 = arith.constant 0 : index
    %c0_34 = arith.constant 0 : index
    %45 = vector.load %arg2[%c6_32, %c0_33, %c0_34] : memref<49x1x128xf32, #tpu.memory_space<vmem>>, vector<1x1x128xf32>
    %46 = vector.shape_cast %45 : vector<1x1x128xf32> to vector<1x128xf32>
    %47 = vector.broadcast %46 : vector<1x128xf32> to vector<32x128xf32>
    %48 = arith.mulf %44, %47 : vector<32x128xf32>
    %49 = arith.addf %42, %48 : vector<32x128xf32>
    %c7 = arith.constant 7 : index
    %c0_35 = arith.constant 0 : index
    %c0_36 = arith.constant 0 : index
    %50 = vector.load %arg1[%c7, %c0_35, %c0_36] : memref<49x32x128xf32, #tpu.memory_space<vmem>>, vector<1x32x128xf32>
    %51 = vector.shape_cast %50 : vector<1x32x128xf32> to vector<32x128xf32>
    %c7_37 = arith.constant 7 : index
    %c0_38 = arith.constant 0 : index
    %c0_39 = arith.constant 0 : index
    %52 = vector.load %arg2[%c7_37, %c0_38, %c0_39] : memref<49x1x128xf32, #tpu.memory_space<vmem>>, vector<1x1x128xf32>
    %53 = vector.shape_cast %52 : vector<1x1x128xf32> to vector<1x128xf32>
    %54 = vector.broadcast %53 : vector<1x128xf32> to vector<32x128xf32>
    %55 = arith.mulf %51, %54 : vector<32x128xf32>
    %56 = arith.addf %49, %55 : vector<32x128xf32>
    %c8 = arith.constant 8 : index
    %c0_40 = arith.constant 0 : index
    %c0_41 = arith.constant 0 : index
    %57 = vector.load %arg1[%c8, %c0_40, %c0_41] : memref<49x32x128xf32, #tpu.memory_space<vmem>>, vector<1x32x128xf32>
    %58 = vector.shape_cast %57 : vector<1x32x128xf32> to vector<32x128xf32>
    %c8_42 = arith.constant 8 : index
    %c0_43 = arith.constant 0 : index
    %c0_44 = arith.constant 0 : index
    %59 = vector.load %arg2[%c8_42, %c0_43, %c0_44] : memref<49x1x128xf32, #tpu.memory_space<vmem>>, vector<1x1x128xf32>
    %60 = vector.shape_cast %59 : vector<1x1x128xf32> to vector<1x128xf32>
    %61 = vector.broadcast %60 : vector<1x128xf32> to vector<32x128xf32>
    %62 = arith.mulf %58, %61 : vector<32x128xf32>
    %63 = arith.addf %56, %62 : vector<32x128xf32>
    %c9 = arith.constant 9 : index
    %c0_45 = arith.constant 0 : index
    %c0_46 = arith.constant 0 : index
    %64 = vector.load %arg1[%c9, %c0_45, %c0_46] : memref<49x32x128xf32, #tpu.memory_space<vmem>>, vector<1x32x128xf32>
    %65 = vector.shape_cast %64 : vector<1x32x128xf32> to vector<32x128xf32>
    %c9_47 = arith.constant 9 : index
    %c0_48 = arith.constant 0 : index
    %c0_49 = arith.constant 0 : index
    %66 = vector.load %arg2[%c9_47, %c0_48, %c0_49] : memref<49x1x128xf32, #tpu.memory_space<vmem>>, vector<1x1x128xf32>
    %67 = vector.shape_cast %66 : vector<1x1x128xf32> to vector<1x128xf32>
    %68 = vector.broadcast %67 : vector<1x128xf32> to vector<32x128xf32>
    %69 = arith.mulf %65, %68 : vector<32x128xf32>
    %70 = arith.addf %63, %69 : vector<32x128xf32>
    %c10 = arith.constant 10 : index
    %c0_50 = arith.constant 0 : index
    %c0_51 = arith.constant 0 : index
    %71 = vector.load %arg1[%c10, %c0_50, %c0_51] : memref<49x32x128xf32, #tpu.memory_space<vmem>>, vector<1x32x128xf32>
    %72 = vector.shape_cast %71 : vector<1x32x128xf32> to vector<32x128xf32>
    %c10_52 = arith.constant 10 : index
    %c0_53 = arith.constant 0 : index
    %c0_54 = arith.constant 0 : index
    %73 = vector.load %arg2[%c10_52, %c0_53, %c0_54] : memref<49x1x128xf32, #tpu.memory_space<vmem>>, vector<1x1x128xf32>
    %74 = vector.shape_cast %73 : vector<1x1x128xf32> to vector<1x128xf32>
    %75 = vector.broadcast %74 : vector<1x128xf32> to vector<32x128xf32>
    %76 = arith.mulf %72, %75 : vector<32x128xf32>
    %77 = arith.addf %70, %76 : vector<32x128xf32>
    %c11 = arith.constant 11 : index
    %c0_55 = arith.constant 0 : index
    %c0_56 = arith.constant 0 : index
    %78 = vector.load %arg1[%c11, %c0_55, %c0_56] : memref<49x32x128xf32, #tpu.memory_space<vmem>>, vector<1x32x128xf32>
    %79 = vector.shape_cast %78 : vector<1x32x128xf32> to vector<32x128xf32>
    %c11_57 = arith.constant 11 : index
    %c0_58 = arith.constant 0 : index
    %c0_59 = arith.constant 0 : index
    %80 = vector.load %arg2[%c11_57, %c0_58, %c0_59] : memref<49x1x128xf32, #tpu.memory_space<vmem>>, vector<1x1x128xf32>
    %81 = vector.shape_cast %80 : vector<1x1x128xf32> to vector<1x128xf32>
    %82 = vector.broadcast %81 : vector<1x128xf32> to vector<32x128xf32>
    %83 = arith.mulf %79, %82 : vector<32x128xf32>
    %84 = arith.addf %77, %83 : vector<32x128xf32>
    %c12 = arith.constant 12 : index
    %c0_60 = arith.constant 0 : index
    %c0_61 = arith.constant 0 : index
    %85 = vector.load %arg1[%c12, %c0_60, %c0_61] : memref<49x32x128xf32, #tpu.memory_space<vmem>>, vector<1x32x128xf32>
    %86 = vector.shape_cast %85 : vector<1x32x128xf32> to vector<32x128xf32>
    %c12_62 = arith.constant 12 : index
    %c0_63 = arith.constant 0 : index
    %c0_64 = arith.constant 0 : index
    %87 = vector.load %arg2[%c12_62, %c0_63, %c0_64] : memref<49x1x128xf32, #tpu.memory_space<vmem>>, vector<1x1x128xf32>
    %88 = vector.shape_cast %87 : vector<1x1x128xf32> to vector<1x128xf32>
    %89 = vector.broadcast %88 : vector<1x128xf32> to vector<32x128xf32>
    %90 = arith.mulf %86, %89 : vector<32x128xf32>
    %91 = arith.addf %84, %90 : vector<32x128xf32>
    %c13 = arith.constant 13 : index
    %c0_65 = arith.constant 0 : index
    %c0_66 = arith.constant 0 : index
    %92 = vector.load %arg1[%c13, %c0_65, %c0_66] : memref<49x32x128xf32, #tpu.memory_space<vmem>>, vector<1x32x128xf32>
    %93 = vector.shape_cast %92 : vector<1x32x128xf32> to vector<32x128xf32>
    %c13_67 = arith.constant 13 : index
    %c0_68 = arith.constant 0 : index
    %c0_69 = arith.constant 0 : index
    %94 = vector.load %arg2[%c13_67, %c0_68, %c0_69] : memref<49x1x128xf32, #tpu.memory_space<vmem>>, vector<1x1x128xf32>
    %95 = vector.shape_cast %94 : vector<1x1x128xf32> to vector<1x128xf32>
    %96 = vector.broadcast %95 : vector<1x128xf32> to vector<32x128xf32>
    %97 = arith.mulf %93, %96 : vector<32x128xf32>
    %98 = arith.addf %91, %97 : vector<32x128xf32>
    %c14 = arith.constant 14 : index
    %c0_70 = arith.constant 0 : index
    %c0_71 = arith.constant 0 : index
    %99 = vector.load %arg1[%c14, %c0_70, %c0_71] : memref<49x32x128xf32, #tpu.memory_space<vmem>>, vector<1x32x128xf32>
    %100 = vector.shape_cast %99 : vector<1x32x128xf32> to vector<32x128xf32>
    %c14_72 = arith.constant 14 : index
    %c0_73 = arith.constant 0 : index
    %c0_74 = arith.constant 0 : index
    %101 = vector.load %arg2[%c14_72, %c0_73, %c0_74] : memref<49x1x128xf32, #tpu.memory_space<vmem>>, vector<1x1x128xf32>
    %102 = vector.shape_cast %101 : vector<1x1x128xf32> to vector<1x128xf32>
    %103 = vector.broadcast %102 : vector<1x128xf32> to vector<32x128xf32>
    %104 = arith.mulf %100, %103 : vector<32x128xf32>
    %105 = arith.addf %98, %104 : vector<32x128xf32>
    %c15 = arith.constant 15 : index
    %c0_75 = arith.constant 0 : index
    %c0_76 = arith.constant 0 : index
    %106 = vector.load %arg1[%c15, %c0_75, %c0_76] : memref<49x32x128xf32, #tpu.memory_space<vmem>>, vector<1x32x128xf32>
    %107 = vector.shape_cast %106 : vector<1x32x128xf32> to vector<32x128xf32>
    %c15_77 = arith.constant 15 : index
    %c0_78 = arith.constant 0 : index
    %c0_79 = arith.constant 0 : index
    %108 = vector.load %arg2[%c15_77, %c0_78, %c0_79] : memref<49x1x128xf32, #tpu.memory_space<vmem>>, vector<1x1x128xf32>
    %109 = vector.shape_cast %108 : vector<1x1x128xf32> to vector<1x128xf32>
    %110 = vector.broadcast %109 : vector<1x128xf32> to vector<32x128xf32>
    %111 = arith.mulf %107, %110 : vector<32x128xf32>
    %112 = arith.addf %105, %111 : vector<32x128xf32>
    %c16 = arith.constant 16 : index
    %c0_80 = arith.constant 0 : index
    %c0_81 = arith.constant 0 : index
    %113 = vector.load %arg1[%c16, %c0_80, %c0_81] : memref<49x32x128xf32, #tpu.memory_space<vmem>>, vector<1x32x128xf32>
    %114 = vector.shape_cast %113 : vector<1x32x128xf32> to vector<32x128xf32>
    %c16_82 = arith.constant 16 : index
    %c0_83 = arith.constant 0 : index
    %c0_84 = arith.constant 0 : index
    %115 = vector.load %arg2[%c16_82, %c0_83, %c0_84] : memref<49x1x128xf32, #tpu.memory_space<vmem>>, vector<1x1x128xf32>
    %116 = vector.shape_cast %115 : vector<1x1x128xf32> to vector<1x128xf32>
    %117 = vector.broadcast %116 : vector<1x128xf32> to vector<32x128xf32>
    %118 = arith.mulf %114, %117 : vector<32x128xf32>
    %119 = arith.addf %112, %118 : vector<32x128xf32>
    %c17 = arith.constant 17 : index
    %c0_85 = arith.constant 0 : index
    %c0_86 = arith.constant 0 : index
    %120 = vector.load %arg1[%c17, %c0_85, %c0_86] : memref<49x32x128xf32, #tpu.memory_space<vmem>>, vector<1x32x128xf32>
    %121 = vector.shape_cast %120 : vector<1x32x128xf32> to vector<32x128xf32>
    %c17_87 = arith.constant 17 : index
    %c0_88 = arith.constant 0 : index
    %c0_89 = arith.constant 0 : index
    %122 = vector.load %arg2[%c17_87, %c0_88, %c0_89] : memref<49x1x128xf32, #tpu.memory_space<vmem>>, vector<1x1x128xf32>
    %123 = vector.shape_cast %122 : vector<1x1x128xf32> to vector<1x128xf32>
    %124 = vector.broadcast %123 : vector<1x128xf32> to vector<32x128xf32>
    %125 = arith.mulf %121, %124 : vector<32x128xf32>
    %126 = arith.addf %119, %125 : vector<32x128xf32>
    %c18 = arith.constant 18 : index
    %c0_90 = arith.constant 0 : index
    %c0_91 = arith.constant 0 : index
    %127 = vector.load %arg1[%c18, %c0_90, %c0_91] : memref<49x32x128xf32, #tpu.memory_space<vmem>>, vector<1x32x128xf32>
    %128 = vector.shape_cast %127 : vector<1x32x128xf32> to vector<32x128xf32>
    %c18_92 = arith.constant 18 : index
    %c0_93 = arith.constant 0 : index
    %c0_94 = arith.constant 0 : index
    %129 = vector.load %arg2[%c18_92, %c0_93, %c0_94] : memref<49x1x128xf32, #tpu.memory_space<vmem>>, vector<1x1x128xf32>
    %130 = vector.shape_cast %129 : vector<1x1x128xf32> to vector<1x128xf32>
    %131 = vector.broadcast %130 : vector<1x128xf32> to vector<32x128xf32>
    %132 = arith.mulf %128, %131 : vector<32x128xf32>
    %133 = arith.addf %126, %132 : vector<32x128xf32>
    %c19 = arith.constant 19 : index
    %c0_95 = arith.constant 0 : index
    %c0_96 = arith.constant 0 : index
    %134 = vector.load %arg1[%c19, %c0_95, %c0_96] : memref<49x32x128xf32, #tpu.memory_space<vmem>>, vector<1x32x128xf32>
    %135 = vector.shape_cast %134 : vector<1x32x128xf32> to vector<32x128xf32>
    %c19_97 = arith.constant 19 : index
    %c0_98 = arith.constant 0 : index
    %c0_99 = arith.constant 0 : index
    %136 = vector.load %arg2[%c19_97, %c0_98, %c0_99] : memref<49x1x128xf32, #tpu.memory_space<vmem>>, vector<1x1x128xf32>
    %137 = vector.shape_cast %136 : vector<1x1x128xf32> to vector<1x128xf32>
    %138 = vector.broadcast %137 : vector<1x128xf32> to vector<32x128xf32>
    %139 = arith.mulf %135, %138 : vector<32x128xf32>
    %140 = arith.addf %133, %139 : vector<32x128xf32>
    %c20 = arith.constant 20 : index
    %c0_100 = arith.constant 0 : index
    %c0_101 = arith.constant 0 : index
    %141 = vector.load %arg1[%c20, %c0_100, %c0_101] : memref<49x32x128xf32, #tpu.memory_space<vmem>>, vector<1x32x128xf32>
    %142 = vector.shape_cast %141 : vector<1x32x128xf32> to vector<32x128xf32>
    %c20_102 = arith.constant 20 : index
    %c0_103 = arith.constant 0 : index
    %c0_104 = arith.constant 0 : index
    %143 = vector.load %arg2[%c20_102, %c0_103, %c0_104] : memref<49x1x128xf32, #tpu.memory_space<vmem>>, vector<1x1x128xf32>
    %144 = vector.shape_cast %143 : vector<1x1x128xf32> to vector<1x128xf32>
    %145 = vector.broadcast %144 : vector<1x128xf32> to vector<32x128xf32>
    %146 = arith.mulf %142, %145 : vector<32x128xf32>
    %147 = arith.addf %140, %146 : vector<32x128xf32>
    %c21 = arith.constant 21 : index
    %c0_105 = arith.constant 0 : index
    %c0_106 = arith.constant 0 : index
    %148 = vector.load %arg1[%c21, %c0_105, %c0_106] : memref<49x32x128xf32, #tpu.memory_space<vmem>>, vector<1x32x128xf32>
    %149 = vector.shape_cast %148 : vector<1x32x128xf32> to vector<32x128xf32>
    %c21_107 = arith.constant 21 : index
    %c0_108 = arith.constant 0 : index
    %c0_109 = arith.constant 0 : index
    %150 = vector.load %arg2[%c21_107, %c0_108, %c0_109] : memref<49x1x128xf32, #tpu.memory_space<vmem>>, vector<1x1x128xf32>
    %151 = vector.shape_cast %150 : vector<1x1x128xf32> to vector<1x128xf32>
    %152 = vector.broadcast %151 : vector<1x128xf32> to vector<32x128xf32>
    %153 = arith.mulf %149, %152 : vector<32x128xf32>
    %154 = arith.addf %147, %153 : vector<32x128xf32>
    %c22 = arith.constant 22 : index
    %c0_110 = arith.constant 0 : index
    %c0_111 = arith.constant 0 : index
    %155 = vector.load %arg1[%c22, %c0_110, %c0_111] : memref<49x32x128xf32, #tpu.memory_space<vmem>>, vector<1x32x128xf32>
    %156 = vector.shape_cast %155 : vector<1x32x128xf32> to vector<32x128xf32>
    %c22_112 = arith.constant 22 : index
    %c0_113 = arith.constant 0 : index
    %c0_114 = arith.constant 0 : index
    %157 = vector.load %arg2[%c22_112, %c0_113, %c0_114] : memref<49x1x128xf32, #tpu.memory_space<vmem>>, vector<1x1x128xf32>
    %158 = vector.shape_cast %157 : vector<1x1x128xf32> to vector<1x128xf32>
    %159 = vector.broadcast %158 : vector<1x128xf32> to vector<32x128xf32>
    %160 = arith.mulf %156, %159 : vector<32x128xf32>
    %161 = arith.addf %154, %160 : vector<32x128xf32>
    %c23 = arith.constant 23 : index
    %c0_115 = arith.constant 0 : index
    %c0_116 = arith.constant 0 : index
    %162 = vector.load %arg1[%c23, %c0_115, %c0_116] : memref<49x32x128xf32, #tpu.memory_space<vmem>>, vector<1x32x128xf32>
    %163 = vector.shape_cast %162 : vector<1x32x128xf32> to vector<32x128xf32>
    %c23_117 = arith.constant 23 : index
    %c0_118 = arith.constant 0 : index
    %c0_119 = arith.constant 0 : index
    %164 = vector.load %arg2[%c23_117, %c0_118, %c0_119] : memref<49x1x128xf32, #tpu.memory_space<vmem>>, vector<1x1x128xf32>
    %165 = vector.shape_cast %164 : vector<1x1x128xf32> to vector<1x128xf32>
    %166 = vector.broadcast %165 : vector<1x128xf32> to vector<32x128xf32>
    %167 = arith.mulf %163, %166 : vector<32x128xf32>
    %168 = arith.addf %161, %167 : vector<32x128xf32>
    %c24 = arith.constant 24 : index
    %c0_120 = arith.constant 0 : index
    %c0_121 = arith.constant 0 : index
    %169 = vector.load %arg1[%c24, %c0_120, %c0_121] : memref<49x32x128xf32, #tpu.memory_space<vmem>>, vector<1x32x128xf32>
    %170 = vector.shape_cast %169 : vector<1x32x128xf32> to vector<32x128xf32>
    %c24_122 = arith.constant 24 : index
    %c0_123 = arith.constant 0 : index
    %c0_124 = arith.constant 0 : index
    %171 = vector.load %arg2[%c24_122, %c0_123, %c0_124] : memref<49x1x128xf32, #tpu.memory_space<vmem>>, vector<1x1x128xf32>
    %172 = vector.shape_cast %171 : vector<1x1x128xf32> to vector<1x128xf32>
    %173 = vector.broadcast %172 : vector<1x128xf32> to vector<32x128xf32>
    %174 = arith.mulf %170, %173 : vector<32x128xf32>
    %175 = arith.addf %168, %174 : vector<32x128xf32>
    %c25 = arith.constant 25 : index
    %c0_125 = arith.constant 0 : index
    %c0_126 = arith.constant 0 : index
    %176 = vector.load %arg1[%c25, %c0_125, %c0_126] : memref<49x32x128xf32, #tpu.memory_space<vmem>>, vector<1x32x128xf32>
    %177 = vector.shape_cast %176 : vector<1x32x128xf32> to vector<32x128xf32>
    %c25_127 = arith.constant 25 : index
    %c0_128 = arith.constant 0 : index
    %c0_129 = arith.constant 0 : index
    %178 = vector.load %arg2[%c25_127, %c0_128, %c0_129] : memref<49x1x128xf32, #tpu.memory_space<vmem>>, vector<1x1x128xf32>
    %179 = vector.shape_cast %178 : vector<1x1x128xf32> to vector<1x128xf32>
    %180 = vector.broadcast %179 : vector<1x128xf32> to vector<32x128xf32>
    %181 = arith.mulf %177, %180 : vector<32x128xf32>
    %182 = arith.addf %175, %181 : vector<32x128xf32>
    %c26 = arith.constant 26 : index
    %c0_130 = arith.constant 0 : index
    %c0_131 = arith.constant 0 : index
    %183 = vector.load %arg1[%c26, %c0_130, %c0_131] : memref<49x32x128xf32, #tpu.memory_space<vmem>>, vector<1x32x128xf32>
    %184 = vector.shape_cast %183 : vector<1x32x128xf32> to vector<32x128xf32>
    %c26_132 = arith.constant 26 : index
    %c0_133 = arith.constant 0 : index
    %c0_134 = arith.constant 0 : index
    %185 = vector.load %arg2[%c26_132, %c0_133, %c0_134] : memref<49x1x128xf32, #tpu.memory_space<vmem>>, vector<1x1x128xf32>
    %186 = vector.shape_cast %185 : vector<1x1x128xf32> to vector<1x128xf32>
    %187 = vector.broadcast %186 : vector<1x128xf32> to vector<32x128xf32>
    %188 = arith.mulf %184, %187 : vector<32x128xf32>
    %189 = arith.addf %182, %188 : vector<32x128xf32>
    %c27 = arith.constant 27 : index
    %c0_135 = arith.constant 0 : index
    %c0_136 = arith.constant 0 : index
    %190 = vector.load %arg1[%c27, %c0_135, %c0_136] : memref<49x32x128xf32, #tpu.memory_space<vmem>>, vector<1x32x128xf32>
    %191 = vector.shape_cast %190 : vector<1x32x128xf32> to vector<32x128xf32>
    %c27_137 = arith.constant 27 : index
    %c0_138 = arith.constant 0 : index
    %c0_139 = arith.constant 0 : index
    %192 = vector.load %arg2[%c27_137, %c0_138, %c0_139] : memref<49x1x128xf32, #tpu.memory_space<vmem>>, vector<1x1x128xf32>
    %193 = vector.shape_cast %192 : vector<1x1x128xf32> to vector<1x128xf32>
    %194 = vector.broadcast %193 : vector<1x128xf32> to vector<32x128xf32>
    %195 = arith.mulf %191, %194 : vector<32x128xf32>
    %196 = arith.addf %189, %195 : vector<32x128xf32>
    %c28 = arith.constant 28 : index
    %c0_140 = arith.constant 0 : index
    %c0_141 = arith.constant 0 : index
    %197 = vector.load %arg1[%c28, %c0_140, %c0_141] : memref<49x32x128xf32, #tpu.memory_space<vmem>>, vector<1x32x128xf32>
    %198 = vector.shape_cast %197 : vector<1x32x128xf32> to vector<32x128xf32>
    %c28_142 = arith.constant 28 : index
    %c0_143 = arith.constant 0 : index
    %c0_144 = arith.constant 0 : index
    %199 = vector.load %arg2[%c28_142, %c0_143, %c0_144] : memref<49x1x128xf32, #tpu.memory_space<vmem>>, vector<1x1x128xf32>
    %200 = vector.shape_cast %199 : vector<1x1x128xf32> to vector<1x128xf32>
    %201 = vector.broadcast %200 : vector<1x128xf32> to vector<32x128xf32>
    %202 = arith.mulf %198, %201 : vector<32x128xf32>
    %203 = arith.addf %196, %202 : vector<32x128xf32>
    %c29 = arith.constant 29 : index
    %c0_145 = arith.constant 0 : index
    %c0_146 = arith.constant 0 : index
    %204 = vector.load %arg1[%c29, %c0_145, %c0_146] : memref<49x32x128xf32, #tpu.memory_space<vmem>>, vector<1x32x128xf32>
    %205 = vector.shape_cast %204 : vector<1x32x128xf32> to vector<32x128xf32>
    %c29_147 = arith.constant 29 : index
    %c0_148 = arith.constant 0 : index
    %c0_149 = arith.constant 0 : index
    %206 = vector.load %arg2[%c29_147, %c0_148, %c0_149] : memref<49x1x128xf32, #tpu.memory_space<vmem>>, vector<1x1x128xf32>
    %207 = vector.shape_cast %206 : vector<1x1x128xf32> to vector<1x128xf32>
    %208 = vector.broadcast %207 : vector<1x128xf32> to vector<32x128xf32>
    %209 = arith.mulf %205, %208 : vector<32x128xf32>
    %210 = arith.addf %203, %209 : vector<32x128xf32>
    %c30 = arith.constant 30 : index
    %c0_150 = arith.constant 0 : index
    %c0_151 = arith.constant 0 : index
    %211 = vector.load %arg1[%c30, %c0_150, %c0_151] : memref<49x32x128xf32, #tpu.memory_space<vmem>>, vector<1x32x128xf32>
    %212 = vector.shape_cast %211 : vector<1x32x128xf32> to vector<32x128xf32>
    %c30_152 = arith.constant 30 : index
    %c0_153 = arith.constant 0 : index
    %c0_154 = arith.constant 0 : index
    %213 = vector.load %arg2[%c30_152, %c0_153, %c0_154] : memref<49x1x128xf32, #tpu.memory_space<vmem>>, vector<1x1x128xf32>
    %214 = vector.shape_cast %213 : vector<1x1x128xf32> to vector<1x128xf32>
    %215 = vector.broadcast %214 : vector<1x128xf32> to vector<32x128xf32>
    %216 = arith.mulf %212, %215 : vector<32x128xf32>
    %217 = arith.addf %210, %216 : vector<32x128xf32>
    %c31 = arith.constant 31 : index
    %c0_155 = arith.constant 0 : index
    %c0_156 = arith.constant 0 : index
    %218 = vector.load %arg1[%c31, %c0_155, %c0_156] : memref<49x32x128xf32, #tpu.memory_space<vmem>>, vector<1x32x128xf32>
    %219 = vector.shape_cast %218 : vector<1x32x128xf32> to vector<32x128xf32>
    %c31_157 = arith.constant 31 : index
    %c0_158 = arith.constant 0 : index
    %c0_159 = arith.constant 0 : index
    %220 = vector.load %arg2[%c31_157, %c0_158, %c0_159] : memref<49x1x128xf32, #tpu.memory_space<vmem>>, vector<1x1x128xf32>
    %221 = vector.shape_cast %220 : vector<1x1x128xf32> to vector<1x128xf32>
    %222 = vector.broadcast %221 : vector<1x128xf32> to vector<32x128xf32>
    %223 = arith.mulf %219, %222 : vector<32x128xf32>
    %224 = arith.addf %217, %223 : vector<32x128xf32>
    %c32 = arith.constant 32 : index
    %c0_160 = arith.constant 0 : index
    %c0_161 = arith.constant 0 : index
    %225 = vector.load %arg1[%c32, %c0_160, %c0_161] : memref<49x32x128xf32, #tpu.memory_space<vmem>>, vector<1x32x128xf32>
    %226 = vector.shape_cast %225 : vector<1x32x128xf32> to vector<32x128xf32>
    %c32_162 = arith.constant 32 : index
    %c0_163 = arith.constant 0 : index
    %c0_164 = arith.constant 0 : index
    %227 = vector.load %arg2[%c32_162, %c0_163, %c0_164] : memref<49x1x128xf32, #tpu.memory_space<vmem>>, vector<1x1x128xf32>
    %228 = vector.shape_cast %227 : vector<1x1x128xf32> to vector<1x128xf32>
    %229 = vector.broadcast %228 : vector<1x128xf32> to vector<32x128xf32>
    %230 = arith.mulf %226, %229 : vector<32x128xf32>
    %231 = arith.addf %224, %230 : vector<32x128xf32>
    %c33 = arith.constant 33 : index
    %c0_165 = arith.constant 0 : index
    %c0_166 = arith.constant 0 : index
    %232 = vector.load %arg1[%c33, %c0_165, %c0_166] : memref<49x32x128xf32, #tpu.memory_space<vmem>>, vector<1x32x128xf32>
    %233 = vector.shape_cast %232 : vector<1x32x128xf32> to vector<32x128xf32>
    %c33_167 = arith.constant 33 : index
    %c0_168 = arith.constant 0 : index
    %c0_169 = arith.constant 0 : index
    %234 = vector.load %arg2[%c33_167, %c0_168, %c0_169] : memref<49x1x128xf32, #tpu.memory_space<vmem>>, vector<1x1x128xf32>
    %235 = vector.shape_cast %234 : vector<1x1x128xf32> to vector<1x128xf32>
    %236 = vector.broadcast %235 : vector<1x128xf32> to vector<32x128xf32>
    %237 = arith.mulf %233, %236 : vector<32x128xf32>
    %238 = arith.addf %231, %237 : vector<32x128xf32>
    %c34 = arith.constant 34 : index
    %c0_170 = arith.constant 0 : index
    %c0_171 = arith.constant 0 : index
    %239 = vector.load %arg1[%c34, %c0_170, %c0_171] : memref<49x32x128xf32, #tpu.memory_space<vmem>>, vector<1x32x128xf32>
    %240 = vector.shape_cast %239 : vector<1x32x128xf32> to vector<32x128xf32>
    %c34_172 = arith.constant 34 : index
    %c0_173 = arith.constant 0 : index
    %c0_174 = arith.constant 0 : index
    %241 = vector.load %arg2[%c34_172, %c0_173, %c0_174] : memref<49x1x128xf32, #tpu.memory_space<vmem>>, vector<1x1x128xf32>
    %242 = vector.shape_cast %241 : vector<1x1x128xf32> to vector<1x128xf32>
    %243 = vector.broadcast %242 : vector<1x128xf32> to vector<32x128xf32>
    %244 = arith.mulf %240, %243 : vector<32x128xf32>
    %245 = arith.addf %238, %244 : vector<32x128xf32>
    %c35 = arith.constant 35 : index
    %c0_175 = arith.constant 0 : index
    %c0_176 = arith.constant 0 : index
    %246 = vector.load %arg1[%c35, %c0_175, %c0_176] : memref<49x32x128xf32, #tpu.memory_space<vmem>>, vector<1x32x128xf32>
    %247 = vector.shape_cast %246 : vector<1x32x128xf32> to vector<32x128xf32>
    %c35_177 = arith.constant 35 : index
    %c0_178 = arith.constant 0 : index
    %c0_179 = arith.constant 0 : index
    %248 = vector.load %arg2[%c35_177, %c0_178, %c0_179] : memref<49x1x128xf32, #tpu.memory_space<vmem>>, vector<1x1x128xf32>
    %249 = vector.shape_cast %248 : vector<1x1x128xf32> to vector<1x128xf32>
    %250 = vector.broadcast %249 : vector<1x128xf32> to vector<32x128xf32>
    %251 = arith.mulf %247, %250 : vector<32x128xf32>
    %252 = arith.addf %245, %251 : vector<32x128xf32>
    %c36 = arith.constant 36 : index
    %c0_180 = arith.constant 0 : index
    %c0_181 = arith.constant 0 : index
    %253 = vector.load %arg1[%c36, %c0_180, %c0_181] : memref<49x32x128xf32, #tpu.memory_space<vmem>>, vector<1x32x128xf32>
    %254 = vector.shape_cast %253 : vector<1x32x128xf32> to vector<32x128xf32>
    %c36_182 = arith.constant 36 : index
    %c0_183 = arith.constant 0 : index
    %c0_184 = arith.constant 0 : index
    %255 = vector.load %arg2[%c36_182, %c0_183, %c0_184] : memref<49x1x128xf32, #tpu.memory_space<vmem>>, vector<1x1x128xf32>
    %256 = vector.shape_cast %255 : vector<1x1x128xf32> to vector<1x128xf32>
    %257 = vector.broadcast %256 : vector<1x128xf32> to vector<32x128xf32>
    %258 = arith.mulf %254, %257 : vector<32x128xf32>
    %259 = arith.addf %252, %258 : vector<32x128xf32>
    %c37 = arith.constant 37 : index
    %c0_185 = arith.constant 0 : index
    %c0_186 = arith.constant 0 : index
    %260 = vector.load %arg1[%c37, %c0_185, %c0_186] : memref<49x32x128xf32, #tpu.memory_space<vmem>>, vector<1x32x128xf32>
    %261 = vector.shape_cast %260 : vector<1x32x128xf32> to vector<32x128xf32>
    %c37_187 = arith.constant 37 : index
    %c0_188 = arith.constant 0 : index
    %c0_189 = arith.constant 0 : index
    %262 = vector.load %arg2[%c37_187, %c0_188, %c0_189] : memref<49x1x128xf32, #tpu.memory_space<vmem>>, vector<1x1x128xf32>
    %263 = vector.shape_cast %262 : vector<1x1x128xf32> to vector<1x128xf32>
    %264 = vector.broadcast %263 : vector<1x128xf32> to vector<32x128xf32>
    %265 = arith.mulf %261, %264 : vector<32x128xf32>
    %266 = arith.addf %259, %265 : vector<32x128xf32>
    %c38 = arith.constant 38 : index
    %c0_190 = arith.constant 0 : index
    %c0_191 = arith.constant 0 : index
    %267 = vector.load %arg1[%c38, %c0_190, %c0_191] : memref<49x32x128xf32, #tpu.memory_space<vmem>>, vector<1x32x128xf32>
    %268 = vector.shape_cast %267 : vector<1x32x128xf32> to vector<32x128xf32>
    %c38_192 = arith.constant 38 : index
    %c0_193 = arith.constant 0 : index
    %c0_194 = arith.constant 0 : index
    %269 = vector.load %arg2[%c38_192, %c0_193, %c0_194] : memref<49x1x128xf32, #tpu.memory_space<vmem>>, vector<1x1x128xf32>
    %270 = vector.shape_cast %269 : vector<1x1x128xf32> to vector<1x128xf32>
    %271 = vector.broadcast %270 : vector<1x128xf32> to vector<32x128xf32>
    %272 = arith.mulf %268, %271 : vector<32x128xf32>
    %273 = arith.addf %266, %272 : vector<32x128xf32>
    %c39 = arith.constant 39 : index
    %c0_195 = arith.constant 0 : index
    %c0_196 = arith.constant 0 : index
    %274 = vector.load %arg1[%c39, %c0_195, %c0_196] : memref<49x32x128xf32, #tpu.memory_space<vmem>>, vector<1x32x128xf32>
    %275 = vector.shape_cast %274 : vector<1x32x128xf32> to vector<32x128xf32>
    %c39_197 = arith.constant 39 : index
    %c0_198 = arith.constant 0 : index
    %c0_199 = arith.constant 0 : index
    %276 = vector.load %arg2[%c39_197, %c0_198, %c0_199] : memref<49x1x128xf32, #tpu.memory_space<vmem>>, vector<1x1x128xf32>
    %277 = vector.shape_cast %276 : vector<1x1x128xf32> to vector<1x128xf32>
    %278 = vector.broadcast %277 : vector<1x128xf32> to vector<32x128xf32>
    %279 = arith.mulf %275, %278 : vector<32x128xf32>
    %280 = arith.addf %273, %279 : vector<32x128xf32>
    %c40 = arith.constant 40 : index
    %c0_200 = arith.constant 0 : index
    %c0_201 = arith.constant 0 : index
    %281 = vector.load %arg1[%c40, %c0_200, %c0_201] : memref<49x32x128xf32, #tpu.memory_space<vmem>>, vector<1x32x128xf32>
    %282 = vector.shape_cast %281 : vector<1x32x128xf32> to vector<32x128xf32>
    %c40_202 = arith.constant 40 : index
    %c0_203 = arith.constant 0 : index
    %c0_204 = arith.constant 0 : index
    %283 = vector.load %arg2[%c40_202, %c0_203, %c0_204] : memref<49x1x128xf32, #tpu.memory_space<vmem>>, vector<1x1x128xf32>
    %284 = vector.shape_cast %283 : vector<1x1x128xf32> to vector<1x128xf32>
    %285 = vector.broadcast %284 : vector<1x128xf32> to vector<32x128xf32>
    %286 = arith.mulf %282, %285 : vector<32x128xf32>
    %287 = arith.addf %280, %286 : vector<32x128xf32>
    %c41 = arith.constant 41 : index
    %c0_205 = arith.constant 0 : index
    %c0_206 = arith.constant 0 : index
    %288 = vector.load %arg1[%c41, %c0_205, %c0_206] : memref<49x32x128xf32, #tpu.memory_space<vmem>>, vector<1x32x128xf32>
    %289 = vector.shape_cast %288 : vector<1x32x128xf32> to vector<32x128xf32>
    %c41_207 = arith.constant 41 : index
    %c0_208 = arith.constant 0 : index
    %c0_209 = arith.constant 0 : index
    %290 = vector.load %arg2[%c41_207, %c0_208, %c0_209] : memref<49x1x128xf32, #tpu.memory_space<vmem>>, vector<1x1x128xf32>
    %291 = vector.shape_cast %290 : vector<1x1x128xf32> to vector<1x128xf32>
    %292 = vector.broadcast %291 : vector<1x128xf32> to vector<32x128xf32>
    %293 = arith.mulf %289, %292 : vector<32x128xf32>
    %294 = arith.addf %287, %293 : vector<32x128xf32>
    %c42 = arith.constant 42 : index
    %c0_210 = arith.constant 0 : index
    %c0_211 = arith.constant 0 : index
    %295 = vector.load %arg1[%c42, %c0_210, %c0_211] : memref<49x32x128xf32, #tpu.memory_space<vmem>>, vector<1x32x128xf32>
    %296 = vector.shape_cast %295 : vector<1x32x128xf32> to vector<32x128xf32>
    %c42_212 = arith.constant 42 : index
    %c0_213 = arith.constant 0 : index
    %c0_214 = arith.constant 0 : index
    %297 = vector.load %arg2[%c42_212, %c0_213, %c0_214] : memref<49x1x128xf32, #tpu.memory_space<vmem>>, vector<1x1x128xf32>
    %298 = vector.shape_cast %297 : vector<1x1x128xf32> to vector<1x128xf32>
    %299 = vector.broadcast %298 : vector<1x128xf32> to vector<32x128xf32>
    %300 = arith.mulf %296, %299 : vector<32x128xf32>
    %301 = arith.addf %294, %300 : vector<32x128xf32>
    %c43 = arith.constant 43 : index
    %c0_215 = arith.constant 0 : index
    %c0_216 = arith.constant 0 : index
    %302 = vector.load %arg1[%c43, %c0_215, %c0_216] : memref<49x32x128xf32, #tpu.memory_space<vmem>>, vector<1x32x128xf32>
    %303 = vector.shape_cast %302 : vector<1x32x128xf32> to vector<32x128xf32>
    %c43_217 = arith.constant 43 : index
    %c0_218 = arith.constant 0 : index
    %c0_219 = arith.constant 0 : index
    %304 = vector.load %arg2[%c43_217, %c0_218, %c0_219] : memref<49x1x128xf32, #tpu.memory_space<vmem>>, vector<1x1x128xf32>
    %305 = vector.shape_cast %304 : vector<1x1x128xf32> to vector<1x128xf32>
    %306 = vector.broadcast %305 : vector<1x128xf32> to vector<32x128xf32>
    %307 = arith.mulf %303, %306 : vector<32x128xf32>
    %308 = arith.addf %301, %307 : vector<32x128xf32>
    %c44 = arith.constant 44 : index
    %c0_220 = arith.constant 0 : index
    %c0_221 = arith.constant 0 : index
    %309 = vector.load %arg1[%c44, %c0_220, %c0_221] : memref<49x32x128xf32, #tpu.memory_space<vmem>>, vector<1x32x128xf32>
    %310 = vector.shape_cast %309 : vector<1x32x128xf32> to vector<32x128xf32>
    %c44_222 = arith.constant 44 : index
    %c0_223 = arith.constant 0 : index
    %c0_224 = arith.constant 0 : index
    %311 = vector.load %arg2[%c44_222, %c0_223, %c0_224] : memref<49x1x128xf32, #tpu.memory_space<vmem>>, vector<1x1x128xf32>
    %312 = vector.shape_cast %311 : vector<1x1x128xf32> to vector<1x128xf32>
    %313 = vector.broadcast %312 : vector<1x128xf32> to vector<32x128xf32>
    %314 = arith.mulf %310, %313 : vector<32x128xf32>
    %315 = arith.addf %308, %314 : vector<32x128xf32>
    %c45 = arith.constant 45 : index
    %c0_225 = arith.constant 0 : index
    %c0_226 = arith.constant 0 : index
    %316 = vector.load %arg1[%c45, %c0_225, %c0_226] : memref<49x32x128xf32, #tpu.memory_space<vmem>>, vector<1x32x128xf32>
    %317 = vector.shape_cast %316 : vector<1x32x128xf32> to vector<32x128xf32>
    %c45_227 = arith.constant 45 : index
    %c0_228 = arith.constant 0 : index
    %c0_229 = arith.constant 0 : index
    %318 = vector.load %arg2[%c45_227, %c0_228, %c0_229] : memref<49x1x128xf32, #tpu.memory_space<vmem>>, vector<1x1x128xf32>
    %319 = vector.shape_cast %318 : vector<1x1x128xf32> to vector<1x128xf32>
    %320 = vector.broadcast %319 : vector<1x128xf32> to vector<32x128xf32>
    %321 = arith.mulf %317, %320 : vector<32x128xf32>
    %322 = arith.addf %315, %321 : vector<32x128xf32>
    %c46 = arith.constant 46 : index
    %c0_230 = arith.constant 0 : index
    %c0_231 = arith.constant 0 : index
    %323 = vector.load %arg1[%c46, %c0_230, %c0_231] : memref<49x32x128xf32, #tpu.memory_space<vmem>>, vector<1x32x128xf32>
    %324 = vector.shape_cast %323 : vector<1x32x128xf32> to vector<32x128xf32>
    %c46_232 = arith.constant 46 : index
    %c0_233 = arith.constant 0 : index
    %c0_234 = arith.constant 0 : index
    %325 = vector.load %arg2[%c46_232, %c0_233, %c0_234] : memref<49x1x128xf32, #tpu.memory_space<vmem>>, vector<1x1x128xf32>
    %326 = vector.shape_cast %325 : vector<1x1x128xf32> to vector<1x128xf32>
    %327 = vector.broadcast %326 : vector<1x128xf32> to vector<32x128xf32>
    %328 = arith.mulf %324, %327 : vector<32x128xf32>
    %329 = arith.addf %322, %328 : vector<32x128xf32>
    %c47 = arith.constant 47 : index
    %c0_235 = arith.constant 0 : index
    %c0_236 = arith.constant 0 : index
    %330 = vector.load %arg1[%c47, %c0_235, %c0_236] : memref<49x32x128xf32, #tpu.memory_space<vmem>>, vector<1x32x128xf32>
    %331 = vector.shape_cast %330 : vector<1x32x128xf32> to vector<32x128xf32>
    %c47_237 = arith.constant 47 : index
    %c0_238 = arith.constant 0 : index
    %c0_239 = arith.constant 0 : index
    %332 = vector.load %arg2[%c47_237, %c0_238, %c0_239] : memref<49x1x128xf32, #tpu.memory_space<vmem>>, vector<1x1x128xf32>
    %333 = vector.shape_cast %332 : vector<1x1x128xf32> to vector<1x128xf32>
    %334 = vector.broadcast %333 : vector<1x128xf32> to vector<32x128xf32>
    %335 = arith.mulf %331, %334 : vector<32x128xf32>
    %336 = arith.addf %329, %335 : vector<32x128xf32>
    %c48 = arith.constant 48 : index
    %c0_240 = arith.constant 0 : index
    %c0_241 = arith.constant 0 : index
    %337 = vector.load %arg1[%c48, %c0_240, %c0_241] : memref<49x32x128xf32, #tpu.memory_space<vmem>>, vector<1x32x128xf32>
    %338 = vector.shape_cast %337 : vector<1x32x128xf32> to vector<32x128xf32>
    %c48_242 = arith.constant 48 : index
    %c0_243 = arith.constant 0 : index
    %c0_244 = arith.constant 0 : index
    %339 = vector.load %arg2[%c48_242, %c0_243, %c0_244] : memref<49x1x128xf32, #tpu.memory_space<vmem>>, vector<1x1x128xf32>
    %340 = vector.shape_cast %339 : vector<1x1x128xf32> to vector<1x128xf32>
    %341 = vector.broadcast %340 : vector<1x128xf32> to vector<32x128xf32>
    %342 = arith.mulf %338, %341 : vector<32x128xf32>
    %343 = arith.addf %336, %342 : vector<32x128xf32>
    %c0_245 = arith.constant 0 : index
    %c0_246 = arith.constant 0 : index
    %344 = vector.load %arg3[%c0_245, %c0_246] : memref<1x128xf32, #tpu.memory_space<vmem>>, vector<1x128xf32>
    %345 = vector.broadcast %344 : vector<1x128xf32> to vector<32x128xf32>
    %346 = arith.addf %343, %345 : vector<32x128xf32>
    %c0_247 = arith.constant 0 : index
    %c0_248 = arith.constant 0 : index
    %347 = vector.load %arg4[%c0_247, %c0_248] : memref<32x128xf32, #tpu.memory_space<vmem>>, vector<32x128xf32>
    tpu.vector_store %arg4[%c0_247, %c0_248], %346 {strides = array<i32>} : memref<32x128xf32, #tpu.memory_space<vmem>>, vector<32x128xf32>,
    return
  }
  func.func @transform_0(%arg0: i32) -> (i32, i32, i32) {
    %c0_i32 = arith.constant 0 : i32
    %c0_i32_0 = arith.constant 0 : i32
    %c0_i32_1 = arith.constant 0 : i32
    return %c0_i32, %arg0, %c0_i32_0 : i32, i32, i32
  }
  func.func @transform_1(%arg0: i32) -> (i32, i32, i32) {
    %c0_i32 = arith.constant 0 : i32
    %c0_i32_0 = arith.constant 0 : i32
    %c0_i32_1 = arith.constant 0 : i32
    %c0_i32_2 = arith.constant 0 : i32
    return %c0_i32, %c0_i32_0, %c0_i32_1 : i32, i32, i32
  }
  func.func @transform_2(%arg0: i32) -> (i32, i32) {
    %c0_i32 = arith.constant 0 : i32
    %c0_i32_0 = arith.constant 0 : i32
    %c0_i32_1 = arith.constant 0 : i32
    return %c0_i32, %c0_i32_0 : i32, i32
  }
  func.func @transform_3(%arg0: i32) -> (i32, i32) {
    %c0_i32 = arith.constant 0 : i32
    %c0_i32_0 = arith.constant 0 : i32
    return %arg0, %c0_i32 : i32, i32
  }
}

module attributes {stable_mosaic.version = 11 : i64} {
  func.func @matmul_bias_kernel(%arg0: i32, %arg1: memref<32x128xf32, #tpu.memory_space<vmem>>, %arg2: memref<128x128xf32, #tpu.memory_space<vmem>>, %arg3: memref<1x128xf32, #tpu.memory_space<vmem>>, %arg4: memref<32x128xf32, #tpu.memory_space<vmem>>) attributes {dimension_semantics = [#tpu.dimension_semantics<parallel>], iteration_bounds = array<i64: 2>, scalar_prefetch = 0 : i64, scratch_operands = 0 : i64, tpu.core_type = #tpu.core_type<tc>, window_params = [{transform_indices = @transform_0, window_bounds = array<i64: 32, 128>}, {pipeline_mode = #tpu.pipeline_mode<synchronous>, transform_indices = @transform_1, window_bounds = array<i64: 128, 128>}, {pipeline_mode = #tpu.pipeline_mode<synchronous>, transform_indices = @transform_2, window_bounds = array<i64: 1, 128>}, {transform_indices = @transform_3, window_bounds = array<i64: 32, 128>}]} {
    %c0 = arith.constant 0 : index
    %c0_0 = arith.constant 0 : index
    %0 = vector.load %arg1[%c0, %c0_0] : memref<32x128xf32, #tpu.memory_space<vmem>>, vector<32x128xf32>
    %c0_1 = arith.constant 0 : index
    %c0_2 = arith.constant 0 : index
    %1 = vector.load %arg2[%c0_1, %c0_2] : memref<128x128xf32, #tpu.memory_space<vmem>>, vector<128x128xf32>
    %cst = arith.constant dense<0.000000e+00> : vector<32x128xf32>
    %2 = tpu.matmul %0, %1, %cst {dimension_numbers = #tpu.dot_dimension_numbers<[1], [0], [0], [1], [0, 0, 1, 1], [], []>} : vector<32x128xf32>, vector<128x128xf32>, vector<32x128xf32> -> vector<32x128xf32>
    %c0_3 = arith.constant 0 : index
    %c0_4 = arith.constant 0 : index
    %3 = vector.load %arg3[%c0_3, %c0_4] : memref<1x128xf32, #tpu.memory_space<vmem>>, vector<1x128xf32>
    %4 = vector.broadcast %3 : vector<1x128xf32> to vector<32x128xf32>
    %5 = arith.addf %2, %4 : vector<32x128xf32>
    %c0_5 = arith.constant 0 : index
    %c0_6 = arith.constant 0 : index
    %6 = vector.load %arg4[%c0_5, %c0_6] : memref<32x128xf32, #tpu.memory_space<vmem>>, vector<32x128xf32>
    tpu.vector_store %arg4[%c0_5, %c0_6], %5 {strides = array<i32>} : memref<32x128xf32, #tpu.memory_space<vmem>>, vector<32x128xf32>,
    return
  }
  func.func @transform_0(%arg0: i32) -> (i32, i32) {
    %c0_i32 = arith.constant 0 : i32
    %c0_i32_0 = arith.constant 0 : i32
    return %arg0, %c0_i32 : i32, i32
  }
  func.func @transform_1(%arg0: i32) -> (i32, i32) {
    %c0_i32 = arith.constant 0 : i32
    %c0_i32_0 = arith.constant 0 : i32
    %c0_i32_1 = arith.constant 0 : i32
    return %c0_i32, %c0_i32_0 : i32, i32
  }
  func.func @transform_2(%arg0: i32) -> (i32, i32) {
    %c0_i32 = arith.constant 0 : i32
    %c0_i32_0 = arith.constant 0 : i32
    %c0_i32_1 = arith.constant 0 : i32
    return %c0_i32, %c0_i32_0 : i32, i32
  }
  func.func @transform_3(%arg0: i32) -> (i32, i32) {
    %c0_i32 = arith.constant 0 : i32
    %c0_i32_0 = arith.constant 0 : i32
    return %arg0, %c0_i32 : i32, i32
  }
}

module attributes {stable_mosaic.version = 11 : i64} {
  func.func @mul_kernel(%arg0: i32, %arg1: memref<32x128xf32, #tpu.memory_space<vmem>>, %arg2: memref<32x128xf32, #tpu.memory_space<vmem>>, %arg3: memref<32x128xf32, #tpu.memory_space<vmem>>) attributes {dimension_semantics = [#tpu.dimension_semantics<parallel>], iteration_bounds = array<i64: 2>, scalar_prefetch = 0 : i64, scratch_operands = 0 : i64, tpu.core_type = #tpu.core_type<tc>, window_params = [{transform_indices = @transform_0, window_bounds = array<i64: 32, 128>}, {transform_indices = @transform_1, window_bounds = array<i64: 32, 128>}, {transform_indices = @transform_2, window_bounds = array<i64: 32, 128>}]} {
    %c0 = arith.constant 0 : index
    %c0_0 = arith.constant 0 : index
    %0 = vector.load %arg1[%c0, %c0_0] : memref<32x128xf32, #tpu.memory_space<vmem>>, vector<32x128xf32>
    %c0_1 = arith.constant 0 : index
    %c0_2 = arith.constant 0 : index
    %1 = vector.load %arg2[%c0_1, %c0_2] : memref<32x128xf32, #tpu.memory_space<vmem>>, vector<32x128xf32>
    %2 = arith.mulf %0, %1 : vector<32x128xf32>
    %c0_3 = arith.constant 0 : index
    %c0_4 = arith.constant 0 : index
    %3 = vector.load %arg3[%c0_3, %c0_4] : memref<32x128xf32, #tpu.memory_space<vmem>>, vector<32x128xf32>
    tpu.vector_store %arg3[%c0_3, %c0_4], %2 {strides = array<i32>} : memref<32x128xf32, #tpu.memory_space<vmem>>, vector<32x128xf32>,
    return
  }
  func.func @transform_0(%arg0: i32) -> (i32, i32) {
    %c0_i32 = arith.constant 0 : i32
    %c0_i32_0 = arith.constant 0 : i32
    return %arg0, %c0_i32 : i32, i32
  }
  func.func @transform_1(%arg0: i32) -> (i32, i32) {
    %c0_i32 = arith.constant 0 : i32
    %c0_i32_0 = arith.constant 0 : i32
    return %arg0, %c0_i32 : i32, i32
  }
  func.func @transform_2(%arg0: i32) -> (i32, i32) {
    %c0_i32 = arith.constant 0 : i32
    %c0_i32_0 = arith.constant 0 : i32
    return %arg0, %c0_i32 : i32, i32
  }
}

module attributes {stable_mosaic.version = 11 : i64} {
  func.func @residual_scale_kernel(%arg0: i32, %arg1: memref<32x128xf32, #tpu.memory_space<vmem>>, %arg2: memref<32x128xf32, #tpu.memory_space<vmem>>, %arg3: memref<1x128xf32, #tpu.memory_space<vmem>>, %arg4: memref<32x128xf32, #tpu.memory_space<vmem>>) attributes {dimension_semantics = [#tpu.dimension_semantics<parallel>], iteration_bounds = array<i64: 2>, scalar_prefetch = 0 : i64, scratch_operands = 0 : i64, tpu.core_type = #tpu.core_type<tc>, window_params = [{transform_indices = @transform_0, window_bounds = array<i64: 32, 128>}, {transform_indices = @transform_1, window_bounds = array<i64: 32, 128>}, {pipeline_mode = #tpu.pipeline_mode<synchronous>, transform_indices = @transform_2, window_bounds = array<i64: 1, 128>}, {transform_indices = @transform_3, window_bounds = array<i64: 32, 128>}]} {
    %c0 = arith.constant 0 : index
    %c0_0 = arith.constant 0 : index
    %0 = vector.load %arg1[%c0, %c0_0] : memref<32x128xf32, #tpu.memory_space<vmem>>, vector<32x128xf32>
    %c0_1 = arith.constant 0 : index
    %c0_2 = arith.constant 0 : index
    %1 = vector.load %arg3[%c0_1, %c0_2] : memref<1x128xf32, #tpu.memory_space<vmem>>, vector<1x128xf32>
    %c0_3 = arith.constant 0 : index
    %c0_4 = arith.constant 0 : index
    %2 = vector.load %arg2[%c0_3, %c0_4] : memref<32x128xf32, #tpu.memory_space<vmem>>, vector<32x128xf32>
    %3 = vector.broadcast %1 : vector<1x128xf32> to vector<32x128xf32>
    %4 = arith.mulf %3, %2 : vector<32x128xf32>
    %5 = arith.addf %0, %4 : vector<32x128xf32>
    %c0_5 = arith.constant 0 : index
    %c0_6 = arith.constant 0 : index
    %6 = vector.load %arg4[%c0_5, %c0_6] : memref<32x128xf32, #tpu.memory_space<vmem>>, vector<32x128xf32>
    tpu.vector_store %arg4[%c0_5, %c0_6], %5 {strides = array<i32>} : memref<32x128xf32, #tpu.memory_space<vmem>>, vector<32x128xf32>,
    return
  }
  func.func @transform_0(%arg0: i32) -> (i32, i32) {
    %c0_i32 = arith.constant 0 : i32
    %c0_i32_0 = arith.constant 0 : i32
    return %arg0, %c0_i32 : i32, i32
  }
  func.func @transform_1(%arg0: i32) -> (i32, i32) {
    %c0_i32 = arith.constant 0 : i32
    %c0_i32_0 = arith.constant 0 : i32
    return %arg0, %c0_i32 : i32, i32
  }
  func.func @transform_2(%arg0: i32) -> (i32, i32) {
    %c0_i32 = arith.constant 0 : i32
    %c0_i32_0 = arith.constant 0 : i32
    %c0_i32_1 = arith.constant 0 : i32
    return %c0_i32, %c0_i32_0 : i32, i32
  }
  func.func @transform_3(%arg0: i32) -> (i32, i32) {
    %c0_i32 = arith.constant 0 : i32
    %c0_i32_0 = arith.constant 0 : i32
    return %arg0, %c0_i32 : i32, i32
  }
}

module attributes {stable_mosaic.version = 11 : i64} {
  func.func @layernorm_kernel(%arg0: i32, %arg1: memref<32x128xf32, #tpu.memory_space<vmem>>, %arg2: memref<1x128xf32, #tpu.memory_space<vmem>>, %arg3: memref<1x128xf32, #tpu.memory_space<vmem>>, %arg4: memref<32x128xf32, #tpu.memory_space<vmem>>) attributes {dimension_semantics = [#tpu.dimension_semantics<parallel>], iteration_bounds = array<i64: 2>, scalar_prefetch = 0 : i64, scratch_operands = 0 : i64, tpu.core_type = #tpu.core_type<tc>, window_params = [{transform_indices = @transform_0, window_bounds = array<i64: 32, 128>}, {pipeline_mode = #tpu.pipeline_mode<synchronous>, transform_indices = @transform_1, window_bounds = array<i64: 1, 128>}, {pipeline_mode = #tpu.pipeline_mode<synchronous>, transform_indices = @transform_2, window_bounds = array<i64: 1, 128>}, {transform_indices = @transform_3, window_bounds = array<i64: 32, 128>}]} {
    %c0 = arith.constant 0 : index
    %c0_0 = arith.constant 0 : index
    %0 = vector.load %arg1[%c0, %c0_0] : memref<32x128xf32, #tpu.memory_space<vmem>>, vector<32x128xf32>
    %cst = arith.constant dense<0.000000e+00> : vector<32xf32>
    %1 = vector.multi_reduction <add>, %0, %cst [1] : vector<32x128xf32> to vector<32xf32>
    %2 = vector.shape_cast %1 : vector<32xf32> to vector<32x1xf32>
    %cst_1 = arith.constant 3.200000e+01 : f32
    %3 = vector.broadcast %cst_1 : f32 to vector<32x1xf32>
    %4 = arith.divf %2, %3 : vector<32x1xf32>
    %5 = arith.mulf %0, %0 : vector<32x128xf32>
    %cst_2 = arith.constant dense<0.000000e+00> : vector<32xf32>
    %6 = vector.multi_reduction <add>, %5, %cst_2 [1] : vector<32x128xf32> to vector<32xf32>
    %7 = vector.shape_cast %6 : vector<32xf32> to vector<32x1xf32>
    %cst_3 = arith.constant 3.200000e+01 : f32
    %8 = vector.broadcast %cst_3 : f32 to vector<32x1xf32>
    %9 = arith.divf %7, %8 : vector<32x1xf32>
    %10 = arith.mulf %4, %4 : vector<32x1xf32>
    %11 = arith.subf %9, %10 : vector<32x1xf32>
    %cst_4 = arith.constant 0.000000e+00 : f32
    %12 = vector.broadcast %cst_4 : f32 to vector<32x1xf32>
    %13 = arith.maximumf %11, %12 : vector<32x1xf32>
    %cst_5 = arith.constant 9.99999974E-6 : f32
    %14 = vector.broadcast %cst_5 : f32 to vector<32x1xf32>
    %15 = arith.addf %13, %14 : vector<32x1xf32>
    %16 = math.rsqrt %15 : vector<32x1xf32>
    %17 = vector.broadcast %4 : vector<32x1xf32> to vector<32x128xf32>
    %18 = arith.subf %0, %17 : vector<32x128xf32>
    %19 = vector.broadcast %16 : vector<32x1xf32> to vector<32x128xf32>
    %20 = arith.mulf %18, %19 : vector<32x128xf32>
    %c0_6 = arith.constant 0 : index
    %c0_7 = arith.constant 0 : index
    %21 = vector.load %arg2[%c0_6, %c0_7] : memref<1x128xf32, #tpu.memory_space<vmem>>, vector<1x128xf32>
    %22 = vector.broadcast %21 : vector<1x128xf32> to vector<32x128xf32>
    %23 = arith.mulf %20, %22 : vector<32x128xf32>
    %c0_8 = arith.constant 0 : index
    %c0_9 = arith.constant 0 : index
    %24 = vector.load %arg3[%c0_8, %c0_9] : memref<1x128xf32, #tpu.memory_space<vmem>>, vector<1x128xf32>
    %25 = vector.broadcast %24 : vector<1x128xf32> to vector<32x128xf32>
    %26 = arith.addf %23, %25 : vector<32x128xf32>
    %c0_10 = arith.constant 0 : index
    %c0_11 = arith.constant 0 : index
    %27 = vector.load %arg4[%c0_10, %c0_11] : memref<32x128xf32, #tpu.memory_space<vmem>>, vector<32x128xf32>
    tpu.vector_store %arg4[%c0_10, %c0_11], %26 {strides = array<i32>} : memref<32x128xf32, #tpu.memory_space<vmem>>, vector<32x128xf32>,
    return
  }
  func.func @transform_0(%arg0: i32) -> (i32, i32) {
    %c0_i32 = arith.constant 0 : i32
    %c0_i32_0 = arith.constant 0 : i32
    return %arg0, %c0_i32 : i32, i32
  }
  func.func @transform_1(%arg0: i32) -> (i32, i32) {
    %c0_i32 = arith.constant 0 : i32
    %c0_i32_0 = arith.constant 0 : i32
    %c0_i32_1 = arith.constant 0 : i32
    return %c0_i32, %c0_i32_0 : i32, i32
  }
  func.func @transform_2(%arg0: i32) -> (i32, i32) {
    %c0_i32 = arith.constant 0 : i32
    %c0_i32_0 = arith.constant 0 : i32
    %c0_i32_1 = arith.constant 0 : i32
    return %c0_i32, %c0_i32_0 : i32, i32
  }
  func.func @transform_3(%arg0: i32) -> (i32, i32) {
    %c0_i32 = arith.constant 0 : i32
    %c0_i32_0 = arith.constant 0 : i32
    return %arg0, %c0_i32 : i32, i32
  }
}

module attributes {stable_mosaic.version = 11 : i64} {
  func.func @dwconv_taps_kernel(%arg0: i32, %arg1: memref<9x32x128xf32, #tpu.memory_space<vmem>>, %arg2: memref<9x1x128xf32, #tpu.memory_space<vmem>>, %arg3: memref<1x128xf32, #tpu.memory_space<vmem>>, %arg4: memref<32x128xf32, #tpu.memory_space<vmem>>) attributes {dimension_semantics = [#tpu.dimension_semantics<parallel>], iteration_bounds = array<i64: 2>, scalar_prefetch = 0 : i64, scratch_operands = 0 : i64, tpu.core_type = #tpu.core_type<tc>, window_params = [{transform_indices = @transform_0, window_bounds = array<i64: 9, 32, 128>}, {pipeline_mode = #tpu.pipeline_mode<synchronous>, transform_indices = @transform_1, window_bounds = array<i64: 9, 1, 128>}, {pipeline_mode = #tpu.pipeline_mode<synchronous>, transform_indices = @transform_2, window_bounds = array<i64: 1, 128>}, {transform_indices = @transform_3, window_bounds = array<i64: 32, 128>}]} {
    %cst = arith.constant 0.000000e+00 : f32
    %0 = vector.broadcast %cst : f32 to vector<32x128xf32>
    %c0 = arith.constant 0 : index
    %c0_0 = arith.constant 0 : index
    %c0_1 = arith.constant 0 : index
    %1 = vector.load %arg1[%c0, %c0_0, %c0_1] : memref<9x32x128xf32, #tpu.memory_space<vmem>>, vector<1x32x128xf32>
    %2 = vector.shape_cast %1 : vector<1x32x128xf32> to vector<32x128xf32>
    %c0_2 = arith.constant 0 : index
    %c0_3 = arith.constant 0 : index
    %c0_4 = arith.constant 0 : index
    %3 = vector.load %arg2[%c0_2, %c0_3, %c0_4] : memref<9x1x128xf32, #tpu.memory_space<vmem>>, vector<1x1x128xf32>
    %4 = vector.shape_cast %3 : vector<1x1x128xf32> to vector<1x128xf32>
    %5 = vector.broadcast %4 : vector<1x128xf32> to vector<32x128xf32>
    %6 = arith.mulf %2, %5 : vector<32x128xf32>
    %7 = arith.addf %0, %6 : vector<32x128xf32>
    %c1 = arith.constant 1 : index
    %c0_5 = arith.constant 0 : index
    %c0_6 = arith.constant 0 : index
    %8 = vector.load %arg1[%c1, %c0_5, %c0_6] : memref<9x32x128xf32, #tpu.memory_space<vmem>>, vector<1x32x128xf32>
    %9 = vector.shape_cast %8 : vector<1x32x128xf32> to vector<32x128xf32>
    %c1_7 = arith.constant 1 : index
    %c0_8 = arith.constant 0 : index
    %c0_9 = arith.constant 0 : index
    %10 = vector.load %arg2[%c1_7, %c0_8, %c0_9] : memref<9x1x128xf32, #tpu.memory_space<vmem>>, vector<1x1x128xf32>
    %11 = vector.shape_cast %10 : vector<1x1x128xf32> to vector<1x128xf32>
    %12 = vector.broadcast %11 : vector<1x128xf32> to vector<32x128xf32>
    %13 = arith.mulf %9, %12 : vector<32x128xf32>
    %14 = arith.addf %7, %13 : vector<32x128xf32>
    %c2 = arith.constant 2 : index
    %c0_10 = arith.constant 0 : index
    %c0_11 = arith.constant 0 : index
    %15 = vector.load %arg1[%c2, %c0_10, %c0_11] : memref<9x32x128xf32, #tpu.memory_space<vmem>>, vector<1x32x128xf32>
    %16 = vector.shape_cast %15 : vector<1x32x128xf32> to vector<32x128xf32>
    %c2_12 = arith.constant 2 : index
    %c0_13 = arith.constant 0 : index
    %c0_14 = arith.constant 0 : index
    %17 = vector.load %arg2[%c2_12, %c0_13, %c0_14] : memref<9x1x128xf32, #tpu.memory_space<vmem>>, vector<1x1x128xf32>
    %18 = vector.shape_cast %17 : vector<1x1x128xf32> to vector<1x128xf32>
    %19 = vector.broadcast %18 : vector<1x128xf32> to vector<32x128xf32>
    %20 = arith.mulf %16, %19 : vector<32x128xf32>
    %21 = arith.addf %14, %20 : vector<32x128xf32>
    %c3 = arith.constant 3 : index
    %c0_15 = arith.constant 0 : index
    %c0_16 = arith.constant 0 : index
    %22 = vector.load %arg1[%c3, %c0_15, %c0_16] : memref<9x32x128xf32, #tpu.memory_space<vmem>>, vector<1x32x128xf32>
    %23 = vector.shape_cast %22 : vector<1x32x128xf32> to vector<32x128xf32>
    %c3_17 = arith.constant 3 : index
    %c0_18 = arith.constant 0 : index
    %c0_19 = arith.constant 0 : index
    %24 = vector.load %arg2[%c3_17, %c0_18, %c0_19] : memref<9x1x128xf32, #tpu.memory_space<vmem>>, vector<1x1x128xf32>
    %25 = vector.shape_cast %24 : vector<1x1x128xf32> to vector<1x128xf32>
    %26 = vector.broadcast %25 : vector<1x128xf32> to vector<32x128xf32>
    %27 = arith.mulf %23, %26 : vector<32x128xf32>
    %28 = arith.addf %21, %27 : vector<32x128xf32>
    %c4 = arith.constant 4 : index
    %c0_20 = arith.constant 0 : index
    %c0_21 = arith.constant 0 : index
    %29 = vector.load %arg1[%c4, %c0_20, %c0_21] : memref<9x32x128xf32, #tpu.memory_space<vmem>>, vector<1x32x128xf32>
    %30 = vector.shape_cast %29 : vector<1x32x128xf32> to vector<32x128xf32>
    %c4_22 = arith.constant 4 : index
    %c0_23 = arith.constant 0 : index
    %c0_24 = arith.constant 0 : index
    %31 = vector.load %arg2[%c4_22, %c0_23, %c0_24] : memref<9x1x128xf32, #tpu.memory_space<vmem>>, vector<1x1x128xf32>
    %32 = vector.shape_cast %31 : vector<1x1x128xf32> to vector<1x128xf32>
    %33 = vector.broadcast %32 : vector<1x128xf32> to vector<32x128xf32>
    %34 = arith.mulf %30, %33 : vector<32x128xf32>
    %35 = arith.addf %28, %34 : vector<32x128xf32>
    %c5 = arith.constant 5 : index
    %c0_25 = arith.constant 0 : index
    %c0_26 = arith.constant 0 : index
    %36 = vector.load %arg1[%c5, %c0_25, %c0_26] : memref<9x32x128xf32, #tpu.memory_space<vmem>>, vector<1x32x128xf32>
    %37 = vector.shape_cast %36 : vector<1x32x128xf32> to vector<32x128xf32>
    %c5_27 = arith.constant 5 : index
    %c0_28 = arith.constant 0 : index
    %c0_29 = arith.constant 0 : index
    %38 = vector.load %arg2[%c5_27, %c0_28, %c0_29] : memref<9x1x128xf32, #tpu.memory_space<vmem>>, vector<1x1x128xf32>
    %39 = vector.shape_cast %38 : vector<1x1x128xf32> to vector<1x128xf32>
    %40 = vector.broadcast %39 : vector<1x128xf32> to vector<32x128xf32>
    %41 = arith.mulf %37, %40 : vector<32x128xf32>
    %42 = arith.addf %35, %41 : vector<32x128xf32>
    %c6 = arith.constant 6 : index
    %c0_30 = arith.constant 0 : index
    %c0_31 = arith.constant 0 : index
    %43 = vector.load %arg1[%c6, %c0_30, %c0_31] : memref<9x32x128xf32, #tpu.memory_space<vmem>>, vector<1x32x128xf32>
    %44 = vector.shape_cast %43 : vector<1x32x128xf32> to vector<32x128xf32>
    %c6_32 = arith.constant 6 : index
    %c0_33 = arith.constant 0 : index
    %c0_34 = arith.constant 0 : index
    %45 = vector.load %arg2[%c6_32, %c0_33, %c0_34] : memref<9x1x128xf32, #tpu.memory_space<vmem>>, vector<1x1x128xf32>
    %46 = vector.shape_cast %45 : vector<1x1x128xf32> to vector<1x128xf32>
    %47 = vector.broadcast %46 : vector<1x128xf32> to vector<32x128xf32>
    %48 = arith.mulf %44, %47 : vector<32x128xf32>
    %49 = arith.addf %42, %48 : vector<32x128xf32>
    %c7 = arith.constant 7 : index
    %c0_35 = arith.constant 0 : index
    %c0_36 = arith.constant 0 : index
    %50 = vector.load %arg1[%c7, %c0_35, %c0_36] : memref<9x32x128xf32, #tpu.memory_space<vmem>>, vector<1x32x128xf32>
    %51 = vector.shape_cast %50 : vector<1x32x128xf32> to vector<32x128xf32>
    %c7_37 = arith.constant 7 : index
    %c0_38 = arith.constant 0 : index
    %c0_39 = arith.constant 0 : index
    %52 = vector.load %arg2[%c7_37, %c0_38, %c0_39] : memref<9x1x128xf32, #tpu.memory_space<vmem>>, vector<1x1x128xf32>
    %53 = vector.shape_cast %52 : vector<1x1x128xf32> to vector<1x128xf32>
    %54 = vector.broadcast %53 : vector<1x128xf32> to vector<32x128xf32>
    %55 = arith.mulf %51, %54 : vector<32x128xf32>
    %56 = arith.addf %49, %55 : vector<32x128xf32>
    %c8 = arith.constant 8 : index
    %c0_40 = arith.constant 0 : index
    %c0_41 = arith.constant 0 : index
    %57 = vector.load %arg1[%c8, %c0_40, %c0_41] : memref<9x32x128xf32, #tpu.memory_space<vmem>>, vector<1x32x128xf32>
    %58 = vector.shape_cast %57 : vector<1x32x128xf32> to vector<32x128xf32>
    %c8_42 = arith.constant 8 : index
    %c0_43 = arith.constant 0 : index
    %c0_44 = arith.constant 0 : index
    %59 = vector.load %arg2[%c8_42, %c0_43, %c0_44] : memref<9x1x128xf32, #tpu.memory_space<vmem>>, vector<1x1x128xf32>
    %60 = vector.shape_cast %59 : vector<1x1x128xf32> to vector<1x128xf32>
    %61 = vector.broadcast %60 : vector<1x128xf32> to vector<32x128xf32>
    %62 = arith.mulf %58, %61 : vector<32x128xf32>
    %63 = arith.addf %56, %62 : vector<32x128xf32>
    %c0_45 = arith.constant 0 : index
    %c0_46 = arith.constant 0 : index
    %64 = vector.load %arg3[%c0_45, %c0_46] : memref<1x128xf32, #tpu.memory_space<vmem>>, vector<1x128xf32>
    %65 = vector.broadcast %64 : vector<1x128xf32> to vector<32x128xf32>
    %66 = arith.addf %63, %65 : vector<32x128xf32>
    %67 = arith.mulf %66, %66 : vector<32x128xf32>
    %68 = arith.mulf %66, %67 : vector<32x128xf32>
    %cst_47 = arith.constant 4.471500e-02 : f32
    %69 = vector.broadcast %cst_47 : f32 to vector<32x128xf32>
    %70 = arith.mulf %69, %68 : vector<32x128xf32>
    %71 = arith.addf %66, %70 : vector<32x128xf32>
    %cst_48 = arith.constant 0.797884583 : f32
    %72 = vector.broadcast %cst_48 : f32 to vector<32x128xf32>
    %73 = arith.mulf %72, %71 : vector<32x128xf32>
    %74 = math.tanh %73 : vector<32x128xf32>
    %cst_49 = arith.constant 1.000000e+00 : f32
    %75 = vector.broadcast %cst_49 : f32 to vector<32x128xf32>
    %76 = arith.addf %75, %74 : vector<32x128xf32>
    %cst_50 = arith.constant 5.000000e-01 : f32
    %77 = vector.broadcast %cst_50 : f32 to vector<32x128xf32>
    %78 = arith.mulf %77, %76 : vector<32x128xf32>
    %79 = arith.mulf %66, %78 : vector<32x128xf32>
    %c0_51 = arith.constant 0 : index
    %c0_52 = arith.constant 0 : index
    %80 = vector.load %arg4[%c0_51, %c0_52] : memref<32x128xf32, #tpu.memory_space<vmem>>, vector<32x128xf32>
    tpu.vector_store %arg4[%c0_51, %c0_52], %79 {strides = array<i32>} : memref<32x128xf32, #tpu.memory_space<vmem>>, vector<32x128xf32>,
    return
  }
  func.func @transform_0(%arg0: i32) -> (i32, i32, i32) {
    %c0_i32 = arith.constant 0 : i32
    %c0_i32_0 = arith.constant 0 : i32
    %c0_i32_1 = arith.constant 0 : i32
    return %c0_i32, %arg0, %c0_i32_0 : i32, i32, i32
  }
  func.func @transform_1(%arg0: i32) -> (i32, i32, i32) {
    %c0_i32 = arith.constant 0 : i32
    %c0_i32_0 = arith.constant 0 : i32
    %c0_i32_1 = arith.constant 0 : i32
    %c0_i32_2 = arith.constant 0 : i32
    return %c0_i32, %c0_i32_0, %c0_i32_1 : i32, i32, i32
  }
  func.func @transform_2(%arg0: i32) -> (i32, i32) {
    %c0_i32 = arith.constant 0 : i32
    %c0_i32_0 = arith.constant 0 : i32
    %c0_i32_1 = arith.constant 0 : i32
    return %c0_i32, %c0_i32_0 : i32, i32
  }
  func.func @transform_3(%arg0: i32) -> (i32, i32) {
    %c0_i32 = arith.constant 0 : i32
    %c0_i32_0 = arith.constant 0 : i32
    return %arg0, %c0_i32 : i32, i32
  }
}

</mosaic_0001>

<bundles_post_ra>
// kernel: block_forward.21
= control target key start
LH: loop header
LB: loop body
LE: loop exit
PB: predicated region body
PF: predicated region fallthrough
CT: control target
= control target key end

     0   :  { %s396_s9 = smov 0   ;;  %s398_s10 = smov 0   ;;  %s435_s0 = inlined_call_operand.vmem [shape: f32[64,128], index: 0, kind: input, shape index: {}]   ;;  %s436_s1 = inlined_call_operand.vmem [shape: f32[16,128], index: 1, kind: output, shape index: {0}]   ;;  %s437_s2 = inlined_call_operand.vmem [shape: f32[16,128], index: 2, kind: output, shape index: {1}]  }
   0x1   :  { %s400_s11 = smov 0  }
   0x2 LB: > { %s25_s12 = sadd.s32 1, %s375_s10  ;;  %p324_p0 = scmp.ge.s32.totalorder %s379_s11, 1  ;;  %s379_s11 = sphi %s400_s11, %s13_s11   ;;  %s375_s10 = sphi %s398_s10, %s439_s10   ;;  %s371_s9 = sphi %s396_s9, %s438_s9  }
   0x3   : > { %p27_p1 = scmp.ge.s32.totalorder %s25_s12, 2  ;;  %p132_p2 = scmp.lt.s32.totalorder %s379_s11, 3 }
   0x5   : > { %s441_s12 = smov (%p27_p1, %s25_s12), 0  ;;  %p133_p3 = pnand %p324_p0, %p132_p2 }
   0x6   : > { %p166_p4 = scmp.lt.s32.totalorder (!%p133_p3), %s371_s9, 1  ;;  %s325_s13 = sshll.u32 (!%p133_p3), %s371_s9, 2  ;;  %v182_v0 = vlaneseq (!%p133_p3) }
   0x7   : > { %136 = sbr.rel (%p133_p3) target bundleno = 28 (0x1c), region = 24  ;;  %p160_p5 = scmp.lt.s32.totalorder (!%p133_p3), %s325_s13, 7 }
   0x8   : > { %s329_s14 = sshll.u32 (!%p133_p3), %s371_s9, 5  ;;  %v183_v1 = vshrl.u32 (!%p133_p3), %v182_v0, 7 }
   0x9   : > { %v187_v2 = vstv (!%p133_p3), %s329_s14 }
   0xa   : > { %v184_v3 = vadd.s32 (!%p133_p3), 8, %v183_v1  ;;  %v185_v4 = vadd.s32 (!%p133_p3), 16, %v183_v1  ;;  %v186_v5 = vadd.s32 (!%p133_p3), 24, %v183_v1  ;;  %v188_v6 = vadd.s32 (!%p133_p3), %v187_v2, %v183_v1 }
   0xc   : > { %v189_v7 = vadd.s32 (!%p133_p3), %v187_v2, %v184_v3  ;;  %v190_v8 = vadd.s32 (!%p133_p3), %v187_v2, %v185_v4  ;;  %v191_v9 = vadd.s32 (!%p133_p3), %v187_v2, %v186_v5  ;;  %vm192_vm0 = vcmp.lt.s32.totalorder (!%p133_p3), %v188_v6, 32 }
   0xe   : > { %s443_s13 = smov (!%p160_p5, %s325_s13), 7  ;;  %s445_s9 = smov (!%p166_p4, %s371_s9), 1  ;;  %vm193_vm1 = vcmp.lt.s32.totalorder %v189_v7, 32  ;;  %vm194_vm2 = vcmp.lt.s32.totalorder %v190_v8, 32  ;;  %vm195_vm3 = vcmp.lt.s32.totalorder %v191_v9, 32 }
   0xf   : > { %s326_s15 = sshll.u32 %s443_s13, 3  ;;  %s327_s19 = sshll.u32 %s445_s9, 3 }
  0x10   : > { %s163_s18 = scalar_lea.vmem %s435_s0, %s326_s15  ;;  %s169_s22 = scalar_lea.vmem %s436_s1, %s327_s19 }
  0x11   : > { %v196_v10 = vld [vmem:[%s163_s18] sm:$0xff]  ;;  %v197_v11 = vld [vmem:[%s163_s18 + $0x8] sm:$0xff]  ;;  %v198_v12 = vld [vmem:[%s163_s18 + $0x10] sm:$0xff]  ;;  %s173_s25 = scalar_lea.vmem %s437_s2, %s327_s19 }
  0x12   : > { %v199_v13 = vld [vmem:[%s163_s18 + $0x18] sm:$0xff]  ;;  %v208_v14 = vsel %vm192_vm0, %v196_v10, 0.0  ;;  %v209_v15 = vsel %vm193_vm1, %v197_v11, 0.0  ;;  %v210_v16 = vsel %vm194_vm2, %v198_v12, 0.0 }
  0x13   : > { %v211_v17 = vsel %vm195_vm3, %v199_v13, 0.0  ;;  %v213_v18 = vadd.f32 %v209_v15, %v208_v14  ;;  %v219_v19 = vmul.f32 %v208_v14, %v208_v14  ;;  %v220_v20 = vmul.f32 %v209_v15, %v209_v15 }
  0x14   : > { %v221_v21 = vmul.f32 %v210_v16, %v210_v16  ;;  %v222_v23 = vmul.f32 %v211_v17, %v211_v17 }
  0x15   : > { %v214_v22 = vadd.f32 %v213_v18, %v210_v16  ;;  %v223_v24 = vadd.f32 %v220_v20, %v219_v19 }
  0x17   : > { %v215_v25 = vadd.f32 %v214_v22, %v211_v17  ;;  %v224_v26 = vadd.f32 %v223_v24, %v221_v21 }
  0x19   : > { %v225_v27 = vadd.f32 %v224_v26, %v222_v23  ;;  %217 = vst [vmem:[%s169_s22] sm:$0xff] %v215_v25 }
  0x1b   : > { %227 = vst [vmem:[%s173_s25] sm:$0xff] %v225_v27 }
  0x1c PF: > { %s13_s11 = sadd.s32 1, %s379_s11   ;;  %s438_s9 = smov %s375_s10 }
  0x1d   : > { %p10_p6 = scmp.ge.s32.totalorder %s13_s11, 4   ;;  %s439_s10 = smov %s441_s12 }
  0x1f   :  { %12 = sbr.rel (!%p10_p6) target bundleno = 2 (0x2), region = 70 }

// kernel: block_forward.20
= control target key start
LH: loop header
LB: loop body
LE: loop exit
PB: predicated region body
PF: predicated region fallthrough
CT: control target
= control target key end

     0   :  { %s309_s12 = smov 0   ;;  %s332_s0 = inlined_call_operand.vmem [shape: f32[64,128], index: 0, kind: input, shape index: {}]   ;;  %s333_s1 = inlined_call_operand.vmem [shape: f32[1,128], index: 1, kind: input, shape index: {}]   ;;  %s334_s2 = inlined_call_operand.vmem [shape: f32[1,128], index: 2, kind: input, shape index: {}]   ;;  %s335_s3 = inlined_call_operand.vmem [shape: f32[64,128], index: 3, kind: output, shape index: {}]  }
   0x1 LB: > { %s260_s13 = sadd.s32 4294967295, %s287_s12   ;;  %p264_p0 = scmp.ge.s32.totalorder %s287_s12, 1  ;;  %s287_s12 = sphi %s309_s12, %s13_s12  }
   0x2   : > { %p138_p1 = scmp.lt.s32.totalorder %s287_s12, 3 }
   0x4   : > { %p139_p2 = pnand %p264_p0, %p138_p1 }
   0x5   : > { %s265_s14 = sshll.u32 (!%p139_p2), %s260_s13, 2  ;;  %v269_v0 = vld [vmem:[%s333_s1] ss:$0 sm:$0xff] (!%p139_p2) }
   0x6   : > { %142 = sbr.rel (%p139_p2) target bundleno = 23 (0x17), region = 32  ;;  %p163_p3 = scmp.lt.s32.totalorder (!%p139_p2), %s265_s14, 7  ;;  %v270_v1 = vld [vmem:[%s334_s2] ss:$0 sm:$0xff] (!%p139_p2) }
   0xd   : > { %s337_s14 = smov (!%p163_p3, %s265_s14), 7 }
   0xe   : > { %s266_s15 = sshll.u32 %s337_s14, 3 }
   0xf   : > { %s166_s20 = scalar_lea.vmem %s332_s0, %s266_s15  ;;  %s172_s25 = scalar_lea.vmem %s335_s3, %s266_s15 }
  0x10   : > { %v174_v2 = vld [vmem:[%s166_s20] sm:$0xff]  ;;  %v175_v3 = vld [vmem:[%s166_s20 + $0x8] sm:$0xff]  ;;  %v176_v4 = vld [vmem:[%s166_s20 + $0x10] sm:$0xff] }
  0x11   : > { %v185_v5 = vmul.f32 %v269_v0, %v174_v2  ;;  %v186_v6 = vmul.f32 %v269_v0, %v175_v3  ;;  %v187_v7 = vmul.f32 %v269_v0, %v176_v4  ;;  %v177_v8 = vld [vmem:[%s166_s20 + $0x18] sm:$0xff] }
  0x12   : > { %v188_v9 = vmul.f32 %v269_v0, %v177_v8 }
  0x13   : > { %v196_v10 = vadd.f32 %v270_v1, %v185_v5  ;;  %v197_v11 = vadd.f32 %v270_v1, %v186_v6  ;;  %v198_v12 = vadd.f32 %v270_v1, %v187_v7 }
  0x14   : > { %v199_v13 = vadd.f32 %v270_v1, %v188_v9 }
  0x15   : > { %200 = vst [vmem:[%s172_s25] sm:$0xff] %v196_v10  ;;  %201 = vst [vmem:[%s172_s25 + $0x8] sm:$0xff] %v197_v11 }
  0x16   : > { %202 = vst [vmem:[%s172_s25 + $0x10] sm:$0xff] %v198_v12  ;;  %203 = vst [vmem:[%s172_s25 + $0x18] sm:$0xff] %v199_v13 }
  0x17 PF: > { %s13_s12 = sadd.s32 1, %s287_s12  }
  0x18   : > { %p10_p4 = scmp.ge.s32.totalorder %s13_s12, 4  }
  0x1a   :  { %12 = sbr.rel (!%p10_p4) target bundleno = 1 (0x1), region = 62 }

// kernel: block_forward.19
= control target key start
LH: loop header
LB: loop body
LE: loop exit
PB: predicated region body
PF: predicated region fallthrough
CT: control target
= control target key end

     0   :  { %s851_s18 = smov 0   ;;  %s853_s19 = smov 0   ;;  %s954_s0 = inlined_call_operand.vmem [shape: bf16[64,256], index: 0, kind: input, shape index: {}]   ;;  %s955_s1 = inlined_call_operand.vmem [shape: bf16[256,128], index: 1, kind: input, shape index: {}]   ;;  %s956_s2 = inlined_call_operand.vmem [shape: f32[1,128], index: 2, kind: input, shape index: {}]   ;;  %s957_s3 = inlined_call_operand.vmem [shape: f32[64,128], index: 3, kind: output, shape index: {0}]   ;;  %s958_s4 = inlined_call_operand.vmem [shape: f32[16,128], index: 4, kind: output, shape index: {1}]   ;;  %s959_s5 = inlined_call_operand.vmem [shape: f32[16,128], index: 5, kind: output, shape index: {2}]  }
   0x1   :  { %s855_s20 = smov 0  }
   0x2 LB: > { %s28_s21 = sadd.s32 1, %s815_s19  ;;  %p673_p0 = scmp.ge.s32.totalorder %s819_s20, 1  ;;  %s819_s20 = sphi %s855_s20, %s16_s20   ;;  %s815_s19 = sphi %s853_s19, %s961_s19   ;;  %s811_s18 = sphi %s851_s18, %s960_s18  }
   0x3   : > { %p30_p1 = scmp.ge.s32.totalorder %s28_s21, 2  ;;  %p212_p2 = scmp.lt.s32.totalorder %s819_s20, 3 }
   0x5   : > { %s963_s21 = smov (%p30_p1, %s28_s21), 0  ;;  %p213_p3 = pnand %p673_p0, %p212_p2 }
   0x6   : > { %v775_v0 = vld [vmem:[%s955_s1 + $0x40] sm:$0xff] (!%p213_p3)   ;;  %s674_s24 = sshll.u32 (!%p213_p3), %s811_s18, 2  ;;  %v777_v2 = vld [vmem:[%s955_s1 + $0x48] sm:$0xff] (!%p213_p3)   ;;  %v779_v4 = vld [vmem:[%s955_s1 + $0x50] sm:$0xff] (!%p213_p3)   ;;  %v497_v20 = vlaneseq (!%p213_p3)  ;;  %s702_s15 = sshll.u32 (!%p213_p3), %s811_s18, 5 }
   0x7   : > { %216 = sbr.rel (%p213_p3) target bundleno = 268 (0x10c), region = 32  ;;  %v776_v1 = vld [vmem:[%s955_s1] sm:$0xff] (!%p213_p3)   ;;  %706 = vmatprep.subr.bf16.mxu0 (!%p213_p3), %v775_v0  ;;  %734 = vmatprep.subr.bf16.mxu1 (!%p213_p3), %v775_v0  ;;  %v778_v3 = vld [vmem:[%s955_s1 + $0x8] sm:$0xff] (!%p213_p3)   ;;  %p253_p4 = scmp.lt.s32.totalorder (!%p213_p3), %s674_s24, 7  ;;  %v780_v5 = vld [vmem:[%s955_s1 + $0x10] sm:$0xff] (!%p213_p3)   ;;  %v502_v23 = vstv (!%p213_p3), %s702_s15 }
   0x8   : > { %707 = vmatpush3.bf16.msra.mxu0 (!%p213_p3), %v776_v1  ;;  %742 = vmatpush3.bf16.msra.mxu1 (!%p213_p3), %v776_v1  ;;  %v781_v6 = vld [vmem:[%s955_s1 + $0x58] sm:$0xff] (!%p213_p3)   ;;  %v783_v8 = vld [vmem:[%s955_s1 + $0x60] sm:$0xff] (!%p213_p3)   ;;  %v785_v10 = vld [vmem:[%s955_s1 + $0x68] sm:$0xff] (!%p213_p3)   ;;  %v498_v21 = vshrl.u32 (!%p213_p3), %v497_v20, 7  ;;  %p268_p5 = scmp.lt.s32.totalorder (!%p213_p3), %s811_s18, 1 }
   0x9   : > { %708 = vmatprep.subr.bf16.mxu0 (!%p213_p3), %v777_v2  ;;  %735 = vmatprep.subr.bf16.mxu1 (!%p213_p3), %v777_v2  ;;  %v782_v7 = vld [vmem:[%s955_s1 + $0x18] sm:$0xff] (!%p213_p3)   ;;  %v784_v9 = vld [vmem:[%s955_s1 + $0x20] sm:$0xff] (!%p213_p3)   ;;  %v786_v13 = vld [vmem:[%s955_s1 + $0x28] sm:$0xff] (!%p213_p3)  }
   0xa   : > { %v787_v14 = vld [vmem:[%s955_s1 + $0x70] sm:$0xff] (!%p213_p3)   ;;  %v789_v16 = vld [vmem:[%s955_s1 + $0x78] sm:$0xff] (!%p213_p3)   ;;  %v500_v22 = vadd.s32 (!%p213_p3), 16, %v498_v21  ;;  %v499_v24 = vadd.s32 (!%p213_p3), 8, %v498_v21  ;;  %v503_v25 = vadd.s32 (!%p213_p3), %v502_v23, %v498_v21  ;;  %v501_v27 = vadd.s32 (!%p213_p3), 24, %v498_v21 }
   0xb   : > { %v788_v15 = vld [vmem:[%s955_s1 + $0x30] sm:$0xff] (!%p213_p3)   ;;  %v790_v17 = vld [vmem:[%s955_s1 + $0x38] sm:$0xff] (!%p213_p3)   ;;  %v681_v30 = vld [vmem:[%s956_s2] ss:$0 sm:$0xff] (!%p213_p3) }
   0xc   : > { %709 = vmatpush3.bf16.msra.mxu0 (!%p213_p3), %v778_v3  ;;  %743 = vmatpush3.bf16.msra.mxu1 (!%p213_p3), %v778_v3  ;;  %v505_v26 = vadd.s32 (!%p213_p3), %v502_v23, %v500_v22  ;;  %v504_v33 = vadd.s32 (!%p213_p3), %v502_v23, %v499_v24  ;;  %vm507_vm0 = vcmp.lt.s32.totalorder (!%p213_p3), %v503_v25, 32  ;;  %v506_v40 = vadd.s32 (!%p213_p3), %v502_v23, %v501_v27 }
   0xd   : > { %710 = vmatprep.subr.bf16.mxu0 (!%p213_p3), %v779_v4  ;;  %736 = vmatprep.subr.bf16.mxu1 (!%p213_p3), %v779_v4 }
   0xe   : > { %s965_s24 = smov (!%p253_p4, %s674_s24), 7  ;;  %vm509_vm1 = vcmp.lt.s32.totalorder %v505_v26, 32  ;;  %vm508_vm2 = vcmp.lt.s32.totalorder %v504_v33, 32  ;;  %s967_s18 = smov (!%p268_p5, %s811_s18), 1  ;;  %vm510_vm3 = vcmp.lt.s32.totalorder %v506_v40, 32 }
   0xf   : > { %s705_s14 = sshll.u32 %s965_s24, 3  ;;  %s679_s24 = sshll.u32 %s967_s18, 3 }
  0x10   : > { %711 = vmatpush3.bf16.msra.mxu0 %v780_v5  ;;  %744 = vmatpush3.bf16.msra.mxu1 %v780_v5  ;;  %s257_s23 = scalar_lea.vmem %s954_s0, %s705_s14  ;;  %s265_s25 = scalar_lea.vmem %s957_s3, %s705_s14 }
  0x11   : > { %712 = vmatprep.subr.bf16.mxu0 %v781_v6  ;;  %737 = vmatprep.subr.bf16.mxu1 %v781_v6  ;;  %v793_v11 = vld [vmem:[%s257_s23 + $0x4] ss:$8 sps:$4 sm:$0xff]   ;;  %v796_v12 = vld [vmem:[%s257_s23 + $0x14] ss:$8 sps:$4 sm:$0xff]   ;;  %v791_v18 = vld [vmem:[%s257_s23] ss:$8 sps:$4 sm:$0xff]   ;;  %s271_s27 = scalar_lea.vmem %s958_s4, %s679_s24  ;;  %s275_s30 = scalar_lea.vmem %s959_s5, %s679_s24 }
  0x12   : > { %474 = vmatprep.mubr.bf16.mxu0 %v793_v11  ;;  %482 = vmatprep.mubr.bf16.mxu1 %v796_v12  ;;  %v794_v19 = vld [vmem:[%s257_s23 + $0x10] ss:$8 sps:$4 sm:$0xff]  }
  0x14   : > { %713 = vmatpush3.bf16.msra.mxu0 %v782_v7  ;;  %745 = vmatpush3.bf16.msra.mxu1 %v782_v7 }
  0x15   : > { %714 = vmatprep.subr.bf16.mxu0 %v783_v8  ;;  %738 = vmatprep.subr.bf16.mxu1 %v783_v8 }
  0x18   : > { %715 = vmatpush3.bf16.msra.mxu0 %v784_v9  ;;  %746 = vmatpush3.bf16.msra.mxu1 %v784_v9 }
  0x19   : > { %716 = vmatprep.subr.bf16.mxu0 %v785_v10  ;;  %739 = vmatprep.subr.bf16.mxu1 %v785_v10 }
  0x1c   : > { %717 = vmatpush3.bf16.msra.mxu0 %v786_v13  ;;  %747 = vmatpush3.bf16.msra.mxu1 %v786_v13 }
  0x1d   : > { %718 = vmatprep.subr.bf16.mxu0 %v787_v14  ;;  %740 = vmatprep.subr.bf16.mxu1 %v787_v14 }
  0x20   : > { %719 = vmatpush3.bf16.msra.mxu0 %v788_v15  ;;  %748 = vmatpush3.bf16.msra.mxu1 %v788_v15 }
  0x21   : > { %720 = vmatprep.subr.bf16.mxu0 %v789_v16  ;;  %741 = vmatprep.subr.bf16.mxu1 %v789_v16 }
  0x24   : > { %721 = vmatpush3.bf16.msra.mxu0 %v790_v17  ;;  %749 = vmatpush3.bf16.msra.mxu1 %v790_v17 }
  0x27   : > { %475 = vmatmul.mubr.bf16.vlgmr.msra.gmra.mrb[0].mxu0 %v791_v18  ;;  %483 = vmatmul.mubr.bf16.vlgmr.msra.gmra.mrb[0].mxu1 %v794_v19 }
  0xfa   : > { %v722_v28 = vpop.f32.mrb[0].mxu0  ;;  %v728_v29 = vpop.f32.mrb[0].mxu1 }
  0xfb   : > { %v723_v31 = vpop.f32.mrb[1].mxu0  ;;  %v729_v32 = vpop.f32.mrb[1].mxu1 }
  0xfc   : > { %v724_v34 = vadd.f32 %v723_v31, %v722_v28  ;;  %v725_v35 = vpop.f32.mrb[2].mxu0  ;;  %v730_v36 = vadd.f32 %v729_v32, %v728_v29  ;;  %v731_v37 = vpop.f32.mrb[2].mxu1 }
  0xfd   : > { %v726_v38 = vpop.f32.mrb[3].mxu0  ;;  %v732_v39 = vpop.f32.mrb[3].mxu1 }
  0xfe   : > { %v477_v41 = vadd.f32 %v724_v34, %v681_v30  ;;  %v485_v42 = vadd.f32 %v730_v36, %v681_v30  ;;  %v727_v43 = vadd.f32 %v726_v38, %v725_v35  ;;  %v733_v44 = vadd.f32 %v732_v39, %v731_v37 }
 0x100   : > { %491 = vst [vmem:[%s265_s25] sm:$0xff] %v477_v41  ;;  %v519_v45 = vsel %vm507_vm0, %v477_v41, 0.0  ;;  %v521_v46 = vsel %vm509_vm1, %v485_v42, 0.0  ;;  %v480_v47 = vadd.f32 %v727_v43, %v681_v30  ;;  %v488_v48 = vadd.f32 %v733_v44, %v681_v30  ;;  %493 = vst [vmem:[%s265_s25 + $0x10] sm:$0xff] %v485_v42 }
 0x101   : > { %v530_v50 = vmul.f32 %v519_v45, %v519_v45  ;;  %v532_v51 = vmul.f32 %v521_v46, %v521_v46 }
 0x102   : > { %492 = vst [vmem:[%s265_s25 + $0x8] sm:$0xff] %v480_v47  ;;  %v520_v49 = vsel %vm508_vm2, %v480_v47, 0.0  ;;  %494 = vst [vmem:[%s265_s25 + $0x18] sm:$0xff] %v488_v48  ;;  %v522_v54 = vsel %vm510_vm3, %v488_v48, 0.0 }
 0x103   : > { %v524_v52 = vadd.f32 %v520_v49, %v519_v45  ;;  %v531_v53 = vmul.f32 %v520_v49, %v520_v49  ;;  %v533_v58 = vmul.f32 %v522_v54, %v522_v54 }
 0x105   : > { %v534_v55 = vadd.f32 %v531_v53, %v530_v50  ;;  %v525_v56 = vadd.f32 %v524_v52, %v521_v46 }
 0x107   : > { %v526_v57 = vadd.f32 %v525_v56, %v522_v54  ;;  %v535_v59 = vadd.f32 %v534_v55, %v532_v51 }
 0x109   : > { %v536_v60 = vadd.f32 %v535_v59, %v533_v58  ;;  %528 = vst [vmem:[%s271_s27] sm:$0xff] %v526_v57 }
 0x10b   : > { %538 = vst [vmem:[%s275_s30] sm:$0xff] %v536_v60 }
 0x10c PF: > { %s16_s20 = sadd.s32 1, %s819_s20   ;;  %s960_s18 = smov %s815_s19 }
 0x10d   : > { %p13_p6 = scmp.ge.s32.totalorder %s16_s20, 4   ;;  %s961_s19 = smov %s963_s21 }
 0x10f   :  { %15 = sbr.rel (!%p13_p6) target bundleno = 2 (0x2), region = 90 }

// kernel: block_forward.23
= control target key start
LH: loop header
LB: loop body
LE: loop exit
PB: predicated region body
PF: predicated region fallthrough
CT: control target
= control target key end

     0   :  { %s544_s12 = smov 0   ;;  %s625_s0 = inlined_call_operand.vmem [shape: f32[64,128], index: 0, kind: input, shape index: {}]   ;;  %s626_s1 = inlined_call_operand.vmem [shape: f32[128,128], index: 1, kind: input, shape index: {}]   ;;  %s627_s2 = inlined_call_operand.vmem [shape: f32[1,128], index: 2, kind: input, shape index: {}]   ;;  %s628_s3 = inlined_call_operand.vmem [shape: f32[64,128], index: 3, kind: output, shape index: {}]  }
   0x1 LB: > { %s382_s13 = sadd.s32 4294967295, %s522_s12   ;;  %p386_p0 = scmp.ge.s32.totalorder %s522_s12, 1  ;;  %s522_s12 = sphi %s544_s12, %s13_s12  }
   0x2   : > { %p138_p1 = scmp.lt.s32.totalorder %s522_s12, 3 }
   0x4   : > { %p139_p2 = pnand %p386_p0, %p138_p1 }
   0x5   : > { %v178_v0 = vld [vmem:[%s626_s1] sm:$0xff] (!%p139_p2)  ;;  %v179_v1 = vld [vmem:[%s626_s1 + $0x8] sm:$0xff] (!%p139_p2)  ;;  %v180_v2 = vld [vmem:[%s626_s1 + $0x10] sm:$0xff] (!%p139_p2)  ;;  %s387_s20 = sshll.u32 (!%p139_p2), %s382_s13, 2 }
   0x6   : > { %142 = sbr.rel (%p139_p2) target bundleno = 286 (0x11e), region = 32  ;;  %v452_v3 = vpack.c.bf16 (!%p139_p2), %v179_v1, %v178_v0  ;;  %v181_v4 = vld [vmem:[%s626_s1 + $0x18] sm:$0xff] (!%p139_p2)  ;;  %p163_p3 = scmp.lt.s32.totalorder (!%p139_p2), %s387_s20, 7  ;;  %v182_v6 = vld [vmem:[%s626_s1 + $0x20] sm:$0xff] (!%p139_p2)  ;;  %v183_v7 = vld [vmem:[%s626_s1 + $0x28] sm:$0xff] (!%p139_p2) }
   0x7   : > { %v456_v5 = vpack.c.bf16 (!%p139_p2), %v181_v4, %v180_v2  ;;  %v460_v8 = vpack.c.bf16 (!%p139_p2), %v183_v7, %v182_v6  ;;  %v184_v9 = vld [vmem:[%s626_s1 + $0x30] sm:$0xff] (!%p139_p2)  ;;  %v185_v10 = vld [vmem:[%s626_s1 + $0x38] sm:$0xff] (!%p139_p2)  ;;  %v186_v14 = vld [vmem:[%s626_s1 + $0x40] sm:$0xff] (!%p139_p2) }
   0x8   : > { %453 = vmatprep.subr.bf16.mxu0 (!%p139_p2), %v452_v3  ;;  %484 = vmatprep.subr.bf16.mxu1 (!%p139_p2), %v452_v3  ;;  %v464_v13 = vpack.c.bf16 (!%p139_p2), %v185_v10, %v184_v9  ;;  %v187_v15 = vld [vmem:[%s626_s1 + $0x48] sm:$0xff] (!%p139_p2)  ;;  %v188_v17 = vld [vmem:[%s626_s1 + $0x50] sm:$0xff] (!%p139_p2)  ;;  %v189_v18 = vld [vmem:[%s626_s1 + $0x58] sm:$0xff] (!%p139_p2) }
   0x9   : > { %455 = vmatpush3.bf16.msra.mxu0 (!%p139_p2), %v452_v3  ;;  %492 = vmatpush3.bf16.msra.mxu1 (!%p139_p2), %v452_v3  ;;  %v468_v16 = vpack.c.bf16 (!%p139_p2), %v187_v15, %v186_v14  ;;  %v472_v19 = vpack.c.bf16 (!%p139_p2), %v189_v18, %v188_v17  ;;  %v190_v20 = vld [vmem:[%s626_s1 + $0x60] sm:$0xff] (!%p139_p2)  ;;  %v191_v21 = vld [vmem:[%s626_s1 + $0x68] sm:$0xff] (!%p139_p2)  ;;  %v192_v23 = vld [vmem:[%s626_s1 + $0x70] sm:$0xff] (!%p139_p2) }
   0xa   : > { %457 = vmatprep.subr.bf16.mxu0 (!%p139_p2), %v456_v5  ;;  %485 = vmatprep.subr.bf16.mxu1 (!%p139_p2), %v456_v5  ;;  %v476_v22 = vpack.c.bf16 (!%p139_p2), %v191_v21, %v190_v20  ;;  %v193_v24 = vld [vmem:[%s626_s1 + $0x78] sm:$0xff] (!%p139_p2)  ;;  %v391_v28 = vld [vmem:[%s627_s2] ss:$0 sm:$0xff] (!%p139_p2) }
   0xb   : > { %v480_v25 = vpack.c.bf16 (!%p139_p2), %v193_v24, %v192_v23 }
   0xd   : > { %s630_s20 = smov (!%p163_p3, %s387_s20), 7  ;;  %459 = vmatpush3.bf16.msra.mxu0 %v456_v5  ;;  %493 = vmatpush3.bf16.msra.mxu1 %v456_v5 }
   0xe   : > { %s388_s27 = sshll.u32 %s630_s20, 3  ;;  %461 = vmatprep.subr.bf16.mxu0 %v460_v8  ;;  %486 = vmatprep.subr.bf16.mxu1 %v460_v8 }
   0xf   : > { %s584_s7 = scalar_lea.vmem %s625_s0, %s388_s27  ;;  %s172_s4 = scalar_lea.vmem %s628_s3, %s388_s27 }
  0x10   : > { %v174_v11 = vld [vmem:[%s584_s7] sm:$0xff]  ;;  %v176_v12 = vld [vmem:[%s584_s7 + $0x10] sm:$0xff]  ;;  %v175_v26 = vld [vmem:[%s584_s7 + $0x8] sm:$0xff] }
  0x11   : > { %446 = vmatprep.mubr.f32.mxu0 %v174_v11  ;;  %449 = vmatprep.mubr.f32.mxu1 %v176_v12  ;;  %v177_v27 = vld [vmem:[%s584_s7 + $0x18] sm:$0xff] }
  0x12   : > { %463 = vmatpush3.bf16.msra.mxu0 %v460_v8  ;;  %494 = vmatpush3.bf16.msra.mxu1 %v460_v8 }
  0x13   : > { %465 = vmatprep.subr.bf16.mxu0 %v464_v13  ;;  %487 = vmatprep.subr.bf16.mxu1 %v464_v13 }
  0x16   : > { %467 = vmatpush3.bf16.msra.mxu0 %v464_v13  ;;  %495 = vmatpush3.bf16.msra.mxu1 %v464_v13 }
  0x17   : > { %469 = vmatprep.subr.bf16.mxu0 %v468_v16  ;;  %488 = vmatprep.subr.bf16.mxu1 %v468_v16 }
  0x1a   : > { %471 = vmatpush3.bf16.msra.mxu0 %v468_v16  ;;  %496 = vmatpush3.bf16.msra.mxu1 %v468_v16 }
  0x1b   : > { %473 = vmatprep.subr.bf16.mxu0 %v472_v19  ;;  %489 = vmatprep.subr.bf16.mxu1 %v472_v19 }
  0x1e   : > { %475 = vmatpush3.bf16.msra.mxu0 %v472_v19  ;;  %497 = vmatpush3.bf16.msra.mxu1 %v472_v19 }
  0x1f   : > { %477 = vmatprep.subr.bf16.mxu0 %v476_v22  ;;  %490 = vmatprep.subr.bf16.mxu1 %v476_v22 }
  0x22   : > { %479 = vmatpush3.bf16.msra.mxu0 %v476_v22  ;;  %498 = vmatpush3.bf16.msra.mxu1 %v476_v22 }
  0x23   : > { %481 = vmatprep.subr.bf16.mxu0 %v480_v25  ;;  %491 = vmatprep.subr.bf16.mxu1 %v480_v25 }
  0x26   : > { %483 = vmatpush3.bf16.msra.mxu0 %v480_v25  ;;  %499 = vmatpush3.bf16.msra.mxu1 %v480_v25 }
  0x29   : > { %447 = vmatmul.mubr.f32.vlgmr.msra.gmra.mrb[0].mxu0 %v175_v26  ;;  %450 = vmatmul.mubr.f32.vlgmr.msra.gmra.mrb[0].mxu1 %v177_v27 }
  0xfc   : > { %v448_v29 = vpop.f32.mrb[0].mxu0  ;;  %v451_v30 = vpop.f32.mrb[0].mxu1 }
  0xfd   : > { %v273_v31 = vadd.f32 %v448_v29, %v391_v28  ;;  %v283_v32 = vadd.f32 %v451_v30, %v391_v28  ;;  %v267_v33 = vpop.f32.mrb[1].mxu0  ;;  %v277_v34 = vpop.f32.mrb[1].mxu1 }
  0xfe   : > { %v268_v35 = vadd.f32 %v391_v28, %v267_v33  ;;  %v278_v36 = vadd.f32 %v391_v28, %v277_v34 }
  0xff   : > { %v287_v37 = vmul.f32 %v273_v31, %v273_v31  ;;  %v289_v38 = vmul.f32 %v283_v32, %v283_v32 }
 0x100   : > { %v286_v39 = vmul.f32 %v268_v35, %v268_v35  ;;  %v288_v40 = vmul.f32 %v278_v36, %v278_v36 }
 0x101   : > { %v291_v41 = vmul.f32 %v287_v37, %v273_v31  ;;  %v293_v42 = vmul.f32 %v289_v38, %v283_v32 }
 0x102   : > { %v290_v43 = vmul.f32 %v286_v39, %v268_v35  ;;  %v292_v44 = vmul.f32 %v288_v40, %v278_v36 }
 0x103   : > { %v295_v45 = vmul.f32 0.044715, %v291_v41  ;;  %v297_v46 = vmul.f32 0.044715, %v293_v42 }
 0x104   : > { %v294_v47 = vmul.f32 0.044715, %v290_v43  ;;  %v296_v48 = vmul.f32 0.044715, %v292_v44 }
 0x105   : > { %v299_v49 = vadd.f32 %v295_v45, %v273_v31  ;;  %v301_v50 = vadd.f32 %v297_v46, %v283_v32 }
 0x106   : > { %v298_v51 = vadd.f32 %v294_v47, %v268_v35  ;;  %v300_v52 = vadd.f32 %v296_v48, %v278_v36 }
 0x107   : > { %v303_v53 = vmul.f32 0.7978846, %v299_v49  ;;  %v305_v54 = vmul.f32 0.7978846, %v301_v50 }
 0x108   : > { %v302_v55 = vmul.f32 0.7978846, %v298_v51  ;;  %v304_v56 = vmul.f32 0.7978846, %v300_v52 }
 0x109   : > { %508 = vtanh.f32 %v303_v53 }
 0x10a   : > { %510 = vtanh.f32 %v305_v54 }
 0x10b   : > { %512 = vtanh.f32 %v302_v55 }
 0x10c   : > { %514 = vtanh.f32 %v304_v56 }
 0x113   : > { %v509_v57 = vpop.eup %508 }
 0x114   : > { %v511_v58 = vpop.eup %510  ;;  %v311_v59 = vadd.f32 1.0, %v509_v57 }
 0x115   : > { %v513_v60 = vpop.eup %512  ;;  %v313_v61 = vadd.f32 1.0, %v511_v58 }
 0x116   : > { %v515_v62 = vpop.eup %514  ;;  %v310_v63 = vadd.f32 1.0, %v513_v60  ;;  %v315_v0 = vmul.f32 0.5, %v311_v59 }
 0x117   : > { %v312_v1 = vadd.f32 1.0, %v515_v62  ;;  %v317_v3 = vmul.f32 0.5, %v313_v61 }
 0x118   : > { %v314_v2 = vmul.f32 0.5, %v310_v63  ;;  %v319_v6 = vmul.f32 %v315_v0, %v273_v31 }
 0x119   : > { %v316_v4 = vmul.f32 0.5, %v312_v1  ;;  %v321_v8 = vmul.f32 %v317_v3, %v283_v32 }
 0x11a   : > { %v318_v5 = vmul.f32 %v314_v2, %v268_v35  ;;  %323 = vst [vmem:[%s172_s4 + $0x8] sm:$0xff] %v319_v6 }
 0x11b   : > { %v320_v7 = vmul.f32 %v316_v4, %v278_v36  ;;  %325 = vst [vmem:[%s172_s4 + $0x18] sm:$0xff] %v321_v8 }
 0x11c   : > { %322 = vst [vmem:[%s172_s4] sm:$0xff] %v318_v5 }
 0x11d   : > { %324 = vst [vmem:[%s172_s4 + $0x10] sm:$0xff] %v320_v7 }
 0x11e PF: > { %s13_s12 = sadd.s32 1, %s522_s12  }
 0x11f   : > { %p10_p4 = scmp.ge.s32.totalorder %s13_s12, 4  }
 0x121   :  { %12 = sbr.rel (!%p10_p4) target bundleno = 1 (0x1), region = 62 }

// kernel: block_forward.24
= control target key start
LH: loop header
LB: loop body
LE: loop exit
PB: predicated region body
PF: predicated region fallthrough
CT: control target
= control target key end

     0   :  { %s1432_s12 = smov 0   ;;  %s1434_s13 = smov 0   ;;  %s1877_s0 = inlined_call_operand.vmem [shape: f32[25,64,128], index: 0, kind: input, shape index: {}]   ;;  %s1878_s1 = inlined_call_operand.vmem [shape: f32[25,1,128], index: 1, kind: input, shape index: {}]   ;;  %s1879_s2 = inlined_call_operand.vmem [shape: f32[1,128], index: 2, kind: input, shape index: {}]   ;;  %s1880_s3 = inlined_call_operand.vmem [shape: f32[64,128], index: 3, kind: output, shape index: {}]  }
   0x1   :  { %s1436_s14 = smov 0  }
   0x2 LB: > { %s1204_s15 = sadd.s32 4294967295, %s1410_s14   ;;  %s1449_s16 = sadd.s32 1, %s1410_s14   ;;  %s1410_s14 = sphi %s1436_s14, %s1883_s14   ;;  %s1406_s13 = sphi %s1434_s13, %s1882_s13   ;;  %s1402_s12 = sphi %s1432_s12, %s1881_s12  }
   0x3   : > { %s17_s17 = ssub.s32 %s1410_s14, %s1449_s16  ;;  %s20_s18 = sadd.s32 1, %s1406_s13 }
   0x4   : > { %p18_p0 = scmp.eq.s32.totalorder %s17_s17, 0  ;;  %p27_p1 = scmp.ne.s32.totalorder %s1406_s13, %s1402_s12 }
   0x5   : > { %p28_p2 = scmp.eq.s32.totalorder %s1410_s14, 0  ;;  %p1207_p4 = scmp.ge.s32.totalorder %s1410_s14, 2 }
   0x6   : > { %s1458_s19 = scalar_select %p18_p0, %s1406_s13, %s20_s18  }
   0x7   : > { %p29_p3 = por %p28_p2, %p27_p1  ;;  %127 = sbr.rel (%p1207_p4) target bundleno = 69 (0x45), region = 24 }
   0xe   : > { %130 = sbr.rel (!%p29_p3) target bundleno = 69 (0x45), region = 28  ;;  %s132_s20 = sand.u32 (%p29_p3), 1, %s1406_s13  }
   0xf   : > { %s1361_s21 = sshll.u32 (%p29_p3), %s1410_s14, 5  ;;  %s1362_s22 = smul.u32 (%p29_p3), 800, %s132_s20 }
  0x10   : > { %s1466_s25 = scalar_lea.vmem (%p29_p3), %s1877_s0, %s1361_s21 }
  0x11   : > { %v363_v0 = vld [vmem:[%s1466_s25] sm:$0xff] (%p29_p3)  ;;  %v365_v1 = vld [vmem:[%s1466_s25 + $0x8] sm:$0xff] (%p29_p3)  ;;  %v367_v2 = vld [vmem:[%s1466_s25 + $0x10] sm:$0xff] (%p29_p3)  ;;  %s1474_s26 = scalar_lea.vmem (%p29_p3), [#allocation2], %s1362_s22 }
  0x12   : > { %v369_v3 = vld [vmem:[%s1466_s25 + $0x18] sm:$0xff] (%p29_p3)  ;;  %v371_v4 = vld [vmem:[%s1466_s25 + $0x40] sm:$0xff] (%p29_p3)  ;;  %v373_v5 = vld [vmem:[%s1466_s25 + $0x48] sm:$0xff] (%p29_p3)  ;;  %364 = vst [vmem:[%s1474_s26] sm:$0xff] (%p29_p3), %v363_v0 }
  0x13   : > { %366 = vst [vmem:[%s1474_s26 + $0x8] sm:$0xff] (%p29_p3), %v365_v1  ;;  %368 = vst [vmem:[%s1474_s26 + $0x10] sm:$0xff] (%p29_p3), %v367_v2  ;;  %v375_v6 = vld [vmem:[%s1466_s25 + $0x50] sm:$0xff] (%p29_p3)  ;;  %v377_v7 = vld [vmem:[%s1466_s25 + $0x58] sm:$0xff] (%p29_p3) }
  0x14   : > { %370 = vst [vmem:[%s1474_s26 + $0x18] sm:$0xff] (%p29_p3), %v369_v3  ;;  %372 = vst [vmem:[%s1474_s26 + $0x20] sm:$0xff] (%p29_p3), %v371_v4  ;;  %v379_v8 = vld [vmem:[%s1466_s25 + $0x80] sm:$0xff] (%p29_p3)  ;;  %v381_v9 = vld [vmem:[%s1466_s25 + $0x88] sm:$0xff] (%p29_p3) }
  0x15   : > { %374 = vst [vmem:[%s1474_s26 + $0x28] sm:$0xff] %v373_v5  ;;  %376 = vst [vmem:[%s1474_s26 + $0x30] sm:$0xff] %v375_v6  ;;  %v383_v10 = vld [vmem:[%s1466_s25 + $0x90] sm:$0xff]  ;;  %v385_v11 = vld [vmem:[%s1466_s25 + $0x98] sm:$0xff] }
  0x16   : > { %378 = vst [vmem:[%s1474_s26 + $0x38] sm:$0xff] %v377_v7  ;;  %380 = vst [vmem:[%s1474_s26 + $0x40] sm:$0xff] %v379_v8  ;;  %v387_v12 = vld [vmem:[%s1466_s25 + $0xc0] sm:$0xff]  ;;  %v389_v13 = vld [vmem:[%s1466_s25 + $0xc8] sm:$0xff] }
  0x17   : > { %382 = vst [vmem:[%s1474_s26 + $0x48] sm:$0xff] %v381_v9  ;;  %384 = vst [vmem:[%s1474_s26 + $0x50] sm:$0xff] %v383_v10  ;;  %v391_v14 = vld [vmem:[%s1466_s25 + $0xd0] sm:$0xff]  ;;  %v393_v15 = vld [vmem:[%s1466_s25 + $0xd8] sm:$0xff] }
  0x18   : > { %386 = vst [vmem:[%s1474_s26 + $0x58] sm:$0xff] %v385_v11  ;;  %388 = vst [vmem:[%s1474_s26 + $0x60] sm:$0xff] %v387_v12  ;;  %v395_v16 = vld [vmem:[%s1466_s25 + $0x100] sm:$0xff]  ;;  %v397_v17 = vld [vmem:[%s1466_s25 + $0x108] sm:$0xff] }
  0x19   : > { %390 = vst [vmem:[%s1474_s26 + $0x68] sm:$0xff] %v389_v13  ;;  %392 = vst [vmem:[%s1474_s26 + $0x70] sm:$0xff] %v391_v14  ;;  %v399_v18 = vld [vmem:[%s1466_s25 + $0x110] sm:$0xff]  ;;  %v401_v19 = vld [vmem:[%s1466_s25 + $0x118] sm:$0xff] }
  0x1a   : > { %394 = vst [vmem:[%s1474_s26 + $0x78] sm:$0xff] %v393_v15  ;;  %396 = vst [vmem:[%s1474_s26 + $0x80] sm:$0xff] %v395_v16  ;;  %v403_v20 = vld [vmem:[%s1466_s25 + $0x140] sm:$0xff]  ;;  %v405_v21 = vld [vmem:[%s1466_s25 + $0x148] sm:$0xff] }
  0x1b   : > { %398 = vst [vmem:[%s1474_s26 + $0x88] sm:$0xff] %v397_v17  ;;  %400 = vst [vmem:[%s1474_s26 + $0x90] sm:$0xff] %v399_v18  ;;  %v407_v22 = vld [vmem:[%s1466_s25 + $0x150] sm:$0xff]  ;;  %v409_v23 = vld [vmem:[%s1466_s25 + $0x158] sm:$0xff] }
  0x1c   : > { %402 = vst [vmem:[%s1474_s26 + $0x98] sm:$0xff] %v401_v19  ;;  %404 = vst [vmem:[%s1474_s26 + $0xa0] sm:$0xff] %v403_v20  ;;  %v411_v24 = vld [vmem:[%s1466_s25 + $0x180] sm:$0xff]  ;;  %v413_v25 = vld [vmem:[%s1466_s25 + $0x188] sm:$0xff] }
  0x1d   : > { %406 = vst [vmem:[%s1474_s26 + $0xa8] sm:$0xff] %v405_v21  ;;  %408 = vst [vmem:[%s1474_s26 + $0xb0] sm:$0xff] %v407_v22  ;;  %v415_v26 = vld [vmem:[%s1466_s25 + $0x190] sm:$0xff]  ;;  %v417_v27 = vld [vmem:[%s1466_s25 + $0x198] sm:$0xff] }
  0x1e   : > { %410 = vst [vmem:[%s1474_s26 + $0xb8] sm:$0xff] %v409_v23  ;;  %412 = vst [vmem:[%s1474_s26 + $0xc0] sm:$0xff] %v411_v24  ;;  %v419_v28 = vld [vmem:[%s1466_s25 + $0x1c0] sm:$0xff]  ;;  %v421_v29 = vld [vmem:[%s1466_s25 + $0x1c8] sm:$0xff] }
  0x1f   : > { %414 = vst [vmem:[%s1474_s26 + $0xc8] sm:$0xff] %v413_v25  ;;  %416 = vst [vmem:[%s1474_s26 + $0xd0] sm:$0xff] %v415_v26  ;;  %v423_v30 = vld [vmem:[%s1466_s25 + $0x1d0] sm:$0xff]  ;;  %v425_v31 = vld [vmem:[%s1466_s25 + $0x1d8] sm:$0xff] }
  0x20   : > { %418 = vst [vmem:[%s1474_s26 + $0xd8] sm:$0xff] %v417_v27  ;;  %420 = vst [vmem:[%s1474_s26 + $0xe0] sm:$0xff] %v419_v28  ;;  %v427_v32 = vld [vmem:[%s1466_s25 + $0x200] sm:$0xff]  ;;  %v429_v33 = vld [vmem:[%s1466_s25 + $0x208] sm:$0xff] }
  0x21   : > { %422 = vst [vmem:[%s1474_s26 + $0xe8] sm:$0xff] %v421_v29  ;;  %424 = vst [vmem:[%s1474_s26 + $0xf0] sm:$0xff] %v423_v30  ;;  %v431_v34 = vld [vmem:[%s1466_s25 + $0x210] sm:$0xff]  ;;  %v433_v35 = vld [vmem:[%s1466_s25 + $0x218] sm:$0xff] }
  0x22   : > { %426 = vst [vmem:[%s1474_s26 + $0xf8] sm:$0xff] %v425_v31  ;;  %428 = vst [vmem:[%s1474_s26 + $0x100] sm:$0xff] %v427_v32  ;;  %v435_v36 = vld [vmem:[%s1466_s25 + $0x240] sm:$0xff]  ;;  %v437_v37 = vld [vmem:[%s1466_s25 + $0x248] sm:$0xff] }
  0x23   : > { %430 = vst [vmem:[%s1474_s26 + $0x108] sm:$0xff] %v429_v33  ;;  %432 = vst [vmem:[%s1474_s26 + $0x110] sm:$0xff] %v431_v34  ;;  %v439_v38 = vld [vmem:[%s1466_s25 + $0x250] sm:$0xff]  ;;  %v441_v39 = vld [vmem:[%s1466_s25 + $0x258] sm:$0xff] }
  0x24   : > { %434 = vst [vmem:[%s1474_s26 + $0x118] sm:$0xff] %v433_v35  ;;  %436 = vst [vmem:[%s1474_s26 + $0x120] sm:$0xff] %v435_v36  ;;  %v443_v40 = vld [vmem:[%s1466_s25 + $0x280] sm:$0xff]  ;;  %v445_v41 = vld [vmem:[%s1466_s25 + $0x288] sm:$0xff] }
  0x25   : > { %438 = vst [vmem:[%s1474_s26 + $0x128] sm:$0xff] %v437_v37  ;;  %440 = vst [vmem:[%s1474_s26 + $0x130] sm:$0xff] %v439_v38  ;;  %v447_v42 = vld [vmem:[%s1466_s25 + $0x290] sm:$0xff]  ;;  %v449_v43 = vld [vmem:[%s1466_s25 + $0x298] sm:$0xff] }
  0x26   : > { %442 = vst [vmem:[%s1474_s26 + $0x138] sm:$0xff] %v441_v39  ;;  %444 = vst [vmem:[%s1474_s26 + $0x140] sm:$0xff] %v443_v40  ;;  %v451_v44 = vld [vmem:[%s1466_s25 + $0x2c0] sm:$0xff]  ;;  %v453_v45 = vld [vmem:[%s1466_s25 + $0x2c8] sm:$0xff] }
  0x27   : > { %446 = vst [vmem:[%s1474_s26 + $0x148] sm:$0xff] %v445_v41  ;;  %448 = vst [vmem:[%s1474_s26 + $0x150] sm:$0xff] %v447_v42  ;;  %v455_v46 = vld [vmem:[%s1466_s25 + $0x2d0] sm:$0xff]  ;;  %v457_v47 = vld [vmem:[%s1466_s25 + $0x2d8] sm:$0xff] }
  0x28   : > { %450 = vst [vmem:[%s1474_s26 + $0x158] sm:$0xff] %v449_v43  ;;  %452 = vst [vmem:[%s1474_s26 + $0x160] sm:$0xff] %v451_v44  ;;  %v459_v48 = vld [vmem:[%s1466_s25 + $0x300] sm:$0xff]  ;;  %v461_v49 = vld [vmem:[%s1466_s25 + $0x308] sm:$0xff] }
  0x29   : > { %454 = vst [vmem:[%s1474_s26 + $0x168] sm:$0xff] %v453_v45  ;;  %456 = vst [vmem:[%s1474_s26 + $0x170] sm:$0xff] %v455_v46  ;;  %v463_v50 = vld [vmem:[%s1466_s25 + $0x310] sm:$0xff]  ;;  %v465_v51 = vld [vmem:[%s1466_s25 + $0x318] sm:$0xff] }
  0x2a   : > { %458 = vst [vmem:[%s1474_s26 + $0x178] sm:$0xff] %v457_v47  ;;  %460 = vst [vmem:[%s1474_s26 + $0x180] sm:$0xff] %v459_v48  ;;  %v467_v52 = vld [vmem:[%s1466_s25 + $0x340] sm:$0xff]  ;;  %v469_v53 = vld [vmem:[%s1466_s25 + $0x348] sm:$0xff] }
  0x2b   : > { %462 = vst [vmem:[%s1474_s26 + $0x188] sm:$0xff] %v461_v49  ;;  %464 = vst [vmem:[%s1474_s26 + $0x190] sm:$0xff] %v463_v50  ;;  %v471_v54 = vld [vmem:[%s1466_s25 + $0x350] sm:$0xff]  ;;  %v473_v55 = vld [vmem:[%s1466_s25 + $0x358] sm:$0xff] }
  0x2c   : > { %466 = vst [vmem:[%s1474_s26 + $0x198] sm:$0xff] %v465_v51  ;;  %468 = vst [vmem:[%s1474_s26 + $0x1a0] sm:$0xff] %v467_v52  ;;  %v475_v56 = vld [vmem:[%s1466_s25 + $0x380] sm:$0xff]  ;;  %v477_v57 = vld [vmem:[%s1466_s25 + $0x388] sm:$0xff] }
  0x2d   : > { %470 = vst [vmem:[%s1474_s26 + $0x1a8] sm:$0xff] %v469_v53  ;;  %472 = vst [vmem:[%s1474_s26 + $0x1b0] sm:$0xff] %v471_v54  ;;  %v479_v58 = vld [vmem:[%s1466_s25 + $0x390] sm:$0xff]  ;;  %v481_v59 = vld [vmem:[%s1466_s25 + $0x398] sm:$0xff] }
  0x2e   : > { %474 = vst [vmem:[%s1474_s26 + $0x1b8] sm:$0xff] %v473_v55  ;;  %476 = vst [vmem:[%s1474_s26 + $0x1c0] sm:$0xff] %v475_v56  ;;  %v483_v60 = vld [vmem:[%s1466_s25 + $0x3c0] sm:$0xff]  ;;  %v485_v61 = vld [vmem:[%s1466_s25 + $0x3c8] sm:$0xff] }
  0x2f   : > { %478 = vst [vmem:[%s1474_s26 + $0x1c8] sm:$0xff] %v477_v57  ;;  %480 = vst [vmem:[%s1474_s26 + $0x1d0] sm:$0xff] %v479_v58  ;;  %v487_v62 = vld [vmem:[%s1466_s25 + $0x3d0] sm:$0xff]  ;;  %v489_v63 = vld [vmem:[%s1466_s25 + $0x3d8] sm:$0xff] }
  0x30   : > { %482 = vst [vmem:[%s1474_s26 + $0x1d8] sm:$0xff] %v481_v59  ;;  %484 = vst [vmem:[%s1474_s26 + $0x1e0] sm:$0xff] %v483_v60  ;;  %v491_v0 = vld [vmem:[%s1466_s25 + $0x400] sm:$0xff]  ;;  %v493_v1 = vld [vmem:[%s1466_s25 + $0x408] sm:$0xff] }
  0x31   : > { %486 = vst [vmem:[%s1474_s26 + $0x1e8] sm:$0xff] %v485_v61  ;;  %488 = vst [vmem:[%s1474_s26 + $0x1f0] sm:$0xff] %v487_v62  ;;  %v495_v2 = vld [vmem:[%s1466_s25 + $0x410] sm:$0xff]  ;;  %v497_v3 = vld [vmem:[%s1466_s25 + $0x418] sm:$0xff] }
  0x32   : > { %490 = vst [vmem:[%s1474_s26 + $0x1f8] sm:$0xff] %v489_v63  ;;  %492 = vst [vmem:[%s1474_s26 + $0x200] sm:$0xff] %v491_v0  ;;  %v499_v4 = vld [vmem:[%s1466_s25 + $0x440] sm:$0xff]  ;;  %v501_v5 = vld [vmem:[%s1466_s25 + $0x448] sm:$0xff] }
  0x33   : > { %494 = vst [vmem:[%s1474_s26 + $0x208] sm:$0xff] %v493_v1  ;;  %496 = vst [vmem:[%s1474_s26 + $0x210] sm:$0xff] %v495_v2  ;;  %v503_v6 = vld [vmem:[%s1466_s25 + $0x450] sm:$0xff]  ;;  %v505_v7 = vld [vmem:[%s1466_s25 + $0x458] sm:$0xff] }
  0x34   : > { %498 = vst [vmem:[%s1474_s26 + $0x218] sm:$0xff] %v497_v3  ;;  %500 = vst [vmem:[%s1474_s26 + $0x220] sm:$0xff] %v499_v4  ;;  %v507_v8 = vld [vmem:[%s1466_s25 + $0x480] sm:$0xff]  ;;  %v509_v9 = vld [vmem:[%s1466_s25 + $0x488] sm:$0xff] }
  0x35   : > { %502 = vst [vmem:[%s1474_s26 + $0x228] sm:$0xff] %v501_v5  ;;  %504 = vst [vmem:[%s1474_s26 + $0x230] sm:$0xff] %v503_v6  ;;  %v511_v10 = vld [vmem:[%s1466_s25 + $0x490] sm:$0xff]  ;;  %v513_v11 = vld [vmem:[%s1466_s25 + $0x498] sm:$0xff] }
  0x36   : > { %506 = vst [vmem:[%s1474_s26 + $0x238] sm:$0xff] %v505_v7  ;;  %508 = vst [vmem:[%s1474_s26 + $0x240] sm:$0xff] %v507_v8  ;;  %v515_v12 = vld [vmem:[%s1466_s25 + $0x4c0] sm:$0xff]  ;;  %v517_v13 = vld [vmem:[%s1466_s25 + $0x4c8] sm:$0xff] }
  0x37   : > { %510 = vst [vmem:[%s1474_s26 + $0x248] sm:$0xff] %v509_v9  ;;  %512 = vst [vmem:[%s1474_s26 + $0x250] sm:$0xff] %v511_v10  ;;  %v519_v14 = vld [vmem:[%s1466_s25 + $0x4d0] sm:$0xff]  ;;  %v521_v15 = vld [vmem:[%s1466_s25 + $0x4d8] sm:$0xff] }
  0x38   : > { %514 = vst [vmem:[%s1474_s26 + $0x258] sm:$0xff] %v513_v11  ;;  %516 = vst [vmem:[%s1474_s26 + $0x260] sm:$0xff] %v515_v12  ;;  %v523_v16 = vld [vmem:[%s1466_s25 + $0x500] sm:$0xff]  ;;  %v525_v17 = vld [vmem:[%s1466_s25 + $0x508] sm:$0xff] }
  0x39   : > { %518 = vst [vmem:[%s1474_s26 + $0x268] sm:$0xff] %v517_v13  ;;  %520 = vst [vmem:[%s1474_s26 + $0x270] sm:$0xff] %v519_v14  ;;  %v527_v18 = vld [vmem:[%s1466_s25 + $0x510] sm:$0xff]  ;;  %v529_v19 = vld [vmem:[%s1466_s25 + $0x518] sm:$0xff] }
  0x3a   : > { %522 = vst [vmem:[%s1474_s26 + $0x278] sm:$0xff] %v521_v15  ;;  %524 = vst [vmem:[%s1474_s26 + $0x280] sm:$0xff] %v523_v16  ;;  %v531_v20 = vld [vmem:[%s1466_s25 + $0x540] sm:$0xff]  ;;  %v533_v21 = vld [vmem:[%s1466_s25 + $0x548] sm:$0xff] }
  0x3b   : > { %526 = vst [vmem:[%s1474_s26 + $0x288] sm:$0xff] %v525_v17  ;;  %528 = vst [vmem:[%s1474_s26 + $0x290] sm:$0xff] %v527_v18  ;;  %v535_v22 = vld [vmem:[%s1466_s25 + $0x550] sm:$0xff]  ;;  %v537_v23 = vld [vmem:[%s1466_s25 + $0x558] sm:$0xff] }
  0x3c   : > { %530 = vst [vmem:[%s1474_s26 + $0x298] sm:$0xff] %v529_v19  ;;  %532 = vst [vmem:[%s1474_s26 + $0x2a0] sm:$0xff] %v531_v20  ;;  %v539_v24 = vld [vmem:[%s1466_s25 + $0x580] sm:$0xff]  ;;  %v541_v25 = vld [vmem:[%s1466_s25 + $0x588] sm:$0xff] }
  0x3d   : > { %534 = vst [vmem:[%s1474_s26 + $0x2a8] sm:$0xff] %v533_v21  ;;  %536 = vst [vmem:[%s1474_s26 + $0x2b0] sm:$0xff] %v535_v22  ;;  %v543_v26 = vld [vmem:[%s1466_s25 + $0x590] sm:$0xff]  ;;  %v545_v27 = vld [vmem:[%s1466_s25 + $0x598] sm:$0xff] }
  0x3e   : > { %538 = vst [vmem:[%s1474_s26 + $0x2b8] sm:$0xff] %v537_v23  ;;  %540 = vst [vmem:[%s1474_s26 + $0x2c0] sm:$0xff] %v539_v24  ;;  %v547_v28 = vld [vmem:[%s1466_s25 + $0x5c0] sm:$0xff]  ;;  %v549_v29 = vld [vmem:[%s1466_s25 + $0x5c8] sm:$0xff] }
  0x3f   : > { %542 = vst [vmem:[%s1474_s26 + $0x2c8] sm:$0xff] %v541_v25  ;;  %544 = vst [vmem:[%s1474_s26 + $0x2d0] sm:$0xff] %v543_v26  ;;  %v551_v30 = vld [vmem:[%s1466_s25 + $0x5d0] sm:$0xff]  ;;  %v553_v31 = vld [vmem:[%s1466_s25 + $0x5d8] sm:$0xff] }
  0x40   : > { %546 = vst [vmem:[%s1474_s26 + $0x2d8] sm:$0xff] %v545_v27  ;;  %548 = vst [vmem:[%s1474_s26 + $0x2e0] sm:$0xff] %v547_v28  ;;  %v555_v32 = vld [vmem:[%s1466_s25 + $0x600] sm:$0xff]  ;;  %v557_v33 = vld [vmem:[%s1466_s25 + $0x608] sm:$0xff] }
  0x41   : > { %550 = vst [vmem:[%s1474_s26 + $0x2e8] sm:$0xff] %v549_v29  ;;  %552 = vst [vmem:[%s1474_s26 + $0x2f0] sm:$0xff] %v551_v30  ;;  %v559_v34 = vld [vmem:[%s1466_s25 + $0x610] sm:$0xff]  ;;  %v561_v35 = vld [vmem:[%s1466_s25 + $0x618] sm:$0xff] }
  0x42   : > { %554 = vst [vmem:[%s1474_s26 + $0x2f8] sm:$0xff] %v553_v31  ;;  %556 = vst [vmem:[%s1474_s26 + $0x300] sm:$0xff] %v555_v32 }
  0x43   : > { %558 = vst [vmem:[%s1474_s26 + $0x308] sm:$0xff] %v557_v33  ;;  %560 = vst [vmem:[%s1474_s26 + $0x310] sm:$0xff] %v559_v34 }
  0x44   : > { %562 = vst [vmem:[%s1474_s26 + $0x318] sm:$0xff] %v561_v35 }
  0x45 PF: > { %p1210_p5 = scmp.ge.s32.totalorder %s1410_s14, 1  ;;  %p567_p6 = scmp.lt.s32.totalorder %s1410_s14, 3 }
  0x47   : > { %p568_p7 = pnand %p1210_p5, %p567_p6 }
  0x48   : > { %s574_s27 = sand.u32 (!%p568_p7), 1, %s1402_s12   ;;  %v1213_v36 = vld [vmem:[%s1878_s1] ss:$0 sm:$0xff] (!%p568_p7)  ;;  %v1219_v37 = vld [vmem:[%s1878_s1 + $0x1] ss:$0 sm:$0xff] (!%p568_p7)  ;;  %s1821_s29 = sshll.u32 (!%p568_p7), %s1204_s15, 2 }
  0x49   : > { %571 = sbr.rel (%p568_p7) target bundleno = 133 (0x85), region = 66  ;;  %v1225_v38 = vld [vmem:[%s1878_s1 + $0x2] ss:$0 sm:$0xff] (!%p568_p7)  ;;  %v1231_v42 = vld [vmem:[%s1878_s1 + $0x3] ss:$0 sm:$0xff] (!%p568_p7)  ;;  %p599_p8 = scmp.lt.s32.totalorder (!%p568_p7), %s1821_s29, 7 }
  0x4a   : > { %s1363_s28 = smul.u32 (!%p568_p7), 800, %s574_s27  ;;  %v1237_v55 = vld [vmem:[%s1878_s1 + $0x4] ss:$0 sm:$0xff] (!%p568_p7)  ;;  %v1243_v5 = vld [vmem:[%s1878_s1 + $0x5] ss:$0 sm:$0xff] (!%p568_p7) }
  0x4b   : > { %v1249_v32 = vld [vmem:[%s1878_s1 + $0x6] ss:$0 sm:$0xff] (!%p568_p7) }
  0x4c   : > { %s1682_s8 = scalar_lea.vmem (!%p568_p7), [#allocation2], %s1363_s28 }
  0x4d   : > { %v604_v39 = vld [vmem:[%s1682_s8] sm:$0xff] (!%p568_p7)  ;;  %v605_v40 = vld [vmem:[%s1682_s8 + $0x8] sm:$0xff] (!%p568_p7)  ;;  %v606_v41 = vld [vmem:[%s1682_s8 + $0x10] sm:$0xff] (!%p568_p7) }
  0x4e   : > { %v607_v43 = vld [vmem:[%s1682_s8 + $0x18] sm:$0xff] (!%p568_p7)  ;;  %v615_v44 = vmul.f32 (!%p568_p7), %v1213_v36, %v604_v39  ;;  %v616_v45 = vmul.f32 (!%p568_p7), %v1213_v36, %v605_v40  ;;  %v617_v46 = vmul.f32 (!%p568_p7), %v1213_v36, %v606_v41  ;;  %v1214_v47 = vld [vmem:[%s1682_s8 + $0x20] sm:$0xff] (!%p568_p7)  ;;  %v1215_v48 = vld [vmem:[%s1682_s8 + $0x28] sm:$0xff] (!%p568_p7) }
  0x4f   : > { %v618_v49 = vmul.f32 (!%p568_p7), %v1213_v36, %v607_v43  ;;  %v1216_v50 = vld [vmem:[%s1682_s8 + $0x30] sm:$0xff] (!%p568_p7)  ;;  %v1217_v51 = vld [vmem:[%s1682_s8 + $0x38] sm:$0xff] (!%p568_p7)  ;;  %v636_v52 = vmul.f32 (!%p568_p7), %v1219_v37, %v1214_v47  ;;  %v637_v53 = vmul.f32 (!%p568_p7), %v1219_v37, %v1215_v48  ;;  %v1220_v54 = vld [vmem:[%s1682_s8 + $0x40] sm:$0xff] (!%p568_p7) }
  0x50   : > { %v638_v56 = vmul.f32 %v1219_v37, %v1216_v50  ;;  %v639_v57 = vmul.f32 %v1219_v37, %v1217_v51  ;;  %v1221_v58 = vld [vmem:[%s1682_s8 + $0x48] sm:$0xff]  ;;  %v1222_v59 = vld [vmem:[%s1682_s8 + $0x50] sm:$0xff]  ;;  %v1223_v60 = vld [vmem:[%s1682_s8 + $0x58] sm:$0xff]  ;;  %v657_v61 = vmul.f32 %v1225_v38, %v1220_v54  ;;  %s1885_s29 = smov (!%p599_p8, %s1821_s29), 7 }
  0x51   : > { %v640_v62 = vadd.f32 %v636_v52, %v615_v44  ;;  %v641_v63 = vadd.f32 %v637_v53, %v616_v45  ;;  %v658_v0 = vmul.f32 %v1225_v38, %v1221_v58  ;;  %v659_v1 = vmul.f32 %v1225_v38, %v1222_v59  ;;  %v1226_v2 = vld [vmem:[%s1682_s8 + $0x60] sm:$0xff]  ;;  %v1227_v3 = vld [vmem:[%s1682_s8 + $0x68] sm:$0xff]  ;;  %v1228_v4 = vld [vmem:[%s1682_s8 + $0x70] sm:$0xff]  ;;  %s1212_s10 = sshll.u32 %s1885_s29, 3 }
  0x52   : > { %v642_v6 = vadd.f32 %v638_v56, %v617_v46  ;;  %v643_v7 = vadd.f32 %v639_v57, %v618_v49  ;;  %v660_v8 = vmul.f32 %v1225_v38, %v1223_v60  ;;  %v1229_v9 = vld [vmem:[%s1682_s8 + $0x78] sm:$0xff]  ;;  %v678_v10 = vmul.f32 %v1231_v42, %v1226_v2  ;;  %v1232_v11 = vld [vmem:[%s1682_s8 + $0x80] sm:$0xff]  ;;  %v1233_v12 = vld [vmem:[%s1682_s8 + $0x88] sm:$0xff]  ;;  %s602_s18 = scalar_lea.vmem %s1880_s3, %s1212_s10 }
  0x53   : > { %v661_v13 = vadd.f32 %v657_v61, %v640_v62  ;;  %v662_v14 = vadd.f32 %v658_v0, %v641_v63  ;;  %v679_v15 = vmul.f32 %v1231_v42, %v1227_v3  ;;  %v680_v16 = vmul.f32 %v1231_v42, %v1228_v4  ;;  %v1234_v17 = vld [vmem:[%s1682_s8 + $0x90] sm:$0xff]  ;;  %v1235_v18 = vld [vmem:[%s1682_s8 + $0x98] sm:$0xff]  ;;  %v1238_v19 = vld [vmem:[%s1682_s8 + $0xa0] sm:$0xff] }
  0x54   : > { %v663_v20 = vadd.f32 %v659_v1, %v642_v6  ;;  %v664_v21 = vadd.f32 %v660_v8, %v643_v7  ;;  %v681_v22 = vmul.f32 %v1231_v42, %v1229_v9  ;;  %v699_v23 = vmul.f32 %v1237_v55, %v1232_v11  ;;  %v1239_v24 = vld [vmem:[%s1682_s8 + $0xa8] sm:$0xff]  ;;  %v1240_v25 = vld [vmem:[%s1682_s8 + $0xb0] sm:$0xff]  ;;  %v1241_v30 = vld [vmem:[%s1682_s8 + $0xb8] sm:$0xff] }
  0x55   : > { %v682_v26 = vadd.f32 %v678_v10, %v661_v13  ;;  %v683_v27 = vadd.f32 %v679_v15, %v662_v14  ;;  %v700_v28 = vmul.f32 %v1237_v55, %v1233_v12  ;;  %v701_v29 = vmul.f32 %v1237_v55, %v1234_v17  ;;  %v1244_v31 = vld [vmem:[%s1682_s8 + $0xc0] sm:$0xff]  ;;  %v1245_v37 = vld [vmem:[%s1682_s8 + $0xc8] sm:$0xff]  ;;  %v1246_v38 = vld [vmem:[%s1682_s8 + $0xd0] sm:$0xff] }
  0x56   : > { %v684_v33 = vadd.f32 %v680_v16, %v663_v20  ;;  %v685_v34 = vadd.f32 %v681_v22, %v664_v21  ;;  %v702_v35 = vmul.f32 %v1237_v55, %v1235_v18  ;;  %v720_v36 = vmul.f32 %v1243_v5, %v1238_v19  ;;  %v1247_v43 = vld [vmem:[%s1682_s8 + $0xd8] sm:$0xff]  ;;  %v1250_v44 = vld [vmem:[%s1682_s8 + $0xe0] sm:$0xff]  ;;  %v1251_v50 = vld [vmem:[%s1682_s8 + $0xe8] sm:$0xff] }
  0x57   : > { %v703_v39 = vadd.f32 %v699_v23, %v682_v26  ;;  %v704_v40 = vadd.f32 %v700_v28, %v683_v27  ;;  %v721_v41 = vmul.f32 %v1243_v5, %v1239_v24  ;;  %v722_v42 = vmul.f32 %v1243_v5, %v1240_v25  ;;  %v1255_v45 = vld [vmem:[%s1878_s1 + $0x7] ss:$0 sm:$0xff]  ;;  %v1252_v51 = vld [vmem:[%s1682_s8 + $0xf0] sm:$0xff]  ;;  %v1253_v56 = vld [vmem:[%s1682_s8 + $0xf8] sm:$0xff] }
  0x58   : > { %v705_v46 = vadd.f32 %v701_v29, %v684_v33  ;;  %v706_v47 = vadd.f32 %v702_v35, %v685_v34  ;;  %v723_v48 = vmul.f32 %v1243_v5, %v1241_v30  ;;  %v741_v49 = vmul.f32 %v1249_v32, %v1244_v31  ;;  %v1256_v57 = vld [vmem:[%s1682_s8 + $0x100] sm:$0xff]  ;;  %v1261_v58 = vld [vmem:[%s1878_s1 + $0x8] ss:$0 sm:$0xff]  ;;  %v1258_v0 = vld [vmem:[%s1682_s8 + $0x110] sm:$0xff] }
  0x59   : > { %v724_v52 = vadd.f32 %v720_v36, %v703_v39  ;;  %v725_v53 = vadd.f32 %v721_v41, %v704_v40  ;;  %v742_v54 = vmul.f32 %v1249_v32, %v1245_v37  ;;  %v743_v55 = vmul.f32 %v1249_v32, %v1246_v38  ;;  %v1257_v63 = vld [vmem:[%s1682_s8 + $0x108] sm:$0xff]  ;;  %v1259_v5 = vld [vmem:[%s1682_s8 + $0x118] sm:$0xff]  ;;  %v1262_v6 = vld [vmem:[%s1682_s8 + $0x120] sm:$0xff] }
  0x5a   : > { %v726_v59 = vadd.f32 %v722_v42, %v705_v46  ;;  %v727_v60 = vadd.f32 %v723_v48, %v706_v47  ;;  %v744_v61 = vmul.f32 %v1249_v32, %v1247_v43  ;;  %v762_v62 = vmul.f32 %v1255_v45, %v1250_v44  ;;  %v1267_v7 = vld [vmem:[%s1878_s1 + $0x9] ss:$0 sm:$0xff]  ;;  %v1264_v13 = vld [vmem:[%s1682_s8 + $0x130] sm:$0xff]  ;;  %v1265_v18 = vld [vmem:[%s1682_s8 + $0x138] sm:$0xff] }
  0x5b   : > { %v745_v1 = vadd.f32 %v741_v49, %v724_v52  ;;  %v746_v2 = vadd.f32 %v742_v54, %v725_v53  ;;  %v763_v3 = vmul.f32 %v1255_v45, %v1251_v50  ;;  %v764_v4 = vmul.f32 %v1255_v45, %v1252_v51  ;;  %v1263_v12 = vld [vmem:[%s1682_s8 + $0x128] sm:$0xff]  ;;  %v1268_v19 = vld [vmem:[%s1682_s8 + $0x140] sm:$0xff]  ;;  %v1270_v26 = vld [vmem:[%s1682_s8 + $0x150] sm:$0xff] }
  0x5c   : > { %v747_v8 = vadd.f32 %v743_v55, %v726_v59  ;;  %v748_v9 = vadd.f32 %v744_v61, %v727_v60  ;;  %v765_v10 = vmul.f32 %v1255_v45, %v1253_v56  ;;  %v783_v11 = vmul.f32 %v1261_v58, %v1256_v57  ;;  %v1273_v20 = vld [vmem:[%s1878_s1 + $0xa] ss:$0 sm:$0xff]  ;;  %v1271_v31 = vld [vmem:[%s1682_s8 + $0x158] sm:$0xff]  ;;  %v1274_v32 = vld [vmem:[%s1682_s8 + $0x160] sm:$0xff] }
  0x5d   : > { %v766_v14 = vadd.f32 %v762_v62, %v745_v1  ;;  %v767_v15 = vadd.f32 %v763_v3, %v746_v2  ;;  %v784_v16 = vmul.f32 %v1261_v58, %v1257_v63  ;;  %v785_v17 = vmul.f32 %v1261_v58, %v1258_v0  ;;  %v1269_v25 = vld [vmem:[%s1682_s8 + $0x148] sm:$0xff]  ;;  %v1276_v39 = vld [vmem:[%s1682_s8 + $0x170] sm:$0xff]  ;;  %v1277_v44 = vld [vmem:[%s1682_s8 + $0x178] sm:$0xff] }
  0x5e   : > { %v768_v21 = vadd.f32 %v764_v4, %v747_v8  ;;  %v769_v22 = vadd.f32 %v765_v10, %v748_v9  ;;  %v786_v23 = vmul.f32 %v1261_v58, %v1259_v5  ;;  %v804_v24 = vmul.f32 %v1267_v7, %v1262_v6  ;;  %v1279_v33 = vld [vmem:[%s1878_s1 + $0xb] ss:$0 sm:$0xff]  ;;  %v1280_v45 = vld [vmem:[%s1682_s8 + $0x180] sm:$0xff]  ;;  %v1285_v46 = vld [vmem:[%s1878_s1 + $0xc] ss:$0 sm:$0xff] }
  0x5f   : > { %v787_v27 = vadd.f32 %v783_v11, %v766_v14  ;;  %v788_v28 = vadd.f32 %v784_v16, %v767_v15  ;;  %v805_v29 = vmul.f32 %v1267_v7, %v1263_v12  ;;  %v806_v30 = vmul.f32 %v1267_v7, %v1264_v13  ;;  %v1275_v38 = vld [vmem:[%s1682_s8 + $0x168] sm:$0xff]  ;;  %v1282_v52 = vld [vmem:[%s1682_s8 + $0x190] sm:$0xff]  ;;  %v1283_v57 = vld [vmem:[%s1682_s8 + $0x198] sm:$0xff] }
  0x60   : > { %v789_v34 = vadd.f32 %v785_v17, %v768_v21  ;;  %v790_v35 = vadd.f32 %v786_v23, %v769_v22  ;;  %v807_v36 = vmul.f32 %v1267_v7, %v1265_v18  ;;  %v825_v37 = vmul.f32 %v1273_v20, %v1268_v19  ;;  %v1281_v51 = vld [vmem:[%s1682_s8 + $0x188] sm:$0xff]  ;;  %v1286_v58 = vld [vmem:[%s1682_s8 + $0x1a0] sm:$0xff]  ;;  %v1288_v1 = vld [vmem:[%s1682_s8 + $0x1b0] sm:$0xff] }
  0x61   : > { %v808_v40 = vadd.f32 %v804_v24, %v787_v27  ;;  %v809_v41 = vadd.f32 %v805_v29, %v788_v28  ;;  %v826_v42 = vmul.f32 %v1273_v20, %v1269_v25  ;;  %v827_v43 = vmul.f32 %v1273_v20, %v1270_v26  ;;  %v1291_v59 = vld [vmem:[%s1878_s1 + $0xd] ss:$0 sm:$0xff]  ;;  %v1289_v6 = vld [vmem:[%s1682_s8 + $0x1b8] sm:$0xff]  ;;  %v1292_v7 = vld [vmem:[%s1682_s8 + $0x1c0] sm:$0xff] }
  0x62   : > { %v810_v47 = vadd.f32 %v806_v30, %v789_v34  ;;  %v811_v48 = vadd.f32 %v807_v36, %v790_v35  ;;  %v828_v49 = vmul.f32 %v1273_v20, %v1271_v31  ;;  %v846_v50 = vmul.f32 %v1279_v33, %v1274_v32  ;;  %v1287_v0 = vld [vmem:[%s1682_s8 + $0x1a8] sm:$0xff]  ;;  %v1294_v14 = vld [vmem:[%s1682_s8 + $0x1d0] sm:$0xff]  ;;  %v1295_v19 = vld [vmem:[%s1682_s8 + $0x1d8] sm:$0xff] }
  0x63   : > { %v829_v53 = vadd.f32 %v825_v37, %v808_v40  ;;  %v830_v54 = vadd.f32 %v826_v42, %v809_v41  ;;  %v847_v55 = vmul.f32 %v1279_v33, %v1275_v38  ;;  %v848_v56 = vmul.f32 %v1279_v33, %v1276_v39  ;;  %v1297_v8 = vld [vmem:[%s1878_s1 + $0xe] ss:$0 sm:$0xff]  ;;  %v1298_v20 = vld [vmem:[%s1682_s8 + $0x1e0] sm:$0xff]  ;;  %v1303_v21 = vld [vmem:[%s1878_s1 + $0xf] ss:$0 sm:$0xff] }
  0x64   : > { %v831_v60 = vadd.f32 %v827_v43, %v810_v47  ;;  %v832_v61 = vadd.f32 %v828_v49, %v811_v48  ;;  %v849_v62 = vmul.f32 %v1279_v33, %v1277_v44  ;;  %v867_v63 = vmul.f32 %v1285_v46, %v1280_v45  ;;  %v1293_v13 = vld [vmem:[%s1682_s8 + $0x1c8] sm:$0xff]  ;;  %v1300_v27 = vld [vmem:[%s1682_s8 + $0x1f0] sm:$0xff]  ;;  %v1301_v32 = vld [vmem:[%s1682_s8 + $0x1f8] sm:$0xff] }
  0x65   : > { %v850_v2 = vadd.f32 %v846_v50, %v829_v53  ;;  %v851_v3 = vadd.f32 %v847_v55, %v830_v54  ;;  %v868_v4 = vmul.f32 %v1285_v46, %v1281_v51  ;;  %v869_v5 = vmul.f32 %v1285_v46, %v1282_v52  ;;  %v1299_v26 = vld [vmem:[%s1682_s8 + $0x1e8] sm:$0xff]  ;;  %v1304_v33 = vld [vmem:[%s1682_s8 + $0x200] sm:$0xff]  ;;  %v1309_v34 = vld [vmem:[%s1878_s1 + $0x10] ss:$0 sm:$0xff] }
  0x66   : > { %v852_v9 = vadd.f32 %v848_v56, %v831_v60  ;;  %v853_v10 = vadd.f32 %v849_v62, %v832_v61  ;;  %v870_v11 = vmul.f32 %v1285_v46, %v1283_v57  ;;  %v888_v12 = vmul.f32 %v1291_v59, %v1286_v58  ;;  %v1305_v39 = vld [vmem:[%s1682_s8 + $0x208] sm:$0xff]  ;;  %v1306_v40 = vld [vmem:[%s1682_s8 + $0x210] sm:$0xff]  ;;  %v1307_v45 = vld [vmem:[%s1682_s8 + $0x218] sm:$0xff] }
  0x67   : > { %v871_v15 = vadd.f32 %v867_v63, %v850_v2  ;;  %v872_v16 = vadd.f32 %v868_v4, %v851_v3  ;;  %v889_v17 = vmul.f32 %v1291_v59, %v1287_v0  ;;  %v890_v18 = vmul.f32 %v1291_v59, %v1288_v1  ;;  %v1310_v46 = vld [vmem:[%s1682_s8 + $0x220] sm:$0xff]  ;;  %v1315_v47 = vld [vmem:[%s1878_s1 + $0x11] ss:$0 sm:$0xff]  ;;  %v1311_v52 = vld [vmem:[%s1682_s8 + $0x228] sm:$0xff] }
  0x68   : > { %v873_v22 = vadd.f32 %v869_v5, %v852_v9  ;;  %v874_v23 = vadd.f32 %v870_v11, %v853_v10  ;;  %v891_v24 = vmul.f32 %v1291_v59, %v1289_v6  ;;  %v909_v25 = vmul.f32 %v1297_v8, %v1292_v7  ;;  %v1312_v53 = vld [vmem:[%s1682_s8 + $0x230] sm:$0xff]  ;;  %v1313_v58 = vld [vmem:[%s1682_s8 + $0x238] sm:$0xff]  ;;  %v1316_v59 = vld [vmem:[%s1682_s8 + $0x240] sm:$0xff] }
  0x69   : > { %v892_v28 = vadd.f32 %v888_v12, %v871_v15  ;;  %v893_v29 = vadd.f32 %v889_v17, %v872_v16  ;;  %v910_v30 = vmul.f32 %v1297_v8, %v1293_v13  ;;  %v911_v31 = vmul.f32 %v1297_v8, %v1294_v14  ;;  %v1321_v60 = vld [vmem:[%s1878_s1 + $0x12] ss:$0 sm:$0xff]  ;;  %v1317_v1 = vld [vmem:[%s1682_s8 + $0x248] sm:$0xff]  ;;  %v1319_v7 = vld [vmem:[%s1682_s8 + $0x258] sm:$0xff] }
  0x6a   : > { %v894_v35 = vadd.f32 %v890_v18, %v873_v22  ;;  %v895_v36 = vadd.f32 %v891_v24, %v874_v23  ;;  %v912_v37 = vmul.f32 %v1297_v8, %v1295_v19  ;;  %v930_v38 = vmul.f32 %v1303_v21, %v1298_v20  ;;  %v1318_v2 = vld [vmem:[%s1682_s8 + $0x250] sm:$0xff]  ;;  %v1322_v8 = vld [vmem:[%s1682_s8 + $0x260] sm:$0xff]  ;;  %v1323_v14 = vld [vmem:[%s1682_s8 + $0x268] sm:$0xff] }
  0x6b   : > { %v913_v41 = vadd.f32 %v909_v25, %v892_v28  ;;  %v914_v42 = vadd.f32 %v910_v30, %v893_v29  ;;  %v931_v43 = vmul.f32 %v1303_v21, %v1299_v26  ;;  %v932_v44 = vmul.f32 %v1303_v21, %v1300_v27  ;;  %v1327_v9 = vld [vmem:[%s1878_s1 + $0x13] ss:$0 sm:$0xff]  ;;  %v1325_v20 = vld [vmem:[%s1682_s8 + $0x278] sm:$0xff]  ;;  %v1333_v22 = vld [vmem:[%s1878_s1 + $0x14] ss:$0 sm:$0xff] }
  0x6c   : > { %v915_v48 = vadd.f32 %v911_v31, %v894_v35  ;;  %v916_v49 = vadd.f32 %v912_v37, %v895_v36  ;;  %v933_v50 = vmul.f32 %v1303_v21, %v1301_v32  ;;  %v951_v51 = vmul.f32 %v1309_v34, %v1304_v33  ;;  %v1324_v15 = vld [vmem:[%s1682_s8 + $0x270] sm:$0xff]  ;;  %v1328_v21 = vld [vmem:[%s1682_s8 + $0x280] sm:$0xff]  ;;  %v1329_v27 = vld [vmem:[%s1682_s8 + $0x288] sm:$0xff] }
  0x6d   : > { %v934_v54 = vadd.f32 %v930_v38, %v913_v41  ;;  %v935_v55 = vadd.f32 %v931_v43, %v914_v42  ;;  %v952_v56 = vmul.f32 %v1309_v34, %v1305_v39  ;;  %v953_v57 = vmul.f32 %v1309_v34, %v1306_v40  ;;  %v1330_v28 = vld [vmem:[%s1682_s8 + $0x290] sm:$0xff]  ;;  %v1331_v33 = vld [vmem:[%s1682_s8 + $0x298] sm:$0xff]  ;;  %v1335_v40 = vld [vmem:[%s1682_s8 + $0x2a8] sm:$0xff] }
  0x6e   : > { %v936_v61 = vadd.f32 %v932_v44, %v915_v48  ;;  %v937_v62 = vadd.f32 %v933_v50, %v916_v49  ;;  %v954_v63 = vmul.f32 %v1309_v34, %v1307_v45  ;;  %v972_v0 = vmul.f32 %v1315_v47, %v1310_v46  ;;  %v1334_v34 = vld [vmem:[%s1682_s8 + $0x2a0] sm:$0xff]  ;;  %v1339_v35 = vld [vmem:[%s1878_s1 + $0x15] ss:$0 sm:$0xff]  ;;  %v1337_v46 = vld [vmem:[%s1682_s8 + $0x2b8] sm:$0xff] }
  0x6f   : > { %v955_v3 = vadd.f32 %v951_v51, %v934_v54  ;;  %v956_v4 = vadd.f32 %v952_v56, %v935_v55  ;;  %v973_v5 = vmul.f32 %v1315_v47, %v1311_v52  ;;  %v974_v6 = vmul.f32 %v1315_v47, %v1312_v53  ;;  %v1336_v41 = vld [vmem:[%s1682_s8 + $0x2b0] sm:$0xff]  ;;  %v1341_v53 = vld [vmem:[%s1682_s8 + $0x2c8] sm:$0xff] }
  0x70   : > { %v957_v10 = vadd.f32 %v953_v57, %v936_v61  ;;  %v958_v11 = vadd.f32 %v954_v63, %v937_v62  ;;  %v975_v12 = vmul.f32 %v1315_v47, %v1313_v58  ;;  %v993_v13 = vmul.f32 %v1321_v60, %v1316_v59  ;;  %v1340_v47 = vld [vmem:[%s1682_s8 + $0x2c0] sm:$0xff]  ;;  %v1345_v48 = vld [vmem:[%s1878_s1 + $0x16] ss:$0 sm:$0xff]  ;;  %v1343_v59 = vld [vmem:[%s1682_s8 + $0x2d8] sm:$0xff] }
  0x71   : > { %v976_v16 = vadd.f32 %v972_v0, %v955_v3  ;;  %v977_v17 = vadd.f32 %v973_v5, %v956_v4  ;;  %v994_v18 = vmul.f32 %v1321_v60, %v1317_v1  ;;  %v995_v19 = vmul.f32 %v1321_v60, %v1318_v2  ;;  %v1342_v54 = vld [vmem:[%s1682_s8 + $0x2d0] sm:$0xff]  ;;  %v1347_v2 = vld [vmem:[%s1682_s8 + $0x2e8] sm:$0xff] }
  0x72   : > { %v978_v23 = vadd.f32 %v974_v6, %v957_v10  ;;  %v979_v24 = vadd.f32 %v975_v12, %v958_v11  ;;  %v996_v25 = vmul.f32 %v1321_v60, %v1319_v7  ;;  %v1014_v26 = vmul.f32 %v1327_v9, %v1322_v8  ;;  %v1346_v60 = vld [vmem:[%s1682_s8 + $0x2e0] sm:$0xff]  ;;  %v1351_v61 = vld [vmem:[%s1878_s1 + $0x17] ss:$0 sm:$0xff]  ;;  %v1349_v8 = vld [vmem:[%s1682_s8 + $0x2f8] sm:$0xff] }
  0x73   : > { %v997_v29 = vadd.f32 %v993_v13, %v976_v16  ;;  %v998_v30 = vadd.f32 %v994_v18, %v977_v17  ;;  %v1015_v31 = vmul.f32 %v1327_v9, %v1323_v14  ;;  %v1016_v32 = vmul.f32 %v1327_v9, %v1324_v15  ;;  %v1348_v3 = vld [vmem:[%s1682_s8 + $0x2f0] sm:$0xff]  ;;  %v1357_v10 = vld [vmem:[%s1878_s1 + $0x18] ss:$0 sm:$0xff]  ;;  %v1353_v15 = vld [vmem:[%s1682_s8 + $0x308] sm:$0xff] }
  0x74   : > { %v999_v36 = vadd.f32 %v995_v19, %v978_v23  ;;  %v1000_v37 = vadd.f32 %v996_v25, %v979_v24  ;;  %v1017_v38 = vmul.f32 %v1327_v9, %v1325_v20  ;;  %v1035_v39 = vmul.f32 %v1333_v22, %v1328_v21  ;;  %v1352_v9 = vld [vmem:[%s1682_s8 + $0x300] sm:$0xff]  ;;  %v1354_v16 = vld [vmem:[%s1682_s8 + $0x310] sm:$0xff]  ;;  %v1355_v21 = vld [vmem:[%s1682_s8 + $0x318] sm:$0xff] }
  0x75   : > { %v1018_v42 = vadd.f32 %v1014_v26, %v997_v29  ;;  %v1019_v43 = vadd.f32 %v1015_v31, %v998_v30  ;;  %v1036_v44 = vmul.f32 %v1333_v22, %v1329_v27  ;;  %v1037_v45 = vmul.f32 %v1333_v22, %v1330_v28 }
  0x76   : > { %v1020_v49 = vadd.f32 %v1016_v32, %v999_v36  ;;  %v1021_v50 = vadd.f32 %v1017_v38, %v1000_v37  ;;  %v1038_v51 = vmul.f32 %v1333_v22, %v1331_v33  ;;  %v1056_v52 = vmul.f32 %v1339_v35, %v1334_v34  ;;  %v1358_v33 = vld [vmem:[%s1879_s2] ss:$0 sm:$0xff] }
  0x77   : > { %v1039_v55 = vadd.f32 %v1035_v39, %v1018_v42  ;;  %v1040_v56 = vadd.f32 %v1036_v44, %v1019_v43  ;;  %v1057_v57 = vmul.f32 %v1339_v35, %v1335_v40  ;;  %v1058_v58 = vmul.f32 %v1339_v35, %v1336_v41 }
  0x78   : > { %v1041_v62 = vadd.f32 %v1037_v45, %v1020_v49  ;;  %v1042_v63 = vadd.f32 %v1038_v51, %v1021_v50  ;;  %v1059_v0 = vmul.f32 %v1339_v35, %v1337_v46  ;;  %v1077_v1 = vmul.f32 %v1345_v48, %v1340_v47 }
  0x79   : > { %v1060_v4 = vadd.f32 %v1056_v52, %v1039_v55  ;;  %v1061_v5 = vadd.f32 %v1057_v57, %v1040_v56  ;;  %v1078_v6 = vmul.f32 %v1345_v48, %v1341_v53  ;;  %v1079_v7 = vmul.f32 %v1345_v48, %v1342_v54 }
  0x7a   : > { %v1062_v11 = vadd.f32 %v1058_v58, %v1041_v62  ;;  %v1063_v12 = vadd.f32 %v1059_v0, %v1042_v63  ;;  %v1080_v13 = vmul.f32 %v1345_v48, %v1343_v59  ;;  %v1098_v14 = vmul.f32 %v1351_v61, %v1346_v60 }
  0x7b   : > { %v1081_v17 = vadd.f32 %v1077_v1, %v1060_v4  ;;  %v1082_v18 = vadd.f32 %v1078_v6, %v1061_v5  ;;  %v1099_v19 = vmul.f32 %v1351_v61, %v1347_v2  ;;  %v1100_v20 = vmul.f32 %v1351_v61, %v1348_v3 }
  0x7c   : > { %v1083_v22 = vadd.f32 %v1079_v7, %v1062_v11  ;;  %v1084_v23 = vadd.f32 %v1080_v13, %v1063_v12  ;;  %v1101_v24 = vmul.f32 %v1351_v61, %v1349_v8  ;;  %v1119_v25 = vmul.f32 %v1357_v10, %v1352_v9 }
  0x7d   : > { %v1102_v26 = vadd.f32 %v1098_v14, %v1081_v17  ;;  %v1103_v27 = vadd.f32 %v1099_v19, %v1082_v18  ;;  %v1120_v28 = vmul.f32 %v1357_v10, %v1353_v15  ;;  %v1121_v29 = vmul.f32 %v1357_v10, %v1354_v16 }
  0x7e   : > { %v1104_v30 = vadd.f32 %v1100_v20, %v1083_v22  ;;  %v1105_v31 = vadd.f32 %v1101_v24, %v1084_v23  ;;  %v1122_v32 = vmul.f32 %v1357_v10, %v1355_v21 }
  0x7f   : > { %v1123_v34 = vadd.f32 %v1119_v25, %v1102_v26  ;;  %v1124_v35 = vadd.f32 %v1120_v28, %v1103_v27 }
  0x80   : > { %v1125_v36 = vadd.f32 %v1121_v29, %v1104_v30  ;;  %v1126_v37 = vadd.f32 %v1122_v32, %v1105_v31 }
  0x81   : > { %v1134_v38 = vadd.f32 %v1358_v33, %v1123_v34  ;;  %v1135_v39 = vadd.f32 %v1358_v33, %v1124_v35 }
  0x82   : > { %v1136_v40 = vadd.f32 %v1358_v33, %v1125_v36  ;;  %v1137_v41 = vadd.f32 %v1358_v33, %v1126_v37 }
  0x83   : > { %1138 = vst [vmem:[%s602_s18] sm:$0xff] %v1134_v38  ;;  %1139 = vst [vmem:[%s602_s18 + $0x8] sm:$0xff] %v1135_v39 }
  0x84   : > { %1140 = vst [vmem:[%s602_s18 + $0x10] sm:$0xff] %v1136_v40  ;;  %1141 = vst [vmem:[%s602_s18 + $0x18] sm:$0xff] %v1137_v41 }
  0x85 PF: > { %p10_p9 = scmp.ge.s32.totalorder %s1449_s16, 4   ;;  %s1881_s12 = smov %s1406_s13 }
  0x86   : > { %s1882_s13 = smov %s1458_s19  ;;  %s1883_s14 = smov %s1449_s16 }
  0x87   :  { %12 = sbr.rel (!%p10_p9) target bundleno = 2 (0x2), region = 153 }

// kernel: block_forward.25
= control target key start
LH: loop header
LB: loop body
LE: loop exit
PB: predicated region body
PF: predicated region fallthrough
CT: control target
= control target key end

     0   :  { %s2464_s12 = smov 0   ;;  %s2466_s13 = smov 0   ;;  %s3269_s0 = inlined_call_operand.vmem [shape: f32[49,64,128], index: 0, kind: input, shape index: {}]   ;;  %s3270_s1 = inlined_call_operand.vmem [shape: f32[49,1,128], index: 1, kind: input, shape index: {}]   ;;  %s3271_s2 = inlined_call_operand.vmem [shape: f32[1,128], index: 2, kind: input, shape index: {}]   ;;  %s3272_s3 = inlined_call_operand.vmem [shape: f32[64,128], index: 3, kind: output, shape index: {}]  }
   0x1   :  { %s2468_s14 = smov 0  }
   0x2 LB: > { %s2092_s15 = sadd.s32 4294967295, %s2442_s14   ;;  %s2481_s16 = sadd.s32 1, %s2442_s14   ;;  %s2442_s14 = sphi %s2468_s14, %s3275_s14   ;;  %s2438_s13 = sphi %s2466_s13, %s3274_s13   ;;  %s2434_s12 = sphi %s2464_s12, %s3273_s12  }
   0x3   : > { %s17_s17 = ssub.s32 %s2442_s14, %s2481_s16  ;;  %s20_s18 = sadd.s32 1, %s2438_s13 }
   0x4   : > { %p18_p0 = scmp.eq.s32.totalorder %s17_s17, 0  ;;  %p27_p1 = scmp.ne.s32.totalorder %s2438_s13, %s2434_s12 }
   0x5   : > { %p28_p2 = scmp.eq.s32.totalorder %s2442_s14, 0  ;;  %p2095_p4 = scmp.ge.s32.totalorder %s2442_s14, 2 }
   0x6   : > { %s2490_s19 = scalar_select %p18_p0, %s2438_s13, %s20_s18  }
   0x7   : > { %p29_p3 = por %p28_p2, %p27_p1  ;;  %127 = sbr.rel (%p2095_p4) target bundleno = 117 (0x75), region = 24 }
   0xe   : > { %130 = sbr.rel (!%p29_p3) target bundleno = 117 (0x75), region = 28  ;;  %s132_s20 = sand.u32 (%p29_p3), 1, %s2438_s13  }
   0xf   : > { %s2393_s21 = sshll.u32 (%p29_p3), %s2442_s14, 5  ;;  %s2394_s22 = smul.u32 (%p29_p3), 1568, %s132_s20 }
  0x10   : > { %s2498_s25 = scalar_lea.vmem (%p29_p3), %s3269_s0, %s2393_s21 }
  0x11   : > { %v555_v0 = vld [vmem:[%s2498_s25] sm:$0xff] (%p29_p3)  ;;  %v557_v1 = vld [vmem:[%s2498_s25 + $0x8] sm:$0xff] (%p29_p3)  ;;  %v559_v2 = vld [vmem:[%s2498_s25 + $0x10] sm:$0xff] (%p29_p3)  ;;  %s2506_s26 = scalar_lea.vmem (%p29_p3), [#allocation2], %s2394_s22 }
  0x12   : > { %v561_v3 = vld [vmem:[%s2498_s25 + $0x18] sm:$0xff] (%p29_p3)  ;;  %v563_v4 = vld [vmem:[%s2498_s25 + $0x40] sm:$0xff] (%p29_p3)  ;;  %v565_v5 = vld [vmem:[%s2498_s25 + $0x48] sm:$0xff] (%p29_p3)  ;;  %556 = vst [vmem:[%s2506_s26] sm:$0xff] (%p29_p3), %v555_v0 }
  0x13   : > { %558 = vst [vmem:[%s2506_s26 + $0x8] sm:$0xff] (%p29_p3), %v557_v1  ;;  %560 = vst [vmem:[%s2506_s26 + $0x10] sm:$0xff] (%p29_p3), %v559_v2  ;;  %v567_v6 = vld [vmem:[%s2498_s25 + $0x50] sm:$0xff] (%p29_p3)  ;;  %v569_v7 = vld [vmem:[%s2498_s25 + $0x58] sm:$0xff] (%p29_p3) }
  0x14   : > { %562 = vst [vmem:[%s2506_s26 + $0x18] sm:$0xff] (%p29_p3), %v561_v3  ;;  %564 = vst [vmem:[%s2506_s26 + $0x20] sm:$0xff] (%p29_p3), %v563_v4  ;;  %v571_v8 = vld [vmem:[%s2498_s25 + $0x80] sm:$0xff] (%p29_p3)  ;;  %v573_v9 = vld [vmem:[%s2498_s25 + $0x88] sm:$0xff] (%p29_p3) }
  0x15   : > { %566 = vst [vmem:[%s2506_s26 + $0x28] sm:$0xff] %v565_v5  ;;  %568 = vst [vmem:[%s2506_s26 + $0x30] sm:$0xff] %v567_v6  ;;  %v575_v10 = vld [vmem:[%s2498_s25 + $0x90] sm:$0xff]  ;;  %v577_v11 = vld [vmem:[%s2498_s25 + $0x98] sm:$0xff] }
  0x16   : > { %570 = vst [vmem:[%s2506_s26 + $0x38] sm:$0xff] %v569_v7  ;;  %572 = vst [vmem:[%s2506_s26 + $0x40] sm:$0xff] %v571_v8  ;;  %v579_v12 = vld [vmem:[%s2498_s25 + $0xc0] sm:$0xff]  ;;  %v581_v13 = vld [vmem:[%s2498_s25 + $0xc8] sm:$0xff] }
  0x17   : > { %574 = vst [vmem:[%s2506_s26 + $0x48] sm:$0xff] %v573_v9  ;;  %576 = vst [vmem:[%s2506_s26 + $0x50] sm:$0xff] %v575_v10  ;;  %v583_v14 = vld [vmem:[%s2498_s25 + $0xd0] sm:$0xff]  ;;  %v585_v15 = vld [vmem:[%s2498_s25 + $0xd8] sm:$0xff] }
  0x18   : > { %578 = vst [vmem:[%s2506_s26 + $0x58] sm:$0xff] %v577_v11  ;;  %580 = vst [vmem:[%s2506_s26 + $0x60] sm:$0xff] %v579_v12  ;;  %v587_v16 = vld [vmem:[%s2498_s25 + $0x100] sm:$0xff]  ;;  %v589_v17 = vld [vmem:[%s2498_s25 + $0x108] sm:$0xff] }
  0x19   : > { %582 = vst [vmem:[%s2506_s26 + $0x68] sm:$0xff] %v581_v13  ;;  %584 = vst [vmem:[%s2506_s26 + $0x70] sm:$0xff] %v583_v14  ;;  %v591_v18 = vld [vmem:[%s2498_s25 + $0x110] sm:$0xff]  ;;  %v593_v19 = vld [vmem:[%s2498_s25 + $0x118] sm:$0xff] }
  0x1a   : > { %586 = vst [vmem:[%s2506_s26 + $0x78] sm:$0xff] %v585_v15  ;;  %588 = vst [vmem:[%s2506_s26 + $0x80] sm:$0xff] %v587_v16  ;;  %v595_v20 = vld [vmem:[%s2498_s25 + $0x140] sm:$0xff]  ;;  %v597_v21 = vld [vmem:[%s2498_s25 + $0x148] sm:$0xff] }
  0x1b   : > { %590 = vst [vmem:[%s2506_s26 + $0x88] sm:$0xff] %v589_v17  ;;  %592 = vst [vmem:[%s2506_s26 + $0x90] sm:$0xff] %v591_v18  ;;  %v599_v22 = vld [vmem:[%s2498_s25 + $0x150] sm:$0xff]  ;;  %v601_v23 = vld [vmem:[%s2498_s25 + $0x158] sm:$0xff] }
  0x1c   : > { %594 = vst [vmem:[%s2506_s26 + $0x98] sm:$0xff] %v593_v19  ;;  %596 = vst [vmem:[%s2506_s26 + $0xa0] sm:$0xff] %v595_v20  ;;  %v603_v24 = vld [vmem:[%s2498_s25 + $0x180] sm:$0xff]  ;;  %v605_v25 = vld [vmem:[%s2498_s25 + $0x188] sm:$0xff] }
  0x1d   : > { %598 = vst [vmem:[%s2506_s26 + $0xa8] sm:$0xff] %v597_v21  ;;  %600 = vst [vmem:[%s2506_s26 + $0xb0] sm:$0xff] %v599_v22  ;;  %v607_v26 = vld [vmem:[%s2498_s25 + $0x190] sm:$0xff]  ;;  %v609_v27 = vld [vmem:[%s2498_s25 + $0x198] sm:$0xff] }
  0x1e   : > { %602 = vst [vmem:[%s2506_s26 + $0xb8] sm:$0xff] %v601_v23  ;;  %604 = vst [vmem:[%s2506_s26 + $0xc0] sm:$0xff] %v603_v24  ;;  %v611_v28 = vld [vmem:[%s2498_s25 + $0x1c0] sm:$0xff]  ;;  %v613_v29 = vld [vmem:[%s2498_s25 + $0x1c8] sm:$0xff] }
  0x1f   : > { %606 = vst [vmem:[%s2506_s26 + $0xc8] sm:$0xff] %v605_v25  ;;  %608 = vst [vmem:[%s2506_s26 + $0xd0] sm:$0xff] %v607_v26  ;;  %v615_v30 = vld [vmem:[%s2498_s25 + $0x1d0] sm:$0xff]  ;;  %v617_v31 = vld [vmem:[%s2498_s25 + $0x1d8] sm:$0xff] }
  0x20   : > { %610 = vst [vmem:[%s2506_s26 + $0xd8] sm:$0xff] %v609_v27  ;;  %612 = vst [vmem:[%s2506_s26 + $0xe0] sm:$0xff] %v611_v28  ;;  %v619_v32 = vld [vmem:[%s2498_s25 + $0x200] sm:$0xff]  ;;  %v621_v33 = vld [vmem:[%s2498_s25 + $0x208] sm:$0xff] }
  0x21   : > { %614 = vst [vmem:[%s2506_s26 + $0xe8] sm:$0xff] %v613_v29  ;;  %616 = vst [vmem:[%s2506_s26 + $0xf0] sm:$0xff] %v615_v30  ;;  %v623_v34 = vld [vmem:[%s2498_s25 + $0x210] sm:$0xff]  ;;  %v625_v35 = vld [vmem:[%s2498_s25 + $0x218] sm:$0xff] }
  0x22   : > { %618 = vst [vmem:[%s2506_s26 + $0xf8] sm:$0xff] %v617_v31  ;;  %620 = vst [vmem:[%s2506_s26 + $0x100] sm:$0xff] %v619_v32  ;;  %v627_v36 = vld [vmem:[%s2498_s25 + $0x240] sm:$0xff]  ;;  %v629_v37 = vld [vmem:[%s2498_s25 + $0x248] sm:$0xff] }
  0x23   : > { %622 = vst [vmem:[%s2506_s26 + $0x108] sm:$0xff] %v621_v33  ;;  %624 = vst [vmem:[%s2506_s26 + $0x110] sm:$0xff] %v623_v34  ;;  %v631_v38 = vld [vmem:[%s2498_s25 + $0x250] sm:$0xff]  ;;  %v633_v39 = vld [vmem:[%s2498_s25 + $0x258] sm:$0xff] }
  0x24   : > { %626 = vst [vmem:[%s2506_s26 + $0x118] sm:$0xff] %v625_v35  ;;  %628 = vst [vmem:[%s2506_s26 + $0x120] sm:$0xff] %v627_v36  ;;  %v635_v40 = vld [vmem:[%s2498_s25 + $0x280] sm:$0xff]  ;;  %v637_v41 = vld [vmem:[%s2498_s25 + $0x288] sm:$0xff] }
  0x25   : > { %630 = vst [vmem:[%s2506_s26 + $0x128] sm:$0xff] %v629_v37  ;;  %632 = vst [vmem:[%s2506_s26 + $0x130] sm:$0xff] %v631_v38  ;;  %v639_v42 = vld [vmem:[%s2498_s25 + $0x290] sm:$0xff]  ;;  %v641_v43 = vld [vmem:[%s2498_s25 + $0x298] sm:$0xff] }
  0x26   : > { %634 = vst [vmem:[%s2506_s26 + $0x138] sm:$0xff] %v633_v39  ;;  %636 = vst [vmem:[%s2506_s26 + $0x140] sm:$0xff] %v635_v40  ;;  %v643_v44 = vld [vmem:[%s2498_s25 + $0x2c0] sm:$0xff]  ;;  %v645_v45 = vld [vmem:[%s2498_s25 + $0x2c8] sm:$0xff] }
  0x27   : > { %638 = vst [vmem:[%s2506_s26 + $0x148] sm:$0xff] %v637_v41  ;;  %640 = vst [vmem:[%s2506_s26 + $0x150] sm:$0xff] %v639_v42  ;;  %v647_v46 = vld [vmem:[%s2498_s25 + $0x2d0] sm:$0xff]  ;;  %v649_v47 = vld [vmem:[%s2498_s25 + $0x2d8] sm:$0xff] }
  0x28   : > { %642 = vst [vmem:[%s2506_s26 + $0x158] sm:$0xff] %v641_v43  ;;  %644 = vst [vmem:[%s2506_s26 + $0x160] sm:$0xff] %v643_v44  ;;  %v651_v48 = vld [vmem:[%s2498_s25 + $0x300] sm:$0xff]  ;;  %v653_v49 = vld [vmem:[%s2498_s25 + $0x308] sm:$0xff] }
  0x29   : > { %646 = vst [vmem:[%s2506_s26 + $0x168] sm:$0xff] %v645_v45  ;;  %648 = vst [vmem:[%s2506_s26 + $0x170] sm:$0xff] %v647_v46  ;;  %v655_v50 = vld [vmem:[%s2498_s25 + $0x310] sm:$0xff]  ;;  %v657_v51 = vld [vmem:[%s2498_s25 + $0x318] sm:$0xff] }
  0x2a   : > { %650 = vst [vmem:[%s2506_s26 + $0x178] sm:$0xff] %v649_v47  ;;  %652 = vst [vmem:[%s2506_s26 + $0x180] sm:$0xff] %v651_v48  ;;  %v659_v52 = vld [vmem:[%s2498_s25 + $0x340] sm:$0xff]  ;;  %v661_v53 = vld [vmem:[%s2498_s25 + $0x348] sm:$0xff] }
  0x2b   : > { %654 = vst [vmem:[%s2506_s26 + $0x188] sm:$0xff] %v653_v49  ;;  %656 = vst [vmem:[%s2506_s26 + $0x190] sm:$0xff] %v655_v50  ;;  %v663_v54 = vld [vmem:[%s2498_s25 + $0x350] sm:$0xff]  ;;  %v665_v55 = vld [vmem:[%s2498_s25 + $0x358] sm:$0xff] }
  0x2c   : > { %658 = vst [vmem:[%s2506_s26 + $0x198] sm:$0xff] %v657_v51  ;;  %660 = vst [vmem:[%s2506_s26 + $0x1a0] sm:$0xff] %v659_v52  ;;  %v667_v56 = vld [vmem:[%s2498_s25 + $0x380] sm:$0xff]  ;;  %v669_v57 = vld [vmem:[%s2498_s25 + $0x388] sm:$0xff] }
  0x2d   : > { %662 = vst [vmem:[%s2506_s26 + $0x1a8] sm:$0xff] %v661_v53  ;;  %664 = vst [vmem:[%s2506_s26 + $0x1b0] sm:$0xff] %v663_v54  ;;  %v671_v58 = vld [vmem:[%s2498_s25 + $0x390] sm:$0xff]  ;;  %v673_v59 = vld [vmem:[%s2498_s25 + $0x398] sm:$0xff] }
  0x2e   : > { %666 = vst [vmem:[%s2506_s26 + $0x1b8] sm:$0xff] %v665_v55  ;;  %668 = vst [vmem:[%s2506_s26 + $0x1c0] sm:$0xff] %v667_v56  ;;  %v675_v60 = vld [vmem:[%s2498_s25 + $0x3c0] sm:$0xff]  ;;  %v677_v61 = vld [vmem:[%s2498_s25 + $0x3c8] sm:$0xff] }
  0x2f   : > { %670 = vst [vmem:[%s2506_s26 + $0x1c8] sm:$0xff] %v669_v57  ;;  %672 = vst [vmem:[%s2506_s26 + $0x1d0] sm:$0xff] %v671_v58  ;;  %v679_v62 = vld [vmem:[%s2498_s25 + $0x3d0] sm:$0xff]  ;;  %v681_v63 = vld [vmem:[%s2498_s25 + $0x3d8] sm:$0xff] }
  0x30   : > { %674 = vst [vmem:[%s2506_s26 + $0x1d8] sm:$0xff] %v673_v59  ;;  %676 = vst [vmem:[%s2506_s26 + $0x1e0] sm:$0xff] %v675_v60  ;;  %v683_v0 = vld [vmem:[%s2498_s25 + $0x400] sm:$0xff]  ;;  %v685_v1 = vld [vmem:[%s2498_s25 + $0x408] sm:$0xff] }
  0x31   : > { %678 = vst [vmem:[%s2506_s26 + $0x1e8] sm:$0xff] %v677_v61  ;;  %680 = vst [vmem:[%s2506_s26 + $0x1f0] sm:$0xff] %v679_v62  ;;  %v687_v2 = vld [vmem:[%s2498_s25 + $0x410] sm:$0xff]  ;;  %v689_v3 = vld [vmem:[%s2498_s25 + $0x418] sm:$0xff] }
  0x32   : > { %682 = vst [vmem:[%s2506_s26 + $0x1f8] sm:$0xff] %v681_v63  ;;  %684 = vst [vmem:[%s2506_s26 + $0x200] sm:$0xff] %v683_v0  ;;  %v691_v4 = vld [vmem:[%s2498_s25 + $0x440] sm:$0xff]  ;;  %v693_v5 = vld [vmem:[%s2498_s25 + $0x448] sm:$0xff] }
  0x33   : > { %686 = vst [vmem:[%s2506_s26 + $0x208] sm:$0xff] %v685_v1  ;;  %688 = vst [vmem:[%s2506_s26 + $0x210] sm:$0xff] %v687_v2  ;;  %v695_v6 = vld [vmem:[%s2498_s25 + $0x450] sm:$0xff]  ;;  %v697_v7 = vld [vmem:[%s2498_s25 + $0x458] sm:$0xff] }
  0x34   : > { %690 = vst [vmem:[%s2506_s26 + $0x218] sm:$0xff] %v689_v3  ;;  %692 = vst [vmem:[%s2506_s26 + $0x220] sm:$0xff] %v691_v4  ;;  %v699_v8 = vld [vmem:[%s2498_s25 + $0x480] sm:$0xff]  ;;  %v701_v9 = vld [vmem:[%s2498_s25 + $0x488] sm:$0xff] }
  0x35   : > { %694 = vst [vmem:[%s2506_s26 + $0x228] sm:$0xff] %v693_v5  ;;  %696 = vst [vmem:[%s2506_s26 + $0x230] sm:$0xff] %v695_v6  ;;  %v703_v10 = vld [vmem:[%s2498_s25 + $0x490] sm:$0xff]  ;;  %v705_v11 = vld [vmem:[%s2498_s25 + $0x498] sm:$0xff] }
  0x36   : > { %698 = vst [vmem:[%s2506_s26 + $0x238] sm:$0xff] %v697_v7  ;;  %700 = vst [vmem:[%s2506_s26 + $0x240] sm:$0xff] %v699_v8  ;;  %v707_v12 = vld [vmem:[%s2498_s25 + $0x4c0] sm:$0xff]  ;;  %v709_v13 = vld [vmem:[%s2498_s25 + $0x4c8] sm:$0xff] }
  0x37   : > { %702 = vst [vmem:[%s2506_s26 + $0x248] sm:$0xff] %v701_v9  ;;  %704 = vst [vmem:[%s2506_s26 + $0x250] sm:$0xff] %v703_v10  ;;  %v711_v14 = vld [vmem:[%s2498_s25 + $0x4d0] sm:$0xff]  ;;  %v713_v15 = vld [vmem:[%s2498_s25 + $0x4d8] sm:$0xff] }
  0x38   : > { %706 = vst [vmem:[%s2506_s26 + $0x258] sm:$0xff] %v705_v11  ;;  %708 = vst [vmem:[%s2506_s26 + $0x260] sm:$0xff] %v707_v12  ;;  %v715_v16 = vld [vmem:[%s2498_s25 + $0x500] sm:$0xff]  ;;  %v717_v17 = vld [vmem:[%s2498_s25 + $0x508] sm:$0xff] }
  0x39   : > { %710 = vst [vmem:[%s2506_s26 + $0x268] sm:$0xff] %v709_v13  ;;  %712 = vst [vmem:[%s2506_s26 + $0x270] sm:$0xff] %v711_v14  ;;  %v719_v18 = vld [vmem:[%s2498_s25 + $0x510] sm:$0xff]  ;;  %v721_v19 = vld [vmem:[%s2498_s25 + $0x518] sm:$0xff] }
  0x3a   : > { %714 = vst [vmem:[%s2506_s26 + $0x278] sm:$0xff] %v713_v15  ;;  %716 = vst [vmem:[%s2506_s26 + $0x280] sm:$0xff] %v715_v16  ;;  %v723_v20 = vld [vmem:[%s2498_s25 + $0x540] sm:$0xff]  ;;  %v725_v21 = vld [vmem:[%s2498_s25 + $0x548] sm:$0xff] }
  0x3b   : > { %718 = vst [vmem:[%s2506_s26 + $0x288] sm:$0xff] %v717_v17  ;;  %720 = vst [vmem:[%s2506_s26 + $0x290] sm:$0xff] %v719_v18  ;;  %v727_v22 = vld [vmem:[%s2498_s25 + $0x550] sm:$0xff]  ;;  %v729_v23 = vld [vmem:[%s2498_s25 + $0x558] sm:$0xff] }
  0x3c   : > { %722 = vst [vmem:[%s2506_s26 + $0x298] sm:$0xff] %v721_v19  ;;  %724 = vst [vmem:[%s2506_s26 + $0x2a0] sm:$0xff] %v723_v20  ;;  %v731_v24 = vld [vmem:[%s2498_s25 + $0x580] sm:$0xff]  ;;  %v733_v25 = vld [vmem:[%s2498_s25 + $0x588] sm:$0xff] }
  0x3d   : > { %726 = vst [vmem:[%s2506_s26 + $0x2a8] sm:$0xff] %v725_v21  ;;  %728 = vst [vmem:[%s2506_s26 + $0x2b0] sm:$0xff] %v727_v22  ;;  %v735_v26 = vld [vmem:[%s2498_s25 + $0x590] sm:$0xff]  ;;  %v737_v27 = vld [vmem:[%s2498_s25 + $0x598] sm:$0xff] }
  0x3e   : > { %730 = vst [vmem:[%s2506_s26 + $0x2b8] sm:$0xff] %v729_v23  ;;  %732 = vst [vmem:[%s2506_s26 + $0x2c0] sm:$0xff] %v731_v24  ;;  %v739_v28 = vld [vmem:[%s2498_s25 + $0x5c0] sm:$0xff]  ;;  %v741_v29 = vld [vmem:[%s2498_s25 + $0x5c8] sm:$0xff] }
  0x3f   : > { %734 = vst [vmem:[%s2506_s26 + $0x2c8] sm:$0xff] %v733_v25  ;;  %736 = vst [vmem:[%s2506_s26 + $0x2d0] sm:$0xff] %v735_v26  ;;  %v743_v30 = vld [vmem:[%s2498_s25 + $0x5d0] sm:$0xff]  ;;  %v745_v31 = vld [vmem:[%s2498_s25 + $0x5d8] sm:$0xff] }
  0x40   : > { %738 = vst [vmem:[%s2506_s26 + $0x2d8] sm:$0xff] %v737_v27  ;;  %740 = vst [vmem:[%s2506_s26 + $0x2e0] sm:$0xff] %v739_v28  ;;  %v747_v32 = vld [vmem:[%s2498_s25 + $0x600] sm:$0xff]  ;;  %v749_v33 = vld [vmem:[%s2498_s25 + $0x608] sm:$0xff] }
  0x41   : > { %742 = vst [vmem:[%s2506_s26 + $0x2e8] sm:$0xff] %v741_v29  ;;  %744 = vst [vmem:[%s2506_s26 + $0x2f0] sm:$0xff] %v743_v30  ;;  %v751_v34 = vld [vmem:[%s2498_s25 + $0x610] sm:$0xff]  ;;  %v753_v35 = vld [vmem:[%s2498_s25 + $0x618] sm:$0xff] }
  0x42   : > { %746 = vst [vmem:[%s2506_s26 + $0x2f8] sm:$0xff] %v745_v31  ;;  %748 = vst [vmem:[%s2506_s26 + $0x300] sm:$0xff] %v747_v32  ;;  %v755_v36 = vld [vmem:[%s2498_s25 + $0x640] sm:$0xff]  ;;  %v757_v37 = vld [vmem:[%s2498_s25 + $0x648] sm:$0xff] }
  0x43   : > { %750 = vst [vmem:[%s2506_s26 + $0x308] sm:$0xff] %v749_v33  ;;  %752 = vst [vmem:[%s2506_s26 + $0x310] sm:$0xff] %v751_v34  ;;  %v759_v38 = vld [vmem:[%s2498_s25 + $0x650] sm:$0xff]  ;;  %v761_v39 = vld [vmem:[%s2498_s25 + $0x658] sm:$0xff] }
  0x44   : > { %754 = vst [vmem:[%s2506_s26 + $0x318] sm:$0xff] %v753_v35  ;;  %756 = vst [vmem:[%s2506_s26 + $0x320] sm:$0xff] %v755_v36  ;;  %v763_v40 = vld [vmem:[%s2498_s25 + $0x680] sm:$0xff]  ;;  %v765_v41 = vld [vmem:[%s2498_s25 + $0x688] sm:$0xff] }
  0x45   : > { %758 = vst [vmem:[%s2506_s26 + $0x328] sm:$0xff] %v757_v37  ;;  %760 = vst [vmem:[%s2506_s26 + $0x330] sm:$0xff] %v759_v38  ;;  %v767_v42 = vld [vmem:[%s2498_s25 + $0x690] sm:$0xff]  ;;  %v769_v43 = vld [vmem:[%s2498_s25 + $0x698] sm:$0xff] }
  0x46   : > { %762 = vst [vmem:[%s2506_s26 + $0x338] sm:$0xff] %v761_v39  ;;  %764 = vst [vmem:[%s2506_s26 + $0x340] sm:$0xff] %v763_v40  ;;  %v771_v44 = vld [vmem:[%s2498_s25 + $0x6c0] sm:$0xff]  ;;  %v773_v45 = vld [vmem:[%s2498_s25 + $0x6c8] sm:$0xff] }
  0x47   : > { %766 = vst [vmem:[%s2506_s26 + $0x348] sm:$0xff] %v765_v41  ;;  %768 = vst [vmem:[%s2506_s26 + $0x350] sm:$0xff] %v767_v42  ;;  %v775_v46 = vld [vmem:[%s2498_s25 + $0x6d0] sm:$0xff]  ;;  %v777_v47 = vld [vmem:[%s2498_s25 + $0x6d8] sm:$0xff] }
  0x48   : > { %770 = vst [vmem:[%s2506_s26 + $0x358] sm:$0xff] %v769_v43  ;;  %772 = vst [vmem:[%s2506_s26 + $0x360] sm:$0xff] %v771_v44  ;;  %v779_v48 = vld [vmem:[%s2498_s25 + $0x700] sm:$0xff]  ;;  %v781_v49 = vld [vmem:[%s2498_s25 + $0x708] sm:$0xff] }
  0x49   : > { %774 = vst [vmem:[%s2506_s26 + $0x368] sm:$0xff] %v773_v45  ;;  %776 = vst [vmem:[%s2506_s26 + $0x370] sm:$0xff] %v775_v46  ;;  %v783_v50 = vld [vmem:[%s2498_s25 + $0x710] sm:$0xff]  ;;  %v785_v51 = vld [vmem:[%s2498_s25 + $0x718] sm:$0xff] }
  0x4a   : > { %778 = vst [vmem:[%s2506_s26 + $0x378] sm:$0xff] %v777_v47  ;;  %780 = vst [vmem:[%s2506_s26 + $0x380] sm:$0xff] %v779_v48  ;;  %v787_v52 = vld [vmem:[%s2498_s25 + $0x740] sm:$0xff]  ;;  %v789_v53 = vld [vmem:[%s2498_s25 + $0x748] sm:$0xff] }
  0x4b   : > { %782 = vst [vmem:[%s2506_s26 + $0x388] sm:$0xff] %v781_v49  ;;  %784 = vst [vmem:[%s2506_s26 + $0x390] sm:$0xff] %v783_v50  ;;  %v791_v54 = vld [vmem:[%s2498_s25 + $0x750] sm:$0xff]  ;;  %v793_v55 = vld [vmem:[%s2498_s25 + $0x758] sm:$0xff] }
  0x4c   : > { %786 = vst [vmem:[%s2506_s26 + $0x398] sm:$0xff] %v785_v51  ;;  %788 = vst [vmem:[%s2506_s26 + $0x3a0] sm:$0xff] %v787_v52  ;;  %v795_v56 = vld [vmem:[%s2498_s25 + $0x780] sm:$0xff]  ;;  %v797_v57 = vld [vmem:[%s2498_s25 + $0x788] sm:$0xff] }
  0x4d   : > { %790 = vst [vmem:[%s2506_s26 + $0x3a8] sm:$0xff] %v789_v53  ;;  %792 = vst [vmem:[%s2506_s26 + $0x3b0] sm:$0xff] %v791_v54  ;;  %v799_v58 = vld [vmem:[%s2498_s25 + $0x790] sm:$0xff]  ;;  %v801_v59 = vld [vmem:[%s2498_s25 + $0x798] sm:$0xff] }
  0x4e   : > { %794 = vst [vmem:[%s2506_s26 + $0x3b8] sm:$0xff] %v793_v55  ;;  %796 = vst [vmem:[%s2506_s26 + $0x3c0] sm:$0xff] %v795_v56  ;;  %v803_v60 = vld [vmem:[%s2498_s25 + $0x7c0] sm:$0xff]  ;;  %v805_v61 = vld [vmem:[%s2498_s25 + $0x7c8] sm:$0xff] }
  0x4f   : > { %798 = vst [vmem:[%s2506_s26 + $0x3c8] sm:$0xff] %v797_v57  ;;  %800 = vst [vmem:[%s2506_s26 + $0x3d0] sm:$0xff] %v799_v58  ;;  %v807_v62 = vld [vmem:[%s2498_s25 + $0x7d0] sm:$0xff]  ;;  %v809_v63 = vld [vmem:[%s2498_s25 + $0x7d8] sm:$0xff] }
  0x50   : > { %802 = vst [vmem:[%s2506_s26 + $0x3d8] sm:$0xff] %v801_v59  ;;  %804 = vst [vmem:[%s2506_s26 + $0x3e0] sm:$0xff] %v803_v60  ;;  %v811_v0 = vld [vmem:[%s2498_s25 + $0x800] sm:$0xff]  ;;  %v813_v1 = vld [vmem:[%s2498_s25 + $0x808] sm:$0xff] }
  0x51   : > { %806 = vst [vmem:[%s2506_s26 + $0x3e8] sm:$0xff] %v805_v61  ;;  %808 = vst [vmem:[%s2506_s26 + $0x3f0] sm:$0xff] %v807_v62  ;;  %v815_v2 = vld [vmem:[%s2498_s25 + $0x810] sm:$0xff]  ;;  %v817_v3 = vld [vmem:[%s2498_s25 + $0x818] sm:$0xff] }
  0x52   : > { %810 = vst [vmem:[%s2506_s26 + $0x3f8] sm:$0xff] %v809_v63  ;;  %812 = vst [vmem:[%s2506_s26 + $0x400] sm:$0xff] %v811_v0  ;;  %v819_v4 = vld [vmem:[%s2498_s25 + $0x840] sm:$0xff]  ;;  %v821_v5 = vld [vmem:[%s2498_s25 + $0x848] sm:$0xff] }
  0x53   : > { %814 = vst [vmem:[%s2506_s26 + $0x408] sm:$0xff] %v813_v1  ;;  %816 = vst [vmem:[%s2506_s26 + $0x410] sm:$0xff] %v815_v2  ;;  %v823_v6 = vld [vmem:[%s2498_s25 + $0x850] sm:$0xff]  ;;  %v825_v7 = vld [vmem:[%s2498_s25 + $0x858] sm:$0xff] }
  0x54   : > { %818 = vst [vmem:[%s2506_s26 + $0x418] sm:$0xff] %v817_v3  ;;  %820 = vst [vmem:[%s2506_s26 + $0x420] sm:$0xff] %v819_v4  ;;  %v827_v8 = vld [vmem:[%s2498_s25 + $0x880] sm:$0xff]  ;;  %v829_v9 = vld [vmem:[%s2498_s25 + $0x888] sm:$0xff] }
  0x55   : > { %822 = vst [vmem:[%s2506_s26 + $0x428] sm:$0xff] %v821_v5  ;;  %824 = vst [vmem:[%s2506_s26 + $0x430] sm:$0xff] %v823_v6  ;;  %v831_v10 = vld [vmem:[%s2498_s25 + $0x890] sm:$0xff]  ;;  %v833_v11 = vld [vmem:[%s2498_s25 + $0x898] sm:$0xff] }
  0x56   : > { %826 = vst [vmem:[%s2506_s26 + $0x438] sm:$0xff] %v825_v7  ;;  %828 = vst [vmem:[%s2506_s26 + $0x440] sm:$0xff] %v827_v8  ;;  %v835_v12 = vld [vmem:[%s2498_s25 + $0x8c0] sm:$0xff]  ;;  %v837_v13 = vld [vmem:[%s2498_s25 + $0x8c8] sm:$0xff] }
  0x57   : > { %830 = vst [vmem:[%s2506_s26 + $0x448] sm:$0xff] %v829_v9  ;;  %832 = vst [vmem:[%s2506_s26 + $0x450] sm:$0xff] %v831_v10  ;;  %v839_v14 = vld [vmem:[%s2498_s25 + $0x8d0] sm:$0xff]  ;;  %v841_v15 = vld [vmem:[%s2498_s25 + $0x8d8] sm:$0xff] }
  0x58   : > { %834 = vst [vmem:[%s2506_s26 + $0x458] sm:$0xff] %v833_v11  ;;  %836 = vst [vmem:[%s2506_s26 + $0x460] sm:$0xff] %v835_v12  ;;  %v843_v16 = vld [vmem:[%s2498_s25 + $0x900] sm:$0xff]  ;;  %v845_v17 = vld [vmem:[%s2498_s25 + $0x908] sm:$0xff] }
  0x59   : > { %838 = vst [vmem:[%s2506_s26 + $0x468] sm:$0xff] %v837_v13  ;;  %840 = vst [vmem:[%s2506_s26 + $0x470] sm:$0xff] %v839_v14  ;;  %v847_v18 = vld [vmem:[%s2498_s25 + $0x910] sm:$0xff]  ;;  %v849_v19 = vld [vmem:[%s2498_s25 + $0x918] sm:$0xff] }
  0x5a   : > { %842 = vst [vmem:[%s2506_s26 + $0x478] sm:$0xff] %v841_v15  ;;  %844 = vst [vmem:[%s2506_s26 + $0x480] sm:$0xff] %v843_v16  ;;  %v851_v20 = vld [vmem:[%s2498_s25 + $0x940] sm:$0xff]  ;;  %v853_v21 = vld [vmem:[%s2498_s25 + $0x948] sm:$0xff] }
  0x5b   : > { %846 = vst [vmem:[%s2506_s26 + $0x488] sm:$0xff] %v845_v17  ;;  %848 = vst [vmem:[%s2506_s26 + $0x490] sm:$0xff] %v847_v18  ;;  %v855_v22 = vld [vmem:[%s2498_s25 + $0x950] sm:$0xff]  ;;  %v857_v23 = vld [vmem:[%s2498_s25 + $0x958] sm:$0xff] }
  0x5c   : > { %850 = vst [vmem:[%s2506_s26 + $0x498] sm:$0xff] %v849_v19  ;;  %852 = vst [vmem:[%s2506_s26 + $0x4a0] sm:$0xff] %v851_v20  ;;  %v859_v24 = vld [vmem:[%s2498_s25 + $0x980] sm:$0xff]  ;;  %v861_v25 = vld [vmem:[%s2498_s25 + $0x988] sm:$0xff] }
  0x5d   : > { %854 = vst [vmem:[%s2506_s26 + $0x4a8] sm:$0xff] %v853_v21  ;;  %856 = vst [vmem:[%s2506_s26 + $0x4b0] sm:$0xff] %v855_v22  ;;  %v863_v26 = vld [vmem:[%s2498_s25 + $0x990] sm:$0xff]  ;;  %v865_v27 = vld [vmem:[%s2498_s25 + $0x998] sm:$0xff] }
  0x5e   : > { %858 = vst [vmem:[%s2506_s26 + $0x4b8] sm:$0xff] %v857_v23  ;;  %860 = vst [vmem:[%s2506_s26 + $0x4c0] sm:$0xff] %v859_v24  ;;  %v867_v28 = vld [vmem:[%s2498_s25 + $0x9c0] sm:$0xff]  ;;  %v869_v29 = vld [vmem:[%s2498_s25 + $0x9c8] sm:$0xff] }
  0x5f   : > { %862 = vst [vmem:[%s2506_s26 + $0x4c8] sm:$0xff] %v861_v25  ;;  %864 = vst [vmem:[%s2506_s26 + $0x4d0] sm:$0xff] %v863_v26  ;;  %v871_v30 = vld [vmem:[%s2498_s25 + $0x9d0] sm:$0xff]  ;;  %v873_v31 = vld [vmem:[%s2498_s25 + $0x9d8] sm:$0xff] }
  0x60   : > { %866 = vst [vmem:[%s2506_s26 + $0x4d8] sm:$0xff] %v865_v27  ;;  %868 = vst [vmem:[%s2506_s26 + $0x4e0] sm:$0xff] %v867_v28  ;;  %v875_v32 = vld [vmem:[%s2498_s25 + $0xa00] sm:$0xff]  ;;  %v877_v33 = vld [vmem:[%s2498_s25 + $0xa08] sm:$0xff] }
  0x61   : > { %870 = vst [vmem:[%s2506_s26 + $0x4e8] sm:$0xff] %v869_v29  ;;  %872 = vst [vmem:[%s2506_s26 + $0x4f0] sm:$0xff] %v871_v30  ;;  %v879_v34 = vld [vmem:[%s2498_s25 + $0xa10] sm:$0xff]  ;;  %v881_v35 = vld [vmem:[%s2498_s25 + $0xa18] sm:$0xff] }
  0x62   : > { %874 = vst [vmem:[%s2506_s26 + $0x4f8] sm:$0xff] %v873_v31  ;;  %876 = vst [vmem:[%s2506_s26 + $0x500] sm:$0xff] %v875_v32  ;;  %v883_v36 = vld [vmem:[%s2498_s25 + $0xa40] sm:$0xff]  ;;  %v885_v37 = vld [vmem:[%s2498_s25 + $0xa48] sm:$0xff] }
  0x63   : > { %878 = vst [vmem:[%s2506_s26 + $0x508] sm:$0xff] %v877_v33  ;;  %880 = vst [vmem:[%s2506_s26 + $0x510] sm:$0xff] %v879_v34  ;;  %v887_v38 = vld [vmem:[%s2498_s25 + $0xa50] sm:$0xff]  ;;  %v889_v39 = vld [vmem:[%s2498_s25 + $0xa58] sm:$0xff] }
  0x64   : > { %882 = vst [vmem:[%s2506_s26 + $0x518] sm:$0xff] %v881_v35  ;;  %884 = vst [vmem:[%s2506_s26 + $0x520] sm:$0xff] %v883_v36  ;;  %v891_v40 = vld [vmem:[%s2498_s25 + $0xa80] sm:$0xff]  ;;  %v893_v41 = vld [vmem:[%s2498_s25 + $0xa88] sm:$0xff] }
  0x65   : > { %886 = vst [vmem:[%s2506_s26 + $0x528] sm:$0xff] %v885_v37  ;;  %888 = vst [vmem:[%s2506_s26 + $0x530] sm:$0xff] %v887_v38  ;;  %v895_v42 = vld [vmem:[%s2498_s25 + $0xa90] sm:$0xff]  ;;  %v897_v43 = vld [vmem:[%s2498_s25 + $0xa98] sm:$0xff] }
  0x66   : > { %890 = vst [vmem:[%s2506_s26 + $0x538] sm:$0xff] %v889_v39  ;;  %892 = vst [vmem:[%s2506_s26 + $0x540] sm:$0xff] %v891_v40  ;;  %v899_v44 = vld [vmem:[%s2498_s25 + $0xac0] sm:$0xff]  ;;  %v901_v45 = vld [vmem:[%s2498_s25 + $0xac8] sm:$0xff] }
  0x67   : > { %894 = vst [vmem:[%s2506_s26 + $0x548] sm:$0xff] %v893_v41  ;;  %896 = vst [vmem:[%s2506_s26 + $0x550] sm:$0xff] %v895_v42  ;;  %v903_v46 = vld [vmem:[%s2498_s25 + $0xad0] sm:$0xff]  ;;  %v905_v47 = vld [vmem:[%s2498_s25 + $0xad8] sm:$0xff] }
  0x68   : > { %898 = vst [vmem:[%s2506_s26 + $0x558] sm:$0xff] %v897_v43  ;;  %900 = vst [vmem:[%s2506_s26 + $0x560] sm:$0xff] %v899_v44  ;;  %v907_v48 = vld [vmem:[%s2498_s25 + $0xb00] sm:$0xff]  ;;  %v909_v49 = vld [vmem:[%s2498_s25 + $0xb08] sm:$0xff] }
  0x69   : > { %902 = vst [vmem:[%s2506_s26 + $0x568] sm:$0xff] %v901_v45  ;;  %904 = vst [vmem:[%s2506_s26 + $0x570] sm:$0xff] %v903_v46  ;;  %v911_v50 = vld [vmem:[%s2498_s25 + $0xb10] sm:$0xff]  ;;  %v913_v51 = vld [vmem:[%s2498_s25 + $0xb18] sm:$0xff] }
  0x6a   : > { %906 = vst [vmem:[%s2506_s26 + $0x578] sm:$0xff] %v905_v47  ;;  %908 = vst [vmem:[%s2506_s26 + $0x580] sm:$0xff] %v907_v48  ;;  %v915_v52 = vld [vmem:[%s2498_s25 + $0xb40] sm:$0xff]  ;;  %v917_v53 = vld [vmem:[%s2498_s25 + $0xb48] sm:$0xff] }
  0x6b   : > { %910 = vst [vmem:[%s2506_s26 + $0x588] sm:$0xff] %v909_v49  ;;  %912 = vst [vmem:[%s2506_s26 + $0x590] sm:$0xff] %v911_v50  ;;  %v919_v54 = vld [vmem:[%s2498_s25 + $0xb50] sm:$0xff]  ;;  %v921_v55 = vld [vmem:[%s2498_s25 + $0xb58] sm:$0xff] }
  0x6c   : > { %914 = vst [vmem:[%s2506_s26 + $0x598] sm:$0xff] %v913_v51  ;;  %916 = vst [vmem:[%s2506_s26 + $0x5a0] sm:$0xff] %v915_v52  ;;  %v923_v56 = vld [vmem:[%s2498_s25 + $0xb80] sm:$0xff]  ;;  %v925_v57 = vld [vmem:[%s2498_s25 + $0xb88] sm:$0xff] }
  0x6d   : > { %918 = vst [vmem:[%s2506_s26 + $0x5a8] sm:$0xff] %v917_v53  ;;  %920 = vst [vmem:[%s2506_s26 + $0x5b0] sm:$0xff] %v919_v54  ;;  %v927_v58 = vld [vmem:[%s2498_s25 + $0xb90] sm:$0xff]  ;;  %v929_v59 = vld [vmem:[%s2498_s25 + $0xb98] sm:$0xff] }
  0x6e   : > { %922 = vst [vmem:[%s2506_s26 + $0x5b8] sm:$0xff] %v921_v55  ;;  %924 = vst [vmem:[%s2506_s26 + $0x5c0] sm:$0xff] %v923_v56  ;;  %v931_v60 = vld [vmem:[%s2498_s25 + $0xbc0] sm:$0xff]  ;;  %v933_v61 = vld [vmem:[%s2498_s25 + $0xbc8] sm:$0xff] }
  0x6f   : > { %926 = vst [vmem:[%s2506_s26 + $0x5c8] sm:$0xff] %v925_v57  ;;  %928 = vst [vmem:[%s2506_s26 + $0x5d0] sm:$0xff] %v927_v58  ;;  %v935_v62 = vld [vmem:[%s2498_s25 + $0xbd0] sm:$0xff]  ;;  %v937_v63 = vld [vmem:[%s2498_s25 + $0xbd8] sm:$0xff] }
  0x70   : > { %930 = vst [vmem:[%s2506_s26 + $0x5d8] sm:$0xff] %v929_v59  ;;  %932 = vst [vmem:[%s2506_s26 + $0x5e0] sm:$0xff] %v931_v60  ;;  %v939_v0 = vld [vmem:[%s2498_s25 + $0xc00] sm:$0xff]  ;;  %v941_v1 = vld [vmem:[%s2498_s25 + $0xc08] sm:$0xff] }
  0x71   : > { %934 = vst [vmem:[%s2506_s26 + $0x5e8] sm:$0xff] %v933_v61  ;;  %936 = vst [vmem:[%s2506_s26 + $0x5f0] sm:$0xff] %v935_v62  ;;  %v943_v2 = vld [vmem:[%s2498_s25 + $0xc10] sm:$0xff]  ;;  %v945_v3 = vld [vmem:[%s2498_s25 + $0xc18] sm:$0xff] }
  0x72   : > { %938 = vst [vmem:[%s2506_s26 + $0x5f8] sm:$0xff] %v937_v63  ;;  %940 = vst [vmem:[%s2506_s26 + $0x600] sm:$0xff] %v939_v0 }
  0x73   : > { %942 = vst [vmem:[%s2506_s26 + $0x608] sm:$0xff] %v941_v1  ;;  %944 = vst [vmem:[%s2506_s26 + $0x610] sm:$0xff] %v943_v2 }
  0x74   : > { %946 = vst [vmem:[%s2506_s26 + $0x618] sm:$0xff] %v945_v3 }
  0x75 PF: > { %p2098_p5 = scmp.ge.s32.totalorder %s2442_s14, 1  ;;  %p951_p6 = scmp.lt.s32.totalorder %s2442_s14, 3 }
  0x77   : > { %p952_p7 = pnand %p2098_p5, %p951_p6 }
  0x78   : > { %s958_s27 = sand.u32 (!%p952_p7), 1, %s2434_s12   ;;  %v2101_v4 = vld [vmem:[%s3270_s1] ss:$0 sm:$0xff] (!%p952_p7)  ;;  %v2107_v5 = vld [vmem:[%s3270_s1 + $0x1] ss:$0 sm:$0xff] (!%p952_p7)  ;;  %s3213_s9 = sshll.u32 (!%p952_p7), %s2092_s15, 2 }
  0x79   : > { %955 = sbr.rel (%p952_p7) target bundleno = 229 (0xe5), region = 66  ;;  %v2113_v6 = vld [vmem:[%s3270_s1 + $0x2] ss:$0 sm:$0xff] (!%p952_p7)  ;;  %v2119_v10 = vld [vmem:[%s3270_s1 + $0x3] ss:$0 sm:$0xff] (!%p952_p7)  ;;  %p983_p8 = scmp.lt.s32.totalorder (!%p952_p7), %s3213_s9, 7 }
  0x7a   : > { %s2395_s28 = smul.u32 (!%p952_p7), 1568, %s958_s27  ;;  %v2125_v23 = vld [vmem:[%s3270_s1 + $0x4] ss:$0 sm:$0xff] (!%p952_p7)  ;;  %v2131_v37 = vld [vmem:[%s3270_s1 + $0x5] ss:$0 sm:$0xff] (!%p952_p7) }
  0x7b   : > { %v2137_v0 = vld [vmem:[%s3270_s1 + $0x6] ss:$0 sm:$0xff] (!%p952_p7) }
  0x7c   : > { %s2906_s8 = scalar_lea.vmem (!%p952_p7), [#allocation2], %s2395_s28 }
  0x7d   : > { %v988_v7 = vld [vmem:[%s2906_s8] sm:$0xff] (!%p952_p7)  ;;  %v989_v8 = vld [vmem:[%s2906_s8 + $0x8] sm:$0xff] (!%p952_p7)  ;;  %v990_v9 = vld [vmem:[%s2906_s8 + $0x10] sm:$0xff] (!%p952_p7) }
  0x7e   : > { %v991_v11 = vld [vmem:[%s2906_s8 + $0x18] sm:$0xff] (!%p952_p7)  ;;  %v999_v12 = vmul.f32 (!%p952_p7), %v2101_v4, %v988_v7  ;;  %v1000_v13 = vmul.f32 (!%p952_p7), %v2101_v4, %v989_v8  ;;  %v1001_v14 = vmul.f32 (!%p952_p7), %v2101_v4, %v990_v9  ;;  %v2102_v15 = vld [vmem:[%s2906_s8 + $0x20] sm:$0xff] (!%p952_p7)  ;;  %v2103_v16 = vld [vmem:[%s2906_s8 + $0x28] sm:$0xff] (!%p952_p7) }
  0x7f   : > { %v1002_v17 = vmul.f32 (!%p952_p7), %v2101_v4, %v991_v11  ;;  %v2104_v18 = vld [vmem:[%s2906_s8 + $0x30] sm:$0xff] (!%p952_p7)  ;;  %v2105_v19 = vld [vmem:[%s2906_s8 + $0x38] sm:$0xff] (!%p952_p7)  ;;  %v1020_v20 = vmul.f32 (!%p952_p7), %v2107_v5, %v2102_v15  ;;  %v1021_v21 = vmul.f32 (!%p952_p7), %v2107_v5, %v2103_v16  ;;  %v2108_v22 = vld [vmem:[%s2906_s8 + $0x40] sm:$0xff] (!%p952_p7) }
  0x80   : > { %v1022_v24 = vmul.f32 %v2107_v5, %v2104_v18  ;;  %v1023_v25 = vmul.f32 %v2107_v5, %v2105_v19  ;;  %v2109_v26 = vld [vmem:[%s2906_s8 + $0x48] sm:$0xff]  ;;  %v2110_v27 = vld [vmem:[%s2906_s8 + $0x50] sm:$0xff]  ;;  %v2111_v28 = vld [vmem:[%s2906_s8 + $0x58] sm:$0xff]  ;;  %v1041_v29 = vmul.f32 %v2113_v6, %v2108_v22  ;;  %s3277_s9 = smov (!%p983_p8, %s3213_s9), 7 }
  0x81   : > { %v1024_v30 = vadd.f32 %v1020_v20, %v999_v12  ;;  %v1025_v31 = vadd.f32 %v1021_v21, %v1000_v13  ;;  %v1042_v32 = vmul.f32 %v2113_v6, %v2109_v26  ;;  %v1043_v33 = vmul.f32 %v2113_v6, %v2110_v27  ;;  %v2114_v34 = vld [vmem:[%s2906_s8 + $0x60] sm:$0xff]  ;;  %v2115_v35 = vld [vmem:[%s2906_s8 + $0x68] sm:$0xff]  ;;  %v2116_v36 = vld [vmem:[%s2906_s8 + $0x70] sm:$0xff]  ;;  %s2100_s21 = sshll.u32 %s3277_s9, 3 }
  0x82   : > { %v1026_v38 = vadd.f32 %v1022_v24, %v1001_v14  ;;  %v1027_v39 = vadd.f32 %v1023_v25, %v1002_v17  ;;  %v1044_v40 = vmul.f32 %v2113_v6, %v2111_v28  ;;  %v2117_v41 = vld [vmem:[%s2906_s8 + $0x78] sm:$0xff]  ;;  %v1062_v42 = vmul.f32 %v2119_v10, %v2114_v34  ;;  %v2120_v43 = vld [vmem:[%s2906_s8 + $0x80] sm:$0xff]  ;;  %v2121_v44 = vld [vmem:[%s2906_s8 + $0x88] sm:$0xff]  ;;  %s986_s25 = scalar_lea.vmem %s3272_s3, %s2100_s21 }
  0x83   : > { %v1045_v45 = vadd.f32 %v1041_v29, %v1024_v30  ;;  %v1046_v46 = vadd.f32 %v1042_v32, %v1025_v31  ;;  %v1063_v47 = vmul.f32 %v2119_v10, %v2115_v35  ;;  %v1064_v48 = vmul.f32 %v2119_v10, %v2116_v36  ;;  %v2122_v49 = vld [vmem:[%s2906_s8 + $0x90] sm:$0xff]  ;;  %v2123_v50 = vld [vmem:[%s2906_s8 + $0x98] sm:$0xff]  ;;  %v2126_v51 = vld [vmem:[%s2906_s8 + $0xa0] sm:$0xff] }
  0x84   : > { %v1047_v52 = vadd.f32 %v1043_v33, %v1026_v38  ;;  %v1048_v53 = vadd.f32 %v1044_v40, %v1027_v39  ;;  %v1065_v54 = vmul.f32 %v2119_v10, %v2117_v41  ;;  %v1083_v55 = vmul.f32 %v2125_v23, %v2120_v43  ;;  %v2127_v56 = vld [vmem:[%s2906_s8 + $0xa8] sm:$0xff]  ;;  %v2128_v57 = vld [vmem:[%s2906_s8 + $0xb0] sm:$0xff]  ;;  %v2129_v62 = vld [vmem:[%s2906_s8 + $0xb8] sm:$0xff] }
  0x85   : > { %v1066_v58 = vadd.f32 %v1062_v42, %v1045_v45  ;;  %v1067_v59 = vadd.f32 %v1063_v47, %v1046_v46  ;;  %v1084_v60 = vmul.f32 %v2125_v23, %v2121_v44  ;;  %v1085_v61 = vmul.f32 %v2125_v23, %v2122_v49  ;;  %v2132_v63 = vld [vmem:[%s2906_s8 + $0xc0] sm:$0xff]  ;;  %v2133_v5 = vld [vmem:[%s2906_s8 + $0xc8] sm:$0xff]  ;;  %v2134_v6 = vld [vmem:[%s2906_s8 + $0xd0] sm:$0xff] }
  0x86   : > { %v1068_v1 = vadd.f32 %v1064_v48, %v1047_v52  ;;  %v1069_v2 = vadd.f32 %v1065_v54, %v1048_v53  ;;  %v1086_v3 = vmul.f32 %v2125_v23, %v2123_v50  ;;  %v1104_v4 = vmul.f32 %v2131_v37, %v2126_v51  ;;  %v2135_v11 = vld [vmem:[%s2906_s8 + $0xd8] sm:$0xff]  ;;  %v2138_v12 = vld [vmem:[%s2906_s8 + $0xe0] sm:$0xff]  ;;  %v2139_v18 = vld [vmem:[%s2906_s8 + $0xe8] sm:$0xff] }
  0x87   : > { %v1087_v7 = vadd.f32 %v1083_v55, %v1066_v58  ;;  %v1088_v8 = vadd.f32 %v1084_v60, %v1067_v59  ;;  %v1105_v9 = vmul.f32 %v2131_v37, %v2127_v56  ;;  %v1106_v10 = vmul.f32 %v2131_v37, %v2128_v57  ;;  %v2143_v13 = vld [vmem:[%s3270_s1 + $0x7] ss:$0 sm:$0xff]  ;;  %v2140_v19 = vld [vmem:[%s2906_s8 + $0xf0] sm:$0xff]  ;;  %v2141_v24 = vld [vmem:[%s2906_s8 + $0xf8] sm:$0xff] }
  0x88   : > { %v1089_v14 = vadd.f32 %v1085_v61, %v1068_v1  ;;  %v1090_v15 = vadd.f32 %v1086_v3, %v1069_v2  ;;  %v1107_v16 = vmul.f32 %v2131_v37, %v2129_v62  ;;  %v1125_v17 = vmul.f32 %v2137_v0, %v2132_v63  ;;  %v2144_v25 = vld [vmem:[%s2906_s8 + $0x100] sm:$0xff]  ;;  %v2149_v26 = vld [vmem:[%s3270_s1 + $0x8] ss:$0 sm:$0xff]  ;;  %v2146_v32 = vld [vmem:[%s2906_s8 + $0x110] sm:$0xff] }
  0x89   : > { %v1108_v20 = vadd.f32 %v1104_v4, %v1087_v7  ;;  %v1109_v21 = vadd.f32 %v1105_v9, %v1088_v8  ;;  %v1126_v22 = vmul.f32 %v2137_v0, %v2133_v5  ;;  %v1127_v23 = vmul.f32 %v2137_v0, %v2134_v6  ;;  %v2145_v31 = vld [vmem:[%s2906_s8 + $0x108] sm:$0xff]  ;;  %v2147_v37 = vld [vmem:[%s2906_s8 + $0x118] sm:$0xff]  ;;  %v2150_v38 = vld [vmem:[%s2906_s8 + $0x120] sm:$0xff] }
  0x8a   : > { %v1110_v27 = vadd.f32 %v1106_v10, %v1089_v14  ;;  %v1111_v28 = vadd.f32 %v1107_v16, %v1090_v15  ;;  %v1128_v29 = vmul.f32 %v2137_v0, %v2135_v11  ;;  %v1146_v30 = vmul.f32 %v2143_v13, %v2138_v12  ;;  %v2155_v39 = vld [vmem:[%s3270_s1 + $0x9] ss:$0 sm:$0xff]  ;;  %v2152_v45 = vld [vmem:[%s2906_s8 + $0x130] sm:$0xff]  ;;  %v2153_v50 = vld [vmem:[%s2906_s8 + $0x138] sm:$0xff] }
  0x8b   : > { %v1129_v33 = vadd.f32 %v1125_v17, %v1108_v20  ;;  %v1130_v34 = vadd.f32 %v1126_v22, %v1109_v21  ;;  %v1147_v35 = vmul.f32 %v2143_v13, %v2139_v18  ;;  %v1148_v36 = vmul.f32 %v2143_v13, %v2140_v19  ;;  %v2151_v44 = vld [vmem:[%s2906_s8 + $0x128] sm:$0xff]  ;;  %v2156_v51 = vld [vmem:[%s2906_s8 + $0x140] sm:$0xff]  ;;  %v2158_v58 = vld [vmem:[%s2906_s8 + $0x150] sm:$0xff] }
  0x8c   : > { %v1131_v40 = vadd.f32 %v1127_v23, %v1110_v27  ;;  %v1132_v41 = vadd.f32 %v1128_v29, %v1111_v28  ;;  %v1149_v42 = vmul.f32 %v2143_v13, %v2141_v24  ;;  %v1167_v43 = vmul.f32 %v2149_v26, %v2144_v25  ;;  %v2161_v52 = vld [vmem:[%s3270_s1 + $0xa] ss:$0 sm:$0xff]  ;;  %v2159_v63 = vld [vmem:[%s2906_s8 + $0x158] sm:$0xff]  ;;  %v2162_v0 = vld [vmem:[%s2906_s8 + $0x160] sm:$0xff] }
  0x8d   : > { %v1150_v46 = vadd.f32 %v1146_v30, %v1129_v33  ;;  %v1151_v47 = vadd.f32 %v1147_v35, %v1130_v34  ;;  %v1168_v48 = vmul.f32 %v2149_v26, %v2145_v31  ;;  %v1169_v49 = vmul.f32 %v2149_v26, %v2146_v32  ;;  %v2157_v57 = vld [vmem:[%s2906_s8 + $0x148] sm:$0xff]  ;;  %v2164_v7 = vld [vmem:[%s2906_s8 + $0x170] sm:$0xff]  ;;  %v2165_v12 = vld [vmem:[%s2906_s8 + $0x178] sm:$0xff] }
  0x8e   : > { %v1152_v53 = vadd.f32 %v1148_v36, %v1131_v40  ;;  %v1153_v54 = vadd.f32 %v1149_v42, %v1132_v41  ;;  %v1170_v55 = vmul.f32 %v2149_v26, %v2147_v37  ;;  %v1188_v56 = vmul.f32 %v2155_v39, %v2150_v38  ;;  %v2167_v1 = vld [vmem:[%s3270_s1 + $0xb] ss:$0 sm:$0xff]  ;;  %v2168_v13 = vld [vmem:[%s2906_s8 + $0x180] sm:$0xff]  ;;  %v2173_v14 = vld [vmem:[%s3270_s1 + $0xc] ss:$0 sm:$0xff] }
  0x8f   : > { %v1171_v59 = vadd.f32 %v1167_v43, %v1150_v46  ;;  %v1172_v60 = vadd.f32 %v1168_v48, %v1151_v47  ;;  %v1189_v61 = vmul.f32 %v2155_v39, %v2151_v44  ;;  %v1190_v62 = vmul.f32 %v2155_v39, %v2152_v45  ;;  %v2163_v6 = vld [vmem:[%s2906_s8 + $0x168] sm:$0xff]  ;;  %v2170_v20 = vld [vmem:[%s2906_s8 + $0x190] sm:$0xff]  ;;  %v2171_v25 = vld [vmem:[%s2906_s8 + $0x198] sm:$0xff] }
  0x90   : > { %v1173_v2 = vadd.f32 %v1169_v49, %v1152_v53  ;;  %v1174_v3 = vadd.f32 %v1170_v55, %v1153_v54  ;;  %v1191_v4 = vmul.f32 %v2155_v39, %v2153_v50  ;;  %v1209_v5 = vmul.f32 %v2161_v52, %v2156_v51  ;;  %v2169_v19 = vld [vmem:[%s2906_s8 + $0x188] sm:$0xff]  ;;  %v2174_v26 = vld [vmem:[%s2906_s8 + $0x1a0] sm:$0xff]  ;;  %v2176_v33 = vld [vmem:[%s2906_s8 + $0x1b0] sm:$0xff] }
  0x91   : > { %v1192_v8 = vadd.f32 %v1188_v56, %v1171_v59  ;;  %v1193_v9 = vadd.f32 %v1189_v61, %v1172_v60  ;;  %v1210_v10 = vmul.f32 %v2161_v52, %v2157_v57  ;;  %v1211_v11 = vmul.f32 %v2161_v52, %v2158_v58  ;;  %v2179_v27 = vld [vmem:[%s3270_s1 + $0xd] ss:$0 sm:$0xff]  ;;  %v2177_v38 = vld [vmem:[%s2906_s8 + $0x1b8] sm:$0xff]  ;;  %v2180_v39 = vld [vmem:[%s2906_s8 + $0x1c0] sm:$0xff] }
  0x92   : > { %v1194_v15 = vadd.f32 %v1190_v62, %v1173_v2  ;;  %v1195_v16 = vadd.f32 %v1191_v4, %v1174_v3  ;;  %v1212_v17 = vmul.f32 %v2161_v52, %v2159_v63  ;;  %v1230_v18 = vmul.f32 %v2167_v1, %v2162_v0  ;;  %v2175_v32 = vld [vmem:[%s2906_s8 + $0x1a8] sm:$0xff]  ;;  %v2182_v46 = vld [vmem:[%s2906_s8 + $0x1d0] sm:$0xff]  ;;  %v2183_v51 = vld [vmem:[%s2906_s8 + $0x1d8] sm:$0xff] }
  0x93   : > { %v1213_v21 = vadd.f32 %v1209_v5, %v1192_v8  ;;  %v1214_v22 = vadd.f32 %v1210_v10, %v1193_v9  ;;  %v1231_v23 = vmul.f32 %v2167_v1, %v2163_v6  ;;  %v1232_v24 = vmul.f32 %v2167_v1, %v2164_v7  ;;  %v2185_v40 = vld [vmem:[%s3270_s1 + $0xe] ss:$0 sm:$0xff]  ;;  %v2186_v52 = vld [vmem:[%s2906_s8 + $0x1e0] sm:$0xff]  ;;  %v2191_v53 = vld [vmem:[%s3270_s1 + $0xf] ss:$0 sm:$0xff] }
  0x94   : > { %v1215_v28 = vadd.f32 %v1211_v11, %v1194_v15  ;;  %v1216_v29 = vadd.f32 %v1212_v17, %v1195_v16  ;;  %v1233_v30 = vmul.f32 %v2167_v1, %v2165_v12  ;;  %v1251_v31 = vmul.f32 %v2173_v14, %v2168_v13  ;;  %v2181_v45 = vld [vmem:[%s2906_s8 + $0x1c8] sm:$0xff]  ;;  %v2188_v59 = vld [vmem:[%s2906_s8 + $0x1f0] sm:$0xff]  ;;  %v2189_v0 = vld [vmem:[%s2906_s8 + $0x1f8] sm:$0xff] }
  0x95   : > { %v1234_v34 = vadd.f32 %v1230_v18, %v1213_v21  ;;  %v1235_v35 = vadd.f32 %v1231_v23, %v1214_v22  ;;  %v1252_v36 = vmul.f32 %v2173_v14, %v2169_v19  ;;  %v1253_v37 = vmul.f32 %v2173_v14, %v2170_v20  ;;  %v2187_v58 = vld [vmem:[%s2906_s8 + $0x1e8] sm:$0xff]  ;;  %v2192_v1 = vld [vmem:[%s2906_s8 + $0x200] sm:$0xff]  ;;  %v2197_v2 = vld [vmem:[%s3270_s1 + $0x10] ss:$0 sm:$0xff] }
  0x96   : > { %v1236_v41 = vadd.f32 %v1232_v24, %v1215_v28  ;;  %v1237_v42 = vadd.f32 %v1233_v30, %v1216_v29  ;;  %v1254_v43 = vmul.f32 %v2173_v14, %v2171_v25  ;;  %v1272_v44 = vmul.f32 %v2179_v27, %v2174_v26  ;;  %v2193_v7 = vld [vmem:[%s2906_s8 + $0x208] sm:$0xff]  ;;  %v2194_v8 = vld [vmem:[%s2906_s8 + $0x210] sm:$0xff]  ;;  %v2195_v13 = vld [vmem:[%s2906_s8 + $0x218] sm:$0xff] }
  0x97   : > { %v1255_v47 = vadd.f32 %v1251_v31, %v1234_v34  ;;  %v1256_v48 = vadd.f32 %v1252_v36, %v1235_v35  ;;  %v1273_v49 = vmul.f32 %v2179_v27, %v2175_v32  ;;  %v1274_v50 = vmul.f32 %v2179_v27, %v2176_v33  ;;  %v2198_v14 = vld [vmem:[%s2906_s8 + $0x220] sm:$0xff]  ;;  %v2203_v15 = vld [vmem:[%s3270_s1 + $0x11] ss:$0 sm:$0xff]  ;;  %v2199_v20 = vld [vmem:[%s2906_s8 + $0x228] sm:$0xff] }
  0x98   : > { %v1257_v54 = vadd.f32 %v1253_v37, %v1236_v41  ;;  %v1258_v55 = vadd.f32 %v1254_v43, %v1237_v42  ;;  %v1275_v56 = vmul.f32 %v2179_v27, %v2177_v38  ;;  %v1293_v57 = vmul.f32 %v2185_v40, %v2180_v39  ;;  %v2200_v21 = vld [vmem:[%s2906_s8 + $0x230] sm:$0xff]  ;;  %v2201_v26 = vld [vmem:[%s2906_s8 + $0x238] sm:$0xff]  ;;  %v2204_v27 = vld [vmem:[%s2906_s8 + $0x240] sm:$0xff] }
  0x99   : > { %v1276_v60 = vadd.f32 %v1272_v44, %v1255_v47  ;;  %v1277_v61 = vadd.f32 %v1273_v49, %v1256_v48  ;;  %v1294_v62 = vmul.f32 %v2185_v40, %v2181_v45  ;;  %v1295_v63 = vmul.f32 %v2185_v40, %v2182_v46  ;;  %v2209_v28 = vld [vmem:[%s3270_s1 + $0x12] ss:$0 sm:$0xff]  ;;  %v2205_v33 = vld [vmem:[%s2906_s8 + $0x248] sm:$0xff]  ;;  %v2207_v39 = vld [vmem:[%s2906_s8 + $0x258] sm:$0xff] }
  0x9a   : > { %v1278_v3 = vadd.f32 %v1274_v50, %v1257_v54  ;;  %v1279_v4 = vadd.f32 %v1275_v56, %v1258_v55  ;;  %v1296_v5 = vmul.f32 %v2185_v40, %v2183_v51  ;;  %v1314_v6 = vmul.f32 %v2191_v53, %v2186_v52  ;;  %v2206_v34 = vld [vmem:[%s2906_s8 + $0x250] sm:$0xff]  ;;  %v2210_v40 = vld [vmem:[%s2906_s8 + $0x260] sm:$0xff]  ;;  %v2211_v46 = vld [vmem:[%s2906_s8 + $0x268] sm:$0xff] }
  0x9b   : > { %v1297_v9 = vadd.f32 %v1293_v57, %v1276_v60  ;;  %v1298_v10 = vadd.f32 %v1294_v62, %v1277_v61  ;;  %v1315_v11 = vmul.f32 %v2191_v53, %v2187_v58  ;;  %v1316_v12 = vmul.f32 %v2191_v53, %v2188_v59  ;;  %v2215_v41 = vld [vmem:[%s3270_s1 + $0x13] ss:$0 sm:$0xff]  ;;  %v2213_v52 = vld [vmem:[%s2906_s8 + $0x278] sm:$0xff]  ;;  %v2221_v54 = vld [vmem:[%s3270_s1 + $0x14] ss:$0 sm:$0xff] }
  0x9c   : > { %v1299_v16 = vadd.f32 %v1295_v63, %v1278_v3  ;;  %v1300_v17 = vadd.f32 %v1296_v5, %v1279_v4  ;;  %v1317_v18 = vmul.f32 %v2191_v53, %v2189_v0  ;;  %v1335_v19 = vmul.f32 %v2197_v2, %v2192_v1  ;;  %v2212_v47 = vld [vmem:[%s2906_s8 + $0x270] sm:$0xff]  ;;  %v2216_v53 = vld [vmem:[%s2906_s8 + $0x280] sm:$0xff]  ;;  %v2217_v59 = vld [vmem:[%s2906_s8 + $0x288] sm:$0xff] }
  0x9d   : > { %v1318_v22 = vadd.f32 %v1314_v6, %v1297_v9  ;;  %v1319_v23 = vadd.f32 %v1315_v11, %v1298_v10  ;;  %v1336_v24 = vmul.f32 %v2197_v2, %v2193_v7  ;;  %v1337_v25 = vmul.f32 %v2197_v2, %v2194_v8  ;;  %v2218_v60 = vld [vmem:[%s2906_s8 + $0x290] sm:$0xff]  ;;  %v2219_v1 = vld [vmem:[%s2906_s8 + $0x298] sm:$0xff]  ;;  %v2223_v8 = vld [vmem:[%s2906_s8 + $0x2a8] sm:$0xff] }
  0x9e   : > { %v1320_v29 = vadd.f32 %v1316_v12, %v1299_v16  ;;  %v1321_v30 = vadd.f32 %v1317_v18, %v1300_v17  ;;  %v1338_v31 = vmul.f32 %v2197_v2, %v2195_v13  ;;  %v1356_v32 = vmul.f32 %v2203_v15, %v2198_v14  ;;  %v2222_v2 = vld [vmem:[%s2906_s8 + $0x2a0] sm:$0xff]  ;;  %v2227_v3 = vld [vmem:[%s3270_s1 + $0x15] ss:$0 sm:$0xff]  ;;  %v2225_v14 = vld [vmem:[%s2906_s8 + $0x2b8] sm:$0xff] }
  0x9f   : > { %v1339_v35 = vadd.f32 %v1335_v19, %v1318_v22  ;;  %v1340_v36 = vadd.f32 %v1336_v24, %v1319_v23  ;;  %v1357_v37 = vmul.f32 %v2203_v15, %v2199_v20  ;;  %v1358_v38 = vmul.f32 %v2203_v15, %v2200_v21  ;;  %v2224_v9 = vld [vmem:[%s2906_s8 + $0x2b0] sm:$0xff]  ;;  %v2229_v21 = vld [vmem:[%s2906_s8 + $0x2c8] sm:$0xff] }
  0xa0   : > { %v1341_v42 = vadd.f32 %v1337_v25, %v1320_v29  ;;  %v1342_v43 = vadd.f32 %v1338_v31, %v1321_v30  ;;  %v1359_v44 = vmul.f32 %v2203_v15, %v2201_v26  ;;  %v1377_v45 = vmul.f32 %v2209_v28, %v2204_v27  ;;  %v2228_v15 = vld [vmem:[%s2906_s8 + $0x2c0] sm:$0xff]  ;;  %v2233_v16 = vld [vmem:[%s3270_s1 + $0x16] ss:$0 sm:$0xff]  ;;  %v2231_v27 = vld [vmem:[%s2906_s8 + $0x2d8] sm:$0xff] }
  0xa1   : > { %v1360_v48 = vadd.f32 %v1356_v32, %v1339_v35  ;;  %v1361_v49 = vadd.f32 %v1357_v37, %v1340_v36  ;;  %v1378_v50 = vmul.f32 %v2209_v28, %v2205_v33  ;;  %v1379_v51 = vmul.f32 %v2209_v28, %v2206_v34  ;;  %v2230_v22 = vld [vmem:[%s2906_s8 + $0x2d0] sm:$0xff]  ;;  %v2235_v34 = vld [vmem:[%s2906_s8 + $0x2e8] sm:$0xff] }
  0xa2   : > { %v1362_v55 = vadd.f32 %v1358_v38, %v1341_v42  ;;  %v1363_v56 = vadd.f32 %v1359_v44, %v1342_v43  ;;  %v1380_v57 = vmul.f32 %v2209_v28, %v2207_v39  ;;  %v1398_v58 = vmul.f32 %v2215_v41, %v2210_v40  ;;  %v2234_v28 = vld [vmem:[%s2906_s8 + $0x2e0] sm:$0xff]  ;;  %v2239_v29 = vld [vmem:[%s3270_s1 + $0x17] ss:$0 sm:$0xff]  ;;  %v2237_v40 = vld [vmem:[%s2906_s8 + $0x2f8] sm:$0xff] }
  0xa3   : > { %v1381_v61 = vadd.f32 %v1377_v45, %v1360_v48  ;;  %v1382_v62 = vadd.f32 %v1378_v50, %v1361_v49  ;;  %v1399_v63 = vmul.f32 %v2215_v41, %v2211_v46  ;;  %v1400_v0 = vmul.f32 %v2215_v41, %v2212_v47  ;;  %v2236_v35 = vld [vmem:[%s2906_s8 + $0x2f0] sm:$0xff]  ;;  %v2245_v42 = vld [vmem:[%s3270_s1 + $0x18] ss:$0 sm:$0xff]  ;;  %v2241_v47 = vld [vmem:[%s2906_s8 + $0x308] sm:$0xff] }
  0xa4   : > { %v1383_v4 = vadd.f32 %v1379_v51, %v1362_v55  ;;  %v1384_v5 = vadd.f32 %v1380_v57, %v1363_v56  ;;  %v1401_v6 = vmul.f32 %v2215_v41, %v2213_v52  ;;  %v1419_v7 = vmul.f32 %v2221_v54, %v2216_v53  ;;  %v2240_v41 = vld [vmem:[%s2906_s8 + $0x300] sm:$0xff]  ;;  %v2242_v48 = vld [vmem:[%s2906_s8 + $0x310] sm:$0xff]  ;;  %v2243_v53 = vld [vmem:[%s2906_s8 + $0x318] sm:$0xff] }
  0xa5   : > { %v1402_v10 = vadd.f32 %v1398_v58, %v1381_v61  ;;  %v1403_v11 = vadd.f32 %v1399_v63, %v1382_v62  ;;  %v1420_v12 = vmul.f32 %v2221_v54, %v2217_v59  ;;  %v1421_v13 = vmul.f32 %v2221_v54, %v2218_v60  ;;  %v2251_v55 = vld [vmem:[%s3270_s1 + $0x19] ss:$0 sm:$0xff]  ;;  %v2247_v60 = vld [vmem:[%s2906_s8 + $0x328] sm:$0xff]  ;;  %v2248_v61 = vld [vmem:[%s2906_s8 + $0x330] sm:$0xff] }
  0xa6   : > { %v1404_v17 = vadd.f32 %v1400_v0, %v1383_v4  ;;  %v1405_v18 = vadd.f32 %v1401_v6, %v1384_v5  ;;  %v1422_v19 = vmul.f32 %v2221_v54, %v2219_v1  ;;  %v1440_v20 = vmul.f32 %v2227_v3, %v2222_v2  ;;  %v2246_v54 = vld [vmem:[%s2906_s8 + $0x320] sm:$0xff]  ;;  %v2249_v2 = vld [vmem:[%s2906_s8 + $0x338] sm:$0xff] }
  0xa7   : > { %v1423_v23 = vadd.f32 %v1419_v7, %v1402_v10  ;;  %v1424_v24 = vadd.f32 %v1420_v12, %v1403_v11  ;;  %v1441_v25 = vmul.f32 %v2227_v3, %v2223_v8  ;;  %v1442_v26 = vmul.f32 %v2227_v3, %v2224_v9  ;;  %v2257_v4 = vld [vmem:[%s3270_s1 + $0x1a] ss:$0 sm:$0xff]  ;;  %v2253_v9 = vld [vmem:[%s2906_s8 + $0x348] sm:$0xff]  ;;  %v2254_v10 = vld [vmem:[%s2906_s8 + $0x350] sm:$0xff] }
  0xa8   : > { %v1425_v30 = vadd.f32 %v1421_v13, %v1404_v17  ;;  %v1426_v31 = vadd.f32 %v1422_v19, %v1405_v18  ;;  %v1443_v32 = vmul.f32 %v2227_v3, %v2225_v14  ;;  %v1461_v33 = vmul.f32 %v2233_v16, %v2228_v15  ;;  %v2252_v3 = vld [vmem:[%s2906_s8 + $0x340] sm:$0xff]  ;;  %v2255_v15 = vld [vmem:[%s2906_s8 + $0x358] sm:$0xff] }
  0xa9   : > { %v1444_v36 = vadd.f32 %v1440_v20, %v1423_v23  ;;  %v1445_v37 = vadd.f32 %v1441_v25, %v1424_v24  ;;  %v1462_v38 = vmul.f32 %v2233_v16, %v2229_v21  ;;  %v1463_v39 = vmul.f32 %v2233_v16, %v2230_v22  ;;  %v2263_v17 = vld [vmem:[%s3270_s1 + $0x1b] ss:$0 sm:$0xff]  ;;  %v2259_v22 = vld [vmem:[%s2906_s8 + $0x368] sm:$0xff]  ;;  %v2260_v23 = vld [vmem:[%s2906_s8 + $0x370] sm:$0xff] }
  0xaa   : > { %v1446_v43 = vadd.f32 %v1442_v26, %v1425_v30  ;;  %v1447_v44 = vadd.f32 %v1443_v32, %v1426_v31  ;;  %v1464_v45 = vmul.f32 %v2233_v16, %v2231_v27  ;;  %v1482_v46 = vmul.f32 %v2239_v29, %v2234_v28  ;;  %v2258_v16 = vld [vmem:[%s2906_s8 + $0x360] sm:$0xff]  ;;  %v2261_v28 = vld [vmem:[%s2906_s8 + $0x378] sm:$0xff] }
  0xab   : > { %v1465_v49 = vadd.f32 %v1461_v33, %v1444_v36  ;;  %v1466_v50 = vadd.f32 %v1462_v38, %v1445_v37  ;;  %v1483_v51 = vmul.f32 %v2239_v29, %v2235_v34  ;;  %v1484_v52 = vmul.f32 %v2239_v29, %v2236_v35  ;;  %v2269_v30 = vld [vmem:[%s3270_s1 + $0x1c] ss:$0 sm:$0xff]  ;;  %v2265_v35 = vld [vmem:[%s2906_s8 + $0x388] sm:$0xff]  ;;  %v2266_v36 = vld [vmem:[%s2906_s8 + $0x390] sm:$0xff] }
  0xac   : > { %v1467_v56 = vadd.f32 %v1463_v39, %v1446_v43  ;;  %v1468_v57 = vadd.f32 %v1464_v45, %v1447_v44  ;;  %v1485_v58 = vmul.f32 %v2239_v29, %v2237_v40  ;;  %v1503_v59 = vmul.f32 %v2245_v42, %v2240_v41  ;;  %v2264_v29 = vld [vmem:[%s2906_s8 + $0x380] sm:$0xff]  ;;  %v2267_v41 = vld [vmem:[%s2906_s8 + $0x398] sm:$0xff] }
  0xad   : > { %v1486_v62 = vadd.f32 %v1482_v46, %v1465_v49  ;;  %v1487_v63 = vadd.f32 %v1483_v51, %v1466_v50  ;;  %v1504_v0 = vmul.f32 %v2245_v42, %v2241_v47  ;;  %v1505_v1 = vmul.f32 %v2245_v42, %v2242_v48  ;;  %v2275_v43 = vld [vmem:[%s3270_s1 + $0x1d] ss:$0 sm:$0xff]  ;;  %v2271_v48 = vld [vmem:[%s2906_s8 + $0x3a8] sm:$0xff]  ;;  %v2272_v49 = vld [vmem:[%s2906_s8 + $0x3b0] sm:$0xff] }
  0xae   : > { %v1488_v5 = vadd.f32 %v1484_v52, %v1467_v56  ;;  %v1489_v6 = vadd.f32 %v1485_v58, %v1468_v57  ;;  %v1506_v7 = vmul.f32 %v2245_v42, %v2243_v53  ;;  %v1524_v8 = vmul.f32 %v2251_v55, %v2246_v54  ;;  %v2270_v42 = vld [vmem:[%s2906_s8 + $0x3a0] sm:$0xff]  ;;  %v2273_v54 = vld [vmem:[%s2906_s8 + $0x3b8] sm:$0xff] }
  0xaf   : > { %v1507_v11 = vadd.f32 %v1503_v59, %v1486_v62  ;;  %v1508_v12 = vadd.f32 %v1504_v0, %v1487_v63  ;;  %v1525_v13 = vmul.f32 %v2251_v55, %v2247_v60  ;;  %v1526_v14 = vmul.f32 %v2251_v55, %v2248_v61  ;;  %v2281_v56 = vld [vmem:[%s3270_s1 + $0x1e] ss:$0 sm:$0xff]  ;;  %v2277_v61 = vld [vmem:[%s2906_s8 + $0x3c8] sm:$0xff]  ;;  %v2278_v62 = vld [vmem:[%s2906_s8 + $0x3d0] sm:$0xff] }
  0xb0   : > { %v1509_v18 = vadd.f32 %v1505_v1, %v1488_v5  ;;  %v1510_v19 = vadd.f32 %v1506_v7, %v1489_v6  ;;  %v1527_v20 = vmul.f32 %v2251_v55, %v2249_v2  ;;  %v1545_v21 = vmul.f32 %v2257_v4, %v2252_v3  ;;  %v2276_v55 = vld [vmem:[%s2906_s8 + $0x3c0] sm:$0xff]  ;;  %v2279_v3 = vld [vmem:[%s2906_s8 + $0x3d8] sm:$0xff] }
  0xb1   : > { %v1528_v24 = vadd.f32 %v1524_v8, %v1507_v11  ;;  %v1529_v25 = vadd.f32 %v1525_v13, %v1508_v12  ;;  %v1546_v26 = vmul.f32 %v2257_v4, %v2253_v9  ;;  %v1547_v27 = vmul.f32 %v2257_v4, %v2254_v10  ;;  %v2287_v5 = vld [vmem:[%s3270_s1 + $0x1f] ss:$0 sm:$0xff]  ;;  %v2283_v10 = vld [vmem:[%s2906_s8 + $0x3e8] sm:$0xff]  ;;  %v2284_v11 = vld [vmem:[%s2906_s8 + $0x3f0] sm:$0xff] }
  0xb2   : > { %v1530_v31 = vadd.f32 %v1526_v14, %v1509_v18  ;;  %v1531_v32 = vadd.f32 %v1527_v20, %v1510_v19  ;;  %v1548_v33 = vmul.f32 %v2257_v4, %v2255_v15  ;;  %v1566_v34 = vmul.f32 %v2263_v17, %v2258_v16  ;;  %v2282_v4 = vld [vmem:[%s2906_s8 + $0x3e0] sm:$0xff]  ;;  %v2285_v16 = vld [vmem:[%s2906_s8 + $0x3f8] sm:$0xff] }
  0xb3   : > { %v1549_v37 = vadd.f32 %v1545_v21, %v1528_v24  ;;  %v1550_v38 = vadd.f32 %v1546_v26, %v1529_v25  ;;  %v1567_v39 = vmul.f32 %v2263_v17, %v2259_v22  ;;  %v1568_v40 = vmul.f32 %v2263_v17, %v2260_v23  ;;  %v2293_v18 = vld [vmem:[%s3270_s1 + $0x20] ss:$0 sm:$0xff]  ;;  %v2289_v23 = vld [vmem:[%s2906_s8 + $0x408] sm:$0xff]  ;;  %v2290_v24 = vld [vmem:[%s2906_s8 + $0x410] sm:$0xff] }
  0xb4   : > { %v1551_v44 = vadd.f32 %v1547_v27, %v1530_v31  ;;  %v1552_v45 = vadd.f32 %v1548_v33, %v1531_v32  ;;  %v1569_v46 = vmul.f32 %v2263_v17, %v2261_v28  ;;  %v1587_v47 = vmul.f32 %v2269_v30, %v2264_v29  ;;  %v2288_v17 = vld [vmem:[%s2906_s8 + $0x400] sm:$0xff]  ;;  %v2291_v29 = vld [vmem:[%s2906_s8 + $0x418] sm:$0xff] }
  0xb5   : > { %v1570_v50 = vadd.f32 %v1566_v34, %v1549_v37  ;;  %v1571_v51 = vadd.f32 %v1567_v39, %v1550_v38  ;;  %v1588_v52 = vmul.f32 %v2269_v30, %v2265_v35  ;;  %v1589_v53 = vmul.f32 %v2269_v30, %v2266_v36  ;;  %v2299_v31 = vld [vmem:[%s3270_s1 + $0x21] ss:$0 sm:$0xff]  ;;  %v2295_v36 = vld [vmem:[%s2906_s8 + $0x428] sm:$0xff]  ;;  %v2296_v37 = vld [vmem:[%s2906_s8 + $0x430] sm:$0xff] }
  0xb6   : > { %v1572_v57 = vadd.f32 %v1568_v40, %v1551_v44  ;;  %v1573_v58 = vadd.f32 %v1569_v46, %v1552_v45  ;;  %v1590_v59 = vmul.f32 %v2269_v30, %v2267_v41  ;;  %v1608_v60 = vmul.f32 %v2275_v43, %v2270_v42  ;;  %v2294_v30 = vld [vmem:[%s2906_s8 + $0x420] sm:$0xff]  ;;  %v2297_v42 = vld [vmem:[%s2906_s8 + $0x438] sm:$0xff] }
  0xb7   : > { %v1591_v63 = vadd.f32 %v1587_v47, %v1570_v50  ;;  %v1592_v0 = vadd.f32 %v1588_v52, %v1571_v51  ;;  %v1609_v1 = vmul.f32 %v2275_v43, %v2271_v48  ;;  %v1610_v2 = vmul.f32 %v2275_v43, %v2272_v49  ;;  %v2305_v44 = vld [vmem:[%s3270_s1 + $0x22] ss:$0 sm:$0xff]  ;;  %v2301_v49 = vld [vmem:[%s2906_s8 + $0x448] sm:$0xff]  ;;  %v2302_v50 = vld [vmem:[%s2906_s8 + $0x450] sm:$0xff] }
  0xb8   : > { %v1593_v6 = vadd.f32 %v1589_v53, %v1572_v57  ;;  %v1594_v7 = vadd.f32 %v1590_v59, %v1573_v58  ;;  %v1611_v8 = vmul.f32 %v2275_v43, %v2273_v54  ;;  %v1629_v9 = vmul.f32 %v2281_v56, %v2276_v55  ;;  %v2300_v43 = vld [vmem:[%s2906_s8 + $0x440] sm:$0xff]  ;;  %v2303_v55 = vld [vmem:[%s2906_s8 + $0x458] sm:$0xff] }
  0xb9   : > { %v1612_v12 = vadd.f32 %v1608_v60, %v1591_v63  ;;  %v1613_v13 = vadd.f32 %v1609_v1, %v1592_v0  ;;  %v1630_v14 = vmul.f32 %v2281_v56, %v2277_v61  ;;  %v1631_v15 = vmul.f32 %v2281_v56, %v2278_v62  ;;  %v2311_v57 = vld [vmem:[%s3270_s1 + $0x23] ss:$0 sm:$0xff]  ;;  %v2307_v62 = vld [vmem:[%s2906_s8 + $0x468] sm:$0xff]  ;;  %v2308_v63 = vld [vmem:[%s2906_s8 + $0x470] sm:$0xff] }
  0xba   : > { %v1614_v19 = vadd.f32 %v1610_v2, %v1593_v6  ;;  %v1615_v20 = vadd.f32 %v1611_v8, %v1594_v7  ;;  %v1632_v21 = vmul.f32 %v2281_v56, %v2279_v3  ;;  %v1650_v22 = vmul.f32 %v2287_v5, %v2282_v4  ;;  %v2306_v56 = vld [vmem:[%s2906_s8 + $0x460] sm:$0xff]  ;;  %v2309_v4 = vld [vmem:[%s2906_s8 + $0x478] sm:$0xff] }
  0xbb   : > { %v1633_v25 = vadd.f32 %v1629_v9, %v1612_v12  ;;  %v1634_v26 = vadd.f32 %v1630_v14, %v1613_v13  ;;  %v1651_v27 = vmul.f32 %v2287_v5, %v2283_v10  ;;  %v1652_v28 = vmul.f32 %v2287_v5, %v2284_v11  ;;  %v2317_v6 = vld [vmem:[%s3270_s1 + $0x24] ss:$0 sm:$0xff]  ;;  %v2313_v11 = vld [vmem:[%s2906_s8 + $0x488] sm:$0xff]  ;;  %v2314_v12 = vld [vmem:[%s2906_s8 + $0x490] sm:$0xff] }
  0xbc   : > { %v1635_v32 = vadd.f32 %v1631_v15, %v1614_v19  ;;  %v1636_v33 = vadd.f32 %v1632_v21, %v1615_v20  ;;  %v1653_v34 = vmul.f32 %v2287_v5, %v2285_v16  ;;  %v1671_v35 = vmul.f32 %v2293_v18, %v2288_v17  ;;  %v2312_v5 = vld [vmem:[%s2906_s8 + $0x480] sm:$0xff]  ;;  %v2315_v17 = vld [vmem:[%s2906_s8 + $0x498] sm:$0xff] }
  0xbd   : > { %v1654_v38 = vadd.f32 %v1650_v22, %v1633_v25  ;;  %v1655_v39 = vadd.f32 %v1651_v27, %v1634_v26  ;;  %v1672_v40 = vmul.f32 %v2293_v18, %v2289_v23  ;;  %v1673_v41 = vmul.f32 %v2293_v18, %v2290_v24  ;;  %v2323_v19 = vld [vmem:[%s3270_s1 + $0x25] ss:$0 sm:$0xff]  ;;  %v2319_v24 = vld [vmem:[%s2906_s8 + $0x4a8] sm:$0xff]  ;;  %v2320_v25 = vld [vmem:[%s2906_s8 + $0x4b0] sm:$0xff] }
  0xbe   : > { %v1656_v45 = vadd.f32 %v1652_v28, %v1635_v32  ;;  %v1657_v46 = vadd.f32 %v1653_v34, %v1636_v33  ;;  %v1674_v47 = vmul.f32 %v2293_v18, %v2291_v29  ;;  %v1692_v48 = vmul.f32 %v2299_v31, %v2294_v30  ;;  %v2318_v18 = vld [vmem:[%s2906_s8 + $0x4a0] sm:$0xff]  ;;  %v2321_v30 = vld [vmem:[%s2906_s8 + $0x4b8] sm:$0xff] }
  0xbf   : > { %v1675_v51 = vadd.f32 %v1671_v35, %v1654_v38  ;;  %v1676_v52 = vadd.f32 %v1672_v40, %v1655_v39  ;;  %v1693_v53 = vmul.f32 %v2299_v31, %v2295_v36  ;;  %v1694_v54 = vmul.f32 %v2299_v31, %v2296_v37  ;;  %v2329_v32 = vld [vmem:[%s3270_s1 + $0x26] ss:$0 sm:$0xff]  ;;  %v2325_v37 = vld [vmem:[%s2906_s8 + $0x4c8] sm:$0xff]  ;;  %v2326_v38 = vld [vmem:[%s2906_s8 + $0x4d0] sm:$0xff] }
  0xc0   : > { %v1677_v58 = vadd.f32 %v1673_v41, %v1656_v45  ;;  %v1678_v59 = vadd.f32 %v1674_v47, %v1657_v46  ;;  %v1695_v60 = vmul.f32 %v2299_v31, %v2297_v42  ;;  %v1713_v61 = vmul.f32 %v2305_v44, %v2300_v43  ;;  %v2324_v31 = vld [vmem:[%s2906_s8 + $0x4c0] sm:$0xff]  ;;  %v2327_v43 = vld [vmem:[%s2906_s8 + $0x4d8] sm:$0xff] }
  0xc1   : > { %v1696_v0 = vadd.f32 %v1692_v48, %v1675_v51  ;;  %v1697_v1 = vadd.f32 %v1693_v53, %v1676_v52  ;;  %v1714_v2 = vmul.f32 %v2305_v44, %v2301_v49  ;;  %v1715_v3 = vmul.f32 %v2305_v44, %v2302_v50  ;;  %v2335_v45 = vld [vmem:[%s3270_s1 + $0x27] ss:$0 sm:$0xff]  ;;  %v2331_v50 = vld [vmem:[%s2906_s8 + $0x4e8] sm:$0xff]  ;;  %v2332_v51 = vld [vmem:[%s2906_s8 + $0x4f0] sm:$0xff] }
  0xc2   : > { %v1698_v7 = vadd.f32 %v1694_v54, %v1677_v58  ;;  %v1699_v8 = vadd.f32 %v1695_v60, %v1678_v59  ;;  %v1716_v9 = vmul.f32 %v2305_v44, %v2303_v55  ;;  %v1734_v10 = vmul.f32 %v2311_v57, %v2306_v56  ;;  %v2330_v44 = vld [vmem:[%s2906_s8 + $0x4e0] sm:$0xff]  ;;  %v2333_v56 = vld [vmem:[%s2906_s8 + $0x4f8] sm:$0xff]  ;;  %v2341_v58 = vld [vmem:[%s3270_s1 + $0x28] ss:$0 sm:$0xff] }
  0xc3   : > { %v1717_v13 = vadd.f32 %v1713_v61, %v1696_v0  ;;  %v1718_v14 = vadd.f32 %v1714_v2, %v1697_v1  ;;  %v1735_v15 = vmul.f32 %v2311_v57, %v2307_v62  ;;  %v1736_v16 = vmul.f32 %v2311_v57, %v2308_v63  ;;  %v2337_v63 = vld [vmem:[%s2906_s8 + $0x508] sm:$0xff]  ;;  %v2338_v0 = vld [vmem:[%s2906_s8 + $0x510] sm:$0xff] }
  0xc4   : > { %v1719_v20 = vadd.f32 %v1715_v3, %v1698_v7  ;;  %v1720_v21 = vadd.f32 %v1716_v9, %v1699_v8  ;;  %v1737_v22 = vmul.f32 %v2311_v57, %v2309_v4  ;;  %v1755_v23 = vmul.f32 %v2317_v6, %v2312_v5  ;;  %v2336_v57 = vld [vmem:[%s2906_s8 + $0x500] sm:$0xff]  ;;  %v2339_v5 = vld [vmem:[%s2906_s8 + $0x518] sm:$0xff]  ;;  %v2347_v7 = vld [vmem:[%s3270_s1 + $0x29] ss:$0 sm:$0xff] }
  0xc5   : > { %v1738_v26 = vadd.f32 %v1734_v10, %v1717_v13  ;;  %v1739_v27 = vadd.f32 %v1735_v15, %v1718_v14  ;;  %v1756_v28 = vmul.f32 %v2317_v6, %v2313_v11  ;;  %v1757_v29 = vmul.f32 %v2317_v6, %v2314_v12  ;;  %v2343_v12 = vld [vmem:[%s2906_s8 + $0x528] sm:$0xff]  ;;  %v2344_v13 = vld [vmem:[%s2906_s8 + $0x530] sm:$0xff] }
  0xc6   : > { %v1740_v33 = vadd.f32 %v1736_v16, %v1719_v20  ;;  %v1741_v34 = vadd.f32 %v1737_v22, %v1720_v21  ;;  %v1758_v35 = vmul.f32 %v2317_v6, %v2315_v17  ;;  %v1776_v36 = vmul.f32 %v2323_v19, %v2318_v18  ;;  %v2342_v6 = vld [vmem:[%s2906_s8 + $0x520] sm:$0xff]  ;;  %v2345_v18 = vld [vmem:[%s2906_s8 + $0x538] sm:$0xff]  ;;  %v2353_v20 = vld [vmem:[%s3270_s1 + $0x2a] ss:$0 sm:$0xff] }
  0xc7   : > { %v1759_v39 = vadd.f32 %v1755_v23, %v1738_v26  ;;  %v1760_v40 = vadd.f32 %v1756_v28, %v1739_v27  ;;  %v1777_v41 = vmul.f32 %v2323_v19, %v2319_v24  ;;  %v1778_v42 = vmul.f32 %v2323_v19, %v2320_v25  ;;  %v2349_v25 = vld [vmem:[%s2906_s8 + $0x548] sm:$0xff]  ;;  %v2350_v26 = vld [vmem:[%s2906_s8 + $0x550] sm:$0xff] }
  0xc8   : > { %v1761_v46 = vadd.f32 %v1757_v29, %v1740_v33  ;;  %v1762_v47 = vadd.f32 %v1758_v35, %v1741_v34  ;;  %v1779_v48 = vmul.f32 %v2323_v19, %v2321_v30  ;;  %v1797_v49 = vmul.f32 %v2329_v32, %v2324_v31  ;;  %v2348_v19 = vld [vmem:[%s2906_s8 + $0x540] sm:$0xff]  ;;  %v2351_v31 = vld [vmem:[%s2906_s8 + $0x558] sm:$0xff]  ;;  %v2359_v33 = vld [vmem:[%s3270_s1 + $0x2b] ss:$0 sm:$0xff] }
  0xc9   : > { %v1780_v52 = vadd.f32 %v1776_v36, %v1759_v39  ;;  %v1781_v53 = vadd.f32 %v1777_v41, %v1760_v40  ;;  %v1798_v54 = vmul.f32 %v2329_v32, %v2325_v37  ;;  %v1799_v55 = vmul.f32 %v2329_v32, %v2326_v38  ;;  %v2355_v38 = vld [vmem:[%s2906_s8 + $0x568] sm:$0xff]  ;;  %v2356_v39 = vld [vmem:[%s2906_s8 + $0x570] sm:$0xff] }
  0xca   : > { %v1782_v59 = vadd.f32 %v1778_v42, %v1761_v46  ;;  %v1783_v60 = vadd.f32 %v1779_v48, %v1762_v47  ;;  %v1800_v61 = vmul.f32 %v2329_v32, %v2327_v43  ;;  %v1818_v62 = vmul.f32 %v2335_v45, %v2330_v44  ;;  %v2354_v32 = vld [vmem:[%s2906_s8 + $0x560] sm:$0xff]  ;;  %v2357_v44 = vld [vmem:[%s2906_s8 + $0x578] sm:$0xff]  ;;  %v2365_v46 = vld [vmem:[%s3270_s1 + $0x2c] ss:$0 sm:$0xff] }
  0xcb   : > { %v1801_v1 = vadd.f32 %v1797_v49, %v1780_v52  ;;  %v1802_v2 = vadd.f32 %v1798_v54, %v1781_v53  ;;  %v1819_v3 = vmul.f32 %v2335_v45, %v2331_v50  ;;  %v1820_v4 = vmul.f32 %v2335_v45, %v2332_v51  ;;  %v2361_v51 = vld [vmem:[%s2906_s8 + $0x588] sm:$0xff]  ;;  %v2362_v52 = vld [vmem:[%s2906_s8 + $0x590] sm:$0xff] }
  0xcc   : > { %v1803_v8 = vadd.f32 %v1799_v55, %v1782_v59  ;;  %v1804_v9 = vadd.f32 %v1800_v61, %v1783_v60  ;;  %v1821_v10 = vmul.f32 %v2335_v45, %v2333_v56  ;;  %v1839_v11 = vmul.f32 %v2341_v58, %v2336_v57  ;;  %v2360_v45 = vld [vmem:[%s2906_s8 + $0x580] sm:$0xff]  ;;  %v2363_v57 = vld [vmem:[%s2906_s8 + $0x598] sm:$0xff]  ;;  %v2371_v59 = vld [vmem:[%s3270_s1 + $0x2d] ss:$0 sm:$0xff] }
  0xcd   : > { %v1822_v14 = vadd.f32 %v1818_v62, %v1801_v1  ;;  %v1823_v15 = vadd.f32 %v1819_v3, %v1802_v2  ;;  %v1840_v16 = vmul.f32 %v2341_v58, %v2337_v63  ;;  %v1841_v17 = vmul.f32 %v2341_v58, %v2338_v0  ;;  %v2367_v0 = vld [vmem:[%s2906_s8 + $0x5a8] sm:$0xff]  ;;  %v2368_v1 = vld [vmem:[%s2906_s8 + $0x5b0] sm:$0xff] }
  0xce   : > { %v1824_v21 = vadd.f32 %v1820_v4, %v1803_v8  ;;  %v1825_v22 = vadd.f32 %v1821_v10, %v1804_v9  ;;  %v1842_v23 = vmul.f32 %v2341_v58, %v2339_v5  ;;  %v1860_v24 = vmul.f32 %v2347_v7, %v2342_v6  ;;  %v2366_v58 = vld [vmem:[%s2906_s8 + $0x5a0] sm:$0xff]  ;;  %v2369_v6 = vld [vmem:[%s2906_s8 + $0x5b8] sm:$0xff]  ;;  %v2377_v8 = vld [vmem:[%s3270_s1 + $0x2e] ss:$0 sm:$0xff] }
  0xcf   : > { %v1843_v27 = vadd.f32 %v1839_v11, %v1822_v14  ;;  %v1844_v28 = vadd.f32 %v1840_v16, %v1823_v15  ;;  %v1861_v29 = vmul.f32 %v2347_v7, %v2343_v12  ;;  %v1862_v30 = vmul.f32 %v2347_v7, %v2344_v13  ;;  %v2373_v13 = vld [vmem:[%s2906_s8 + $0x5c8] sm:$0xff]  ;;  %v2374_v14 = vld [vmem:[%s2906_s8 + $0x5d0] sm:$0xff] }
  0xd0   : > { %v1845_v34 = vadd.f32 %v1841_v17, %v1824_v21  ;;  %v1846_v35 = vadd.f32 %v1842_v23, %v1825_v22  ;;  %v1863_v36 = vmul.f32 %v2347_v7, %v2345_v18  ;;  %v1881_v37 = vmul.f32 %v2353_v20, %v2348_v19  ;;  %v2372_v7 = vld [vmem:[%s2906_s8 + $0x5c0] sm:$0xff]  ;;  %v2375_v19 = vld [vmem:[%s2906_s8 + $0x5d8] sm:$0xff]  ;;  %v2383_v21 = vld [vmem:[%s3270_s1 + $0x2f] ss:$0 sm:$0xff] }
  0xd1   : > { %v1864_v40 = vadd.f32 %v1860_v24, %v1843_v27  ;;  %v1865_v41 = vadd.f32 %v1861_v29, %v1844_v28  ;;  %v1882_v42 = vmul.f32 %v2353_v20, %v2349_v25  ;;  %v1883_v43 = vmul.f32 %v2353_v20, %v2350_v26  ;;  %v2379_v26 = vld [vmem:[%s2906_s8 + $0x5e8] sm:$0xff]  ;;  %v2380_v27 = vld [vmem:[%s2906_s8 + $0x5f0] sm:$0xff] }
  0xd2   : > { %v1866_v47 = vadd.f32 %v1862_v30, %v1845_v34  ;;  %v1867_v48 = vadd.f32 %v1863_v36, %v1846_v35  ;;  %v1884_v49 = vmul.f32 %v2353_v20, %v2351_v31  ;;  %v1902_v50 = vmul.f32 %v2359_v33, %v2354_v32  ;;  %v2378_v20 = vld [vmem:[%s2906_s8 + $0x5e0] sm:$0xff]  ;;  %v2381_v32 = vld [vmem:[%s2906_s8 + $0x5f8] sm:$0xff]  ;;  %v2389_v34 = vld [vmem:[%s3270_s1 + $0x30] ss:$0 sm:$0xff] }
  0xd3   : > { %v1885_v53 = vadd.f32 %v1881_v37, %v1864_v40  ;;  %v1886_v54 = vadd.f32 %v1882_v42, %v1865_v41  ;;  %v1903_v55 = vmul.f32 %v2359_v33, %v2355_v38  ;;  %v1904_v56 = vmul.f32 %v2359_v33, %v2356_v39  ;;  %v2385_v39 = vld [vmem:[%s2906_s8 + $0x608] sm:$0xff]  ;;  %v2386_v40 = vld [vmem:[%s2906_s8 + $0x610] sm:$0xff] }
  0xd4   : > { %v1887_v60 = vadd.f32 %v1883_v43, %v1866_v47  ;;  %v1888_v61 = vadd.f32 %v1884_v49, %v1867_v48  ;;  %v1905_v62 = vmul.f32 %v2359_v33, %v2357_v44  ;;  %v1923_v63 = vmul.f32 %v2365_v46, %v2360_v45  ;;  %v2384_v33 = vld [vmem:[%s2906_s8 + $0x600] sm:$0xff]  ;;  %v2387_v45 = vld [vmem:[%s2906_s8 + $0x618] sm:$0xff] }
  0xd5   : > { %v1906_v2 = vadd.f32 %v1902_v50, %v1885_v53  ;;  %v1907_v3 = vadd.f32 %v1903_v55, %v1886_v54  ;;  %v1924_v4 = vmul.f32 %v2365_v46, %v2361_v51  ;;  %v1925_v5 = vmul.f32 %v2365_v46, %v2362_v52 }
  0xd6   : > { %v1908_v9 = vadd.f32 %v1904_v56, %v1887_v60  ;;  %v1909_v10 = vadd.f32 %v1905_v62, %v1888_v61  ;;  %v1926_v11 = vmul.f32 %v2365_v46, %v2363_v57  ;;  %v1944_v12 = vmul.f32 %v2371_v59, %v2366_v58  ;;  %v2390_v57 = vld [vmem:[%s3271_s2] ss:$0 sm:$0xff] }
  0xd7   : > { %v1927_v15 = vadd.f32 %v1923_v63, %v1906_v2  ;;  %v1928_v16 = vadd.f32 %v1924_v4, %v1907_v3  ;;  %v1945_v17 = vmul.f32 %v2371_v59, %v2367_v0  ;;  %v1946_v18 = vmul.f32 %v2371_v59, %v2368_v1 }
  0xd8   : > { %v1929_v22 = vadd.f32 %v1925_v5, %v1908_v9  ;;  %v1930_v23 = vadd.f32 %v1926_v11, %v1909_v10  ;;  %v1947_v24 = vmul.f32 %v2371_v59, %v2369_v6  ;;  %v1965_v25 = vmul.f32 %v2377_v8, %v2372_v7 }
  0xd9   : > { %v1948_v28 = vadd.f32 %v1944_v12, %v1927_v15  ;;  %v1949_v29 = vadd.f32 %v1945_v17, %v1928_v16  ;;  %v1966_v30 = vmul.f32 %v2377_v8, %v2373_v13  ;;  %v1967_v31 = vmul.f32 %v2377_v8, %v2374_v14 }
  0xda   : > { %v1950_v35 = vadd.f32 %v1946_v18, %v1929_v22  ;;  %v1951_v36 = vadd.f32 %v1947_v24, %v1930_v23  ;;  %v1968_v37 = vmul.f32 %v2377_v8, %v2375_v19  ;;  %v1986_v38 = vmul.f32 %v2383_v21, %v2378_v20 }
  0xdb   : > { %v1969_v41 = vadd.f32 %v1965_v25, %v1948_v28  ;;  %v1970_v42 = vadd.f32 %v1966_v30, %v1949_v29  ;;  %v1987_v43 = vmul.f32 %v2383_v21, %v2379_v26  ;;  %v1988_v44 = vmul.f32 %v2383_v21, %v2380_v27 }
  0xdc   : > { %v1971_v46 = vadd.f32 %v1967_v31, %v1950_v35  ;;  %v1972_v47 = vadd.f32 %v1968_v37, %v1951_v36  ;;  %v1989_v48 = vmul.f32 %v2383_v21, %v2381_v32  ;;  %v2007_v49 = vmul.f32 %v2389_v34, %v2384_v33 }
  0xdd   : > { %v1990_v50 = vadd.f32 %v1986_v38, %v1969_v41  ;;  %v1991_v51 = vadd.f32 %v1987_v43, %v1970_v42  ;;  %v2008_v52 = vmul.f32 %v2389_v34, %v2385_v39  ;;  %v2009_v53 = vmul.f32 %v2389_v34, %v2386_v40 }
  0xde   : > { %v1992_v54 = vadd.f32 %v1988_v44, %v1971_v46  ;;  %v1993_v55 = vadd.f32 %v1989_v48, %v1972_v47  ;;  %v2010_v56 = vmul.f32 %v2389_v34, %v2387_v45 }
  0xdf   : > { %v2011_v58 = vadd.f32 %v2007_v49, %v1990_v50  ;;  %v2012_v59 = vadd.f32 %v2008_v52, %v1991_v51 }
  0xe0   : > { %v2013_v60 = vadd.f32 %v2009_v53, %v1992_v54  ;;  %v2014_v61 = vadd.f32 %v2010_v56, %v1993_v55 }
  0xe1   : > { %v2022_v62 = vadd.f32 %v2390_v57, %v2011_v58  ;;  %v2023_v63 = vadd.f32 %v2390_v57, %v2012_v59 }
  0xe2   : > { %v2024_v0 = vadd.f32 %v2390_v57, %v2013_v60  ;;  %v2025_v1 = vadd.f32 %v2390_v57, %v2014_v61 }
  0xe3   : > { %2026 = vst [vmem:[%s986_s25] sm:$0xff] %v2022_v62  ;;  %2027 = vst [vmem:[%s986_s25 + $0x8] sm:$0xff] %v2023_v63 }
  0xe4   : > { %2028 = vst [vmem:[%s986_s25 + $0x10] sm:$0xff] %v2024_v0  ;;  %2029 = vst [vmem:[%s986_s25 + $0x18] sm:$0xff] %v2025_v1 }
  0xe5 PF: > { %p10_p9 = scmp.ge.s32.totalorder %s2481_s16, 4   ;;  %s3273_s12 = smov %s2438_s13 }
  0xe6   : > { %s3274_s13 = smov %s2490_s19  ;;  %s3275_s14 = smov %s2481_s16 }
  0xe7   :  { %12 = sbr.rel (!%p10_p9) target bundleno = 2 (0x2), region = 201 }

// kernel: block_forward.26
= control target key start
LH: loop header
LB: loop body
LE: loop exit
PB: predicated region body
PF: predicated region fallthrough
CT: control target
= control target key end

     0   :  { %s500_s12 = smov 0   ;;  %s581_s0 = inlined_call_operand.vmem [shape: f32[64,128], index: 0, kind: input, shape index: {}]   ;;  %s582_s1 = inlined_call_operand.vmem [shape: f32[128,128], index: 1, kind: input, shape index: {}]   ;;  %s583_s2 = inlined_call_operand.vmem [shape: f32[1,128], index: 2, kind: input, shape index: {}]   ;;  %s584_s3 = inlined_call_operand.vmem [shape: f32[64,128], index: 3, kind: output, shape index: {}]  }
   0x1 LB: > { %s346_s13 = sadd.s32 4294967295, %s478_s12   ;;  %p350_p0 = scmp.ge.s32.totalorder %s478_s12, 1  ;;  %s478_s12 = sphi %s500_s12, %s13_s12  }
   0x2   : > { %p138_p1 = scmp.lt.s32.totalorder %s478_s12, 3 }
   0x4   : > { %p139_p2 = pnand %p350_p0, %p138_p1 }
   0x5   : > { %v178_v0 = vld [vmem:[%s582_s1] sm:$0xff] (!%p139_p2)  ;;  %v179_v1 = vld [vmem:[%s582_s1 + $0x8] sm:$0xff] (!%p139_p2)  ;;  %v180_v2 = vld [vmem:[%s582_s1 + $0x10] sm:$0xff] (!%p139_p2)  ;;  %s351_s20 = sshll.u32 (!%p139_p2), %s346_s13, 2 }
   0x6   : > { %142 = sbr.rel (%p139_p2) target bundleno = 257 (0x101), region = 32  ;;  %v416_v3 = vpack.c.bf16 (!%p139_p2), %v179_v1, %v178_v0  ;;  %v181_v4 = vld [vmem:[%s582_s1 + $0x18] sm:$0xff] (!%p139_p2)  ;;  %p163_p3 = scmp.lt.s32.totalorder (!%p139_p2), %s351_s20, 7  ;;  %v182_v6 = vld [vmem:[%s582_s1 + $0x20] sm:$0xff] (!%p139_p2)  ;;  %v183_v7 = vld [vmem:[%s582_s1 + $0x28] sm:$0xff] (!%p139_p2) }
   0x7   : > { %v420_v5 = vpack.c.bf16 (!%p139_p2), %v181_v4, %v180_v2  ;;  %v424_v8 = vpack.c.bf16 (!%p139_p2), %v183_v7, %v182_v6  ;;  %v184_v9 = vld [vmem:[%s582_s1 + $0x30] sm:$0xff] (!%p139_p2)  ;;  %v185_v10 = vld [vmem:[%s582_s1 + $0x38] sm:$0xff] (!%p139_p2)  ;;  %v186_v14 = vld [vmem:[%s582_s1 + $0x40] sm:$0xff] (!%p139_p2) }
   0x8   : > { %417 = vmatprep.subr.bf16.mxu0 (!%p139_p2), %v416_v3  ;;  %448 = vmatprep.subr.bf16.mxu1 (!%p139_p2), %v416_v3  ;;  %v428_v13 = vpack.c.bf16 (!%p139_p2), %v185_v10, %v184_v9  ;;  %v187_v15 = vld [vmem:[%s582_s1 + $0x48] sm:$0xff] (!%p139_p2)  ;;  %v188_v17 = vld [vmem:[%s582_s1 + $0x50] sm:$0xff] (!%p139_p2)  ;;  %v189_v18 = vld [vmem:[%s582_s1 + $0x58] sm:$0xff] (!%p139_p2) }
   0x9   : > { %419 = vmatpush3.bf16.msra.mxu0 (!%p139_p2), %v416_v3  ;;  %456 = vmatpush3.bf16.msra.mxu1 (!%p139_p2), %v416_v3  ;;  %v432_v16 = vpack.c.bf16 (!%p139_p2), %v187_v15, %v186_v14  ;;  %v436_v19 = vpack.c.bf16 (!%p139_p2), %v189_v18, %v188_v17  ;;  %v190_v20 = vld [vmem:[%s582_s1 + $0x60] sm:$0xff] (!%p139_p2)  ;;  %v191_v21 = vld [vmem:[%s582_s1 + $0x68] sm:$0xff] (!%p139_p2)  ;;  %v192_v23 = vld [vmem:[%s582_s1 + $0x70] sm:$0xff] (!%p139_p2) }
   0xa   : > { %421 = vmatprep.subr.bf16.mxu0 (!%p139_p2), %v420_v5  ;;  %449 = vmatprep.subr.bf16.mxu1 (!%p139_p2), %v420_v5  ;;  %v440_v22 = vpack.c.bf16 (!%p139_p2), %v191_v21, %v190_v20  ;;  %v193_v24 = vld [vmem:[%s582_s1 + $0x78] sm:$0xff] (!%p139_p2)  ;;  %v355_v28 = vld [vmem:[%s583_s2] ss:$0 sm:$0xff] (!%p139_p2) }
   0xb   : > { %v444_v25 = vpack.c.bf16 (!%p139_p2), %v193_v24, %v192_v23 }
   0xd   : > { %s586_s20 = smov (!%p163_p3, %s351_s20), 7  ;;  %423 = vmatpush3.bf16.msra.mxu0 %v420_v5  ;;  %457 = vmatpush3.bf16.msra.mxu1 %v420_v5 }
   0xe   : > { %s352_s27 = sshll.u32 %s586_s20, 3  ;;  %425 = vmatprep.subr.bf16.mxu0 %v424_v8  ;;  %450 = vmatprep.subr.bf16.mxu1 %v424_v8 }
   0xf   : > { %s540_s7 = scalar_lea.vmem %s581_s0, %s352_s27  ;;  %s172_s4 = scalar_lea.vmem %s584_s3, %s352_s27 }
  0x10   : > { %v174_v11 = vld [vmem:[%s540_s7] sm:$0xff]  ;;  %v176_v12 = vld [vmem:[%s540_s7 + $0x10] sm:$0xff]  ;;  %v175_v26 = vld [vmem:[%s540_s7 + $0x8] sm:$0xff] }
  0x11   : > { %410 = vmatprep.mubr.f32.mxu0 %v174_v11  ;;  %413 = vmatprep.mubr.f32.mxu1 %v176_v12  ;;  %v177_v27 = vld [vmem:[%s540_s7 + $0x18] sm:$0xff] }
  0x12   : > { %427 = vmatpush3.bf16.msra.mxu0 %v424_v8  ;;  %458 = vmatpush3.bf16.msra.mxu1 %v424_v8 }
  0x13   : > { %429 = vmatprep.subr.bf16.mxu0 %v428_v13  ;;  %451 = vmatprep.subr.bf16.mxu1 %v428_v13 }
  0x16   : > { %431 = vmatpush3.bf16.msra.mxu0 %v428_v13  ;;  %459 = vmatpush3.bf16.msra.mxu1 %v428_v13 }
  0x17   : > { %433 = vmatprep.subr.bf16.mxu0 %v432_v16  ;;  %452 = vmatprep.subr.bf16.mxu1 %v432_v16 }
  0x1a   : > { %435 = vmatpush3.bf16.msra.mxu0 %v432_v16  ;;  %460 = vmatpush3.bf16.msra.mxu1 %v432_v16 }
  0x1b   : > { %437 = vmatprep.subr.bf16.mxu0 %v436_v19  ;;  %453 = vmatprep.subr.bf16.mxu1 %v436_v19 }
  0x1e   : > { %439 = vmatpush3.bf16.msra.mxu0 %v436_v19  ;;  %461 = vmatpush3.bf16.msra.mxu1 %v436_v19 }
  0x1f   : > { %441 = vmatprep.subr.bf16.mxu0 %v440_v22  ;;  %454 = vmatprep.subr.bf16.mxu1 %v440_v22 }
  0x22   : > { %443 = vmatpush3.bf16.msra.mxu0 %v440_v22  ;;  %462 = vmatpush3.bf16.msra.mxu1 %v440_v22 }
  0x23   : > { %445 = vmatprep.subr.bf16.mxu0 %v444_v25  ;;  %455 = vmatprep.subr.bf16.mxu1 %v444_v25 }
  0x26   : > { %447 = vmatpush3.bf16.msra.mxu0 %v444_v25  ;;  %463 = vmatpush3.bf16.msra.mxu1 %v444_v25 }
  0x29   : > { %411 = vmatmul.mubr.f32.vlgmr.msra.gmra.mrb[0].mxu0 %v175_v26  ;;  %414 = vmatmul.mubr.f32.vlgmr.msra.gmra.mrb[0].mxu1 %v177_v27 }
  0xfc   : > { %v412_v29 = vpop.f32.mrb[0].mxu0  ;;  %v415_v30 = vpop.f32.mrb[0].mxu1 }
  0xfd   : > { %v267_v31 = vpop.f32.mrb[1].mxu0  ;;  %v277_v32 = vpop.f32.mrb[1].mxu1  ;;  %v273_v35 = vadd.f32 %v412_v29, %v355_v28  ;;  %v283_v36 = vadd.f32 %v415_v30, %v355_v28 }
  0xfe   : > { %v268_v33 = vadd.f32 %v355_v28, %v267_v31  ;;  %v278_v34 = vadd.f32 %v355_v28, %v277_v32 }
  0xff   : > { %287 = vst [vmem:[%s172_s4 + $0x8] sm:$0xff] %v273_v35  ;;  %289 = vst [vmem:[%s172_s4 + $0x18] sm:$0xff] %v283_v36 }
 0x100   : > { %286 = vst [vmem:[%s172_s4] sm:$0xff] %v268_v33  ;;  %288 = vst [vmem:[%s172_s4 + $0x10] sm:$0xff] %v278_v34 }
 0x101 PF: > { %s13_s12 = sadd.s32 1, %s478_s12  }
 0x102   : > { %p10_p4 = scmp.ge.s32.totalorder %s13_s12, 4  }
 0x104   :  { %12 = sbr.rel (!%p10_p4) target bundleno = 1 (0x1), region = 62 }

// kernel: block_forward.27
= control target key start
LH: loop header
LB: loop body
LE: loop exit
PB: predicated region body
PF: predicated region fallthrough
CT: control target
= control target key end

     0   :  { %s297_s9 = smov 0   ;;  %s317_s0 = inlined_call_operand.vmem [shape: f32[64,128], index: 0, kind: input, shape index: {}]   ;;  %s318_s1 = inlined_call_operand.vmem [shape: f32[64,128], index: 1, kind: input, shape index: {}]   ;;  %s319_s2 = inlined_call_operand.vmem [shape: f32[64,128], index: 2, kind: output, shape index: {}]  }
   0x1 LB: > { %s253_s10 = sadd.s32 4294967295, %s280_s9   ;;  %p257_p0 = scmp.ge.s32.totalorder %s280_s9, 1  ;;  %s280_s9 = sphi %s297_s9, %s12_s9  }
   0x2   : > { %p124_p1 = scmp.lt.s32.totalorder %s280_s9, 3 }
   0x4   : > { %p125_p2 = pnand %p257_p0, %p124_p1 }
   0x5   : > { %s258_s11 = sshll.u32 (!%p125_p2), %s253_s10, 2 }
   0x6   : > { %128 = sbr.rel (%p125_p2) target bundleno = 23 (0x17), region = 28  ;;  %p152_p3 = scmp.lt.s32.totalorder (!%p125_p2), %s258_s11, 7 }
   0xd   : > { %s321_s11 = smov (!%p152_p3, %s258_s11), 7 }
   0xe   : > { %s259_s12 = sshll.u32 %s321_s11, 3 }
   0xf   : > { %s155_s15 = scalar_lea.vmem %s317_s0, %s259_s12  ;;  %s161_s18 = scalar_lea.vmem %s318_s1, %s259_s12 }
  0x10   : > { %s167_s21 = scalar_lea.vmem %s319_s2, %s259_s12  ;;  %v169_v0 = vld [vmem:[%s155_s15] sm:$0xff]  ;;  %v170_v2 = vld [vmem:[%s155_s15 + $0x8] sm:$0xff]  ;;  %v171_v5 = vld [vmem:[%s155_s15 + $0x10] sm:$0xff] }
  0x11   : > { %v173_v1 = vld [vmem:[%s161_s18] sm:$0xff]  ;;  %v174_v4 = vld [vmem:[%s161_s18 + $0x8] sm:$0xff]  ;;  %v175_v6 = vld [vmem:[%s161_s18 + $0x10] sm:$0xff] }
  0x12   : > { %v177_v3 = vmul.f32 %v173_v1, %v169_v0  ;;  %v178_v7 = vmul.f32 %v174_v4, %v170_v2  ;;  %v179_v8 = vmul.f32 %v175_v6, %v171_v5  ;;  %v172_v9 = vld [vmem:[%s155_s15 + $0x18] sm:$0xff] }
  0x13   : > { %v176_v10 = vld [vmem:[%s161_s18 + $0x18] sm:$0xff] }
  0x14   : > { %181 = vst [vmem:[%s167_s21] sm:$0xff] %v177_v3  ;;  %v180_v11 = vmul.f32 %v176_v10, %v172_v9  ;;  %182 = vst [vmem:[%s167_s21 + $0x8] sm:$0xff] %v178_v7 }
  0x15   : > { %183 = vst [vmem:[%s167_s21 + $0x10] sm:$0xff] %v179_v8 }
  0x16   : > { %184 = vst [vmem:[%s167_s21 + $0x18] sm:$0xff] %v180_v11 }
  0x17 PF: > { %s12_s9 = sadd.s32 1, %s280_s9  }
  0x18   : > { %p9_p4 = scmp.ge.s32.totalorder %s12_s9, 4  }
  0x1a   :  { %11 = sbr.rel (!%p9_p4) target bundleno = 1 (0x1), region = 61 }

// kernel: block_forward.29
= control target key start
LH: loop header
LB: loop body
LE: loop exit
PB: predicated region body
PF: predicated region fallthrough
CT: control target
= control target key end

     0   :  { %s341_s12 = smov 0   ;;  %s364_s0 = inlined_call_operand.vmem [shape: f32[64,128], index: 0, kind: input, shape index: {}]   ;;  %s365_s1 = inlined_call_operand.vmem [shape: f32[64,128], index: 1, kind: input, shape index: {}]   ;;  %s366_s2 = inlined_call_operand.vmem [shape: f32[1,128], index: 2, kind: input, shape index: {}]   ;;  %s367_s3 = inlined_call_operand.vmem [shape: f32[64,128], index: 3, kind: output, shape index: {}]  }
   0x1 LB: > { %s291_s13 = sadd.s32 4294967295, %s319_s12   ;;  %p295_p0 = scmp.ge.s32.totalorder %s319_s12, 1  ;;  %s319_s12 = sphi %s341_s12, %s13_s12  }
   0x2   : > { %p149_p1 = scmp.lt.s32.totalorder %s319_s12, 3 }
   0x4   : > { %p150_p2 = pnand %p295_p0, %p149_p1 }
   0x5   : > { %s296_s14 = sshll.u32 (!%p150_p2), %s291_s13, 2  ;;  %v302_v0 = vld [vmem:[%s366_s2] ss:$0 sm:$0xff] (!%p150_p2) }
   0x6   : > { %153 = sbr.rel (%p150_p2) target bundleno = 25 (0x19), region = 32  ;;  %p179_p3 = scmp.lt.s32.totalorder (!%p150_p2), %s296_s14, 7 }
   0xd   : > { %s369_s14 = smov (!%p179_p3, %s296_s14), 7 }
   0xe   : > { %s297_s15 = sshll.u32 %s369_s14, 3 }
   0xf   : > { %s182_s20 = scalar_lea.vmem %s364_s0, %s297_s15  ;;  %s188_s23 = scalar_lea.vmem %s365_s1, %s297_s15 }
  0x10   : > { %v196_v1 = vld [vmem:[%s182_s20] sm:$0xff]  ;;  %v197_v3 = vld [vmem:[%s182_s20 + $0x8] sm:$0xff]  ;;  %v198_v6 = vld [vmem:[%s182_s20 + $0x10] sm:$0xff]  ;;  %s194_s26 = scalar_lea.vmem %s367_s3, %s297_s15 }
  0x11   : > { %v201_v2 = vld [vmem:[%s188_s23] sm:$0xff]  ;;  %v202_v5 = vld [vmem:[%s188_s23 + $0x8] sm:$0xff]  ;;  %v203_v7 = vld [vmem:[%s188_s23 + $0x10] sm:$0xff] }
  0x12   : > { %v211_v4 = vmul.f32 %v302_v0, %v201_v2  ;;  %v212_v8 = vmul.f32 %v302_v0, %v202_v5  ;;  %v213_v9 = vmul.f32 %v302_v0, %v203_v7  ;;  %v199_v10 = vld [vmem:[%s182_s20 + $0x18] sm:$0xff] }
  0x13   : > { %v204_v11 = vld [vmem:[%s188_s23 + $0x18] sm:$0xff] }
  0x14   : > { %v215_v12 = vadd.f32 %v211_v4, %v196_v1  ;;  %v214_v13 = vmul.f32 %v302_v0, %v204_v11  ;;  %v216_v14 = vadd.f32 %v212_v8, %v197_v3  ;;  %v217_v15 = vadd.f32 %v213_v9, %v198_v6 }
  0x16   : > { %219 = vst [vmem:[%s194_s26] sm:$0xff] %v215_v12  ;;  %v218_v16 = vadd.f32 %v214_v13, %v199_v10  ;;  %220 = vst [vmem:[%s194_s26 + $0x8] sm:$0xff] %v216_v14 }
  0x17   : > { %221 = vst [vmem:[%s194_s26 + $0x10] sm:$0xff] %v217_v15 }
  0x18   : > { %222 = vst [vmem:[%s194_s26 + $0x18] sm:$0xff] %v218_v16 }
  0x19 PF: > { %s13_s12 = sadd.s32 1, %s319_s12  }
  0x1a   : > { %p10_p4 = scmp.ge.s32.totalorder %s13_s12, 4  }
  0x1c   :  { %12 = sbr.rel (!%p10_p4) target bundleno = 1 (0x1), region = 65 }

// kernel: block_forward.37
= control target key start
LH: loop header
LB: loop body
LE: loop exit
PB: predicated region body
PF: predicated region fallthrough
CT: control target
= control target key end

     0   :  { %s374_s12 = smov 0   ;;  %s416_s0 = inlined_call_operand.vmem [shape: f32[64,128], index: 0, kind: input, shape index: {}]   ;;  %s417_s1 = inlined_call_operand.vmem [shape: f32[1,128], index: 1, kind: input, shape index: {}]   ;;  %s418_s2 = inlined_call_operand.vmem [shape: f32[1,128], index: 2, kind: input, shape index: {}]   ;;  %s419_s3 = inlined_call_operand.vmem [shape: f32[64,128], index: 3, kind: output, shape index: {}]  }
   0x1 LB: > { %s317_s13 = sadd.s32 4294967295, %s352_s12   ;;  %p321_p0 = scmp.ge.s32.totalorder %s352_s12, 1  ;;  %s352_s12 = sphi %s374_s12, %s13_s12  }
   0x2   : > { %p138_p1 = scmp.lt.s32.totalorder %s352_s12, 3 }
   0x4   : > { %p139_p2 = pnand %p321_p0, %p138_p1 }
   0x5   : > { %s322_s14 = sshll.u32 (!%p139_p2), %s317_s13, 2  ;;  %v326_v42 = vld [vmem:[%s417_s1] ss:$0 sm:$0xff] (!%p139_p2) }
   0x6   : > { %142 = sbr.rel (%p139_p2) target bundleno = 198 (0xc6), region = 32  ;;  %p163_p3 = scmp.lt.s32.totalorder (!%p139_p2), %s322_s14, 7  ;;  %v327_v44 = vld [vmem:[%s418_s2] ss:$0 sm:$0xff] (!%p139_p2) }
   0xd   : > { %s421_s14 = smov (!%p163_p3, %s322_s14), 7 }
   0xe   : > { %s323_s15 = sshll.u32 %s421_s14, 3 }
   0xf   : > { %s166_s18 = scalar_lea.vmem %s416_s0, %s323_s15  ;;  %s172_s25 = scalar_lea.vmem %s419_s3, %s323_s15 }
  0x10   : > { %v390_v0 = vld [vmem:[%s166_s18 + $0x10] sm:$0xff]  ;;  %v174_v1 = vld [vmem:[%s166_s18] sm:$0xff]  ;;  %v175_v3 = vld [vmem:[%s166_s18 + $0x8] sm:$0xff] }
  0x11   : > { %182 = vadd.xlane.f32.xlu1 %v390_v0  ;;  %178 = vadd.xlane.f32.xlu0 %v174_v1  ;;  %v191_v2 = vmul.f32 %v174_v1, %v174_v1  ;;  %v192_v4 = vmul.f32 %v175_v3, %v175_v3  ;;  %v393_v5 = vld [vmem:[%s166_s18 + $0x18] sm:$0xff]  ;;  %v193_v6 = vmul.f32 %v390_v0, %v390_v0 }
  0x12   : > { %v194_v7 = vmul.f32 %v393_v5, %v393_v5 }
  0x15   : > { %180 = vadd.xlane.f32.xlu0 %v175_v3  ;;  %195 = vadd.xlane.f32.xlu1 %v191_v2 }
  0x19   : > { %184 = vadd.xlane.f32.xlu0 %v393_v5  ;;  %197 = vadd.xlane.f32.xlu1 %v192_v4 }
  0x1d   : > { %199 = vadd.xlane.f32.xlu0 %v193_v6  ;;  %201 = vadd.xlane.f32.xlu1 %v194_v7 }
  0x9e   : > { %v183_v8 = vpop.xlane.xlu1 %182  ;;  %v179_v9 = vpop.xlane.xlu0 %178 }
  0x9f   : > { %v187_v10 = vmul.f32 0.03125, %v179_v9  ;;  %v189_v17 = vmul.f32 0.03125, %v183_v8 }
  0xa1   : > { %v207_v13 = vmul.f32 %v187_v10, %v187_v10  ;;  %v209_v26 = vmul.f32 %v189_v17, %v189_v17  ;;  %v227_v40 = vsub.f32 %v174_v1, %v187_v10  ;;  %v229_v50 = vsub.f32 %v390_v0, %v189_v17 }
  0xa2   : > { %v181_v11 = vpop.xlane.xlu0 %180  ;;  %v196_v12 = vpop.xlane.xlu1 %195 }
  0xa3   : > { %v188_v14 = vmul.f32 0.03125, %v181_v11  ;;  %v203_v15 = vmul.f32 0.03125, %v196_v12 }
  0xa5   : > { %v211_v16 = vsub.f32 %v203_v15, %v207_v13  ;;  %v208_v20 = vmul.f32 %v188_v14, %v188_v14  ;;  %v228_v45 = vsub.f32 %v175_v3, %v188_v14 }
  0xa6   : > { %v185_v18 = vpop.xlane.xlu0 %184  ;;  %v198_v19 = vpop.xlane.xlu1 %197 }
  0xa7   : > { %v215_v21 = vmax.f32 %v211_v16, 0.0  ;;  %v190_v22 = vmul.f32 0.03125, %v185_v18  ;;  %v204_v23 = vmul.f32 0.03125, %v198_v19 }
  0xa9   : > { %v219_v24 = vadd.f32 1e-05, %v215_v21  ;;  %v212_v25 = vsub.f32 %v204_v23, %v208_v20  ;;  %v210_v27 = vmul.f32 %v190_v22, %v190_v22  ;;  %v230_v53 = vsub.f32 %v393_v5, %v190_v22 }
  0xaa   : > { %v200_v28 = vpop.xlane.xlu0 %199  ;;  %v202_v29 = vpop.xlane.xlu1 %201 }
  0xab   : > { %338 = vrsqrt.f32 %v219_v24  ;;  %v216_v30 = vmax.f32 %v212_v25, 0.0  ;;  %v205_v31 = vmul.f32 0.03125, %v200_v28  ;;  %v206_v32 = vmul.f32 0.03125, %v202_v29 }
  0xad   : > { %v220_v33 = vadd.f32 1e-05, %v216_v30  ;;  %v213_v34 = vsub.f32 %v205_v31, %v209_v26  ;;  %v214_v35 = vsub.f32 %v206_v32, %v210_v27 }
  0xaf   : > { %340 = vrsqrt.f32 %v220_v33  ;;  %v217_v36 = vmax.f32 %v213_v34, 0.0  ;;  %v218_v37 = vmax.f32 %v214_v35, 0.0 }
  0xb1   : > { %v221_v38 = vadd.f32 1e-05, %v217_v36  ;;  %v222_v39 = vadd.f32 1e-05, %v218_v37 }
  0xb3   : > { %342 = vrsqrt.f32 %v221_v38 }
  0xb4   : > { %344 = vrsqrt.f32 %v222_v39 }
  0xb5   : > { %v339_v41 = vpop.eup %338 }
  0xb6   : > { %v231_v43 = vmul.f32 %v339_v41, %v227_v40 }
  0xb8   : > { %v242_v46 = vmul.f32 %v326_v42, %v231_v43 }
  0xb9   : > { %v341_v47 = vpop.eup %340 }
  0xba   : > { %v253_v48 = vadd.f32 %v327_v44, %v242_v46  ;;  %v232_v49 = vmul.f32 %v341_v47, %v228_v45 }
  0xbc   : > { %257 = vst [vmem:[%s172_s25] sm:$0xff] %v253_v48  ;;  %v243_v51 = vmul.f32 %v326_v42, %v232_v49 }
  0xbd   : > { %v343_v52 = vpop.eup %342 }
  0xbe   : > { %v345_v54 = vpop.eup %344  ;;  %v254_v55 = vadd.f32 %v327_v44, %v243_v51  ;;  %v233_v56 = vmul.f32 %v343_v52, %v229_v50 }
  0xbf   : > { %v234_v57 = vmul.f32 %v345_v54, %v230_v53 }
  0xc0   : > { %258 = vst [vmem:[%s172_s25 + $0x8] sm:$0xff] %v254_v55  ;;  %v244_v58 = vmul.f32 %v326_v42, %v233_v56 }
  0xc1   : > { %v245_v59 = vmul.f32 %v326_v42, %v234_v57 }
  0xc2   : > { %v255_v60 = vadd.f32 %v327_v44, %v244_v58 }
  0xc3   : > { %v256_v61 = vadd.f32 %v327_v44, %v245_v59 }
  0xc4   : > { %259 = vst [vmem:[%s172_s25 + $0x10] sm:$0xff] %v255_v60 }
  0xc5   : > { %260 = vst [vmem:[%s172_s25 + $0x18] sm:$0xff] %v256_v61 }
  0xc6 PF: > { %s13_s12 = sadd.s32 1, %s352_s12  }
  0xc7   : > { %p10_p4 = scmp.ge.s32.totalorder %s13_s12, 4  }
  0xc9   :  { %12 = sbr.rel (!%p10_p4) target bundleno = 1 (0x1), region = 62 }

// kernel: block_forward.34
= control target key start
LH: loop header
LB: loop body
LE: loop exit
PB: predicated region body
PF: predicated region fallthrough
CT: control target
= control target key end

     0   :  { %s788_s12 = smov 0   ;;  %s790_s13 = smov 0   ;;  %s1032_s0 = inlined_call_operand.vmem [shape: f32[9,64,128], index: 0, kind: input, shape index: {}]   ;;  %s1033_s1 = inlined_call_operand.vmem [shape: f32[9,1,128], index: 1, kind: input, shape index: {}]   ;;  %s1034_s2 = inlined_call_operand.vmem [shape: f32[1,128], index: 2, kind: input, shape index: {}]   ;;  %s1035_s3 = inlined_call_operand.vmem [shape: f32[64,128], index: 3, kind: output, shape index: {}]  }
   0x1   :  { %s792_s14 = smov 0  }
   0x2 LB: > { %s648_s15 = sadd.s32 4294967295, %s766_s14   ;;  %s805_s16 = sadd.s32 1, %s766_s14   ;;  %s766_s14 = sphi %s792_s14, %s1038_s14   ;;  %s762_s13 = sphi %s790_s13, %s1037_s13   ;;  %s758_s12 = sphi %s788_s12, %s1036_s12  }
   0x3   : > { %s17_s17 = ssub.s32 %s766_s14, %s805_s16  ;;  %s20_s18 = sadd.s32 1, %s762_s13 }
   0x4   : > { %p18_p0 = scmp.eq.s32.totalorder %s17_s17, 0  ;;  %p27_p1 = scmp.ne.s32.totalorder %s762_s13, %s758_s12 }
   0x5   : > { %p28_p2 = scmp.eq.s32.totalorder %s766_s14, 0  ;;  %p651_p4 = scmp.ge.s32.totalorder %s766_s14, 2 }
   0x6   : > { %s814_s19 = scalar_select %p18_p0, %s762_s13, %s20_s18  }
   0x7   : > { %p29_p3 = por %p28_p2, %p27_p1  ;;  %127 = sbr.rel (%p651_p4) target bundleno = 37 (0x25), region = 24 }
   0xe   : > { %130 = sbr.rel (!%p29_p3) target bundleno = 37 (0x25), region = 28  ;;  %s132_s20 = sand.u32 (%p29_p3), 1, %s762_s13  }
   0xf   : > { %s709_s21 = sshll.u32 (%p29_p3), %s766_s14, 5  ;;  %s710_s22 = smul.u32 (%p29_p3), 288, %s132_s20 }
  0x10   : > { %s822_s25 = scalar_lea.vmem (%p29_p3), %s1032_s0, %s709_s21 }
  0x11   : > { %v235_v0 = vld [vmem:[%s822_s25] sm:$0xff] (%p29_p3)  ;;  %v237_v1 = vld [vmem:[%s822_s25 + $0x8] sm:$0xff] (%p29_p3)  ;;  %v239_v2 = vld [vmem:[%s822_s25 + $0x10] sm:$0xff] (%p29_p3)  ;;  %s830_s26 = scalar_lea.vmem (%p29_p3), [#allocation2], %s710_s22 }
  0x12   : > { %v241_v3 = vld [vmem:[%s822_s25 + $0x18] sm:$0xff] (%p29_p3)  ;;  %v243_v4 = vld [vmem:[%s822_s25 + $0x40] sm:$0xff] (%p29_p3)  ;;  %v245_v5 = vld [vmem:[%s822_s25 + $0x48] sm:$0xff] (%p29_p3)  ;;  %236 = vst [vmem:[%s830_s26] sm:$0xff] (%p29_p3), %v235_v0 }
  0x13   : > { %238 = vst [vmem:[%s830_s26 + $0x8] sm:$0xff] (%p29_p3), %v237_v1  ;;  %240 = vst [vmem:[%s830_s26 + $0x10] sm:$0xff] (%p29_p3), %v239_v2  ;;  %v247_v6 = vld [vmem:[%s822_s25 + $0x50] sm:$0xff] (%p29_p3)  ;;  %v249_v7 = vld [vmem:[%s822_s25 + $0x58] sm:$0xff] (%p29_p3) }
  0x14   : > { %242 = vst [vmem:[%s830_s26 + $0x18] sm:$0xff] (%p29_p3), %v241_v3  ;;  %244 = vst [vmem:[%s830_s26 + $0x20] sm:$0xff] (%p29_p3), %v243_v4  ;;  %v251_v8 = vld [vmem:[%s822_s25 + $0x80] sm:$0xff] (%p29_p3)  ;;  %v253_v9 = vld [vmem:[%s822_s25 + $0x88] sm:$0xff] (%p29_p3) }
  0x15   : > { %246 = vst [vmem:[%s830_s26 + $0x28] sm:$0xff] %v245_v5  ;;  %248 = vst [vmem:[%s830_s26 + $0x30] sm:$0xff] %v247_v6  ;;  %v255_v10 = vld [vmem:[%s822_s25 + $0x90] sm:$0xff]  ;;  %v257_v11 = vld [vmem:[%s822_s25 + $0x98] sm:$0xff] }
  0x16   : > { %250 = vst [vmem:[%s830_s26 + $0x38] sm:$0xff] %v249_v7  ;;  %252 = vst [vmem:[%s830_s26 + $0x40] sm:$0xff] %v251_v8  ;;  %v259_v12 = vld [vmem:[%s822_s25 + $0xc0] sm:$0xff]  ;;  %v261_v13 = vld [vmem:[%s822_s25 + $0xc8] sm:$0xff] }
  0x17   : > { %254 = vst [vmem:[%s830_s26 + $0x48] sm:$0xff] %v253_v9  ;;  %256 = vst [vmem:[%s830_s26 + $0x50] sm:$0xff] %v255_v10  ;;  %v263_v14 = vld [vmem:[%s822_s25 + $0xd0] sm:$0xff]  ;;  %v265_v15 = vld [vmem:[%s822_s25 + $0xd8] sm:$0xff] }
  0x18   : > { %258 = vst [vmem:[%s830_s26 + $0x58] sm:$0xff] %v257_v11  ;;  %260 = vst [vmem:[%s830_s26 + $0x60] sm:$0xff] %v259_v12  ;;  %v267_v16 = vld [vmem:[%s822_s25 + $0x100] sm:$0xff]  ;;  %v269_v17 = vld [vmem:[%s822_s25 + $0x108] sm:$0xff] }
  0x19   : > { %262 = vst [vmem:[%s830_s26 + $0x68] sm:$0xff] %v261_v13  ;;  %264 = vst [vmem:[%s830_s26 + $0x70] sm:$0xff] %v263_v14  ;;  %v271_v18 = vld [vmem:[%s822_s25 + $0x110] sm:$0xff]  ;;  %v273_v19 = vld [vmem:[%s822_s25 + $0x118] sm:$0xff] }
  0x1a   : > { %266 = vst [vmem:[%s830_s26 + $0x78] sm:$0xff] %v265_v15  ;;  %268 = vst [vmem:[%s830_s26 + $0x80] sm:$0xff] %v267_v16  ;;  %v275_v20 = vld [vmem:[%s822_s25 + $0x140] sm:$0xff]  ;;  %v277_v21 = vld [vmem:[%s822_s25 + $0x148] sm:$0xff] }
  0x1b   : > { %270 = vst [vmem:[%s830_s26 + $0x88] sm:$0xff] %v269_v17  ;;  %272 = vst [vmem:[%s830_s26 + $0x90] sm:$0xff] %v271_v18  ;;  %v279_v22 = vld [vmem:[%s822_s25 + $0x150] sm:$0xff]  ;;  %v281_v23 = vld [vmem:[%s822_s25 + $0x158] sm:$0xff] }
  0x1c   : > { %274 = vst [vmem:[%s830_s26 + $0x98] sm:$0xff] %v273_v19  ;;  %276 = vst [vmem:[%s830_s26 + $0xa0] sm:$0xff] %v275_v20  ;;  %v283_v24 = vld [vmem:[%s822_s25 + $0x180] sm:$0xff]  ;;  %v285_v25 = vld [vmem:[%s822_s25 + $0x188] sm:$0xff] }
  0x1d   : > { %278 = vst [vmem:[%s830_s26 + $0xa8] sm:$0xff] %v277_v21  ;;  %280 = vst [vmem:[%s830_s26 + $0xb0] sm:$0xff] %v279_v22  ;;  %v287_v26 = vld [vmem:[%s822_s25 + $0x190] sm:$0xff]  ;;  %v289_v27 = vld [vmem:[%s822_s25 + $0x198] sm:$0xff] }
  0x1e   : > { %282 = vst [vmem:[%s830_s26 + $0xb8] sm:$0xff] %v281_v23  ;;  %284 = vst [vmem:[%s830_s26 + $0xc0] sm:$0xff] %v283_v24  ;;  %v291_v28 = vld [vmem:[%s822_s25 + $0x1c0] sm:$0xff]  ;;  %v293_v29 = vld [vmem:[%s822_s25 + $0x1c8] sm:$0xff] }
  0x1f   : > { %286 = vst [vmem:[%s830_s26 + $0xc8] sm:$0xff] %v285_v25  ;;  %288 = vst [vmem:[%s830_s26 + $0xd0] sm:$0xff] %v287_v26  ;;  %v295_v30 = vld [vmem:[%s822_s25 + $0x1d0] sm:$0xff]  ;;  %v297_v31 = vld [vmem:[%s822_s25 + $0x1d8] sm:$0xff] }
  0x20   : > { %290 = vst [vmem:[%s830_s26 + $0xd8] sm:$0xff] %v289_v27  ;;  %292 = vst [vmem:[%s830_s26 + $0xe0] sm:$0xff] %v291_v28  ;;  %v299_v32 = vld [vmem:[%s822_s25 + $0x200] sm:$0xff]  ;;  %v301_v33 = vld [vmem:[%s822_s25 + $0x208] sm:$0xff] }
  0x21   : > { %294 = vst [vmem:[%s830_s26 + $0xe8] sm:$0xff] %v293_v29  ;;  %296 = vst [vmem:[%s830_s26 + $0xf0] sm:$0xff] %v295_v30  ;;  %v303_v34 = vld [vmem:[%s822_s25 + $0x210] sm:$0xff]  ;;  %v305_v35 = vld [vmem:[%s822_s25 + $0x218] sm:$0xff] }
  0x22   : > { %298 = vst [vmem:[%s830_s26 + $0xf8] sm:$0xff] %v297_v31  ;;  %300 = vst [vmem:[%s830_s26 + $0x100] sm:$0xff] %v299_v32 }
  0x23   : > { %302 = vst [vmem:[%s830_s26 + $0x108] sm:$0xff] %v301_v33  ;;  %304 = vst [vmem:[%s830_s26 + $0x110] sm:$0xff] %v303_v34 }
  0x24   : > { %306 = vst [vmem:[%s830_s26 + $0x118] sm:$0xff] %v305_v35 }
  0x25 PF: > { %p654_p5 = scmp.ge.s32.totalorder %s766_s14, 1  ;;  %p311_p6 = scmp.lt.s32.totalorder %s766_s14, 3 }
  0x27   : > { %p312_p7 = pnand %p654_p5, %p311_p6 }
  0x28   : > { %s318_s27 = sand.u32 (!%p312_p7), 1, %s758_s12   ;;  %v657_v36 = vld [vmem:[%s1033_s1] ss:$0 sm:$0xff] (!%p312_p7)  ;;  %v907_v37 = vld [vmem:[%s1033_s1 + $0x1] ss:$0 sm:$0xff] (!%p312_p7) }
  0x29   : > { %315 = sbr.rel (%p312_p7) target bundleno = 101 (0x65), region = 66  ;;  %v912_v38 = vld [vmem:[%s1033_s1 + $0x2] ss:$0 sm:$0xff] (!%p312_p7)  ;;  %v917_v39 = vld [vmem:[%s1033_s1 + $0x3] ss:$0 sm:$0xff] (!%p312_p7) }
  0x2a   : > { %s711_s28 = smul.u32 (!%p312_p7), 288, %s318_s27  ;;  %v931_v48 = vld [vmem:[%s1033_s1 + $0x4] ss:$0 sm:$0xff] (!%p312_p7)  ;;  %v936_v49 = vld [vmem:[%s1033_s1 + $0x5] ss:$0 sm:$0xff] (!%p312_p7) }
  0x2b   : > { %v942_v52 = vld [vmem:[%s1033_s1 + $0x6] ss:$0 sm:$0xff] (!%p312_p7)  ;;  %v950_v56 = vld [vmem:[%s1033_s1 + $0x7] ss:$0 sm:$0xff] (!%p312_p7)  ;;  %v974_v17 = vld [vmem:[%s1033_s1 + $0x8] ss:$0 sm:$0xff] (!%p312_p7) }
  0x2c   : > { %s919_s10 = scalar_lea.vmem (!%p312_p7), [#allocation2], %s711_s28  ;;  %s655_s28 = sshll.u32 (!%p312_p7), %s648_s15, 2 }
  0x2d   : > { %v348_v40 = vld [vmem:[%s919_s10] sm:$0xff] (!%p312_p7)  ;;  %v349_v53 = vld [vmem:[%s919_s10 + $0x8] sm:$0xff] (!%p312_p7)  ;;  %v350_v6 = vld [vmem:[%s919_s10 + $0x10] sm:$0xff] (!%p312_p7)  ;;  %p343_p8 = scmp.lt.s32.totalorder (!%p312_p7), %s655_s28, 7 }
  0x2e   : > { %v658_v41 = vld [vmem:[%s919_s10 + $0x20] sm:$0xff] (!%p312_p7)  ;;  %v359_v43 = vmul.f32 (!%p312_p7), %v657_v36, %v348_v40  ;;  %v659_v54 = vld [vmem:[%s919_s10 + $0x28] sm:$0xff] (!%p312_p7)  ;;  %v360_v57 = vmul.f32 (!%p312_p7), %v657_v36, %v349_v53  ;;  %v660_v7 = vld [vmem:[%s919_s10 + $0x30] sm:$0xff] (!%p312_p7)  ;;  %v361_v10 = vmul.f32 (!%p312_p7), %v657_v36, %v350_v6 }
  0x2f   : > { %v664_v42 = vld [vmem:[%s919_s10 + $0x40] sm:$0xff] (!%p312_p7)  ;;  %v380_v44 = vmul.f32 (!%p312_p7), %v907_v37, %v658_v41  ;;  %v381_v58 = vmul.f32 (!%p312_p7), %v907_v37, %v659_v54  ;;  %v665_v59 = vld [vmem:[%s919_s10 + $0x48] sm:$0xff] (!%p312_p7)  ;;  %v382_v11 = vmul.f32 (!%p312_p7), %v907_v37, %v660_v7  ;;  %v666_v12 = vld [vmem:[%s919_s10 + $0x50] sm:$0xff] (!%p312_p7) }
  0x30   : > { %v401_v45 = vmul.f32 %v912_v38, %v664_v42  ;;  %v670_v46 = vld [vmem:[%s919_s10 + $0x60] sm:$0xff]  ;;  %v671_v60 = vld [vmem:[%s919_s10 + $0x68] sm:$0xff]  ;;  %v402_v1 = vmul.f32 %v912_v38, %v665_v59  ;;  %v672_v13 = vld [vmem:[%s919_s10 + $0x70] sm:$0xff]  ;;  %v403_v21 = vmul.f32 %v912_v38, %v666_v12  ;;  %s1040_s28 = smov (!%p343_p8, %s655_s28), 7 }
  0x31   : > { %v676_v47 = vld [vmem:[%s919_s10 + $0x80] sm:$0xff]  ;;  %v384_v50 = vadd.f32 %v380_v44, %v359_v43  ;;  %v422_v51 = vmul.f32 %v917_v39, %v670_v46  ;;  %v677_v2 = vld [vmem:[%s919_s10 + $0x88] sm:$0xff]  ;;  %v385_v3 = vadd.f32 %v381_v58, %v360_v57  ;;  %v423_v4 = vmul.f32 %v917_v39, %v671_v60  ;;  %v678_v14 = vld [vmem:[%s919_s10 + $0x90] sm:$0xff]  ;;  %s656_s29 = sshll.u32 %s1040_s28, 3 }
  0x32   : > { %v682_v55 = vld [vmem:[%s919_s10 + $0xa0] sm:$0xff]  ;;  %v443_v62 = vmul.f32 %v931_v48, %v676_v47  ;;  %v683_v5 = vld [vmem:[%s919_s10 + $0xa8] sm:$0xff]  ;;  %v444_v19 = vmul.f32 %v931_v48, %v677_v2  ;;  %v386_v24 = vadd.f32 %v382_v11, %v361_v10  ;;  %v424_v25 = vmul.f32 %v917_v39, %v672_v13  ;;  %v684_v26 = vld [vmem:[%s919_s10 + $0xb0] sm:$0xff]  ;;  %s346_s30 = scalar_lea.vmem %s1035_s3, %s656_s29 }
  0x33   : > { %v405_v61 = vadd.f32 %v401_v45, %v384_v50  ;;  %v688_v63 = vld [vmem:[%s919_s10 + $0xc0] sm:$0xff]  ;;  %v464_v9 = vmul.f32 %v936_v49, %v682_v55  ;;  %v406_v18 = vadd.f32 %v402_v1, %v385_v3  ;;  %v689_v20 = vld [vmem:[%s919_s10 + $0xc8] sm:$0xff]  ;;  %v351_v27 = vld [vmem:[%s919_s10 + $0x18] sm:$0xff]  ;;  %v465_v30 = vmul.f32 %v936_v49, %v683_v5 }
  0x34   : > { %v694_v0 = vld [vmem:[%s919_s10 + $0xe0] sm:$0xff]  ;;  %v485_v15 = vmul.f32 %v942_v52, %v688_v63  ;;  %v661_v28 = vld [vmem:[%s919_s10 + $0x38] sm:$0xff]  ;;  %v445_v31 = vmul.f32 %v931_v48, %v678_v14  ;;  %v362_v32 = vmul.f32 %v657_v36, %v351_v27  ;;  %v695_v40 = vld [vmem:[%s919_s10 + $0xe8] sm:$0xff]  ;;  %v407_v41 = vadd.f32 %v403_v21, %v386_v24 }
  0x35   : > { %v426_v8 = vadd.f32 %v422_v51, %v405_v61  ;;  %v700_v16 = vld [vmem:[%s919_s10 + $0x100] sm:$0xff]  ;;  %v506_v23 = vmul.f32 %v950_v56, %v694_v0  ;;  %v427_v29 = vadd.f32 %v423_v4, %v406_v18  ;;  %v667_v33 = vld [vmem:[%s919_s10 + $0x58] sm:$0xff]  ;;  %v690_v42 = vld [vmem:[%s919_s10 + $0xd0] sm:$0xff]  ;;  %v383_v43 = vmul.f32 %v907_v37, %v661_v28 }
  0x36   : > { %v673_v34 = vld [vmem:[%s919_s10 + $0x78] sm:$0xff]  ;;  %v404_v44 = vmul.f32 %v912_v38, %v667_v33  ;;  %v527_v45 = vmul.f32 %v974_v17, %v700_v16  ;;  %v486_v47 = vmul.f32 %v942_v52, %v689_v20  ;;  %v466_v36 = vmul.f32 %v936_v49, %v684_v26  ;;  %v701_v53 = vld [vmem:[%s919_s10 + $0x108] sm:$0xff]  ;;  %v696_v55 = vld [vmem:[%s919_s10 + $0xf0] sm:$0xff] }
  0x37   : > { %v447_v22 = vadd.f32 %v443_v62, %v426_v8  ;;  %v448_v46 = vadd.f32 %v444_v19, %v427_v29  ;;  %v679_v50 = vld [vmem:[%s919_s10 + $0x98] sm:$0xff]  ;;  %v428_v54 = vadd.f32 %v424_v25, %v407_v41  ;;  %v387_v57 = vadd.f32 %v383_v43, %v362_v32  ;;  %v702_v63 = vld [vmem:[%s919_s10 + $0x110] sm:$0xff]  ;;  %v706_v2 = vld [vmem:[%s1034_s2] ss:$0 sm:$0xff] }
  0x38   : > { %v425_v37 = vmul.f32 %v917_v39, %v673_v34  ;;  %v507_v38 = vmul.f32 %v950_v56, %v695_v40  ;;  %v487_v59 = vmul.f32 %v942_v52, %v690_v42  ;;  %v685_v60 = vld [vmem:[%s919_s10 + $0xb8] sm:$0xff]  ;;  %v446_v1 = vmul.f32 %v931_v48, %v679_v50 }
  0x39   : > { %v468_v35 = vadd.f32 %v464_v9, %v447_v22  ;;  %v469_v58 = vadd.f32 %v465_v30, %v448_v46  ;;  %v449_v62 = vadd.f32 %v445_v31, %v428_v54  ;;  %v408_v0 = vadd.f32 %v404_v44, %v387_v57  ;;  %v691_v5 = vld [vmem:[%s919_s10 + $0xd8] sm:$0xff] }
  0x3a   : > { %v528_v39 = vmul.f32 %v974_v17, %v701_v53  ;;  %v508_v4 = vmul.f32 %v950_v56, %v696_v55  ;;  %v467_v9 = vmul.f32 %v936_v49, %v685_v60  ;;  %v529_v11 = vmul.f32 %v974_v17, %v702_v63  ;;  %v697_v48 = vld [vmem:[%s919_s10 + $0xf8] sm:$0xff] }
  0x3b   : > { %v489_v51 = vadd.f32 %v485_v15, %v468_v35  ;;  %v490_v3 = vadd.f32 %v486_v47, %v469_v58  ;;  %v470_v7 = vadd.f32 %v466_v36, %v449_v62  ;;  %v429_v8 = vadd.f32 %v425_v37, %v408_v0  ;;  %v703_v18 = vld [vmem:[%s919_s10 + $0x118] sm:$0xff] }
  0x3c   : > { %v488_v15 = vmul.f32 %v942_v52, %v691_v5  ;;  %v509_v22 = vmul.f32 %v950_v56, %v697_v48  ;;  %v530_v26 = vmul.f32 %v974_v17, %v703_v18 }
  0x3d   : > { %v510_v61 = vadd.f32 %v506_v23, %v489_v51  ;;  %v511_v10 = vadd.f32 %v507_v38, %v490_v3  ;;  %v491_v13 = vadd.f32 %v487_v59, %v470_v7  ;;  %v450_v14 = vadd.f32 %v446_v1, %v429_v8 }
  0x3f   : > { %v531_v6 = vadd.f32 %v527_v45, %v510_v61  ;;  %v532_v16 = vadd.f32 %v528_v39, %v511_v10  ;;  %v512_v20 = vadd.f32 %v508_v4, %v491_v13  ;;  %v471_v21 = vadd.f32 %v467_v9, %v450_v14 }
  0x41   : > { %v542_v12 = vadd.f32 %v706_v2, %v531_v6  ;;  %v543_v23 = vadd.f32 %v706_v2, %v532_v16  ;;  %v533_v25 = vadd.f32 %v529_v11, %v512_v20  ;;  %v492_v49 = vadd.f32 %v488_v15, %v471_v21 }
  0x43   : > { %v546_v19 = vmul.f32 %v542_v12, %v542_v12  ;;  %v547_v27 = vmul.f32 %v543_v23, %v543_v23  ;;  %v544_v29 = vadd.f32 %v706_v2, %v533_v25  ;;  %v513_v30 = vadd.f32 %v509_v22, %v492_v49 }
  0x45   : > { %v550_v24 = vmul.f32 %v546_v19, %v542_v12  ;;  %v551_v31 = vmul.f32 %v547_v27, %v543_v23  ;;  %v548_v32 = vmul.f32 %v544_v29, %v544_v29  ;;  %v534_v33 = vadd.f32 %v530_v26, %v513_v30 }
  0x47   : > { %v554_v28 = vmul.f32 0.044715, %v550_v24  ;;  %v555_v34 = vmul.f32 0.044715, %v551_v31  ;;  %v552_v40 = vmul.f32 %v548_v32, %v544_v29  ;;  %v545_v41 = vadd.f32 %v706_v2, %v534_v33 }
  0x49   : > { %v558_v52 = vadd.f32 %v554_v28, %v542_v12  ;;  %v559_v56 = vadd.f32 %v555_v34, %v543_v23  ;;  %v556_v42 = vmul.f32 0.044715, %v552_v40  ;;  %v549_v43 = vmul.f32 %v545_v41, %v545_v41 }
  0x4b   : > { %v562_v35 = vmul.f32 0.7978846, %v558_v52  ;;  %v563_v44 = vmul.f32 0.7978846, %v559_v56  ;;  %v560_v17 = vadd.f32 %v556_v42, %v544_v29  ;;  %v553_v45 = vmul.f32 %v549_v43, %v545_v41 }
  0x4d   : > { %736 = vtanh.f32 %v562_v35  ;;  %v564_v46 = vmul.f32 0.7978846, %v560_v17  ;;  %v557_v47 = vmul.f32 0.044715, %v553_v45 }
  0x4e   : > { %738 = vtanh.f32 %v563_v44 }
  0x4f   : > { %740 = vtanh.f32 %v564_v46  ;;  %v561_v36 = vadd.f32 %v557_v47, %v545_v41 }
  0x51   : > { %v565_v50 = vmul.f32 0.7978846, %v561_v36 }
  0x53   : > { %742 = vtanh.f32 %v565_v50 }
  0x57   : > { %v737_v51 = vpop.eup %736 }
  0x58   : > { %v570_v53 = vadd.f32 1.0, %v737_v51  ;;  %v739_v54 = vpop.eup %738 }
  0x59   : > { %v571_v57 = vadd.f32 1.0, %v739_v54  ;;  %v741_v58 = vpop.eup %740 }
  0x5a   : > { %v574_v55 = vmul.f32 0.5, %v570_v53  ;;  %v572_v59 = vadd.f32 1.0, %v741_v58 }
  0x5b   : > { %v575_v38 = vmul.f32 0.5, %v571_v57 }
  0x5c   : > { %v578_v37 = vmul.f32 %v574_v55, %v542_v12  ;;  %v576_v61 = vmul.f32 0.5, %v572_v59 }
  0x5d   : > { %v579_v60 = vmul.f32 %v575_v38, %v543_v23  ;;  %v743_v62 = vpop.eup %742 }
  0x5e   : > { %582 = vst [vmem:[%s346_s30] sm:$0xff] %v578_v37  ;;  %v580_v63 = vmul.f32 %v576_v61, %v544_v29  ;;  %v573_v0 = vadd.f32 1.0, %v743_v62 }
  0x5f   : > { %583 = vst [vmem:[%s346_s30 + $0x8] sm:$0xff] %v579_v60 }
  0x60   : > { %584 = vst [vmem:[%s346_s30 + $0x10] sm:$0xff] %v580_v63  ;;  %v577_v1 = vmul.f32 0.5, %v573_v0 }
  0x62   : > { %v581_v2 = vmul.f32 %v577_v1, %v545_v41 }
  0x64   : > { %585 = vst [vmem:[%s346_s30 + $0x18] sm:$0xff] %v581_v2 }
  0x65 PF: > { %p10_p9 = scmp.ge.s32.totalorder %s805_s16, 4   ;;  %s1036_s12 = smov %s762_s13 }
  0x66   : > { %s1037_s13 = smov %s814_s19  ;;  %s1038_s14 = smov %s805_s16 }
  0x67   :  { %12 = sbr.rel (!%p10_p9) target bundleno = 2 (0x2), region = 121 }

</bundles_post_ra>
